<compile_context>
chip_gen: v7x
topology: tpu7x:2x2x1
jax: 0.10.0
libtpu: 0.0.40
codegen_flags: <defaults>
</compile_context>

<pallas_src>
import numpy as np
import jax
import jax.numpy as jnp
from jax.experimental import pallas as pl
from jax.experimental.pallas import tpu as pltpu


# ----------------------------------------------------------------------------
# Padded-scratch geometry: activations live in a (W+2)-stride row-major layout
#   valid pixel (h, w)  ->  row  BASE + h*(W+2) + w
# so every 3x3 tap of the conv is one contiguous slice of length L = H*(W+2)-2.
# ----------------------------------------------------------------------------
_B16, _L16, _PR16 = 25, 286, 336      # 16x16 x16ch buffer (input of to_32)
_B8,  _L8,  _PR8  = 17,  78, 112      # 8x8  x32ch buffer (res1 / to_64)
_B4,  _L4,  _PR4  = 9,   22,  40      # 4x4  x64ch buffer (res2 / final pool)


def _conv_dims(repeat_cnt):
    """(cin, cout) of every conv in execution order."""
    return ([(3, 16), (16, 32)] + [(32, 32)] * repeat_cnt
            + [(32, 64)] + [(64, 64)] * repeat_cnt)


def _weight_offsets(repeat_cnt):
    """Row offset / K / Cout of each conv inside the packed weight blob."""
    offs, off = [], 0
    for idx, (cin, cout) in enumerate(_conv_dims(repeat_cnt)):
        k = 32 if idx == 0 else 9 * cin          # conv1's K (27) padded to 32
        offs.append((off, k, cout))
        off += k
    return offs, off


# ----------------------------------------------------------------------------
# Host-built constants (pool matrices / edge masks) - trace-time numpy.
# ----------------------------------------------------------------------------
def _pool_blob_np():
    """All four 2x2-average matrices packed into one (180, 286) array.

    P1 rows [0,72):   one 8-image-row chunk of the 32x32 pool, output rows are
                      already in the 16x16 padded (stride-18) layout.
    P2 rows [72,152): full 16x16 -> 8x8 pool, input = padded span of 286,
                      output rows in the 8x8 padded (stride-10) layout.
    P3 rows [152,176): 8x8 -> 4x4 pool into the 4x4 padded (stride-6) layout.
    P4 rows [176,180): 4x4 -> 2x2 pool, flat (h2*2 + w2) output rows.
    """
    blob = np.zeros((180, 286), np.float32)
    for j in range(4):                                        # P1
        for w2 in range(16):
            r = j * 18 + 1 + w2
            for di in (0, 1):
                for dj in (0, 1):
                    blob[r, (2 * j + di) * 32 + 2 * w2 + dj] = 0.25
    for h2 in range(8):                                       # P2
        for w2 in range(8):
            r = 72 + h2 * 10 + 1 + w2
            for di in (0, 1):
                for dj in (0, 1):
                    blob[r, (2 * h2 + di) * 18 + 2 * w2 + dj] = 0.25
    for h2 in range(4):                                       # P3
        for w2 in range(4):
            r = 152 + h2 * 6 + 1 + w2
            for di in (0, 1):
                for dj in (0, 1):
                    blob[r, (2 * h2 + di) * 10 + 2 * w2 + dj] = 0.25
    for h2 in range(2):                                       # P4
        for w2 in range(2):
            r = 176 + h2 * 2 + w2
            for di in (0, 1):
                for dj in (0, 1):
                    blob[r, (2 * h2 + di) * 6 + 2 * w2 + dj] = 0.25
    return blob


def _masks_np():
    """0/1 column masks killing the padding columns of the res-block spans."""
    m = np.zeros((80, 2), np.float32)
    m[:_L8, 0] = (np.arange(_L8) % 10 < 8).astype(np.float32)
    m[:_L4, 1] = (np.arange(_L4) % 6 < 4).astype(np.float32)
    return m


def _input_im2col(x_nchw):
    """NCHW image -> (N, 1024, 32) bf16 im2col slab for the first conv."""
    n = x_nchw.shape[0]
    xp = jnp.pad(x_nchw.astype(jnp.float32), ((0, 0), (0, 0), (1, 1), (1, 1)))
    taps = [xp[:, :, dy:dy + 32, dx:dx + 32]
            for dy in range(3) for dx in range(3)]
    col = jnp.stack(taps, axis=1)                       # (N, 9, 3, 32, 32)
    col = jnp.transpose(col, (0, 3, 4, 1, 2)).reshape(n, 1024, 27)
    col = jnp.pad(col, ((0, 0), (0, 0), (0, 5)))        # K: 27 -> 32
    return col.astype(jnp.bfloat16)


# ----------------------------------------------------------------------------
# Fused kernel (one sample per grid step)
# ----------------------------------------------------------------------------
def _make_kernel(repeat_cnt, offs):
    n_conv = 3 + 2 * repeat_cnt

    def kernel(x_ref, w_ref, p_ref, sb_ref, wl_ref, mask_ref, o_ref,
               pad16, pad8, pad4, col2, col8, col4):
        f32 = jnp.float32

        # Zero only the halo rows (cheap, and safe when grid steps are split
        # across TensorCores); the interior is fully rewritten every step.
        pad16[0:_B16 - 1, :] = jnp.zeros((_B16 - 1, 16), f32)
        pad16[_B16 - 1 + 288:_PR16, :] = jnp.zeros((_PR16 - _B16 + 1 - 288, 16), f32)
        pad8[0:_B8 - 1, :] = jnp.zeros((_B8 - 1, 32), f32)
        pad8[_B8 - 1 + 80:_PR8, :] = jnp.zeros((_PR8 - _B8 + 1 - 80, 32), f32)
        pad4[0:_B4 - 1, :] = jnp.zeros((_B4 - 1, 64), f32)
        pad4[_B4 - 1 + 24:_PR4, :] = jnp.zeros((_PR4 - _B4 + 1 - 24, 64), f32)

        def conv(col_val, li):
            """One matmul + folded BatchNorm + ReLU for conv layer `li`."""
            off, k, cout = offs[li]
            acc = jnp.dot(col_val, w_ref[off:off + k, :cout],
                          preferred_element_type=f32)
            scale = sb_ref[2 * li:2 * li + 1, :cout]
            bias = sb_ref[2 * li + 1:2 * li + 2, :cout]
            return jnp.maximum(acc * scale + bias, 0.0)

        def build_col(pad, col, base, w, lc, cin):
            """im2col: 9 shifted contiguous row slices -> (lc, 9*cin) slab."""
            wp = w + 2
            for dy in range(3):
                for dx in range(3):
                    k = dy * 3 + dx
                    s = base + (dy - 1) * wp + (dx - 1)
                    col[:, k * cin:(k + 1) * cin] = (
                        pad[s:s + lc, :].astype(jnp.bfloat16))

        # ---------------- to_16 + pool1: 32x32x3 -> 16x16x16 ----------------
        y1 = conv(x_ref[0], 0)                       # (1024, 16) f32
        y1b = y1.astype(jnp.bfloat16)
        p1 = p_ref[0:72, 0:256]
        for g in range(4):                           # 8 image rows per chunk
            blk = jnp.dot(p1, y1b[g * 256:(g + 1) * 256, :],
                          preferred_element_type=f32)
            pad16[_B16 - 1 + 72 * g:_B16 - 1 + 72 * (g + 1), :] = blk

        # ---------------- to_32 + pool2: 16x16x16 -> 8x8x32 -----------------
        build_col(pad16, col2, _B16, 16, _L16, 16)
        y2 = conv(col2[...], 1)                      # (286, 32) f32
        p2 = p_ref[72:152, :]
        pad8[_B8 - 1:_B8 - 1 + 80, :] = jnp.dot(
            p2, y2.astype(jnp.bfloat16), preferred_element_type=f32)

        # ---------------- res_block1 x repeat_cnt at 8x8x32 -----------------
        m8 = mask_ref[0:_L8, 0:1]
        for i in range(repeat_cnt):
            li = 2 + i
            enter = pad8[_B8:_B8 + _L8, :]
            build_col(pad8, col8, _B8, 8, _L8, 32)
            pad8[_B8:_B8 + _L8, :] = conv(col8[...], li) * m8
            build_col(pad8, col8, _B8, 8, _L8, 32)
            h2 = conv(col8[...], li)                 # same conv+norm reused
            pad8[_B8:_B8 + _L8, :] = jnp.maximum(h2 + enter, 0.0) * m8

        # ---------------- to_64 + pool3: 8x8x32 -> 4x4x64 -------------------
        li64 = 2 + repeat_cnt
        build_col(pad8, col8, _B8, 8, _L8, 32)
        y3 = conv(col8[...], li64)                   # (78, 64) f32
        p3 = p_ref[152:176, 0:78]
        pad4[_B4 - 1:_B4 - 1 + 24, :] = jnp.dot(
            p3, y3.astype(jnp.bfloat16), preferred_element_type=f32)

        # ---------------- res_block2 x repeat_cnt at 4x4x64 -----------------
        m4 = mask_ref[0:_L4, 1:2]
        for i in range(repeat_cnt):
            li = 3 + repeat_cnt + i
            enter = pad4[_B4:_B4 + _L4, :]
            build_col(pad4, col4, _B4, 4, _L4, 64)
            pad4[_B4:_B4 + _L4, :] = conv(col4[...], li) * m4
            build_col(pad4, col4, _B4, 4, _L4, 64)
            h2 = conv(col4[...], li)
            pad4[_B4:_B4 + _L4, :] = jnp.maximum(h2 + enter, 0.0) * m4

        # --------- final pool 4x4 -> 2x2, flatten (NCHW), Linear(256,10) ----
        p4 = p_ref[176:180, 0:22]
        flat = jnp.dot(p4, pad4[_B4:_B4 + _L4, :].astype(jnp.bfloat16),
                       preferred_element_type=f32)   # (4, 64)
        acc = sb_ref[2 * n_conv:2 * n_conv + 1, :]   # (1, 128) linear bias
        for r in range(4):
            acc = acc + jnp.dot(flat[r:r + 1, :].astype(jnp.bfloat16),
                                wl_ref[r], preferred_element_type=f32)
        o_ref[0] = acc

    return kernel


# ----------------------------------------------------------------------------
# Model forward (one fused pallas_call)
# ----------------------------------------------------------------------------
def forward(x_nchw, params):
    n = x_nchw.shape[0]
    repeat_cnt = (params["sb"].shape[0] - 7) // 4      # sb rows = 2*n_conv + 1
    offs, _ = _weight_offsets(repeat_cnt)

    xcol = _input_im2col(x_nchw)                       # (n, 1024, 32) bf16
    pblob = jnp.asarray(_pool_blob_np(), jnp.bfloat16)
    masks = jnp.asarray(_masks_np(), jnp.float32)

    out = pl.pallas_call(
        _make_kernel(repeat_cnt, offs),
        out_shape=jax.ShapeDtypeStruct((n, 1, 128), jnp.float32),
        grid=(n,),
        in_specs=[
            pl.BlockSpec((1, 1024, 32), lambda i: (i, 0, 0)),
            pl.BlockSpec(params["wblob"].shape, lambda i: (0, 0)),
            pl.BlockSpec(pblob.shape, lambda i: (0, 0)),
            pl.BlockSpec(params["sb"].shape, lambda i: (0, 0)),
            pl.BlockSpec(params["wl"].shape, lambda i: (0, 0, 0)),
            pl.BlockSpec(masks.shape, lambda i: (0, 0)),
        ],
        out_specs=pl.BlockSpec((1, 1, 128), lambda i: (i, 0, 0)),
        scratch_shapes=[
            pltpu.VMEM((_PR16, 16), jnp.float32),      # padded 16x16x16
            pltpu.VMEM((_PR8, 32), jnp.float32),       # padded 8x8x32
            pltpu.VMEM((_PR4, 64), jnp.float32),       # padded 4x4x64
            pltpu.VMEM((_L16, 144), jnp.bfloat16),     # im2col slab, cin=16
            pltpu.VMEM((_L8, 288), jnp.bfloat16),      # im2col slab, cin=32
            pltpu.VMEM((_L4, 576), jnp.bfloat16),      # im2col slab, cin=64
        ],
        compiler_params=pltpu.CompilerParams(
            dimension_semantics=("parallel",)),
    )(xcol, params["wblob"], pblob, params["sb"], params["wl"], masks)
    return out.reshape(n, 128)[:, :10]


# ----------------------------------------------------------------------------
# Deterministic parameter construction + packing (shapes from the reference)
# ----------------------------------------------------------------------------
def make_params(key, base_channels=16, repeat_cnt=1):
    dims = _conv_dims(repeat_cnt)
    n_conv = len(dims)
    keys = iter(jax.random.split(key, 6 * n_conv + 2))

    def conv_init(cin, cout):
        k1, k2 = next(keys), next(keys)
        bound = 1.0 / np.sqrt(cin * 9)
        w = jax.random.uniform(k1, (cout, cin, 3, 3), jnp.float32, -bound, bound)
        b = jax.random.uniform(k2, (cout,), jnp.float32, -bound, bound)
        return w, b

    def bn_init(c):
        k1, k2, k3, k4 = next(keys), next(keys), next(keys), next(keys)
        gamma = jax.random.uniform(k1, (c,), jnp.float32, 0.5, 1.5)
        beta = jax.random.uniform(k2, (c,), jnp.float32, -0.5, 0.5)
        mean = 0.1 * jax.random.normal(k3, (c,), jnp.float32)
        var = jax.random.uniform(k4, (c,), jnp.float32, 0.5, 1.5)
        return gamma, beta, mean, var

    offs, total_rows = _weight_offsets(repeat_cnt)
    wblob = jnp.zeros((total_rows, 64), jnp.float32)
    sb = jnp.zeros((2 * n_conv + 1, 128), jnp.float32)

    for idx, (cin, cout) in enumerate(dims):
        w, b = conv_init(cin, cout)
        gamma, beta, mean, var = bn_init(cout)
        scale = gamma / jnp.sqrt(var + 1e-5)
        bias_eff = scale * (b - mean) + beta
        # (Cout, Cin, 3, 3) -> (9*Cin, Cout), row index = (dy*3+dx)*Cin + c
        wk = jnp.transpose(w, (2, 3, 1, 0)).reshape(9 * cin, cout)
        if idx == 0:
            wk = jnp.pad(wk, ((0, 32 - 27), (0, 0)))     # K padded to 32
        off, k, _ = offs[idx]
        wblob = wblob.at[off:off + k, :cout].set(wk)
        sb = sb.at[2 * idx, :cout].set(scale)
        sb = sb.at[2 * idx + 1, :cout].set(bias_eff)

    kw, kb = next(keys), next(keys)
    in_f = base_channels * 16
    bound = 1.0 / np.sqrt(in_f)
    w_lin = jax.random.uniform(kw, (10, in_f), jnp.float32, -bound, bound)
    b_lin = jax.random.uniform(kb, (10,), jnp.float32, -bound, bound)
    c = in_f // 4
    # Torch NCHW flatten order (c*4 + h*2 + w) folded into the weight layout.
    wt = jnp.transpose(w_lin.reshape(10, c, 2, 2), (2, 3, 1, 0)).reshape(4, c, 10)
    wl = jnp.zeros((4, c, 128), jnp.float32).at[:, :, :10].set(wt)
    sb = sb.at[2 * n_conv, :10].set(b_lin)

    return {"wblob": wblob.astype(jnp.bfloat16),
            "sb": sb,
            "wl": wl.astype(jnp.bfloat16)}


if __name__ == "__main__":
    key = jax.random.PRNGKey(0)
    kx, kp = jax.random.split(key)

    # Linear(base_channels*16 = 256, 10) after four AvgPool2d(2) implies 32x32.
    x = jax.random.normal(kx, (2, 3, 32, 32), jnp.float32)     # NCHW like torch
    params = make_params(kp, base_channels=16, repeat_cnt=1)

    out = jax.jit(forward)(x, params)
    out = jax.block_until_ready(out)
    assert out.shape == (2, 10), out.shape
    assert bool(jnp.all(jnp.isfinite(out)))
    print("KERNEL_OK")
</pallas_src>

<mosaic_0001>
module attributes {stable_mosaic.version = 11 : i64} {
  func.func @kernel(%arg0: i32, %arg1: memref<1x1024x32xbf16, #tpu.memory_space<vmem>>, %arg2: memref<1328x64xbf16, #tpu.memory_space<vmem>>, %arg3: memref<180x286xbf16, #tpu.memory_space<vmem>>, %arg4: memref<11x128xf32, #tpu.memory_space<vmem>>, %arg5: memref<4x64x128xbf16, #tpu.memory_space<vmem>>, %arg6: memref<80x2xf32, #tpu.memory_space<vmem>>, %arg7: memref<1x1x128xf32, #tpu.memory_space<vmem>>, %arg8: memref<336x16xf32, #tpu.memory_space<vmem>>, %arg9: memref<112x32xf32, #tpu.memory_space<vmem>>, %arg10: memref<40x64xf32, #tpu.memory_space<vmem>>, %arg11: memref<286x144xbf16, #tpu.memory_space<vmem>>, %arg12: memref<78x288xbf16, #tpu.memory_space<vmem>>, %arg13: memref<22x576xbf16, #tpu.memory_space<vmem>>) attributes {dimension_semantics = [#tpu.dimension_semantics<parallel>], iteration_bounds = array<i64: 2>, scalar_prefetch = 0 : i64, scratch_operands = 6 : i64, tpu.core_type = #tpu.core_type<tc>, window_params = [{transform_indices = @transform_0, window_bounds = array<i64: 1, 1024, 32>}, {pipeline_mode = #tpu.pipeline_mode<synchronous>, transform_indices = @transform_1, window_bounds = array<i64: 1328, 64>}, {pipeline_mode = #tpu.pipeline_mode<synchronous>, transform_indices = @transform_2, window_bounds = array<i64: 180, 286>}, {pipeline_mode = #tpu.pipeline_mode<synchronous>, transform_indices = @transform_3, window_bounds = array<i64: 11, 128>}, {pipeline_mode = #tpu.pipeline_mode<synchronous>, transform_indices = @transform_4, window_bounds = array<i64: 4, 64, 128>}, {pipeline_mode = #tpu.pipeline_mode<synchronous>, transform_indices = @transform_5, window_bounds = array<i64: 80, 2>}, {transform_indices = @transform_6, window_bounds = array<i64: 1, 1, 128>}]} {
    %cst = arith.constant 0.000000e+00 : f32
    %0 = vector.broadcast %cst : f32 to vector<24x16xf32>
    %c0 = arith.constant 0 : index
    %c0_0 = arith.constant 0 : index
    %1 = vector.load %arg8[%c0, %c0_0] : memref<336x16xf32, #tpu.memory_space<vmem>>, vector<24x16xf32>
    tpu.vector_store %arg8[%c0, %c0_0], %0 {strides = array<i32>} : memref<336x16xf32, #tpu.memory_space<vmem>>, vector<24x16xf32>,
    %cst_1 = arith.constant 0.000000e+00 : f32
    %2 = vector.broadcast %cst_1 : f32 to vector<24x16xf32>
    %c312 = arith.constant 312 : index
    %c0_2 = arith.constant 0 : index
    %3 = vector.load %arg8[%c312, %c0_2] : memref<336x16xf32, #tpu.memory_space<vmem>>, vector<24x16xf32>
    tpu.vector_store %arg8[%c312, %c0_2], %2 {strides = array<i32>} : memref<336x16xf32, #tpu.memory_space<vmem>>, vector<24x16xf32>,
    %cst_3 = arith.constant 0.000000e+00 : f32
    %4 = vector.broadcast %cst_3 : f32 to vector<16x32xf32>
    %c0_4 = arith.constant 0 : index
    %c0_5 = arith.constant 0 : index
    %5 = vector.load %arg9[%c0_4, %c0_5] : memref<112x32xf32, #tpu.memory_space<vmem>>, vector<16x32xf32>
    tpu.vector_store %arg9[%c0_4, %c0_5], %4 {strides = array<i32>} : memref<112x32xf32, #tpu.memory_space<vmem>>, vector<16x32xf32>,
    %cst_6 = arith.constant 0.000000e+00 : f32
    %6 = vector.broadcast %cst_6 : f32 to vector<16x32xf32>
    %c96 = arith.constant 96 : index
    %c0_7 = arith.constant 0 : index
    %7 = vector.load %arg9[%c96, %c0_7] : memref<112x32xf32, #tpu.memory_space<vmem>>, vector<16x32xf32>
    tpu.vector_store %arg9[%c96, %c0_7], %6 {strides = array<i32>} : memref<112x32xf32, #tpu.memory_space<vmem>>, vector<16x32xf32>,
    %cst_8 = arith.constant 0.000000e+00 : f32
    %8 = vector.broadcast %cst_8 : f32 to vector<8x64xf32>
    %c0_9 = arith.constant 0 : index
    %c0_10 = arith.constant 0 : index
    %9 = vector.load %arg10[%c0_9, %c0_10] : memref<40x64xf32, #tpu.memory_space<vmem>>, vector<8x64xf32>
    tpu.vector_store %arg10[%c0_9, %c0_10], %8 {strides = array<i32>} : memref<40x64xf32, #tpu.memory_space<vmem>>, vector<8x64xf32>,
    %cst_11 = arith.constant 0.000000e+00 : f32
    %10 = vector.broadcast %cst_11 : f32 to vector<8x64xf32>
    %c32 = arith.constant 32 : index
    %c0_12 = arith.constant 0 : index
    %11 = vector.load %arg10[%c32, %c0_12] : memref<40x64xf32, #tpu.memory_space<vmem>>, vector<8x64xf32>
    tpu.vector_store %arg10[%c32, %c0_12], %10 {strides = array<i32>} : memref<40x64xf32, #tpu.memory_space<vmem>>, vector<8x64xf32>,
    %c0_13 = arith.constant 0 : index
    %c0_14 = arith.constant 0 : index
    %c0_15 = arith.constant 0 : index
    %12 = vector.load %arg1[%c0_13, %c0_14, %c0_15] : memref<1x1024x32xbf16, #tpu.memory_space<vmem>>, vector<1x1024x32xbf16>
    %13 = vector.shape_cast %12 : vector<1x1024x32xbf16> to vector<1024x32xbf16>
    %c0_16 = arith.constant 0 : index
    %c0_17 = arith.constant 0 : index
    %14 = vector.load %arg2[%c0_16, %c0_17] : memref<1328x64xbf16, #tpu.memory_space<vmem>>, vector<32x16xbf16>
    %cst_18 = arith.constant dense<0.000000e+00> : vector<1024x16xf32>
    %15 = tpu.matmul %13, %14, %cst_18 {dimension_numbers = #tpu.dot_dimension_numbers<[1], [0], [0], [1], [0, 0, 1, 1], [], []>} : vector<1024x32xbf16>, vector<32x16xbf16>, vector<1024x16xf32> -> vector<1024x16xf32>
    %c0_19 = arith.constant 0 : index
    %c0_20 = arith.constant 0 : index
    %16 = vector.load %arg4[%c0_19, %c0_20] : memref<11x128xf32, #tpu.memory_space<vmem>>, vector<1x16xf32>
    %c1 = arith.constant 1 : index
    %c0_21 = arith.constant 0 : index
    %17 = vector.load %arg4[%c1, %c0_21] : memref<11x128xf32, #tpu.memory_space<vmem>>, vector<1x16xf32>
    %18 = vector.broadcast %16 : vector<1x16xf32> to vector<1024x16xf32>
    %19 = arith.mulf %15, %18 : vector<1024x16xf32>
    %20 = vector.broadcast %17 : vector<1x16xf32> to vector<1024x16xf32>
    %21 = arith.addf %19, %20 : vector<1024x16xf32>
    %cst_22 = arith.constant 0.000000e+00 : f32
    %22 = vector.broadcast %cst_22 : f32 to vector<1024x16xf32>
    %23 = arith.maximumf %21, %22 : vector<1024x16xf32>
    %24 = arith.truncf %23 : vector<1024x16xf32> to vector<1024x16xbf16>
    %c0_23 = arith.constant 0 : index
    %c0_24 = arith.constant 0 : index
    %25 = vector.load %arg3[%c0_23, %c0_24] : memref<180x286xbf16, #tpu.memory_space<vmem>>, vector<72x256xbf16>
    %26 = vector.extract_strided_slice %24 {offsets = [0, 0], sizes = [256, 16], strides = [1, 1]} : vector<1024x16xbf16> to vector<256x16xbf16>
    %cst_25 = arith.constant dense<0.000000e+00> : vector<72x16xf32>
    %27 = tpu.matmul %25, %26, %cst_25 {dimension_numbers = #tpu.dot_dimension_numbers<[1], [0], [0], [1], [0, 0, 1, 1], [], []>} : vector<72x256xbf16>, vector<256x16xbf16>, vector<72x16xf32> -> vector<72x16xf32>
    %c24 = arith.constant 24 : index
    %c0_26 = arith.constant 0 : index
    %28 = vector.load %arg8[%c24, %c0_26] : memref<336x16xf32, #tpu.memory_space<vmem>>, vector<72x16xf32>
    tpu.vector_store %arg8[%c24, %c0_26], %27 {strides = array<i32>} : memref<336x16xf32, #tpu.memory_space<vmem>>, vector<72x16xf32>,
    %29 = vector.extract_strided_slice %24 {offsets = [256, 0], sizes = [256, 16], strides = [1, 1]} : vector<1024x16xbf16> to vector<256x16xbf16>
    %cst_27 = arith.constant dense<0.000000e+00> : vector<72x16xf32>
    %30 = tpu.matmul %25, %29, %cst_27 {dimension_numbers = #tpu.dot_dimension_numbers<[1], [0], [0], [1], [0, 0, 1, 1], [], []>} : vector<72x256xbf16>, vector<256x16xbf16>, vector<72x16xf32> -> vector<72x16xf32>
    %c96_28 = arith.constant 96 : index
    %c0_29 = arith.constant 0 : index
    %31 = vector.load %arg8[%c96_28, %c0_29] : memref<336x16xf32, #tpu.memory_space<vmem>>, vector<72x16xf32>
    tpu.vector_store %arg8[%c96_28, %c0_29], %30 {strides = array<i32>} : memref<336x16xf32, #tpu.memory_space<vmem>>, vector<72x16xf32>,
    %32 = vector.extract_strided_slice %24 {offsets = [512, 0], sizes = [256, 16], strides = [1, 1]} : vector<1024x16xbf16> to vector<256x16xbf16>
    %cst_30 = arith.constant dense<0.000000e+00> : vector<72x16xf32>
    %33 = tpu.matmul %25, %32, %cst_30 {dimension_numbers = #tpu.dot_dimension_numbers<[1], [0], [0], [1], [0, 0, 1, 1], [], []>} : vector<72x256xbf16>, vector<256x16xbf16>, vector<72x16xf32> -> vector<72x16xf32>
    %c168 = arith.constant 168 : index
    %c0_31 = arith.constant 0 : index
    %34 = vector.load %arg8[%c168, %c0_31] : memref<336x16xf32, #tpu.memory_space<vmem>>, vector<72x16xf32>
    tpu.vector_store %arg8[%c168, %c0_31], %33 {strides = array<i32>} : memref<336x16xf32, #tpu.memory_space<vmem>>, vector<72x16xf32>,
    %35 = vector.extract_strided_slice %24 {offsets = [768, 0], sizes = [256, 16], strides = [1, 1]} : vector<1024x16xbf16> to vector<256x16xbf16>
    %cst_32 = arith.constant dense<0.000000e+00> : vector<72x16xf32>
    %36 = tpu.matmul %25, %35, %cst_32 {dimension_numbers = #tpu.dot_dimension_numbers<[1], [0], [0], [1], [0, 0, 1, 1], [], []>} : vector<72x256xbf16>, vector<256x16xbf16>, vector<72x16xf32> -> vector<72x16xf32>
    %c240 = arith.constant 240 : index
    %c0_33 = arith.constant 0 : index
    %37 = vector.load %arg8[%c240, %c0_33] : memref<336x16xf32, #tpu.memory_space<vmem>>, vector<72x16xf32>
    tpu.vector_store %arg8[%c240, %c0_33], %36 {strides = array<i32>} : memref<336x16xf32, #tpu.memory_space<vmem>>, vector<72x16xf32>,
    %c6 = arith.constant 6 : index
    %c0_34 = arith.constant 0 : index
    %38 = vector.load %arg8[%c6, %c0_34] : memref<336x16xf32, #tpu.memory_space<vmem>>, vector<286x16xf32>
    %39 = arith.truncf %38 : vector<286x16xf32> to vector<286x16xbf16>
    %c0_35 = arith.constant 0 : index
    %c0_36 = arith.constant 0 : index
    %40 = vector.load %arg11[%c0_35, %c0_36] : memref<286x144xbf16, #tpu.memory_space<vmem>>, vector<286x16xbf16>
    tpu.vector_store %arg11[%c0_35, %c0_36], %39 {strides = array<i32>} : memref<286x144xbf16, #tpu.memory_space<vmem>>, vector<286x16xbf16>,
    %c7 = arith.constant 7 : index
    %c0_37 = arith.constant 0 : index
    %41 = vector.load %arg8[%c7, %c0_37] : memref<336x16xf32, #tpu.memory_space<vmem>>, vector<286x16xf32>
    %42 = arith.truncf %41 : vector<286x16xf32> to vector<286x16xbf16>
    %c0_38 = arith.constant 0 : index
    %c16 = arith.constant 16 : index
    %43 = vector.load %arg11[%c0_38, %c16] : memref<286x144xbf16, #tpu.memory_space<vmem>>, vector<286x16xbf16>
    tpu.vector_store %arg11[%c0_38, %c16], %42 {strides = array<i32>} : memref<286x144xbf16, #tpu.memory_space<vmem>>, vector<286x16xbf16>,
    %c8 = arith.constant 8 : index
    %c0_39 = arith.constant 0 : index
    %44 = vector.load %arg8[%c8, %c0_39] : memref<336x16xf32, #tpu.memory_space<vmem>>, vector<286x16xf32>
    %45 = arith.truncf %44 : vector<286x16xf32> to vector<286x16xbf16>
    %c0_40 = arith.constant 0 : index
    %c32_41 = arith.constant 32 : index
    %46 = vector.load %arg11[%c0_40, %c32_41] : memref<286x144xbf16, #tpu.memory_space<vmem>>, vector<286x16xbf16>
    tpu.vector_store %arg11[%c0_40, %c32_41], %45 {strides = array<i32>} : memref<286x144xbf16, #tpu.memory_space<vmem>>, vector<286x16xbf16>,
    %c24_42 = arith.constant 24 : index
    %c0_43 = arith.constant 0 : index
    %47 = vector.load %arg8[%c24_42, %c0_43] : memref<336x16xf32, #tpu.memory_space<vmem>>, vector<286x16xf32>
    %48 = arith.truncf %47 : vector<286x16xf32> to vector<286x16xbf16>
    %c0_44 = arith.constant 0 : index
    %c48 = arith.constant 48 : index
    %49 = vector.load %arg11[%c0_44, %c48] : memref<286x144xbf16, #tpu.memory_space<vmem>>, vector<286x16xbf16>
    tpu.vector_store %arg11[%c0_44, %c48], %48 {strides = array<i32>} : memref<286x144xbf16, #tpu.memory_space<vmem>>, vector<286x16xbf16>,
    %c25 = arith.constant 25 : index
    %c0_45 = arith.constant 0 : index
    %50 = vector.load %arg8[%c25, %c0_45] : memref<336x16xf32, #tpu.memory_space<vmem>>, vector<286x16xf32>
    %51 = arith.truncf %50 : vector<286x16xf32> to vector<286x16xbf16>
    %c0_46 = arith.constant 0 : index
    %c64 = arith.constant 64 : index
    %52 = vector.load %arg11[%c0_46, %c64] : memref<286x144xbf16, #tpu.memory_space<vmem>>, vector<286x16xbf16>
    tpu.vector_store %arg11[%c0_46, %c64], %51 {strides = array<i32>} : memref<286x144xbf16, #tpu.memory_space<vmem>>, vector<286x16xbf16>,
    %c26 = arith.constant 26 : index
    %c0_47 = arith.constant 0 : index
    %53 = vector.load %arg8[%c26, %c0_47] : memref<336x16xf32, #tpu.memory_space<vmem>>, vector<286x16xf32>
    %54 = arith.truncf %53 : vector<286x16xf32> to vector<286x16xbf16>
    %c0_48 = arith.constant 0 : index
    %c80 = arith.constant 80 : index
    %55 = vector.load %arg11[%c0_48, %c80] : memref<286x144xbf16, #tpu.memory_space<vmem>>, vector<286x16xbf16>
    tpu.vector_store %arg11[%c0_48, %c80], %54 {strides = array<i32>} : memref<286x144xbf16, #tpu.memory_space<vmem>>, vector<286x16xbf16>,
    %c42 = arith.constant 42 : index
    %c0_49 = arith.constant 0 : index
    %56 = vector.load %arg8[%c42, %c0_49] : memref<336x16xf32, #tpu.memory_space<vmem>>, vector<286x16xf32>
    %57 = arith.truncf %56 : vector<286x16xf32> to vector<286x16xbf16>
    %c0_50 = arith.constant 0 : index
    %c96_51 = arith.constant 96 : index
    %58 = vector.load %arg11[%c0_50, %c96_51] : memref<286x144xbf16, #tpu.memory_space<vmem>>, vector<286x16xbf16>
    tpu.vector_store %arg11[%c0_50, %c96_51], %57 {strides = array<i32>} : memref<286x144xbf16, #tpu.memory_space<vmem>>, vector<286x16xbf16>,
    %c43 = arith.constant 43 : index
    %c0_52 = arith.constant 0 : index
    %59 = vector.load %arg8[%c43, %c0_52] : memref<336x16xf32, #tpu.memory_space<vmem>>, vector<286x16xf32>
    %60 = arith.truncf %59 : vector<286x16xf32> to vector<286x16xbf16>
    %c0_53 = arith.constant 0 : index
    %c112 = arith.constant 112 : index
    %61 = vector.load %arg11[%c0_53, %c112] : memref<286x144xbf16, #tpu.memory_space<vmem>>, vector<286x16xbf16>
    tpu.vector_store %arg11[%c0_53, %c112], %60 {strides = array<i32>} : memref<286x144xbf16, #tpu.memory_space<vmem>>, vector<286x16xbf16>,
    %c44 = arith.constant 44 : index
    %c0_54 = arith.constant 0 : index
    %62 = vector.load %arg8[%c44, %c0_54] : memref<336x16xf32, #tpu.memory_space<vmem>>, vector<286x16xf32>
    %63 = arith.truncf %62 : vector<286x16xf32> to vector<286x16xbf16>
    %c0_55 = arith.constant 0 : index
    %c128 = arith.constant 128 : index
    %64 = vector.load %arg11[%c0_55, %c128] : memref<286x144xbf16, #tpu.memory_space<vmem>>, vector<286x16xbf16>
    tpu.vector_store %arg11[%c0_55, %c128], %63 {strides = array<i32>} : memref<286x144xbf16, #tpu.memory_space<vmem>>, vector<286x16xbf16>,
    %c0_56 = arith.constant 0 : index
    %c0_57 = arith.constant 0 : index
    %65 = vector.load %arg11[%c0_56, %c0_57] : memref<286x144xbf16, #tpu.memory_space<vmem>>, vector<286x144xbf16>
    %c32_58 = arith.constant 32 : index
    %c0_59 = arith.constant 0 : index
    %66 = vector.load %arg2[%c32_58, %c0_59] : memref<1328x64xbf16, #tpu.memory_space<vmem>>, vector<144x32xbf16>
    %cst_60 = arith.constant dense<0.000000e+00> : vector<286x32xf32>
    %67 = tpu.matmul %65, %66, %cst_60 {dimension_numbers = #tpu.dot_dimension_numbers<[1], [0], [0], [1], [0, 0, 1, 1], [], []>} : vector<286x144xbf16>, vector<144x32xbf16>, vector<286x32xf32> -> vector<286x32xf32>
    %c2 = arith.constant 2 : index
    %c0_61 = arith.constant 0 : index
    %68 = vector.load %arg4[%c2, %c0_61] : memref<11x128xf32, #tpu.memory_space<vmem>>, vector<1x32xf32>
    %c3 = arith.constant 3 : index
    %c0_62 = arith.constant 0 : index
    %69 = vector.load %arg4[%c3, %c0_62] : memref<11x128xf32, #tpu.memory_space<vmem>>, vector<1x32xf32>
    %70 = vector.broadcast %68 : vector<1x32xf32> to vector<286x32xf32>
    %71 = arith.mulf %67, %70 : vector<286x32xf32>
    %72 = vector.broadcast %69 : vector<1x32xf32> to vector<286x32xf32>
    %73 = arith.addf %71, %72 : vector<286x32xf32>
    %cst_63 = arith.constant 0.000000e+00 : f32
    %74 = vector.broadcast %cst_63 : f32 to vector<286x32xf32>
    %75 = arith.maximumf %73, %74 : vector<286x32xf32>
    %c72 = arith.constant 72 : index
    %c0_64 = arith.constant 0 : index
    %76 = vector.load %arg3[%c72, %c0_64] : memref<180x286xbf16, #tpu.memory_space<vmem>>, vector<80x286xbf16>
    %77 = arith.truncf %75 : vector<286x32xf32> to vector<286x32xbf16>
    %cst_65 = arith.constant dense<0.000000e+00> : vector<80x32xf32>
    %78 = tpu.matmul %76, %77, %cst_65 {dimension_numbers = #tpu.dot_dimension_numbers<[1], [0], [0], [1], [0, 0, 1, 1], [], []>} : vector<80x286xbf16>, vector<286x32xbf16>, vector<80x32xf32> -> vector<80x32xf32>
    %c16_66 = arith.constant 16 : index
    %c0_67 = arith.constant 0 : index
    %79 = vector.load %arg9[%c16_66, %c0_67] : memref<112x32xf32, #tpu.memory_space<vmem>>, vector<80x32xf32>
    tpu.vector_store %arg9[%c16_66, %c0_67], %78 {strides = array<i32>} : memref<112x32xf32, #tpu.memory_space<vmem>>, vector<80x32xf32>,
    %c0_68 = arith.constant 0 : index
    %c0_69 = arith.constant 0 : index
    %80 = vector.load %arg6[%c0_68, %c0_69] : memref<80x2xf32, #tpu.memory_space<vmem>>, vector<78x1xf32>
    %c17 = arith.constant 17 : index
    %c0_70 = arith.constant 0 : index
    %81 = vector.load %arg9[%c17, %c0_70] : memref<112x32xf32, #tpu.memory_space<vmem>>, vector<78x32xf32>
    %c6_71 = arith.constant 6 : index
    %c0_72 = arith.constant 0 : index
    %82 = vector.load %arg9[%c6_71, %c0_72] : memref<112x32xf32, #tpu.memory_space<vmem>>, vector<78x32xf32>
    %83 = arith.truncf %82 : vector<78x32xf32> to vector<78x32xbf16>
    %c0_73 = arith.constant 0 : index
    %c0_74 = arith.constant 0 : index
    %84 = vector.load %arg12[%c0_73, %c0_74] : memref<78x288xbf16, #tpu.memory_space<vmem>>, vector<78x32xbf16>
    tpu.vector_store %arg12[%c0_73, %c0_74], %83 {strides = array<i32>} : memref<78x288xbf16, #tpu.memory_space<vmem>>, vector<78x32xbf16>,
    %c7_75 = arith.constant 7 : index
    %c0_76 = arith.constant 0 : index
    %85 = vector.load %arg9[%c7_75, %c0_76] : memref<112x32xf32, #tpu.memory_space<vmem>>, vector<78x32xf32>
    %86 = arith.truncf %85 : vector<78x32xf32> to vector<78x32xbf16>
    %c0_77 = arith.constant 0 : index
    %c32_78 = arith.constant 32 : index
    %87 = vector.load %arg12[%c0_77, %c32_78] : memref<78x288xbf16, #tpu.memory_space<vmem>>, vector<78x32xbf16>
    tpu.vector_store %arg12[%c0_77, %c32_78], %86 {strides = array<i32>} : memref<78x288xbf16, #tpu.memory_space<vmem>>, vector<78x32xbf16>,
    %c8_79 = arith.constant 8 : index
    %c0_80 = arith.constant 0 : index
    %88 = vector.load %arg9[%c8_79, %c0_80] : memref<112x32xf32, #tpu.memory_space<vmem>>, vector<78x32xf32>
    %89 = arith.truncf %88 : vector<78x32xf32> to vector<78x32xbf16>
    %c0_81 = arith.constant 0 : index
    %c64_82 = arith.constant 64 : index
    %90 = vector.load %arg12[%c0_81, %c64_82] : memref<78x288xbf16, #tpu.memory_space<vmem>>, vector<78x32xbf16>
    tpu.vector_store %arg12[%c0_81, %c64_82], %89 {strides = array<i32>} : memref<78x288xbf16, #tpu.memory_space<vmem>>, vector<78x32xbf16>,
    %c16_83 = arith.constant 16 : index
    %c0_84 = arith.constant 0 : index
    %91 = vector.load %arg9[%c16_83, %c0_84] : memref<112x32xf32, #tpu.memory_space<vmem>>, vector<78x32xf32>
    %92 = arith.truncf %91 : vector<78x32xf32> to vector<78x32xbf16>
    %c0_85 = arith.constant 0 : index
    %c96_86 = arith.constant 96 : index
    %93 = vector.load %arg12[%c0_85, %c96_86] : memref<78x288xbf16, #tpu.memory_space<vmem>>, vector<78x32xbf16>
    tpu.vector_store %arg12[%c0_85, %c96_86], %92 {strides = array<i32>} : memref<78x288xbf16, #tpu.memory_space<vmem>>, vector<78x32xbf16>,
    %c17_87 = arith.constant 17 : index
    %c0_88 = arith.constant 0 : index
    %94 = vector.load %arg9[%c17_87, %c0_88] : memref<112x32xf32, #tpu.memory_space<vmem>>, vector<78x32xf32>
    %95 = arith.truncf %94 : vector<78x32xf32> to vector<78x32xbf16>
    %c0_89 = arith.constant 0 : index
    %c128_90 = arith.constant 128 : index
    %96 = vector.load %arg12[%c0_89, %c128_90] : memref<78x288xbf16, #tpu.memory_space<vmem>>, vector<78x32xbf16>
    tpu.vector_store %arg12[%c0_89, %c128_90], %95 {strides = array<i32>} : memref<78x288xbf16, #tpu.memory_space<vmem>>, vector<78x32xbf16>,
    %c18 = arith.constant 18 : index
    %c0_91 = arith.constant 0 : index
    %97 = vector.load %arg9[%c18, %c0_91] : memref<112x32xf32, #tpu.memory_space<vmem>>, vector<78x32xf32>
    %98 = arith.truncf %97 : vector<78x32xf32> to vector<78x32xbf16>
    %c0_92 = arith.constant 0 : index
    %c160 = arith.constant 160 : index
    %99 = vector.load %arg12[%c0_92, %c160] : memref<78x288xbf16, #tpu.memory_space<vmem>>, vector<78x32xbf16>
    tpu.vector_store %arg12[%c0_92, %c160], %98 {strides = array<i32>} : memref<78x288xbf16, #tpu.memory_space<vmem>>, vector<78x32xbf16>,
    %c26_93 = arith.constant 26 : index
    %c0_94 = arith.constant 0 : index
    %100 = vector.load %arg9[%c26_93, %c0_94] : memref<112x32xf32, #tpu.memory_space<vmem>>, vector<78x32xf32>
    %101 = arith.truncf %100 : vector<78x32xf32> to vector<78x32xbf16>
    %c0_95 = arith.constant 0 : index
    %c192 = arith.constant 192 : index
    %102 = vector.load %arg12[%c0_95, %c192] : memref<78x288xbf16, #tpu.memory_space<vmem>>, vector<78x32xbf16>
    tpu.vector_store %arg12[%c0_95, %c192], %101 {strides = array<i32>} : memref<78x288xbf16, #tpu.memory_space<vmem>>, vector<78x32xbf16>,
    %c27 = arith.constant 27 : index
    %c0_96 = arith.constant 0 : index
    %103 = vector.load %arg9[%c27, %c0_96] : memref<112x32xf32, #tpu.memory_space<vmem>>, vector<78x32xf32>
    %104 = arith.truncf %103 : vector<78x32xf32> to vector<78x32xbf16>
    %c0_97 = arith.constant 0 : index
    %c224 = arith.constant 224 : index
    %105 = vector.load %arg12[%c0_97, %c224] : memref<78x288xbf16, #tpu.memory_space<vmem>>, vector<78x32xbf16>
    tpu.vector_store %arg12[%c0_97, %c224], %104 {strides = array<i32>} : memref<78x288xbf16, #tpu.memory_space<vmem>>, vector<78x32xbf16>,
    %c28 = arith.constant 28 : index
    %c0_98 = arith.constant 0 : index
    %106 = vector.load %arg9[%c28, %c0_98] : memref<112x32xf32, #tpu.memory_space<vmem>>, vector<78x32xf32>
    %107 = arith.truncf %106 : vector<78x32xf32> to vector<78x32xbf16>
    %c0_99 = arith.constant 0 : index
    %c256 = arith.constant 256 : index
    %108 = vector.load %arg12[%c0_99, %c256] : memref<78x288xbf16, #tpu.memory_space<vmem>>, vector<78x32xbf16>
    tpu.vector_store %arg12[%c0_99, %c256], %107 {strides = array<i32>} : memref<78x288xbf16, #tpu.memory_space<vmem>>, vector<78x32xbf16>,
    %c0_100 = arith.constant 0 : index
    %c0_101 = arith.constant 0 : index
    %109 = vector.load %arg12[%c0_100, %c0_101] : memref<78x288xbf16, #tpu.memory_space<vmem>>, vector<78x288xbf16>
    %c176 = arith.constant 176 : index
    %c0_102 = arith.constant 0 : index
    %110 = vector.load %arg2[%c176, %c0_102] : memref<1328x64xbf16, #tpu.memory_space<vmem>>, vector<288x32xbf16>
    %cst_103 = arith.constant dense<0.000000e+00> : vector<78x32xf32>
    %111 = tpu.matmul %109, %110, %cst_103 {dimension_numbers = #tpu.dot_dimension_numbers<[1], [0], [0], [1], [0, 0, 1, 1], [], []>} : vector<78x288xbf16>, vector<288x32xbf16>, vector<78x32xf32> -> vector<78x32xf32>
    %c4 = arith.constant 4 : index
    %c0_104 = arith.constant 0 : index
    %112 = vector.load %arg4[%c4, %c0_104] : memref<11x128xf32, #tpu.memory_space<vmem>>, vector<1x32xf32>
    %c5 = arith.constant 5 : index
    %c0_105 = arith.constant 0 : index
    %113 = vector.load %arg4[%c5, %c0_105] : memref<11x128xf32, #tpu.memory_space<vmem>>, vector<1x32xf32>
    %114 = vector.broadcast %112 : vector<1x32xf32> to vector<78x32xf32>
    %115 = arith.mulf %111, %114 : vector<78x32xf32>
    %116 = vector.broadcast %113 : vector<1x32xf32> to vector<78x32xf32>
    %117 = arith.addf %115, %116 : vector<78x32xf32>
    %cst_106 = arith.constant 0.000000e+00 : f32
    %118 = vector.broadcast %cst_106 : f32 to vector<78x32xf32>
    %119 = arith.maximumf %117, %118 : vector<78x32xf32>
    %120 = vector.broadcast %80 : vector<78x1xf32> to vector<78x32xf32>
    %121 = arith.mulf %119, %120 : vector<78x32xf32>
    %c17_107 = arith.constant 17 : index
    %c0_108 = arith.constant 0 : index
    %122 = vector.load %arg9[%c17_107, %c0_108] : memref<112x32xf32, #tpu.memory_space<vmem>>, vector<78x32xf32>
    tpu.vector_store %arg9[%c17_107, %c0_108], %121 {strides = array<i32>} : memref<112x32xf32, #tpu.memory_space<vmem>>, vector<78x32xf32>,
    %c6_109 = arith.constant 6 : index
    %c0_110 = arith.constant 0 : index
    %123 = vector.load %arg9[%c6_109, %c0_110] : memref<112x32xf32, #tpu.memory_space<vmem>>, vector<78x32xf32>
    %124 = arith.truncf %123 : vector<78x32xf32> to vector<78x32xbf16>
    %c0_111 = arith.constant 0 : index
    %c0_112 = arith.constant 0 : index
    %125 = vector.load %arg12[%c0_111, %c0_112] : memref<78x288xbf16, #tpu.memory_space<vmem>>, vector<78x32xbf16>
    tpu.vector_store %arg12[%c0_111, %c0_112], %124 {strides = array<i32>} : memref<78x288xbf16, #tpu.memory_space<vmem>>, vector<78x32xbf16>,
    %c7_113 = arith.constant 7 : index
    %c0_114 = arith.constant 0 : index
    %126 = vector.load %arg9[%c7_113, %c0_114] : memref<112x32xf32, #tpu.memory_space<vmem>>, vector<78x32xf32>
    %127 = arith.truncf %126 : vector<78x32xf32> to vector<78x32xbf16>
    %c0_115 = arith.constant 0 : index
    %c32_116 = arith.constant 32 : index
    %128 = vector.load %arg12[%c0_115, %c32_116] : memref<78x288xbf16, #tpu.memory_space<vmem>>, vector<78x32xbf16>
    tpu.vector_store %arg12[%c0_115, %c32_116], %127 {strides = array<i32>} : memref<78x288xbf16, #tpu.memory_space<vmem>>, vector<78x32xbf16>,
    %c8_117 = arith.constant 8 : index
    %c0_118 = arith.constant 0 : index
    %129 = vector.load %arg9[%c8_117, %c0_118] : memref<112x32xf32, #tpu.memory_space<vmem>>, vector<78x32xf32>
    %130 = arith.truncf %129 : vector<78x32xf32> to vector<78x32xbf16>
    %c0_119 = arith.constant 0 : index
    %c64_120 = arith.constant 64 : index
    %131 = vector.load %arg12[%c0_119, %c64_120] : memref<78x288xbf16, #tpu.memory_space<vmem>>, vector<78x32xbf16>
    tpu.vector_store %arg12[%c0_119, %c64_120], %130 {strides = array<i32>} : memref<78x288xbf16, #tpu.memory_space<vmem>>, vector<78x32xbf16>,
    %c16_121 = arith.constant 16 : index
    %c0_122 = arith.constant 0 : index
    %132 = vector.load %arg9[%c16_121, %c0_122] : memref<112x32xf32, #tpu.memory_space<vmem>>, vector<78x32xf32>
    %133 = arith.truncf %132 : vector<78x32xf32> to vector<78x32xbf16>
    %c0_123 = arith.constant 0 : index
    %c96_124 = arith.constant 96 : index
    %134 = vector.load %arg12[%c0_123, %c96_124] : memref<78x288xbf16, #tpu.memory_space<vmem>>, vector<78x32xbf16>
    tpu.vector_store %arg12[%c0_123, %c96_124], %133 {strides = array<i32>} : memref<78x288xbf16, #tpu.memory_space<vmem>>, vector<78x32xbf16>,
    %c17_125 = arith.constant 17 : index
    %c0_126 = arith.constant 0 : index
    %135 = vector.load %arg9[%c17_125, %c0_126] : memref<112x32xf32, #tpu.memory_space<vmem>>, vector<78x32xf32>
    %136 = arith.truncf %135 : vector<78x32xf32> to vector<78x32xbf16>
    %c0_127 = arith.constant 0 : index
    %c128_128 = arith.constant 128 : index
    %137 = vector.load %arg12[%c0_127, %c128_128] : memref<78x288xbf16, #tpu.memory_space<vmem>>, vector<78x32xbf16>
    tpu.vector_store %arg12[%c0_127, %c128_128], %136 {strides = array<i32>} : memref<78x288xbf16, #tpu.memory_space<vmem>>, vector<78x32xbf16>,
    %c18_129 = arith.constant 18 : index
    %c0_130 = arith.constant 0 : index
    %138 = vector.load %arg9[%c18_129, %c0_130] : memref<112x32xf32, #tpu.memory_space<vmem>>, vector<78x32xf32>
    %139 = arith.truncf %138 : vector<78x32xf32> to vector<78x32xbf16>
    %c0_131 = arith.constant 0 : index
    %c160_132 = arith.constant 160 : index
    %140 = vector.load %arg12[%c0_131, %c160_132] : memref<78x288xbf16, #tpu.memory_space<vmem>>, vector<78x32xbf16>
    tpu.vector_store %arg12[%c0_131, %c160_132], %139 {strides = array<i32>} : memref<78x288xbf16, #tpu.memory_space<vmem>>, vector<78x32xbf16>,
    %c26_133 = arith.constant 26 : index
    %c0_134 = arith.constant 0 : index
    %141 = vector.load %arg9[%c26_133, %c0_134] : memref<112x32xf32, #tpu.memory_space<vmem>>, vector<78x32xf32>
    %142 = arith.truncf %141 : vector<78x32xf32> to vector<78x32xbf16>
    %c0_135 = arith.constant 0 : index
    %c192_136 = arith.constant 192 : index
    %143 = vector.load %arg12[%c0_135, %c192_136] : memref<78x288xbf16, #tpu.memory_space<vmem>>, vector<78x32xbf16>
    tpu.vector_store %arg12[%c0_135, %c192_136], %142 {strides = array<i32>} : memref<78x288xbf16, #tpu.memory_space<vmem>>, vector<78x32xbf16>,
    %c27_137 = arith.constant 27 : index
    %c0_138 = arith.constant 0 : index
    %144 = vector.load %arg9[%c27_137, %c0_138] : memref<112x32xf32, #tpu.memory_space<vmem>>, vector<78x32xf32>
    %145 = arith.truncf %144 : vector<78x32xf32> to vector<78x32xbf16>
    %c0_139 = arith.constant 0 : index
    %c224_140 = arith.constant 224 : index
    %146 = vector.load %arg12[%c0_139, %c224_140] : memref<78x288xbf16, #tpu.memory_space<vmem>>, vector<78x32xbf16>
    tpu.vector_store %arg12[%c0_139, %c224_140], %145 {strides = array<i32>} : memref<78x288xbf16, #tpu.memory_space<vmem>>, vector<78x32xbf16>,
    %c28_141 = arith.constant 28 : index
    %c0_142 = arith.constant 0 : index
    %147 = vector.load %arg9[%c28_141, %c0_142] : memref<112x32xf32, #tpu.memory_space<vmem>>, vector<78x32xf32>
    %148 = arith.truncf %147 : vector<78x32xf32> to vector<78x32xbf16>
    %c0_143 = arith.constant 0 : index
    %c256_144 = arith.constant 256 : index
    %149 = vector.load %arg12[%c0_143, %c256_144] : memref<78x288xbf16, #tpu.memory_space<vmem>>, vector<78x32xbf16>
    tpu.vector_store %arg12[%c0_143, %c256_144], %148 {strides = array<i32>} : memref<78x288xbf16, #tpu.memory_space<vmem>>, vector<78x32xbf16>,
    %c0_145 = arith.constant 0 : index
    %c0_146 = arith.constant 0 : index
    %150 = vector.load %arg12[%c0_145, %c0_146] : memref<78x288xbf16, #tpu.memory_space<vmem>>, vector<78x288xbf16>
    %c176_147 = arith.constant 176 : index
    %c0_148 = arith.constant 0 : index
    %151 = vector.load %arg2[%c176_147, %c0_148] : memref<1328x64xbf16, #tpu.memory_space<vmem>>, vector<288x32xbf16>
    %cst_149 = arith.constant dense<0.000000e+00> : vector<78x32xf32>
    %152 = tpu.matmul %150, %151, %cst_149 {dimension_numbers = #tpu.dot_dimension_numbers<[1], [0], [0], [1], [0, 0, 1, 1], [], []>} : vector<78x288xbf16>, vector<288x32xbf16>, vector<78x32xf32> -> vector<78x32xf32>
    %c4_150 = arith.constant 4 : index
    %c0_151 = arith.constant 0 : index
    %153 = vector.load %arg4[%c4_150, %c0_151] : memref<11x128xf32, #tpu.memory_space<vmem>>, vector<1x32xf32>
    %c5_152 = arith.constant 5 : index
    %c0_153 = arith.constant 0 : index
    %154 = vector.load %arg4[%c5_152, %c0_153] : memref<11x128xf32, #tpu.memory_space<vmem>>, vector<1x32xf32>
    %155 = vector.broadcast %153 : vector<1x32xf32> to vector<78x32xf32>
    %156 = arith.mulf %152, %155 : vector<78x32xf32>
    %157 = vector.broadcast %154 : vector<1x32xf32> to vector<78x32xf32>
    %158 = arith.addf %156, %157 : vector<78x32xf32>
    %cst_154 = arith.constant 0.000000e+00 : f32
    %159 = vector.broadcast %cst_154 : f32 to vector<78x32xf32>
    %160 = arith.maximumf %158, %159 : vector<78x32xf32>
    %161 = arith.addf %160, %81 : vector<78x32xf32>
    %cst_155 = arith.constant 0.000000e+00 : f32
    %162 = vector.broadcast %cst_155 : f32 to vector<78x32xf32>
    %163 = arith.maximumf %161, %162 : vector<78x32xf32>
    %164 = vector.broadcast %80 : vector<78x1xf32> to vector<78x32xf32>
    %165 = arith.mulf %163, %164 : vector<78x32xf32>
    %c17_156 = arith.constant 17 : index
    %c0_157 = arith.constant 0 : index
    %166 = vector.load %arg9[%c17_156, %c0_157] : memref<112x32xf32, #tpu.memory_space<vmem>>, vector<78x32xf32>
    tpu.vector_store %arg9[%c17_156, %c0_157], %165 {strides = array<i32>} : memref<112x32xf32, #tpu.memory_space<vmem>>, vector<78x32xf32>,
    %c6_158 = arith.constant 6 : index
    %c0_159 = arith.constant 0 : index
    %167 = vector.load %arg9[%c6_158, %c0_159] : memref<112x32xf32, #tpu.memory_space<vmem>>, vector<78x32xf32>
    %168 = arith.truncf %167 : vector<78x32xf32> to vector<78x32xbf16>
    %c0_160 = arith.constant 0 : index
    %c0_161 = arith.constant 0 : index
    %169 = vector.load %arg12[%c0_160, %c0_161] : memref<78x288xbf16, #tpu.memory_space<vmem>>, vector<78x32xbf16>
    tpu.vector_store %arg12[%c0_160, %c0_161], %168 {strides = array<i32>} : memref<78x288xbf16, #tpu.memory_space<vmem>>, vector<78x32xbf16>,
    %c7_162 = arith.constant 7 : index
    %c0_163 = arith.constant 0 : index
    %170 = vector.load %arg9[%c7_162, %c0_163] : memref<112x32xf32, #tpu.memory_space<vmem>>, vector<78x32xf32>
    %171 = arith.truncf %170 : vector<78x32xf32> to vector<78x32xbf16>
    %c0_164 = arith.constant 0 : index
    %c32_165 = arith.constant 32 : index
    %172 = vector.load %arg12[%c0_164, %c32_165] : memref<78x288xbf16, #tpu.memory_space<vmem>>, vector<78x32xbf16>
    tpu.vector_store %arg12[%c0_164, %c32_165], %171 {strides = array<i32>} : memref<78x288xbf16, #tpu.memory_space<vmem>>, vector<78x32xbf16>,
    %c8_166 = arith.constant 8 : index
    %c0_167 = arith.constant 0 : index
    %173 = vector.load %arg9[%c8_166, %c0_167] : memref<112x32xf32, #tpu.memory_space<vmem>>, vector<78x32xf32>
    %174 = arith.truncf %173 : vector<78x32xf32> to vector<78x32xbf16>
    %c0_168 = arith.constant 0 : index
    %c64_169 = arith.constant 64 : index
    %175 = vector.load %arg12[%c0_168, %c64_169] : memref<78x288xbf16, #tpu.memory_space<vmem>>, vector<78x32xbf16>
    tpu.vector_store %arg12[%c0_168, %c64_169], %174 {strides = array<i32>} : memref<78x288xbf16, #tpu.memory_space<vmem>>, vector<78x32xbf16>,
    %c16_170 = arith.constant 16 : index
    %c0_171 = arith.constant 0 : index
    %176 = vector.load %arg9[%c16_170, %c0_171] : memref<112x32xf32, #tpu.memory_space<vmem>>, vector<78x32xf32>
    %177 = arith.truncf %176 : vector<78x32xf32> to vector<78x32xbf16>
    %c0_172 = arith.constant 0 : index
    %c96_173 = arith.constant 96 : index
    %178 = vector.load %arg12[%c0_172, %c96_173] : memref<78x288xbf16, #tpu.memory_space<vmem>>, vector<78x32xbf16>
    tpu.vector_store %arg12[%c0_172, %c96_173], %177 {strides = array<i32>} : memref<78x288xbf16, #tpu.memory_space<vmem>>, vector<78x32xbf16>,
    %c17_174 = arith.constant 17 : index
    %c0_175 = arith.constant 0 : index
    %179 = vector.load %arg9[%c17_174, %c0_175] : memref<112x32xf32, #tpu.memory_space<vmem>>, vector<78x32xf32>
    %180 = arith.truncf %179 : vector<78x32xf32> to vector<78x32xbf16>
    %c0_176 = arith.constant 0 : index
    %c128_177 = arith.constant 128 : index
    %181 = vector.load %arg12[%c0_176, %c128_177] : memref<78x288xbf16, #tpu.memory_space<vmem>>, vector<78x32xbf16>
    tpu.vector_store %arg12[%c0_176, %c128_177], %180 {strides = array<i32>} : memref<78x288xbf16, #tpu.memory_space<vmem>>, vector<78x32xbf16>,
    %c18_178 = arith.constant 18 : index
    %c0_179 = arith.constant 0 : index
    %182 = vector.load %arg9[%c18_178, %c0_179] : memref<112x32xf32, #tpu.memory_space<vmem>>, vector<78x32xf32>
    %183 = arith.truncf %182 : vector<78x32xf32> to vector<78x32xbf16>
    %c0_180 = arith.constant 0 : index
    %c160_181 = arith.constant 160 : index
    %184 = vector.load %arg12[%c0_180, %c160_181] : memref<78x288xbf16, #tpu.memory_space<vmem>>, vector<78x32xbf16>
    tpu.vector_store %arg12[%c0_180, %c160_181], %183 {strides = array<i32>} : memref<78x288xbf16, #tpu.memory_space<vmem>>, vector<78x32xbf16>,
    %c26_182 = arith.constant 26 : index
    %c0_183 = arith.constant 0 : index
    %185 = vector.load %arg9[%c26_182, %c0_183] : memref<112x32xf32, #tpu.memory_space<vmem>>, vector<78x32xf32>
    %186 = arith.truncf %185 : vector<78x32xf32> to vector<78x32xbf16>
    %c0_184 = arith.constant 0 : index
    %c192_185 = arith.constant 192 : index
    %187 = vector.load %arg12[%c0_184, %c192_185] : memref<78x288xbf16, #tpu.memory_space<vmem>>, vector<78x32xbf16>
    tpu.vector_store %arg12[%c0_184, %c192_185], %186 {strides = array<i32>} : memref<78x288xbf16, #tpu.memory_space<vmem>>, vector<78x32xbf16>,
    %c27_186 = arith.constant 27 : index
    %c0_187 = arith.constant 0 : index
    %188 = vector.load %arg9[%c27_186, %c0_187] : memref<112x32xf32, #tpu.memory_space<vmem>>, vector<78x32xf32>
    %189 = arith.truncf %188 : vector<78x32xf32> to vector<78x32xbf16>
    %c0_188 = arith.constant 0 : index
    %c224_189 = arith.constant 224 : index
    %190 = vector.load %arg12[%c0_188, %c224_189] : memref<78x288xbf16, #tpu.memory_space<vmem>>, vector<78x32xbf16>
    tpu.vector_store %arg12[%c0_188, %c224_189], %189 {strides = array<i32>} : memref<78x288xbf16, #tpu.memory_space<vmem>>, vector<78x32xbf16>,
    %c28_190 = arith.constant 28 : index
    %c0_191 = arith.constant 0 : index
    %191 = vector.load %arg9[%c28_190, %c0_191] : memref<112x32xf32, #tpu.memory_space<vmem>>, vector<78x32xf32>
    %192 = arith.truncf %191 : vector<78x32xf32> to vector<78x32xbf16>
    %c0_192 = arith.constant 0 : index
    %c256_193 = arith.constant 256 : index
    %193 = vector.load %arg12[%c0_192, %c256_193] : memref<78x288xbf16, #tpu.memory_space<vmem>>, vector<78x32xbf16>
    tpu.vector_store %arg12[%c0_192, %c256_193], %192 {strides = array<i32>} : memref<78x288xbf16, #tpu.memory_space<vmem>>, vector<78x32xbf16>,
    %c0_194 = arith.constant 0 : index
    %c0_195 = arith.constant 0 : index
    %194 = vector.load %arg12[%c0_194, %c0_195] : memref<78x288xbf16, #tpu.memory_space<vmem>>, vector<78x288xbf16>
    %c464 = arith.constant 464 : index
    %c0_196 = arith.constant 0 : index
    %195 = vector.load %arg2[%c464, %c0_196] : memref<1328x64xbf16, #tpu.memory_space<vmem>>, vector<288x64xbf16>
    %cst_197 = arith.constant dense<0.000000e+00> : vector<78x64xf32>
    %196 = tpu.matmul %194, %195, %cst_197 {dimension_numbers = #tpu.dot_dimension_numbers<[1], [0], [0], [1], [0, 0, 1, 1], [], []>} : vector<78x288xbf16>, vector<288x64xbf16>, vector<78x64xf32> -> vector<78x64xf32>
    %c6_198 = arith.constant 6 : index
    %c0_199 = arith.constant 0 : index
    %197 = vector.load %arg4[%c6_198, %c0_199] : memref<11x128xf32, #tpu.memory_space<vmem>>, vector<1x64xf32>
    %c7_200 = arith.constant 7 : index
    %c0_201 = arith.constant 0 : index
    %198 = vector.load %arg4[%c7_200, %c0_201] : memref<11x128xf32, #tpu.memory_space<vmem>>, vector<1x64xf32>
    %199 = vector.broadcast %197 : vector<1x64xf32> to vector<78x64xf32>
    %200 = arith.mulf %196, %199 : vector<78x64xf32>
    %201 = vector.broadcast %198 : vector<1x64xf32> to vector<78x64xf32>
    %202 = arith.addf %200, %201 : vector<78x64xf32>
    %cst_202 = arith.constant 0.000000e+00 : f32
    %203 = vector.broadcast %cst_202 : f32 to vector<78x64xf32>
    %204 = arith.maximumf %202, %203 : vector<78x64xf32>
    %c152 = arith.constant 152 : index
    %c0_203 = arith.constant 0 : index
    %205 = vector.load %arg3[%c152, %c0_203] : memref<180x286xbf16, #tpu.memory_space<vmem>>, vector<24x78xbf16>
    %206 = arith.truncf %204 : vector<78x64xf32> to vector<78x64xbf16>
    %cst_204 = arith.constant dense<0.000000e+00> : vector<24x64xf32>
    %207 = tpu.matmul %205, %206, %cst_204 {dimension_numbers = #tpu.dot_dimension_numbers<[1], [0], [0], [1], [0, 0, 1, 1], [], []>} : vector<24x78xbf16>, vector<78x64xbf16>, vector<24x64xf32> -> vector<24x64xf32>
    %c8_205 = arith.constant 8 : index
    %c0_206 = arith.constant 0 : index
    %208 = vector.load %arg10[%c8_205, %c0_206] : memref<40x64xf32, #tpu.memory_space<vmem>>, vector<24x64xf32>
    tpu.vector_store %arg10[%c8_205, %c0_206], %207 {strides = array<i32>} : memref<40x64xf32, #tpu.memory_space<vmem>>, vector<24x64xf32>,
    %c0_207 = arith.constant 0 : index
    %c1_208 = arith.constant 1 : index
    %209 = vector.load %arg6[%c0_207, %c1_208] : memref<80x2xf32, #tpu.memory_space<vmem>>, vector<22x1xf32>
    %c9 = arith.constant 9 : index
    %c0_209 = arith.constant 0 : index
    %210 = vector.load %arg10[%c9, %c0_209] : memref<40x64xf32, #tpu.memory_space<vmem>>, vector<22x64xf32>
    %c2_210 = arith.constant 2 : index
    %c0_211 = arith.constant 0 : index
    %211 = vector.load %arg10[%c2_210, %c0_211] : memref<40x64xf32, #tpu.memory_space<vmem>>, vector<22x64xf32>
    %212 = arith.truncf %211 : vector<22x64xf32> to vector<22x64xbf16>
    %c0_212 = arith.constant 0 : index
    %c0_213 = arith.constant 0 : index
    %213 = vector.load %arg13[%c0_212, %c0_213] : memref<22x576xbf16, #tpu.memory_space<vmem>>, vector<22x64xbf16>
    tpu.vector_store %arg13[%c0_212, %c0_213], %212 {strides = array<i32>} : memref<22x576xbf16, #tpu.memory_space<vmem>>, vector<22x64xbf16>,
    %c3_214 = arith.constant 3 : index
    %c0_215 = arith.constant 0 : index
    %214 = vector.load %arg10[%c3_214, %c0_215] : memref<40x64xf32, #tpu.memory_space<vmem>>, vector<22x64xf32>
    %215 = arith.truncf %214 : vector<22x64xf32> to vector<22x64xbf16>
    %c0_216 = arith.constant 0 : index
    %c64_217 = arith.constant 64 : index
    %216 = vector.load %arg13[%c0_216, %c64_217] : memref<22x576xbf16, #tpu.memory_space<vmem>>, vector<22x64xbf16>
    tpu.vector_store %arg13[%c0_216, %c64_217], %215 {strides = array<i32>} : memref<22x576xbf16, #tpu.memory_space<vmem>>, vector<22x64xbf16>,
    %c4_218 = arith.constant 4 : index
    %c0_219 = arith.constant 0 : index
    %217 = vector.load %arg10[%c4_218, %c0_219] : memref<40x64xf32, #tpu.memory_space<vmem>>, vector<22x64xf32>
    %218 = arith.truncf %217 : vector<22x64xf32> to vector<22x64xbf16>
    %c0_220 = arith.constant 0 : index
    %c128_221 = arith.constant 128 : index
    %219 = vector.load %arg13[%c0_220, %c128_221] : memref<22x576xbf16, #tpu.memory_space<vmem>>, vector<22x64xbf16>
    tpu.vector_store %arg13[%c0_220, %c128_221], %218 {strides = array<i32>} : memref<22x576xbf16, #tpu.memory_space<vmem>>, vector<22x64xbf16>,
    %c8_222 = arith.constant 8 : index
    %c0_223 = arith.constant 0 : index
    %220 = vector.load %arg10[%c8_222, %c0_223] : memref<40x64xf32, #tpu.memory_space<vmem>>, vector<22x64xf32>
    %221 = arith.truncf %220 : vector<22x64xf32> to vector<22x64xbf16>
    %c0_224 = arith.constant 0 : index
    %c192_225 = arith.constant 192 : index
    %222 = vector.load %arg13[%c0_224, %c192_225] : memref<22x576xbf16, #tpu.memory_space<vmem>>, vector<22x64xbf16>
    tpu.vector_store %arg13[%c0_224, %c192_225], %221 {strides = array<i32>} : memref<22x576xbf16, #tpu.memory_space<vmem>>, vector<22x64xbf16>,
    %c9_226 = arith.constant 9 : index
    %c0_227 = arith.constant 0 : index
    %223 = vector.load %arg10[%c9_226, %c0_227] : memref<40x64xf32, #tpu.memory_space<vmem>>, vector<22x64xf32>
    %224 = arith.truncf %223 : vector<22x64xf32> to vector<22x64xbf16>
    %c0_228 = arith.constant 0 : index
    %c256_229 = arith.constant 256 : index
    %225 = vector.load %arg13[%c0_228, %c256_229] : memref<22x576xbf16, #tpu.memory_space<vmem>>, vector<22x64xbf16>
    tpu.vector_store %arg13[%c0_228, %c256_229], %224 {strides = array<i32>} : memref<22x576xbf16, #tpu.memory_space<vmem>>, vector<22x64xbf16>,
    %c10 = arith.constant 10 : index
    %c0_230 = arith.constant 0 : index
    %226 = vector.load %arg10[%c10, %c0_230] : memref<40x64xf32, #tpu.memory_space<vmem>>, vector<22x64xf32>
    %227 = arith.truncf %226 : vector<22x64xf32> to vector<22x64xbf16>
    %c0_231 = arith.constant 0 : index
    %c320 = arith.constant 320 : index
    %228 = vector.load %arg13[%c0_231, %c320] : memref<22x576xbf16, #tpu.memory_space<vmem>>, vector<22x64xbf16>
    tpu.vector_store %arg13[%c0_231, %c320], %227 {strides = array<i32>} : memref<22x576xbf16, #tpu.memory_space<vmem>>, vector<22x64xbf16>,
    %c14 = arith.constant 14 : index
    %c0_232 = arith.constant 0 : index
    %229 = vector.load %arg10[%c14, %c0_232] : memref<40x64xf32, #tpu.memory_space<vmem>>, vector<22x64xf32>
    %230 = arith.truncf %229 : vector<22x64xf32> to vector<22x64xbf16>
    %c0_233 = arith.constant 0 : index
    %c384 = arith.constant 384 : index
    %231 = vector.load %arg13[%c0_233, %c384] : memref<22x576xbf16, #tpu.memory_space<vmem>>, vector<22x64xbf16>
    tpu.vector_store %arg13[%c0_233, %c384], %230 {strides = array<i32>} : memref<22x576xbf16, #tpu.memory_space<vmem>>, vector<22x64xbf16>,
    %c15 = arith.constant 15 : index
    %c0_234 = arith.constant 0 : index
    %232 = vector.load %arg10[%c15, %c0_234] : memref<40x64xf32, #tpu.memory_space<vmem>>, vector<22x64xf32>
    %233 = arith.truncf %232 : vector<22x64xf32> to vector<22x64xbf16>
    %c0_235 = arith.constant 0 : index
    %c448 = arith.constant 448 : index
    %234 = vector.load %arg13[%c0_235, %c448] : memref<22x576xbf16, #tpu.memory_space<vmem>>, vector<22x64xbf16>
    tpu.vector_store %arg13[%c0_235, %c448], %233 {strides = array<i32>} : memref<22x576xbf16, #tpu.memory_space<vmem>>, vector<22x64xbf16>,
    %c16_236 = arith.constant 16 : index
    %c0_237 = arith.constant 0 : index
    %235 = vector.load %arg10[%c16_236, %c0_237] : memref<40x64xf32, #tpu.memory_space<vmem>>, vector<22x64xf32>
    %236 = arith.truncf %235 : vector<22x64xf32> to vector<22x64xbf16>
    %c0_238 = arith.constant 0 : index
    %c512 = arith.constant 512 : index
    %237 = vector.load %arg13[%c0_238, %c512] : memref<22x576xbf16, #tpu.memory_space<vmem>>, vector<22x64xbf16>
    tpu.vector_store %arg13[%c0_238, %c512], %236 {strides = array<i32>} : memref<22x576xbf16, #tpu.memory_space<vmem>>, vector<22x64xbf16>,
    %c0_239 = arith.constant 0 : index
    %c0_240 = arith.constant 0 : index
    %238 = vector.load %arg13[%c0_239, %c0_240] : memref<22x576xbf16, #tpu.memory_space<vmem>>, vector<22x576xbf16>
    %c752 = arith.constant 752 : index
    %c0_241 = arith.constant 0 : index
    %239 = vector.load %arg2[%c752, %c0_241] : memref<1328x64xbf16, #tpu.memory_space<vmem>>, vector<576x64xbf16>
    %cst_242 = arith.constant dense<0.000000e+00> : vector<22x64xf32>
    %240 = tpu.matmul %238, %239, %cst_242 {dimension_numbers = #tpu.dot_dimension_numbers<[1], [0], [0], [1], [0, 0, 1, 1], [], []>} : vector<22x576xbf16>, vector<576x64xbf16>, vector<22x64xf32> -> vector<22x64xf32>
    %c8_243 = arith.constant 8 : index
    %c0_244 = arith.constant 0 : index
    %241 = vector.load %arg4[%c8_243, %c0_244] : memref<11x128xf32, #tpu.memory_space<vmem>>, vector<1x64xf32>
    %c9_245 = arith.constant 9 : index
    %c0_246 = arith.constant 0 : index
    %242 = vector.load %arg4[%c9_245, %c0_246] : memref<11x128xf32, #tpu.memory_space<vmem>>, vector<1x64xf32>
    %243 = vector.broadcast %241 : vector<1x64xf32> to vector<22x64xf32>
    %244 = arith.mulf %240, %243 : vector<22x64xf32>
    %245 = vector.broadcast %242 : vector<1x64xf32> to vector<22x64xf32>
    %246 = arith.addf %244, %245 : vector<22x64xf32>
    %cst_247 = arith.constant 0.000000e+00 : f32
    %247 = vector.broadcast %cst_247 : f32 to vector<22x64xf32>
    %248 = arith.maximumf %246, %247 : vector<22x64xf32>
    %249 = vector.broadcast %209 : vector<22x1xf32> to vector<22x64xf32>
    %250 = arith.mulf %248, %249 : vector<22x64xf32>
    %c9_248 = arith.constant 9 : index
    %c0_249 = arith.constant 0 : index
    %251 = vector.load %arg10[%c9_248, %c0_249] : memref<40x64xf32, #tpu.memory_space<vmem>>, vector<22x64xf32>
    tpu.vector_store %arg10[%c9_248, %c0_249], %250 {strides = array<i32>} : memref<40x64xf32, #tpu.memory_space<vmem>>, vector<22x64xf32>,
    %c2_250 = arith.constant 2 : index
    %c0_251 = arith.constant 0 : index
    %252 = vector.load %arg10[%c2_250, %c0_251] : memref<40x64xf32, #tpu.memory_space<vmem>>, vector<22x64xf32>
    %253 = arith.truncf %252 : vector<22x64xf32> to vector<22x64xbf16>
    %c0_252 = arith.constant 0 : index
    %c0_253 = arith.constant 0 : index
    %254 = vector.load %arg13[%c0_252, %c0_253] : memref<22x576xbf16, #tpu.memory_space<vmem>>, vector<22x64xbf16>
    tpu.vector_store %arg13[%c0_252, %c0_253], %253 {strides = array<i32>} : memref<22x576xbf16, #tpu.memory_space<vmem>>, vector<22x64xbf16>,
    %c3_254 = arith.constant 3 : index
    %c0_255 = arith.constant 0 : index
    %255 = vector.load %arg10[%c3_254, %c0_255] : memref<40x64xf32, #tpu.memory_space<vmem>>, vector<22x64xf32>
    %256 = arith.truncf %255 : vector<22x64xf32> to vector<22x64xbf16>
    %c0_256 = arith.constant 0 : index
    %c64_257 = arith.constant 64 : index
    %257 = vector.load %arg13[%c0_256, %c64_257] : memref<22x576xbf16, #tpu.memory_space<vmem>>, vector<22x64xbf16>
    tpu.vector_store %arg13[%c0_256, %c64_257], %256 {strides = array<i32>} : memref<22x576xbf16, #tpu.memory_space<vmem>>, vector<22x64xbf16>,
    %c4_258 = arith.constant 4 : index
    %c0_259 = arith.constant 0 : index
    %258 = vector.load %arg10[%c4_258, %c0_259] : memref<40x64xf32, #tpu.memory_space<vmem>>, vector<22x64xf32>
    %259 = arith.truncf %258 : vector<22x64xf32> to vector<22x64xbf16>
    %c0_260 = arith.constant 0 : index
    %c128_261 = arith.constant 128 : index
    %260 = vector.load %arg13[%c0_260, %c128_261] : memref<22x576xbf16, #tpu.memory_space<vmem>>, vector<22x64xbf16>
    tpu.vector_store %arg13[%c0_260, %c128_261], %259 {strides = array<i32>} : memref<22x576xbf16, #tpu.memory_space<vmem>>, vector<22x64xbf16>,
    %c8_262 = arith.constant 8 : index
    %c0_263 = arith.constant 0 : index
    %261 = vector.load %arg10[%c8_262, %c0_263] : memref<40x64xf32, #tpu.memory_space<vmem>>, vector<22x64xf32>
    %262 = arith.truncf %261 : vector<22x64xf32> to vector<22x64xbf16>
    %c0_264 = arith.constant 0 : index
    %c192_265 = arith.constant 192 : index
    %263 = vector.load %arg13[%c0_264, %c192_265] : memref<22x576xbf16, #tpu.memory_space<vmem>>, vector<22x64xbf16>
    tpu.vector_store %arg13[%c0_264, %c192_265], %262 {strides = array<i32>} : memref<22x576xbf16, #tpu.memory_space<vmem>>, vector<22x64xbf16>,
    %c9_266 = arith.constant 9 : index
    %c0_267 = arith.constant 0 : index
    %264 = vector.load %arg10[%c9_266, %c0_267] : memref<40x64xf32, #tpu.memory_space<vmem>>, vector<22x64xf32>
    %265 = arith.truncf %264 : vector<22x64xf32> to vector<22x64xbf16>
    %c0_268 = arith.constant 0 : index
    %c256_269 = arith.constant 256 : index
    %266 = vector.load %arg13[%c0_268, %c256_269] : memref<22x576xbf16, #tpu.memory_space<vmem>>, vector<22x64xbf16>
    tpu.vector_store %arg13[%c0_268, %c256_269], %265 {strides = array<i32>} : memref<22x576xbf16, #tpu.memory_space<vmem>>, vector<22x64xbf16>,
    %c10_270 = arith.constant 10 : index
    %c0_271 = arith.constant 0 : index
    %267 = vector.load %arg10[%c10_270, %c0_271] : memref<40x64xf32, #tpu.memory_space<vmem>>, vector<22x64xf32>
    %268 = arith.truncf %267 : vector<22x64xf32> to vector<22x64xbf16>
    %c0_272 = arith.constant 0 : index
    %c320_273 = arith.constant 320 : index
    %269 = vector.load %arg13[%c0_272, %c320_273] : memref<22x576xbf16, #tpu.memory_space<vmem>>, vector<22x64xbf16>
    tpu.vector_store %arg13[%c0_272, %c320_273], %268 {strides = array<i32>} : memref<22x576xbf16, #tpu.memory_space<vmem>>, vector<22x64xbf16>,
    %c14_274 = arith.constant 14 : index
    %c0_275 = arith.constant 0 : index
    %270 = vector.load %arg10[%c14_274, %c0_275] : memref<40x64xf32, #tpu.memory_space<vmem>>, vector<22x64xf32>
    %271 = arith.truncf %270 : vector<22x64xf32> to vector<22x64xbf16>
    %c0_276 = arith.constant 0 : index
    %c384_277 = arith.constant 384 : index
    %272 = vector.load %arg13[%c0_276, %c384_277] : memref<22x576xbf16, #tpu.memory_space<vmem>>, vector<22x64xbf16>
    tpu.vector_store %arg13[%c0_276, %c384_277], %271 {strides = array<i32>} : memref<22x576xbf16, #tpu.memory_space<vmem>>, vector<22x64xbf16>,
    %c15_278 = arith.constant 15 : index
    %c0_279 = arith.constant 0 : index
    %273 = vector.load %arg10[%c15_278, %c0_279] : memref<40x64xf32, #tpu.memory_space<vmem>>, vector<22x64xf32>
    %274 = arith.truncf %273 : vector<22x64xf32> to vector<22x64xbf16>
    %c0_280 = arith.constant 0 : index
    %c448_281 = arith.constant 448 : index
    %275 = vector.load %arg13[%c0_280, %c448_281] : memref<22x576xbf16, #tpu.memory_space<vmem>>, vector<22x64xbf16>
    tpu.vector_store %arg13[%c0_280, %c448_281], %274 {strides = array<i32>} : memref<22x576xbf16, #tpu.memory_space<vmem>>, vector<22x64xbf16>,
    %c16_282 = arith.constant 16 : index
    %c0_283 = arith.constant 0 : index
    %276 = vector.load %arg10[%c16_282, %c0_283] : memref<40x64xf32, #tpu.memory_space<vmem>>, vector<22x64xf32>
    %277 = arith.truncf %276 : vector<22x64xf32> to vector<22x64xbf16>
    %c0_284 = arith.constant 0 : index
    %c512_285 = arith.constant 512 : index
    %278 = vector.load %arg13[%c0_284, %c512_285] : memref<22x576xbf16, #tpu.memory_space<vmem>>, vector<22x64xbf16>
    tpu.vector_store %arg13[%c0_284, %c512_285], %277 {strides = array<i32>} : memref<22x576xbf16, #tpu.memory_space<vmem>>, vector<22x64xbf16>,
    %c0_286 = arith.constant 0 : index
    %c0_287 = arith.constant 0 : index
    %279 = vector.load %arg13[%c0_286, %c0_287] : memref<22x576xbf16, #tpu.memory_space<vmem>>, vector<22x576xbf16>
    %c752_288 = arith.constant 752 : index
    %c0_289 = arith.constant 0 : index
    %280 = vector.load %arg2[%c752_288, %c0_289] : memref<1328x64xbf16, #tpu.memory_space<vmem>>, vector<576x64xbf16>
    %cst_290 = arith.constant dense<0.000000e+00> : vector<22x64xf32>
    %281 = tpu.matmul %279, %280, %cst_290 {dimension_numbers = #tpu.dot_dimension_numbers<[1], [0], [0], [1], [0, 0, 1, 1], [], []>} : vector<22x576xbf16>, vector<576x64xbf16>, vector<22x64xf32> -> vector<22x64xf32>
    %c8_291 = arith.constant 8 : index
    %c0_292 = arith.constant 0 : index
    %282 = vector.load %arg4[%c8_291, %c0_292] : memref<11x128xf32, #tpu.memory_space<vmem>>, vector<1x64xf32>
    %c9_293 = arith.constant 9 : index
    %c0_294 = arith.constant 0 : index
    %283 = vector.load %arg4[%c9_293, %c0_294] : memref<11x128xf32, #tpu.memory_space<vmem>>, vector<1x64xf32>
    %284 = vector.broadcast %282 : vector<1x64xf32> to vector<22x64xf32>
    %285 = arith.mulf %281, %284 : vector<22x64xf32>
    %286 = vector.broadcast %283 : vector<1x64xf32> to vector<22x64xf32>
    %287 = arith.addf %285, %286 : vector<22x64xf32>
    %cst_295 = arith.constant 0.000000e+00 : f32
    %288 = vector.broadcast %cst_295 : f32 to vector<22x64xf32>
    %289 = arith.maximumf %287, %288 : vector<22x64xf32>
    %290 = arith.addf %289, %210 : vector<22x64xf32>
    %cst_296 = arith.constant 0.000000e+00 : f32
    %291 = vector.broadcast %cst_296 : f32 to vector<22x64xf32>
    %292 = arith.maximumf %290, %291 : vector<22x64xf32>
    %293 = vector.broadcast %209 : vector<22x1xf32> to vector<22x64xf32>
    %294 = arith.mulf %292, %293 : vector<22x64xf32>
    %c9_297 = arith.constant 9 : index
    %c0_298 = arith.constant 0 : index
    %295 = vector.load %arg10[%c9_297, %c0_298] : memref<40x64xf32, #tpu.memory_space<vmem>>, vector<22x64xf32>
    tpu.vector_store %arg10[%c9_297, %c0_298], %294 {strides = array<i32>} : memref<40x64xf32, #tpu.memory_space<vmem>>, vector<22x64xf32>,
    %c176_299 = arith.constant 176 : index
    %c0_300 = arith.constant 0 : index
    %296 = vector.load %arg3[%c176_299, %c0_300] : memref<180x286xbf16, #tpu.memory_space<vmem>>, vector<4x22xbf16>
    %c9_301 = arith.constant 9 : index
    %c0_302 = arith.constant 0 : index
    %297 = vector.load %arg10[%c9_301, %c0_302] : memref<40x64xf32, #tpu.memory_space<vmem>>, vector<22x64xf32>
    %298 = arith.truncf %297 : vector<22x64xf32> to vector<22x64xbf16>
    %cst_303 = arith.constant dense<0.000000e+00> : vector<4x64xf32>
    %299 = tpu.matmul %296, %298, %cst_303 {dimension_numbers = #tpu.dot_dimension_numbers<[1], [0], [0], [1], [0, 0, 1, 1], [], []>} : vector<4x22xbf16>, vector<22x64xbf16>, vector<4x64xf32> -> vector<4x64xf32>
    %c10_304 = arith.constant 10 : index
    %c0_305 = arith.constant 0 : index
    %300 = vector.load %arg4[%c10_304, %c0_305] : memref<11x128xf32, #tpu.memory_space<vmem>>, vector<1x128xf32>
    %301 = vector.extract_strided_slice %299 {offsets = [0, 0], sizes = [1, 64], strides = [1, 1]} : vector<4x64xf32> to vector<1x64xf32>
    %302 = arith.truncf %301 : vector<1x64xf32> to vector<1x64xbf16>
    %c0_306 = arith.constant 0 : index
    %c0_307 = arith.constant 0 : index
    %c0_308 = arith.constant 0 : index
    %303 = vector.load %arg5[%c0_306, %c0_307, %c0_308] : memref<4x64x128xbf16, #tpu.memory_space<vmem>>, vector<1x64x128xbf16>
    %304 = vector.shape_cast %303 : vector<1x64x128xbf16> to vector<64x128xbf16>
    %cst_309 = arith.constant dense<0.000000e+00> : vector<1x128xf32>
    %305 = tpu.matmul %302, %304, %cst_309 {dimension_numbers = #tpu.dot_dimension_numbers<[1], [0], [0], [1], [0, 0, 1, 1], [], []>} : vector<1x64xbf16>, vector<64x128xbf16>, vector<1x128xf32> -> vector<1x128xf32>
    %306 = arith.addf %300, %305 : vector<1x128xf32>
    %307 = vector.extract_strided_slice %299 {offsets = [1, 0], sizes = [1, 64], strides = [1, 1]} : vector<4x64xf32> to vector<1x64xf32>
    %308 = arith.truncf %307 : vector<1x64xf32> to vector<1x64xbf16>
    %c1_310 = arith.constant 1 : index
    %c0_311 = arith.constant 0 : index
    %c0_312 = arith.constant 0 : index
    %309 = vector.load %arg5[%c1_310, %c0_311, %c0_312] : memref<4x64x128xbf16, #tpu.memory_space<vmem>>, vector<1x64x128xbf16>
    %310 = vector.shape_cast %309 : vector<1x64x128xbf16> to vector<64x128xbf16>
    %cst_313 = arith.constant dense<0.000000e+00> : vector<1x128xf32>
    %311 = tpu.matmul %308, %310, %cst_313 {dimension_numbers = #tpu.dot_dimension_numbers<[1], [0], [0], [1], [0, 0, 1, 1], [], []>} : vector<1x64xbf16>, vector<64x128xbf16>, vector<1x128xf32> -> vector<1x128xf32>
    %312 = arith.addf %306, %311 : vector<1x128xf32>
    %313 = vector.extract_strided_slice %299 {offsets = [2, 0], sizes = [1, 64], strides = [1, 1]} : vector<4x64xf32> to vector<1x64xf32>
    %314 = arith.truncf %313 : vector<1x64xf32> to vector<1x64xbf16>
    %c2_314 = arith.constant 2 : index
    %c0_315 = arith.constant 0 : index
    %c0_316 = arith.constant 0 : index
    %315 = vector.load %arg5[%c2_314, %c0_315, %c0_316] : memref<4x64x128xbf16, #tpu.memory_space<vmem>>, vector<1x64x128xbf16>
    %316 = vector.shape_cast %315 : vector<1x64x128xbf16> to vector<64x128xbf16>
    %cst_317 = arith.constant dense<0.000000e+00> : vector<1x128xf32>
    %317 = tpu.matmul %314, %316, %cst_317 {dimension_numbers = #tpu.dot_dimension_numbers<[1], [0], [0], [1], [0, 0, 1, 1], [], []>} : vector<1x64xbf16>, vector<64x128xbf16>, vector<1x128xf32> -> vector<1x128xf32>
    %318 = arith.addf %312, %317 : vector<1x128xf32>
    %319 = vector.extract_strided_slice %299 {offsets = [3, 0], sizes = [1, 64], strides = [1, 1]} : vector<4x64xf32> to vector<1x64xf32>
    %320 = arith.truncf %319 : vector<1x64xf32> to vector<1x64xbf16>
    %c3_318 = arith.constant 3 : index
    %c0_319 = arith.constant 0 : index
    %c0_320 = arith.constant 0 : index
    %321 = vector.load %arg5[%c3_318, %c0_319, %c0_320] : memref<4x64x128xbf16, #tpu.memory_space<vmem>>, vector<1x64x128xbf16>
    %322 = vector.shape_cast %321 : vector<1x64x128xbf16> to vector<64x128xbf16>
    %cst_321 = arith.constant dense<0.000000e+00> : vector<1x128xf32>
    %323 = tpu.matmul %320, %322, %cst_321 {dimension_numbers = #tpu.dot_dimension_numbers<[1], [0], [0], [1], [0, 0, 1, 1], [], []>} : vector<1x64xbf16>, vector<64x128xbf16>, vector<1x128xf32> -> vector<1x128xf32>
    %324 = arith.addf %318, %323 : vector<1x128xf32>
    %c0_322 = arith.constant 0 : index
    %c0_323 = arith.constant 0 : index
    %c0_324 = arith.constant 0 : index
    %325 = vector.load %arg7[%c0_322, %c0_323, %c0_324] : memref<1x1x128xf32, #tpu.memory_space<vmem>>, vector<1x1x128xf32>
    %326 = vector.shape_cast %325 : vector<1x1x128xf32> to vector<1x128xf32>
    %327 = vector.shape_cast %324 : vector<1x128xf32> to vector<1x1x128xf32>
    tpu.vector_store %arg7[%c0_322, %c0_323, %c0_324], %327 {strides = array<i32>} : memref<1x1x128xf32, #tpu.memory_space<vmem>>, vector<1x1x128xf32>,
    return
  }
  func.func @transform_0(%arg0: i32) -> (i32, i32, i32) {
    %c0_i32 = arith.constant 0 : i32
    %c0_i32_0 = arith.constant 0 : i32
    %c0_i32_1 = arith.constant 0 : i32
    return %arg0, %c0_i32, %c0_i32_0 : i32, i32, i32
  }
  func.func @transform_1(%arg0: i32) -> (i32, i32) {
    %c0_i32 = arith.constant 0 : i32
    %c0_i32_0 = arith.constant 0 : i32
    %c0_i32_1 = arith.constant 0 : i32
    return %c0_i32, %c0_i32_0 : i32, i32
  }
  func.func @transform_2(%arg0: i32) -> (i32, i32) {
    %c0_i32 = arith.constant 0 : i32
    %c0_i32_0 = arith.constant 0 : i32
    %c0_i32_1 = arith.constant 0 : i32
    return %c0_i32, %c0_i32_0 : i32, i32
  }
  func.func @transform_3(%arg0: i32) -> (i32, i32) {
    %c0_i32 = arith.constant 0 : i32
    %c0_i32_0 = arith.constant 0 : i32
    %c0_i32_1 = arith.constant 0 : i32
    return %c0_i32, %c0_i32_0 : i32, i32
  }
  func.func @transform_4(%arg0: i32) -> (i32, i32, i32) {
    %c0_i32 = arith.constant 0 : i32
    %c0_i32_0 = arith.constant 0 : i32
    %c0_i32_1 = arith.constant 0 : i32
    %c0_i32_2 = arith.constant 0 : i32
    return %c0_i32, %c0_i32_0, %c0_i32_1 : i32, i32, i32
  }
  func.func @transform_5(%arg0: i32) -> (i32, i32) {
    %c0_i32 = arith.constant 0 : i32
    %c0_i32_0 = arith.constant 0 : i32
    %c0_i32_1 = arith.constant 0 : i32
    return %c0_i32, %c0_i32_0 : i32, i32
  }
  func.func @transform_6(%arg0: i32) -> (i32, i32, i32) {
    %c0_i32 = arith.constant 0 : i32
    %c0_i32_0 = arith.constant 0 : i32
    %c0_i32_1 = arith.constant 0 : i32
    return %arg0, %c0_i32, %c0_i32_0 : i32, i32, i32
  }
}

</mosaic_0001>

<bundles_post_ra>
// kernel: forward.1
= control target key start
LH: loop header
LB: loop body
LE: loop exit
PB: predicated region body
PF: predicated region fallthrough
CT: control target
= control target key end

     0   :  { %11 = vsyncpa [#allocation9], 0  ;;  %s17406_s0 = inlined_call_operand.vmem [shape: bf16[2,1024,32], index: 0, kind: input, shape index: {}]   ;;  %s17407_s1 = inlined_call_operand.vmem [shape: bf16[1328,64], index: 1, kind: input, shape index: {}]   ;;  %s17408_s2 = inlined_call_operand.vmem [shape: bf16[180,286], index: 2, kind: input, shape index: {}]   ;;  %s17409_s3 = inlined_call_operand.vmem [shape: f32[11,128], index: 3, kind: input, shape index: {}]   ;;  %s17410_s4 = inlined_call_operand.vmem [shape: bf16[4,64,128], index: 4, kind: input, shape index: {}]   ;;  %s17411_s5 = inlined_call_operand.vmem [shape: f32[80,2], index: 5, kind: input, shape index: {}]   ;;  %s17412_s6 = inlined_call_operand.hbm [shape: f32[2,1,128], index: 6, kind: output, shape index: {}]  }
   0x1   :  { %13 = vsyncpa [#allocation9 + $0x1], 0  ;;  %s14397_s21 = smov 0   ;;  %s14399_s22 = smov 0  }
   0x2   :  { %s14401_s23 = smov 0   ;;  %s14403_s24 = smov 0  }
   0x3 LB: > { %s14418_s25 = sadd.s32 4294967295, %s14348_s24   ;;  %s11079_s26 = sadd.s32 4294967294, %s14348_s24   ;;  %s14348_s24 = sphi %s14403_s24, %s17418_s24   ;;  %s14344_s23 = sphi %s14401_s23, %s17417_s23   ;;  %s14340_s22 = sphi %s14399_s22, %s17416_s22   ;;  %s14336_s21 = sphi %s14397_s21, %s17415_s21  }
   0x4   : > { %s14422_s27 = sadd.s32 1, %s14348_s24   ;;  %s157_s28 = sadd.s32 1, %s14344_s23 }
   0x5   : > { %s154_s29 = ssub.s32 %s14348_s24, %s14422_s27  ;;  %p167_p0 = scmp.ne.s32.totalorder %s14344_s23, %s14340_s22 }
   0x6   : > { %p155_p1 = scmp.eq.s32.totalorder %s154_s29, 0  ;;  %p168_p2 = scmp.eq.s32.totalorder %s14418_s25, 1 }
   0x7   : > { %p173_p3 = scmp.ne.s32.totalorder %s14340_s22, %s14336_s21  ;;  %p174_p4 = scmp.eq.s32.totalorder %s11079_s26, 1 }
   0x8   : > { %s14433_s30 = scalar_select %p155_p1, %s14344_s23, %s157_s28  }
   0x9   : > { %p14435_p5 = por %p168_p2, %p167_p0  ;;  %p14439_p6 = por %p174_p4, %p173_p3 }
   0xa   : > { %p11082_p7 = scmp.ge.s32.totalorder %s14348_s24, 1  ;;  %p215_p8 = scmp.lt.s32.totalorder %s14348_s24, 3 }
   0xc   : > { %p216_p9 = pnand %p11082_p7, %p215_p8 }
   0xd   : > { %v13919_v0 = vld [vmem:[%s17407_s1] sm:$0xff] (!%p216_p9)   ;;  %p244_p10 = scmp.lt.s32.totalorder (!%p216_p9), %s14418_s25, 1  ;;  %v13920_v1 = vld [vmem:[%s17407_s1 + $0x8] sm:$0xff] (!%p216_p9)   ;;  %vm257_vm0 = vcmask (!%p216_p9), 261120   ;;  %vm250_vm1 = vcmask (!%p216_p9), 130048   ;;  %s14351_s10 = smov (!%p216_p9), 16  }
   0xe   : > { %219 = sbr.rel (%p216_p9) target bundleno = 4374 (0x1116), region = 44  ;;  %13497 = vmatprep.subr.bf16.mxu0 (!%p216_p9), %v13919_v0  ;;  %v14545_v45 = vld [vmem:[%s17408_s2 + $0x4] ss:$12 sps:$4 sm:$0xff] (!%p216_p9)   ;;  %v14575_v57 = vld [vmem:[%s17409_s3] ss:$0 sm:$0xff] (!%p216_p9)  ;;  %s14352_s11 = smov (!%p216_p9), 32  }
   0xf   : > { %13498 = vmatpush3.bf16.msra.mxu0 (!%p216_p9), %v13919_v0  ;;  %2012 = vmatprep.mubr.bf16.mxu1 (!%p216_p9), %v14545_v45  ;;  %v14580_v59 = vld [vmem:[%s17409_s3 + $0x1] ss:$0 sm:$0xff] (!%p216_p9)  ;;  %vm2774_vm2 = vcmask (!%p216_p9), 257152   ;;  %vm2484_vm3 = vcmask (!%p216_p9), 125952   ;;  %vm3064_vm4 = vcmask (!%p216_p9), 388352   ;;  %s14353_s15 = smov (!%p216_p9), 48  }
  0x10   : > { %13499 = vmatprep.subr.bf16.mxu0 (!%p216_p9), %v13920_v1  ;;  %s14357_s16 = smov (!%p216_p9), 96   ;;  %vm3354_vm5 = vcmask (!%p216_p9), 519552   ;;  %vm3644_vm6 = vcmask (!%p216_p9), 650752   ;;  %vm3934_vm7 = vcmask (!%p216_p9), 781952   ;;  %vm4224_vm8 = vcmask (!%p216_p9), 913152   ;;  %s14361_s12 = smov (!%p216_p9), [#allocation8]  }
  0x11   : > { %vm4514_vm9 = vcmask (!%p216_p9), 1044352   ;;  %vm2520_vm10 = vcmask (!%p216_p9), 124928   ;;  %vm2810_vm11 = vcmask (!%p216_p9), 256128   ;;  %vm3100_vm12 = vcmask (!%p216_p9), 387328  }
  0x12   : > { %vm3390_vm13 = vcmask (!%p216_p9), 518528   ;;  %vm3680_vm14 = vcmask (!%p216_p9), 649728   ;;  %vm3970_vm15 = vcmask (!%p216_p9), 780928  }
  0x13   : > { %13500 = vmatpush3.bf16.msra.mxu0 (!%p216_p9), %v13920_v1 }
  0x15   : > { %s245_s13 = scalar_select %p244_p10, %s14418_s25, 1 }
  0x17   : > { %s12232_s14 = sshll.u32 %s245_s13, 9  ;;  %s14355_s13 = smov 64  }
  0x18   : > { %s14456_s17 = scalar_lea.vmem %s17406_s0, %s12232_s14  ;;  %s14356_s14 = smov 80  }
  0x19   : > { %v13921_v2 = vld [vmem:[%s14456_s17] sm:$0xff]   ;;  %v13922_v3 = vld [vmem:[%s14456_s17 + $0x8] sm:$0xff]   ;;  %v13923_v4 = vld [vmem:[%s14456_s17 + $0x10] sm:$0xff]  }
  0x1a   : > { %13501 = vmatprep.mubr.msk.bf16.mxu0 %vm257_vm0, %v13921_v2  ;;  %v13924_v5 = vld [vmem:[%s14456_s17 + $0x18] sm:$0xff]   ;;  %v13925_v6 = vld [vmem:[%s14456_s17 + $0x20] sm:$0xff]   ;;  %v13926_v7 = vld [vmem:[%s14456_s17 + $0x28] sm:$0xff]  }
  0x1b   : > { %13502 = vmatmul.mubr.msk.bf16.vlgmr.msra.gmra.mrb[0].mxu0 %vm257_vm0, %v13922_v3  ;;  %v13927_v8 = vld [vmem:[%s14456_s17 + $0x30] sm:$0xff]   ;;  %v13928_v9 = vld [vmem:[%s14456_s17 + $0x38] sm:$0xff]   ;;  %v13929_v10 = vld [vmem:[%s14456_s17 + $0x40] sm:$0xff]  }
  0x1c   : > { %13505 = vmatprep.mubr.msk.bf16.mxu0 %vm257_vm0, %v13923_v4  ;;  %v13930_v11 = vld [vmem:[%s14456_s17 + $0x48] sm:$0xff]   ;;  %v13931_v12 = vld [vmem:[%s14456_s17 + $0x50] sm:$0xff]   ;;  %v13932_v13 = vld [vmem:[%s14456_s17 + $0x58] sm:$0xff]  }
  0x1d   : > { %v13933_v14 = vld [vmem:[%s14456_s17 + $0x60] sm:$0xff]   ;;  %v13934_v15 = vld [vmem:[%s14456_s17 + $0x68] sm:$0xff]   ;;  %v13935_v16 = vld [vmem:[%s14456_s17 + $0x70] sm:$0xff]  }
  0x1e   : > { %v13936_v17 = vld [vmem:[%s14456_s17 + $0x78] sm:$0xff]   ;;  %v13937_v18 = vld [vmem:[%s14456_s17 + $0x80] sm:$0xff]   ;;  %v13938_v19 = vld [vmem:[%s14456_s17 + $0x88] sm:$0xff]  }
  0x1f   : > { %v13939_v20 = vld [vmem:[%s14456_s17 + $0x90] sm:$0xff]   ;;  %v13940_v21 = vld [vmem:[%s14456_s17 + $0x98] sm:$0xff]   ;;  %v13941_v22 = vld [vmem:[%s14456_s17 + $0xa0] sm:$0xff]  }
  0x20   : > { %v13942_v23 = vld [vmem:[%s14456_s17 + $0xa8] sm:$0xff]   ;;  %v13943_v24 = vld [vmem:[%s14456_s17 + $0xb0] sm:$0xff]   ;;  %v13944_v25 = vld [vmem:[%s14456_s17 + $0xb8] sm:$0xff]  }
  0x21   : > { %v13945_v26 = vld [vmem:[%s14456_s17 + $0xc0] sm:$0xff]   ;;  %v13946_v27 = vld [vmem:[%s14456_s17 + $0xc8] sm:$0xff]   ;;  %v13947_v28 = vld [vmem:[%s14456_s17 + $0xd0] sm:$0xff]  }
  0x22   : > { %v13948_v29 = vld [vmem:[%s14456_s17 + $0xd8] sm:$0xff]   ;;  %v13949_v30 = vld [vmem:[%s14456_s17 + $0xe0] sm:$0xff]   ;;  %v13950_v31 = vld [vmem:[%s14456_s17 + $0xe8] sm:$0xff]  }
  0x23   : > { %13506 = vmatmul.mubr.msk.bf16.gmra.mrb[4].mxu0 %vm257_vm0, %v13924_v5  ;;  %v13951_v32 = vld [vmem:[%s14456_s17 + $0xf0] sm:$0xff]   ;;  %v13952_v33 = vld [vmem:[%s14456_s17 + $0xf8] sm:$0xff]   ;;  %v13953_v34 = vld [vmem:[%s14456_s17 + $0x100] sm:$0xff]  }
  0x24   : > { %13509 = vmatprep.mubr.msk.bf16.mxu0 %vm257_vm0, %v13925_v6  ;;  %v13954_v35 = vld [vmem:[%s14456_s17 + $0x108] sm:$0xff]   ;;  %v13955_v36 = vld [vmem:[%s14456_s17 + $0x110] sm:$0xff]   ;;  %v13956_v37 = vld [vmem:[%s14456_s17 + $0x118] sm:$0xff]  }
  0x25   : > { %v13957_v38 = vld [vmem:[%s14456_s17 + $0x120] sm:$0xff]   ;;  %v13958_v39 = vld [vmem:[%s14456_s17 + $0x128] sm:$0xff]   ;;  %v13959_v40 = vld [vmem:[%s14456_s17 + $0x130] sm:$0xff]  }
  0x26   : > { %v13960_v41 = vld [vmem:[%s14456_s17 + $0x138] sm:$0xff]   ;;  %v13961_v42 = vld [vmem:[%s14456_s17 + $0x140] sm:$0xff]   ;;  %v13962_v43 = vld [vmem:[%s14456_s17 + $0x148] sm:$0xff]  }
  0x27   : > { %v13963_v44 = vld [vmem:[%s14456_s17 + $0x150] sm:$0xff]   ;;  %v13964_v46 = vld [vmem:[%s14456_s17 + $0x158] sm:$0xff]   ;;  %v13965_v47 = vld [vmem:[%s14456_s17 + $0x160] sm:$0xff]  }
  0x28   : > { %v13966_v48 = vld [vmem:[%s14456_s17 + $0x168] sm:$0xff]   ;;  %v13967_v49 = vld [vmem:[%s14456_s17 + $0x170] sm:$0xff]   ;;  %v13968_v50 = vld [vmem:[%s14456_s17 + $0x178] sm:$0xff]  }
  0x29   : > { %v13981_v51 = vld [vmem:[%s14456_s17 + $0x180] sm:$0xff]   ;;  %v13982_v52 = vld [vmem:[%s14456_s17 + $0x188] sm:$0xff]   ;;  %v13983_v53 = vld [vmem:[%s14456_s17 + $0x190] sm:$0xff]  }
  0x2a   : > { %v13984_v54 = vld [vmem:[%s14456_s17 + $0x198] sm:$0xff]   ;;  %v13987_v55 = vld [vmem:[%s14456_s17 + $0x1a0] sm:$0xff]   ;;  %v13988_v56 = vld [vmem:[%s14456_s17 + $0x1a8] sm:$0xff]  }
  0x2b   : > { %13510 = vmatmul.mubr.msk.bf16.gmra.mrb[8].mxu0 %vm257_vm0, %v13926_v7  ;;  %v13989_v60 = vld [vmem:[%s14456_s17 + $0x1b0] sm:$0xff]   ;;  %v13990_v63 = vld [vmem:[%s14456_s17 + $0x1b8] sm:$0xff]  }
  0x2c   : > { %13513 = vmatprep.mubr.msk.bf16.mxu0 %vm257_vm0, %v13927_v8 }
  0x33   : > { %13514 = vmatmul.mubr.msk.bf16.gmra.mrb[12].mxu0 %vm257_vm0, %v13928_v9 }
  0x34   : > { %13517 = vmatprep.mubr.msk.bf16.mxu0 %vm257_vm0, %v13929_v10 }
  0x3b   : > { %13518 = vmatmul.mubr.msk.bf16.gmra.mrb[16].mxu0 %vm257_vm0, %v13930_v11 }
  0x3c   : > { %13521 = vmatprep.mubr.msk.bf16.mxu0 %vm257_vm0, %v13931_v12 }
  0x43   : > { %13522 = vmatmul.mubr.msk.bf16.gmra.mrb[20].mxu0 %vm257_vm0, %v13932_v13 }
  0x44   : > { %13525 = vmatprep.mubr.msk.bf16.mxu0 %vm257_vm0, %v13933_v14  ;;  %v13991_v14 = vld [vmem:[%s14456_s17 + $0x1c0] sm:$0xff]  }
  0x4b   : > { %13526 = vmatmul.mubr.msk.bf16.gmra.mrb[24].mxu0 %vm257_vm0, %v13934_v15 }
  0x4c   : > { %13529 = vmatprep.mubr.msk.bf16.mxu0 %vm257_vm0, %v13935_v16 }
  0x53   : > { %13530 = vmatmul.mubr.msk.bf16.gmra.mrb[28].mxu0 %vm257_vm0, %v13936_v17 }
  0x54   : > { %13533 = vmatprep.mubr.msk.bf16.mxu0 %vm257_vm0, %v13937_v18  ;;  %v13992_v18 = vld [vmem:[%s14456_s17 + $0x1c8] sm:$0xff]  }
  0x5b   : > { %13534 = vmatmul.mubr.msk.bf16.gmra.mrb[32].mxu0 %vm257_vm0, %v13938_v19 }
  0x5c   : > { %13537 = vmatprep.mubr.msk.bf16.mxu0 %vm257_vm0, %v13939_v20 }
  0x63   : > { %13538 = vmatmul.mubr.msk.bf16.gmra.mrb[36].mxu0 %vm257_vm0, %v13940_v21 }
  0x64   : > { %13541 = vmatprep.mubr.msk.bf16.mxu0 %vm257_vm0, %v13941_v22  ;;  %v13993_v22 = vld [vmem:[%s14456_s17 + $0x1d0] sm:$0xff]  }
  0x6b   : > { %13542 = vmatmul.mubr.msk.bf16.gmra.mrb[40].mxu0 %vm257_vm0, %v13942_v23 }
  0x6c   : > { %13545 = vmatprep.mubr.msk.bf16.mxu0 %vm257_vm0, %v13943_v24 }
  0x73   : > { %13546 = vmatmul.mubr.msk.bf16.gmra.mrb[44].mxu0 %vm257_vm0, %v13944_v25 }
  0x74   : > { %13549 = vmatprep.mubr.msk.bf16.mxu0 %vm257_vm0, %v13945_v26 }
  0x7b   : > { %13550 = vmatmul.mubr.msk.bf16.gmra.mrb[48].mxu0 %vm257_vm0, %v13946_v27 }
  0x7c   : > { %13553 = vmatprep.mubr.msk.bf16.mxu0 %vm257_vm0, %v13947_v28 }
  0x83   : > { %13554 = vmatmul.mubr.msk.bf16.gmra.mrb[52].mxu0 %vm257_vm0, %v13948_v29 }
  0x84   : > { %13557 = vmatprep.mubr.msk.bf16.mxu0 %vm257_vm0, %v13949_v30 }
  0x8b   : > { %13558 = vmatmul.mubr.msk.bf16.gmra.mrb[56].mxu0 %vm257_vm0, %v13950_v31 }
  0x8c   : > { %13561 = vmatprep.mubr.msk.bf16.mxu0 %vm257_vm0, %v13951_v32 }
  0x93   : > { %13562 = vmatmul.mubr.msk.bf16.gmra.mrb[60].mxu0 %vm257_vm0, %v13952_v33 }
  0x94   : > { %13565 = vmatprep.mubr.msk.bf16.mxu0 %vm257_vm0, %v13953_v34 }
  0x9b   : > { %13566 = vmatmul.mubr.msk.bf16.gmra.mrb[64].mxu0 %vm257_vm0, %v13954_v35 }
  0x9c   : > { %13569 = vmatprep.mubr.msk.bf16.mxu0 %vm257_vm0, %v13955_v36 }
  0xa3   : > { %13570 = vmatmul.mubr.msk.bf16.gmra.mrb[68].mxu0 %vm257_vm0, %v13956_v37 }
  0xa4   : > { %13573 = vmatprep.mubr.msk.bf16.mxu0 %vm257_vm0, %v13957_v38  ;;  %v13994_v38 = vld [vmem:[%s14456_s17 + $0x1d8] sm:$0xff]  }
  0xab   : > { %13574 = vmatmul.mubr.msk.bf16.gmra.mrb[72].mxu0 %vm257_vm0, %v13958_v39 }
  0xac   : > { %13577 = vmatprep.mubr.msk.bf16.mxu0 %vm257_vm0, %v13959_v40 }
  0xb3   : > { %13578 = vmatmul.mubr.msk.bf16.gmra.mrb[76].mxu0 %vm257_vm0, %v13960_v41 }
  0xb4   : > { %13581 = vmatprep.mubr.msk.bf16.mxu0 %vm257_vm0, %v13961_v42  ;;  %v13995_v42 = vld [vmem:[%s14456_s17 + $0x1e0] sm:$0xff]  }
  0xbb   : > { %13582 = vmatmul.mubr.msk.bf16.gmra.mrb[80].mxu0 %vm257_vm0, %v13962_v43 }
  0xbc   : > { %13585 = vmatprep.mubr.msk.bf16.mxu0 %vm257_vm0, %v13963_v44 }
  0xc3   : > { %13586 = vmatmul.mubr.msk.bf16.gmra.mrb[84].mxu0 %vm257_vm0, %v13964_v46 }
  0xc4   : > { %13589 = vmatprep.mubr.msk.bf16.mxu0 %vm257_vm0, %v13965_v47 }
  0xcb   : > { %13590 = vmatmul.mubr.msk.bf16.gmra.mrb[88].mxu0 %vm257_vm0, %v13966_v48 }
  0xcc   : > { %13593 = vmatprep.mubr.msk.bf16.mxu0 %vm257_vm0, %v13967_v49 }
  0xd3   : > { %13594 = vmatmul.mubr.msk.bf16.gmra.mrb[92].mxu0 %vm257_vm0, %v13968_v50 }
  0xd4   : > { %13597 = vmatprep.mubr.msk.bf16.mxu0 %vm257_vm0, %v13981_v51 }
  0xdb   : > { %13598 = vmatmul.mubr.msk.bf16.gmra.mrb[96].mxu0 %vm257_vm0, %v13982_v52 }
  0xdc   : > { %13601 = vmatprep.mubr.msk.bf16.mxu0 %vm257_vm0, %v13983_v53 }
  0xe3   : > { %13602 = vmatmul.mubr.msk.bf16.gmra.mrb[100].mxu0 %vm257_vm0, %v13984_v54 }
  0xe4   : > { %13605 = vmatprep.mubr.msk.bf16.mxu0 %vm257_vm0, %v13987_v55 }
  0xeb   : > { %13606 = vmatmul.mubr.msk.bf16.gmra.mrb[104].mxu0 %vm257_vm0, %v13988_v56 }
  0xec   : > { %13609 = vmatprep.mubr.msk.bf16.mxu0 %vm257_vm0, %v13989_v60 }
  0xee   : > { %v13503_v58 = vpop.f32.mrb[0].mxu0 }
  0xef   : > { %v1474_v61 = vmul.f32 %v13503_v58, %v14575_v57  ;;  %v955_v62 = vpop.f32.mrb[1].mxu0 }
  0xf0   : > { %v1472_v0 = vmul.f32 %v14575_v57, %v955_v62  ;;  %v13504_v1 = vpop.f32.mrb[2].mxu0 }
  0xf1   : > { %v1606_v2 = vadd.f32 %v14580_v59, %v1474_v61  ;;  %v1475_v3 = vmul.f32 %v13504_v1, %v14575_v57  ;;  %v958_v4 = vpop.f32.mrb[3].mxu0  ;;  %v13996_v61 = vld [vmem:[%s14456_s17 + $0x1e8] sm:$0xff]   ;;  %v13997_v1 = vld [vmem:[%s14456_s17 + $0x1f0] sm:$0xff]  }
  0xf2   : > { %v1473_v5 = vmul.f32 %v14575_v57, %v958_v4  ;;  %v1604_v6 = vadd.f32 %v14580_v59, %v1472_v0 }
  0xf3   : > { %v1607_v7 = vadd.f32 %v14580_v59, %v1475_v3  ;;  %13610 = vmatmul.mubr.msk.bf16.gmra.mrb[108].mxu0 %vm257_vm0, %v13990_v63  ;;  %v1734_v9 = vmax.f32 %v1606_v2, 0.0 }
  0xf4   : > { %v1605_v8 = vadd.f32 %v14580_v59, %v1473_v5  ;;  %v1732_v12 = vmax.f32 %v1604_v6, 0.0  ;;  %13613 = vmatprep.mubr.msk.bf16.mxu0 %vm257_vm0, %v13991_v14 }
  0xf5   : > { %v1735_v10 = vmax.f32 %v1607_v7, 0.0 }
  0xf6   : > { %v13507_v11 = vpop.f32.mrb[4].mxu0  ;;  %v1733_v13 = vmax.f32 %v1605_v8, 0.0 }
  0xf7   : > { %v1478_v15 = vmul.f32 %v13507_v11, %v14575_v57  ;;  %v971_v16 = vpop.f32.mrb[5].mxu0  ;;  %v14596_v17 = vpack.c.bf16 %v1735_v10, %v1734_v9 }
  0xf8   : > { %v1476_v19 = vmul.f32 %v14575_v57, %v971_v16  ;;  %v13508_v20 = vpop.f32.mrb[6].mxu0  ;;  %v14600_v21 = vpack.c.bf16 %v1733_v13, %v1732_v12 }
  0xf9   : > { %v1610_v23 = vadd.f32 %v14580_v59, %v1478_v15  ;;  %v1479_v24 = vmul.f32 %v13508_v20, %v14575_v57  ;;  %v974_v25 = vpop.f32.mrb[7].mxu0 }
  0xfa   : > { %v1608_v26 = vadd.f32 %v14580_v59, %v1476_v19  ;;  %v1477_v27 = vmul.f32 %v14575_v57, %v974_v25 }
  0xfb   : > { %v1611_v28 = vadd.f32 %v14580_v59, %v1479_v24  ;;  %13614 = vmatmul.mubr.msk.bf16.gmra.mrb[112].mxu0 %vm257_vm0, %v13992_v18  ;;  %v1738_v30 = vmax.f32 %v1610_v23, 0.0  ;;  %v13998_v18 = vld [vmem:[%s14456_s17 + $0x1f8] sm:$0xff]   ;;  %s14358_s17 = smov 112  }
  0xfc   : > { %v1609_v29 = vadd.f32 %v14580_v59, %v1477_v27  ;;  %13617 = vmatprep.mubr.msk.bf16.mxu0 %vm257_vm0, %v13993_v22  ;;  %v1736_v33 = vmax.f32 %v1608_v26, 0.0 }
  0xfd   : > { %v1739_v31 = vmax.f32 %v1611_v28, 0.0 }
  0xfe   : > { %v13511_v32 = vpop.f32.mrb[8].mxu0  ;;  %v1737_v34 = vmax.f32 %v1609_v29, 0.0 }
  0xff   : > { %v1482_v35 = vmul.f32 %v13511_v32, %v14575_v57  ;;  %v987_v36 = vpop.f32.mrb[9].mxu0  ;;  %v14613_v37 = vpack.c.bf16 %v1739_v31, %v1738_v30 }
 0x100   : > { %v1480_v39 = vmul.f32 %v14575_v57, %v987_v36  ;;  %v13512_v40 = vpop.f32.mrb[10].mxu0  ;;  %v14617_v41 = vpack.c.bf16 %v1737_v34, %v1736_v33 }
 0x101   : > { %v1614_v43 = vadd.f32 %v14580_v59, %v1482_v35  ;;  %v1483_v44 = vmul.f32 %v13512_v40, %v14575_v57  ;;  %v990_v46 = vpop.f32.mrb[11].mxu0 }
 0x102   : > { %v1612_v47 = vadd.f32 %v14580_v59, %v1480_v39  ;;  %v1481_v48 = vmul.f32 %v14575_v57, %v990_v46 }
 0x103   : > { %v1615_v49 = vadd.f32 %v14580_v59, %v1483_v44  ;;  %13618 = vmatmul.mubr.msk.bf16.gmra.mrb[116].mxu0 %vm257_vm0, %v13994_v38  ;;  %v1742_v51 = vmax.f32 %v1614_v43, 0.0 }
 0x104   : > { %v1613_v50 = vadd.f32 %v14580_v59, %v1481_v48  ;;  %13621 = vmatprep.mubr.msk.bf16.mxu0 %vm257_vm0, %v13995_v42  ;;  %v1740_v54 = vmax.f32 %v1612_v47, 0.0 }
 0x105   : > { %v1743_v52 = vmax.f32 %v1615_v49, 0.0 }
 0x106   : > { %v13515_v53 = vpop.f32.mrb[12].mxu0  ;;  %v1741_v55 = vmax.f32 %v1613_v50, 0.0 }
 0x107   : > { %v1486_v56 = vmul.f32 %v13515_v53, %v14575_v57  ;;  %v1003_v58 = vpop.f32.mrb[13].mxu0  ;;  %v14629_v60 = vpack.c.bf16 %v1743_v52, %v1742_v51 }
 0x108   : > { %v1484_v62 = vmul.f32 %v14575_v57, %v1003_v58  ;;  %v13516_v63 = vpop.f32.mrb[14].mxu0  ;;  %v14633_v0 = vpack.c.bf16 %v1741_v55, %v1740_v54 }
 0x109   : > { %v1618_v2 = vadd.f32 %v14580_v59, %v1486_v56  ;;  %v1487_v3 = vmul.f32 %v13516_v63, %v14575_v57  ;;  %v1006_v4 = vpop.f32.mrb[15].mxu0 }
 0x10a   : > { %v1616_v5 = vadd.f32 %v14580_v59, %v1484_v62  ;;  %v1485_v6 = vmul.f32 %v14575_v57, %v1006_v4 }
 0x10b   : > { %v1619_v7 = vadd.f32 %v14580_v59, %v1487_v3  ;;  %13622 = vmatmul.mubr.msk.bf16.gmra.mrb[120].mxu0 %vm257_vm0, %v13996_v61  ;;  %v1746_v9 = vmax.f32 %v1618_v2, 0.0 }
 0x10c   : > { %v1617_v8 = vadd.f32 %v14580_v59, %v1485_v6  ;;  %13625 = vmatprep.mubr.msk.bf16.mxu0 %vm257_vm0, %v13997_v1  ;;  %v1744_v11 = vmax.f32 %v1616_v5, 0.0 }
 0x10d   : > { %v1747_v10 = vmax.f32 %v1619_v7, 0.0 }
 0x10e   : > { %v1745_v12 = vmax.f32 %v1617_v8, 0.0  ;;  %v13519_v13 = vpop.f32.mrb[16].mxu0 }
 0x10f   : > { %v1490_v14 = vmul.f32 %v13519_v13, %v14575_v57  ;;  %v1019_v15 = vpop.f32.mrb[17].mxu0  ;;  %v14645_v16 = vpack.c.bf16 %v1747_v10, %v1746_v9 }
 0x110   : > { %v1488_v19 = vmul.f32 %v14575_v57, %v1019_v15  ;;  %v13520_v20 = vpop.f32.mrb[18].mxu0  ;;  %v14649_v22 = vpack.c.bf16 %v1745_v12, %v1744_v11 }
 0x111   : > { %v1622_v23 = vadd.f32 %v14580_v59, %v1490_v14  ;;  %v1491_v24 = vmul.f32 %v13520_v20, %v14575_v57  ;;  %v1022_v25 = vpop.f32.mrb[19].mxu0 }
 0x112   : > { %v1489_v26 = vmul.f32 %v14575_v57, %v1022_v25  ;;  %v1620_v27 = vadd.f32 %v14580_v59, %v1488_v19 }
 0x113   : > { %v1623_v28 = vadd.f32 %v14580_v59, %v1491_v24  ;;  %13626 = vmatmul.mubr.msk.bf16.gmra.mrb[124].mxu0 %vm257_vm0, %v13998_v18  ;;  %v1750_v30 = vmax.f32 %v1622_v23, 0.0 }
 0x114   : > { %v1621_v29 = vadd.f32 %v14580_v59, %v1489_v26  ;;  %v1748_v33 = vmax.f32 %v1620_v27, 0.0 }
 0x115   : > { %v1751_v31 = vmax.f32 %v1623_v28, 0.0 }
 0x116   : > { %v13523_v32 = vpop.f32.mrb[20].mxu0  ;;  %v1749_v34 = vmax.f32 %v1621_v29, 0.0 }
 0x117   : > { %v1494_v35 = vmul.f32 %v13523_v32, %v14575_v57  ;;  %v1035_v36 = vpop.f32.mrb[21].mxu0  ;;  %v1869_v38 = vpack.c.bf16 %v1751_v31, %v1750_v30 }
 0x118   : > { %v1492_v39 = vmul.f32 %v14575_v57, %v1035_v36  ;;  %v13524_v40 = vpop.f32.mrb[22].mxu0  ;;  %v1868_v42 = vpack.c.bf16 %v1749_v34, %v1748_v33 }
 0x119   : > { %v1626_v43 = vadd.f32 %v14580_v59, %v1494_v35  ;;  %v1495_v44 = vmul.f32 %v13524_v40, %v14575_v57  ;;  %v1038_v46 = vpop.f32.mrb[23].mxu0 }
 0x11a   : > { %v1624_v47 = vadd.f32 %v14580_v59, %v1492_v39  ;;  %v1493_v48 = vmul.f32 %v14575_v57, %v1038_v46  ;;  %12947 = vmatprep.subr.bf16.mxu1 %v1868_v42 }
 0x11b   : > { %v1627_v49 = vadd.f32 %v14580_v59, %v1495_v44  ;;  %12948 = vmatpush3.bf16.msra.mxu1 %v14600_v21  ;;  %v1754_v51 = vmax.f32 %v1626_v43, 0.0 }
 0x11c   : > { %v1625_v50 = vadd.f32 %v14580_v59, %v1493_v48  ;;  %12949 = vmatprep.subr.bf16.mxu1 %v1869_v38  ;;  %v1752_v53 = vmax.f32 %v1624_v47, 0.0 }
 0x11d   : > { %v1755_v52 = vmax.f32 %v1627_v49, 0.0  ;;  %v14700_v49 = vld [vmem:[%s17408_s2] ss:$12 sps:$4 sm:$0xff]  }
 0x11e   : > { %v1753_v54 = vmax.f32 %v1625_v50, 0.0  ;;  %v13527_v55 = vpop.f32.mrb[24].mxu0 }
 0x11f   : > { %v1498_v56 = vmul.f32 %v13527_v55, %v14575_v57  ;;  %v1051_v58 = vpop.f32.mrb[25].mxu0  ;;  %12950 = vmatpush3.bf16.msra.mxu1 %v14596_v17  ;;  %v1871_v61 = vpack.c.bf16 %v1755_v52, %v1754_v51 }
 0x120   : > { %v1496_v62 = vmul.f32 %v14575_v57, %v1051_v58  ;;  %v13528_v63 = vpop.f32.mrb[26].mxu0  ;;  %v1870_v1 = vpack.c.bf16 %v1753_v54, %v1752_v53 }
 0x121   : > { %v1630_v21 = vadd.f32 %v14580_v59, %v1498_v56  ;;  %v1499_v2 = vmul.f32 %v13528_v63, %v14575_v57  ;;  %v1054_v3 = vpop.f32.mrb[27].mxu0 }
 0x122   : > { %v1628_v4 = vadd.f32 %v14580_v59, %v1496_v62  ;;  %v1497_v5 = vmul.f32 %v14575_v57, %v1054_v3  ;;  %12951 = vmatprep.subr.bf16.mxu1 %v1870_v1 }
 0x123   : > { %v1631_v6 = vadd.f32 %v14580_v59, %v1499_v2  ;;  %12952 = vmatpush3.bf16.msra.mxu1 %v14617_v41  ;;  %v1758_v7 = vmax.f32 %v1630_v21, 0.0 }
 0x124   : > { %v1629_v17 = vadd.f32 %v14580_v59, %v1497_v5  ;;  %12953 = vmatprep.subr.bf16.mxu1 %v1871_v61  ;;  %v1756_v9 = vmax.f32 %v1628_v4, 0.0 }
 0x125   : > { %v1759_v8 = vmax.f32 %v1631_v6, 0.0  ;;  %v14725_v6 = vld [vmem:[%s17408_s2 + $0x18] ss:$12 sps:$4 sm:$0xff]  }
 0x126   : > { %v1757_v10 = vmax.f32 %v1629_v17, 0.0  ;;  %v13531_v11 = vpop.f32.mrb[28].mxu0 }
 0x127   : > { %v1502_v12 = vmul.f32 %v13531_v11, %v14575_v57  ;;  %v1067_v13 = vpop.f32.mrb[29].mxu0  ;;  %12954 = vmatpush3.bf16.msra.mxu1 %v14613_v37  ;;  %v1873_v14 = vpack.c.bf16 %v1759_v8, %v1758_v7  ;;  %v14733_v11 = vld [vmem:[%s17408_s2 + $0x34] ss:$12 sps:$4 sm:$0xff]  }
 0x128   : > { %v1500_v15 = vmul.f32 %v14575_v57, %v1067_v13  ;;  %v13532_v18 = vpop.f32.mrb[30].mxu0  ;;  %v1872_v19 = vpack.c.bf16 %v1757_v10, %v1756_v9 }
 0x129   : > { %v1634_v41 = vadd.f32 %v14580_v59, %v1502_v12  ;;  %v1503_v20 = vmul.f32 %v13532_v18, %v14575_v57  ;;  %v1070_v23 = vpop.f32.mrb[31].mxu0 }
 0x12a   : > { %v1632_v24 = vadd.f32 %v14580_v59, %v1500_v15  ;;  %v1501_v25 = vmul.f32 %v14575_v57, %v1070_v23  ;;  %12955 = vmatprep.subr.bf16.mxu1 %v1872_v19 }
 0x12b   : > { %v1635_v26 = vadd.f32 %v14580_v59, %v1503_v20  ;;  %12956 = vmatpush3.bf16.msra.mxu1 %v14633_v0  ;;  %v1762_v27 = vmax.f32 %v1634_v41, 0.0 }
 0x12c   : > { %v1633_v37 = vadd.f32 %v14580_v59, %v1501_v25  ;;  %12957 = vmatprep.subr.bf16.mxu1 %v1873_v14  ;;  %v1760_v29 = vmax.f32 %v1632_v24, 0.0 }
 0x12d   : > { %v1763_v28 = vmax.f32 %v1635_v26, 0.0 }
 0x12e   : > { %v1761_v30 = vmax.f32 %v1633_v37, 0.0  ;;  %v13535_v31 = vpop.f32.mrb[32].mxu0 }
 0x12f   : > { %12958 = vmatpush3.bf16.msra.mxu1 %v14629_v60  ;;  %v1875_v32 = vpack.c.bf16 %v1763_v28, %v1762_v27  ;;  %v1506_v33 = vmul.f32 %v13535_v31, %v14575_v57  ;;  %v1083_v34 = vpop.f32.mrb[33].mxu0  ;;  %v14749_v27 = vld [vmem:[%s17408_s2 + $0x30] ss:$12 sps:$4 sm:$0xff]  }
 0x130   : > { %v1874_v35 = vpack.c.bf16 %v1761_v30, %v1760_v29  ;;  %v1504_v36 = vmul.f32 %v14575_v57, %v1083_v34  ;;  %v13536_v38 = vpop.f32.mrb[34].mxu0 }
 0x131   : > { %v1638_v0 = vadd.f32 %v14580_v59, %v1506_v33  ;;  %v1507_v39 = vmul.f32 %v13536_v38, %v14575_v57  ;;  %v1086_v40 = vpop.f32.mrb[35].mxu0  ;;  %v14757_v33 = vld [vmem:[%s17408_s2 + $0x4c] ss:$12 sps:$4 sm:$0xff]  }
 0x132   : > { %12959 = vmatprep.subr.bf16.mxu1 %v1874_v35  ;;  %v1636_v42 = vadd.f32 %v14580_v59, %v1504_v36  ;;  %v1505_v43 = vmul.f32 %v14575_v57, %v1086_v40 }
 0x133   : > { %12960 = vmatpush3.bf16.msra.mxu1 %v14649_v22  ;;  %v1766_v60 = vmax.f32 %v1638_v0, 0.0  ;;  %v1639_v44 = vadd.f32 %v14580_v59, %v1507_v39  ;;  %v14706_v22 = vld [vmem:[%s17408_s2 + $0x1c] ss:$12 sps:$4 sm:$0xff]  }
 0x134   : > { %12961 = vmatprep.subr.bf16.mxu1 %v1875_v32  ;;  %v1764_v46 = vmax.f32 %v1636_v42, 0.0  ;;  %v1637_v47 = vadd.f32 %v14580_v59, %v1505_v43 }
 0x135   : > { %v1767_v48 = vmax.f32 %v1639_v44, 0.0 }
 0x136   : > { %v1765_v50 = vmax.f32 %v1637_v47, 0.0  ;;  %v13539_v51 = vpop.f32.mrb[36].mxu0  ;;  %v1932_v47 = vld [vmem:[%s17408_s2 + $0x60] sm:$0xff] }
 0x137   : > { %12962 = vmatpush3.bf16.msra.mxu1 %v14645_v16  ;;  %v14708_v52 = vpack.c.bf16 %v1767_v48, %v1766_v60  ;;  %v1510_v53 = vmul.f32 %v13539_v51, %v14575_v57  ;;  %v1099_v54 = vpop.f32.mrb[37].mxu0 }
 0x138   : > { %v14711_v55 = vpack.c.bf16 %v1765_v50, %v1764_v46  ;;  %v1508_v56 = vmul.f32 %v14575_v57, %v1099_v54  ;;  %v13540_v58 = vpop.f32.mrb[38].mxu0 }
 0x139   : > { %v1642_v61 = vadd.f32 %v14580_v59, %v1510_v53  ;;  %v1511_v62 = vmul.f32 %v13540_v58, %v14575_v57  ;;  %v1102_v16 = vpop.f32.mrb[39].mxu0  ;;  %v14776_v53 = vld [vmem:[%s17408_s2 + $0x48] ss:$12 sps:$4 sm:$0xff]  }
 0x13a   : > { %2013 = vmatmul.mubr.bf16.vlgmr.msra.gmra.mrb[0].mxu1 %v14700_v49  ;;  %v1640_v63 = vadd.f32 %v14580_v59, %v1508_v56  ;;  %v1509_v1 = vmul.f32 %v14575_v57, %v1102_v16 }
 0x13b   : > { %2020 = vmatprep.mubr.bf16.mxu1 %v14706_v22  ;;  %v1770_v21 = vmax.f32 %v1642_v61, 0.0  ;;  %v1643_v2 = vadd.f32 %v14580_v59, %v1511_v62  ;;  %v14781_v61 = vcombine.high %v1932_v47, %v1932_v47 }
 0x13c   : > { %v1768_v3 = vmax.f32 %v1640_v63, 0.0  ;;  %v1641_v4 = vadd.f32 %v14580_v59, %v1509_v1 }
 0x13d   : > { %v1771_v5 = vmax.f32 %v1643_v2, 0.0 }
 0x13e   : > { %v1769_v17 = vmax.f32 %v1641_v4, 0.0  ;;  %v13543_v7 = vpop.f32.mrb[40].mxu0 }
 0x13f   : > { %v14727_v8 = vpack.c.bf16 %v1771_v5, %v1770_v21  ;;  %v1514_v9 = vmul.f32 %v13543_v7, %v14575_v57  ;;  %v1115_v10 = vpop.f32.mrb[41].mxu0 }
 0x140   : > { %v14735_v12 = vpack.c.bf16 %v1769_v17, %v1768_v3  ;;  %v1512_v13 = vmul.f32 %v14575_v57, %v1115_v10  ;;  %v13544_v14 = vpop.f32.mrb[42].mxu0 }
 0x141   : > { %v1646_v15 = vadd.f32 %v14580_v59, %v1514_v9  ;;  %v1515_v18 = vmul.f32 %v13544_v14, %v14575_v57  ;;  %v1118_v19 = vpop.f32.mrb[43].mxu0 }
 0x142   : > { %2021 = vmatmul.mubr.bf16.gmra.mrb[4].mxu1 %v14725_v6  ;;  %v1644_v41 = vadd.f32 %v14580_v59, %v1512_v13  ;;  %v1513_v20 = vmul.f32 %v14575_v57, %v1118_v19 }
 0x143   : > { %v1774_v23 = vmax.f32 %v1646_v15, 0.0  ;;  %2028 = vmatprep.mubr.bf16.mxu1 %v14733_v11  ;;  %v1647_v24 = vadd.f32 %v14580_v59, %v1515_v18  ;;  %v14794_v15 = vcombine.low %v1932_v47, %v1932_v47 }
 0x144   : > { %v1772_v25 = vmax.f32 %v1644_v41, 0.0  ;;  %v1645_v26 = vadd.f32 %v14580_v59, %v1513_v20 }
 0x145   : > { %v1775_v37 = vmax.f32 %v1647_v24, 0.0 }
 0x146   : > { %v1773_v28 = vmax.f32 %v1645_v26, 0.0  ;;  %v13547_v29 = vpop.f32.mrb[44].mxu0 }
 0x147   : > { %v14751_v30 = vpack.c.bf16 %v1775_v37, %v1774_v23  ;;  %v1518_v31 = vmul.f32 %v13547_v29, %v14575_v57  ;;  %v1131_v32 = vpop.f32.mrb[45].mxu0 }
 0x148   : > { %v14759_v34 = vpack.c.bf16 %v1773_v28, %v1772_v25  ;;  %v1516_v35 = vmul.f32 %v14575_v57, %v1131_v32  ;;  %v13548_v36 = vpop.f32.mrb[46].mxu0 }
 0x149   : > { %v1650_v38 = vadd.f32 %v14580_v59, %v1518_v31  ;;  %v1519_v0 = vmul.f32 %v13548_v36, %v14575_v57  ;;  %v1134_v39 = vpop.f32.mrb[47].mxu0 }
 0x14a   : > { %2029 = vmatmul.mubr.bf16.gmra.mrb[8].mxu1 %v14749_v27  ;;  %v1648_v40 = vadd.f32 %v14580_v59, %v1516_v35  ;;  %v1517_v42 = vmul.f32 %v14575_v57, %v1134_v39 }
 0x14b   : > { %v1778_v43 = vmax.f32 %v1650_v38, 0.0  ;;  %v1651_v60 = vadd.f32 %v14580_v59, %v1519_v0  ;;  %2036 = vmatprep.mubr.bf16.mxu1 %v14757_v33 }
 0x14c   : > { %v1776_v44 = vmax.f32 %v1648_v40, 0.0  ;;  %v1649_v46 = vadd.f32 %v14580_v59, %v1517_v42 }
 0x14d   : > { %v1779_v48 = vmax.f32 %v1651_v60, 0.0 }
 0x14e   : > { %v1777_v50 = vmax.f32 %v1649_v46, 0.0  ;;  %v13551_v51 = vpop.f32.mrb[48].mxu0 }
 0x14f   : > { %v14778_v54 = vpack.c.bf16 %v1779_v48, %v1778_v43  ;;  %v1522_v56 = vmul.f32 %v13551_v51, %v14575_v57  ;;  %v1147_v58 = vpop.f32.mrb[49].mxu0 }
 0x150   : > { %v14783_v62 = vpack.c.bf16 %v1777_v50, %v1776_v44  ;;  %v1520_v16 = vmul.f32 %v14575_v57, %v1147_v58  ;;  %v13552_v63 = vpop.f32.mrb[50].mxu0 }
 0x151   : > { %v1654_v1 = vadd.f32 %v14580_v59, %v1522_v56  ;;  %v1523_v21 = vmul.f32 %v13552_v63, %v14575_v57  ;;  %v1150_v2 = vpop.f32.mrb[51].mxu0 }
 0x152   : > { %v1652_v3 = vadd.f32 %v14580_v59, %v1520_v16  ;;  %v1521_v4 = vmul.f32 %v14575_v57, %v1150_v2  ;;  %2037 = vmatmul.mubr.bf16.gmra.mrb[12].mxu1 %v14776_v53 }
 0x153   : > { %v1782_v5 = vmax.f32 %v1654_v1, 0.0  ;;  %v1655_v17 = vadd.f32 %v14580_v59, %v1523_v21  ;;  %2044 = vmatprep.mubr.bf16.mxu1 %v14781_v61 }
 0x154   : > { %v1780_v7 = vmax.f32 %v1652_v3, 0.0  ;;  %v1653_v9 = vadd.f32 %v14580_v59, %v1521_v4 }
 0x155   : > { %v1783_v10 = vmax.f32 %v1655_v17, 0.0 }
 0x156   : > { %v1781_v13 = vmax.f32 %v1653_v9, 0.0  ;;  %v13555_v14 = vpop.f32.mrb[52].mxu0 }
 0x157   : > { %v1526_v18 = vmul.f32 %v13555_v14, %v14575_v57  ;;  %v1163_v19 = vpop.f32.mrb[53].mxu0  ;;  %v1885_v41 = vpack.c.bf16 %v1783_v10, %v1782_v5 }
 0x158   : > { %v1524_v20 = vmul.f32 %v14575_v57, %v1163_v19  ;;  %v13556_v23 = vpop.f32.mrb[54].mxu0  ;;  %v1884_v24 = vpack.c.bf16 %v1781_v13, %v1780_v7 }
 0x159   : > { %v1658_v25 = vadd.f32 %v14580_v59, %v1526_v18  ;;  %v1527_v26 = vmul.f32 %v13556_v23, %v14575_v57  ;;  %v1166_v37 = vpop.f32.mrb[55].mxu0 }
 0x15a   : > { %v1656_v28 = vadd.f32 %v14580_v59, %v1524_v20  ;;  %v1525_v29 = vmul.f32 %v14575_v57, %v1166_v37  ;;  %12993 = vmatprep.subr.bf16.mxu1 %v1884_v24  ;;  %2045 = vmatmul.mubr.bf16.gmra.mrb[16].mxu1 %v14794_v15 }
 0x15b   : > { %v1786_v31 = vmax.f32 %v1658_v25, 0.0  ;;  %v1659_v32 = vadd.f32 %v14580_v59, %v1527_v26  ;;  %12994 = vmatpush3.bf16.msra.mxu1 %v14711_v55  ;;  %2093 = vmatprep.mubr.bf16.mxu1 %v14545_v45 }
 0x15c   : > { %v1784_v35 = vmax.f32 %v1656_v28, 0.0  ;;  %v1657_v36 = vadd.f32 %v14580_v59, %v1525_v29  ;;  %12995 = vmatprep.subr.bf16.mxu1 %v1885_v41 }
 0x15d   : > { %v1787_v38 = vmax.f32 %v1659_v32, 0.0 }
 0x15e   : > { %v1785_v0 = vmax.f32 %v1657_v36, 0.0  ;;  %v13559_v39 = vpop.f32.mrb[56].mxu0 }
 0x15f   : > { %v1530_v40 = vmul.f32 %v13559_v39, %v14575_v57  ;;  %v1179_v42 = vpop.f32.mrb[57].mxu0  ;;  %12996 = vmatpush3.bf16.msra.mxu1 %v14708_v52  ;;  %v1887_v43 = vpack.c.bf16 %v1787_v38, %v1786_v31 }
 0x160   : > { %v1528_v60 = vmul.f32 %v14575_v57, %v1179_v42  ;;  %v13560_v44 = vpop.f32.mrb[58].mxu0  ;;  %v1886_v46 = vpack.c.bf16 %v1785_v0, %v1784_v35 }
 0x161   : > { %v1662_v55 = vadd.f32 %v14580_v59, %v1530_v40  ;;  %v1531_v45 = vmul.f32 %v13560_v44, %v14575_v57  ;;  %v1182_v47 = vpop.f32.mrb[59].mxu0 }
 0x162   : > { %v1660_v48 = vadd.f32 %v14580_v59, %v1528_v60  ;;  %v1529_v50 = vmul.f32 %v14575_v57, %v1182_v47  ;;  %12997 = vmatprep.subr.bf16.mxu1 %v1886_v46 }
 0x163   : > { %v1790_v51 = vmax.f32 %v1662_v55, 0.0  ;;  %v1663_v56 = vadd.f32 %v14580_v59, %v1531_v45  ;;  %12998 = vmatpush3.bf16.msra.mxu1 %v14735_v12 }
 0x164   : > { %v1788_v52 = vmax.f32 %v1660_v48, 0.0  ;;  %v1661_v58 = vadd.f32 %v14580_v59, %v1529_v50  ;;  %12999 = vmatprep.subr.bf16.mxu1 %v1887_v43 }
 0x165   : > { %v1791_v16 = vmax.f32 %v1663_v56, 0.0 }
 0x166   : > { %v1789_v63 = vmax.f32 %v1661_v58, 0.0  ;;  %v13563_v1 = vpop.f32.mrb[60].mxu0 }
 0x167   : > { %v1534_v21 = vmul.f32 %v13563_v1, %v14575_v57  ;;  %v1195_v2 = vpop.f32.mrb[61].mxu0  ;;  %13000 = vmatpush3.bf16.msra.mxu1 %v14727_v8  ;;  %v1889_v3 = vpack.c.bf16 %v1791_v16, %v1790_v51 }
 0x168   : > { %v1532_v4 = vmul.f32 %v14575_v57, %v1195_v2  ;;  %v13564_v5 = vpop.f32.mrb[62].mxu0  ;;  %v1888_v17 = vpack.c.bf16 %v1789_v63, %v1788_v52 }
 0x169   : > { %v1666_v7 = vadd.f32 %v14580_v59, %v1534_v21  ;;  %v1535_v12 = vmul.f32 %v13564_v5, %v14575_v57  ;;  %v1198_v9 = vpop.f32.mrb[63].mxu0 }
 0x16a   : > { %v1664_v10 = vadd.f32 %v14580_v59, %v1532_v4  ;;  %v1533_v13 = vmul.f32 %v14575_v57, %v1198_v9  ;;  %13001 = vmatprep.subr.bf16.mxu1 %v1888_v17 }
 0x16b   : > { %v1794_v14 = vmax.f32 %v1666_v7, 0.0  ;;  %v1667_v18 = vadd.f32 %v14580_v59, %v1535_v12  ;;  %13002 = vmatpush3.bf16.msra.mxu1 %v14759_v34 }
 0x16c   : > { %v1792_v8 = vmax.f32 %v1664_v10, 0.0  ;;  %v1665_v19 = vadd.f32 %v14580_v59, %v1533_v13  ;;  %13003 = vmatprep.subr.bf16.mxu1 %v1889_v3 }
 0x16d   : > { %v1795_v41 = vmax.f32 %v1667_v18, 0.0 }
 0x16e   : > { %v1793_v20 = vmax.f32 %v1665_v19, 0.0  ;;  %v13567_v23 = vpop.f32.mrb[64].mxu0 }
 0x16f   : > { %13004 = vmatpush3.bf16.msra.mxu1 %v14751_v30  ;;  %v1891_v24 = vpack.c.bf16 %v1795_v41, %v1794_v14  ;;  %v1538_v25 = vmul.f32 %v13567_v23, %v14575_v57  ;;  %v1211_v26 = vpop.f32.mrb[65].mxu0 }
 0x170   : > { %v1890_v37 = vpack.c.bf16 %v1793_v20, %v1792_v8  ;;  %v1536_v28 = vmul.f32 %v14575_v57, %v1211_v26  ;;  %v13568_v29 = vpop.f32.mrb[66].mxu0 }
 0x171   : > { %v1670_v31 = vadd.f32 %v14580_v59, %v1538_v25  ;;  %v1539_v34 = vmul.f32 %v13568_v29, %v14575_v57  ;;  %v1214_v32 = vpop.f32.mrb[67].mxu0 }
 0x172   : > { %13005 = vmatprep.subr.bf16.mxu1 %v1890_v37  ;;  %v1668_v35 = vadd.f32 %v14580_v59, %v1536_v28  ;;  %v1537_v36 = vmul.f32 %v14575_v57, %v1214_v32 }
 0x173   : > { %13006 = vmatpush3.bf16.msra.mxu1 %v14783_v62  ;;  %v1798_v30 = vmax.f32 %v1670_v31, 0.0  ;;  %v1671_v38 = vadd.f32 %v14580_v59, %v1539_v34 }
 0x174   : > { %13007 = vmatprep.subr.bf16.mxu1 %v1891_v24  ;;  %v1796_v0 = vmax.f32 %v1668_v35, 0.0  ;;  %v1669_v39 = vadd.f32 %v14580_v59, %v1537_v36  ;;  %v14350_v36 = vmov 0.0  }
 0x175   : > { %v1799_v40 = vmax.f32 %v1671_v38, 0.0  ;;  %251 = vst.msk [vmem:[#allocation2] sm:$0xff] %vm250_vm1, %v14350_v36  ;;  %252 = vst.msk [vmem:[#allocation2 + $0x8] sm:$0xff] %vm250_vm1, %v14350_v36 }
 0x176   : > { %v1797_v42 = vmax.f32 %v1669_v39, 0.0  ;;  %v13571_v43 = vpop.f32.mrb[68].mxu0  ;;  %253 = vst.msk [vmem:[#allocation2 + $0x10] sm:$0xff] %vm250_vm1, %v14350_v36  ;;  %254 = vst.msk [vmem:[#allocation2 + $0x138] sm:$0xff] %vm250_vm1, %v14350_v36 }
 0x177   : > { %13008 = vmatpush3.bf16.msra.mxu1 %v14778_v54  ;;  %v14838_v60 = vpack.c.bf16 %v1799_v40, %v1798_v30  ;;  %v1542_v44 = vmul.f32 %v13571_v43, %v14575_v57  ;;  %v1227_v46 = vpop.f32.mrb[69].mxu0  ;;  %255 = vst.msk [vmem:[#allocation2 + $0x140] sm:$0xff] %vm250_vm1, %v14350_v36  ;;  %256 = vst.msk [vmem:[#allocation2 + $0x148] sm:$0xff] %vm250_vm1, %v14350_v36 }
 0x178   : > { %v14841_v55 = vpack.c.bf16 %v1797_v42, %v1796_v0  ;;  %v1540_v62 = vmul.f32 %v14575_v57, %v1227_v46  ;;  %v13572_v45 = vpop.f32.mrb[70].mxu0  ;;  %258 = vst.msk [vmem:[#allocation3] sm:$0xff] %vm257_vm0, %v14350_v36  ;;  %259 = vst.msk [vmem:[#allocation3 + $0x8] sm:$0xff] %vm257_vm0, %v14350_v36 }
 0x179   : > { %v1674_v47 = vadd.f32 %v14580_v59, %v1542_v44  ;;  %v1543_v48 = vmul.f32 %v13572_v45, %v14575_v57  ;;  %v1230_v50 = vpop.f32.mrb[71].mxu0  ;;  %260 = vst.msk [vmem:[#allocation3 + $0x60] sm:$0xff] %vm257_vm0, %v14350_v36  ;;  %261 = vst.msk [vmem:[#allocation3 + $0x68] sm:$0xff] %vm257_vm0, %v14350_v36 }
 0x17a   : > { %2094 = vmatmul.mubr.bf16.vlgmr.msra.gmra.mrb[20].mxu1 %v14700_v49  ;;  %v1672_v51 = vadd.f32 %v14580_v59, %v1540_v62  ;;  %v1541_v54 = vmul.f32 %v14575_v57, %v1230_v50 }
 0x17b   : > { %2101 = vmatprep.mubr.bf16.mxu1 %v14706_v22  ;;  %v1802_v56 = vmax.f32 %v1674_v47, 0.0  ;;  %v1675_v52 = vadd.f32 %v14580_v59, %v1543_v48 }
 0x17c   : > { %v1800_v58 = vmax.f32 %v1672_v51, 0.0  ;;  %v1673_v16 = vadd.f32 %v14580_v59, %v1541_v54  ;;  %v2522_v54 = vld [vmem:[#allocation2 + $0x7] sm:$0xff] }
 0x17d   : > { %v1803_v63 = vmax.f32 %v1675_v52, 0.0 }
 0x17e   : > { %v1801_v1 = vmax.f32 %v1673_v16, 0.0  ;;  %v13575_v21 = vpop.f32.mrb[72].mxu0  ;;  %v12269_v16 = vpack.c.bf16 %v2522_v54, %v2522_v54 }
 0x17f   : > { %v14852_v2 = vpack.c.bf16 %v1803_v63, %v1802_v56  ;;  %v1546_v3 = vmul.f32 %v13575_v21, %v14575_v57  ;;  %v1243_v4 = vpop.f32.mrb[73].mxu0  ;;  %v2812_v21 = vld [vmem:[#allocation2 + $0x8] sm:$0xff] }
 0x180   : > { %v14855_v5 = vpack.c.bf16 %v1801_v1, %v1800_v58  ;;  %v1544_v17 = vmul.f32 %v14575_v57, %v1243_v4  ;;  %v13576_v7 = vpop.f32.mrb[74].mxu0  ;;  %2666 = vrot.lane.b32.xlu0 %v12269_v16, %s14351_s10 }
 0x181   : > { %v1678_v12 = vadd.f32 %v14580_v59, %v1546_v3  ;;  %v1547_v9 = vmul.f32 %v13576_v7, %v14575_v57  ;;  %v1246_v10 = vpop.f32.mrb[75].mxu0 }
 0x182   : > { %2102 = vmatmul.mubr.bf16.gmra.mrb[24].mxu1 %v14725_v6  ;;  %v1676_v13 = vadd.f32 %v14580_v59, %v1544_v17  ;;  %v1545_v14 = vmul.f32 %v14575_v57, %v1246_v10  ;;  %v12305_v17 = vpack.c.bf16 %v2812_v21, %v2812_v21 }
 0x183   : > { %2109 = vmatprep.mubr.bf16.mxu1 %v14733_v11  ;;  %v1806_v18 = vmax.f32 %v1678_v12, 0.0  ;;  %v1679_v8 = vadd.f32 %v14580_v59, %v1547_v9  ;;  %v2523_v9 = vld [vmem:[#allocation2 + $0xf] sm:$0xff] }
 0x184   : > { %v1804_v19 = vmax.f32 %v1676_v13, 0.0  ;;  %v1677_v41 = vadd.f32 %v14580_v59, %v1545_v14  ;;  %2956 = vrot.lane.b32.xlu1 %v12305_v17, %s14352_s11  ;;  %v12270_v13 = vpack.c.bf16 %v2523_v9, %v2523_v9 }
 0x185   : > { %v1807_v20 = vmax.f32 %v1679_v8, 0.0  ;;  %v2813_v8 = vld [vmem:[#allocation2 + $0x10] sm:$0xff] }
 0x186   : > { %v1805_v23 = vmax.f32 %v1677_v41, 0.0  ;;  %v13579_v24 = vpop.f32.mrb[76].mxu0  ;;  %2668 = vrot.lane.b32.xlu0 %v12270_v13, %s14351_s10 }
 0x187   : > { %v14866_v25 = vpack.c.bf16 %v1807_v20, %v1806_v18  ;;  %v1550_v26 = vmul.f32 %v13579_v24, %v14575_v57  ;;  %v1259_v37 = vpop.f32.mrb[77].mxu0 }
 0x188   : > { %v14869_v28 = vpack.c.bf16 %v1805_v23, %v1804_v19  ;;  %v1548_v29 = vmul.f32 %v14575_v57, %v1259_v37  ;;  %v13580_v31 = vpop.f32.mrb[78].mxu0  ;;  %v12306_v23 = vpack.c.bf16 %v2813_v8, %v2813_v8 }
 0x189   : > { %v1682_v34 = vadd.f32 %v14580_v59, %v1550_v26  ;;  %v1551_v32 = vmul.f32 %v13580_v31, %v14575_v57  ;;  %v1262_v35 = vpop.f32.mrb[79].mxu0 }
 0x18a   : > { %2110 = vmatmul.mubr.bf16.gmra.mrb[28].mxu1 %v14749_v27  ;;  %v1680_v30 = vadd.f32 %v14580_v59, %v1548_v29  ;;  %v1549_v38 = vmul.f32 %v14575_v57, %v1262_v35  ;;  %2958 = vrot.lane.b32.xlu1 %v12306_v23, %s14352_s11 }
 0x18b   : > { %v1810_v0 = vmax.f32 %v1682_v34, 0.0  ;;  %v1683_v39 = vadd.f32 %v14580_v59, %v1551_v32  ;;  %2117 = vmatprep.mubr.bf16.mxu1 %v14757_v33 }
 0x18c   : > { %v1808_v40 = vmax.f32 %v1680_v30, 0.0  ;;  %v1681_v42 = vadd.f32 %v14580_v59, %v1549_v38 }
 0x18d   : > { %v1811_v43 = vmax.f32 %v1683_v39, 0.0 }
 0x18e   : > { %v1809_v44 = vmax.f32 %v1681_v42, 0.0  ;;  %v13583_v46 = vpop.f32.mrb[80].mxu0 }
 0x18f   : > { %v14900_v62 = vpack.c.bf16 %v1811_v43, %v1810_v0  ;;  %v1554_v45 = vmul.f32 %v13583_v46, %v14575_v57  ;;  %v1275_v47 = vpop.f32.mrb[81].mxu0  ;;  %v14930_v0 = vld [vmem:[%s17408_s2 + $0x4] ss:$12 sps:$4 sm:$0xff]  }
 0x190   : > { %v14903_v48 = vpack.c.bf16 %v1809_v44, %v1808_v40  ;;  %v1552_v50 = vmul.f32 %v14575_v57, %v1275_v47  ;;  %v13584_v51 = vpop.f32.mrb[82].mxu0  ;;  %v14939_v47 = vld [vmem:[%s17409_s3] ss:$0 sm:$0xff] }
 0x191   : > { %v1686_v56 = vadd.f32 %v14580_v59, %v1554_v45  ;;  %v1555_v52 = vmul.f32 %v13584_v51, %v14575_v57  ;;  %v1278_v58 = vpop.f32.mrb[83].mxu0 }
 0x192   : > { %v1684_v63 = vadd.f32 %v14580_v59, %v1552_v50  ;;  %v1553_v1 = vmul.f32 %v14575_v57, %v1278_v58  ;;  %2118 = vmatmul.mubr.bf16.gmra.mrb[32].mxu1 %v14776_v53 }
 0x193   : > { %v1814_v3 = vmax.f32 %v1686_v56, 0.0  ;;  %v1687_v4 = vadd.f32 %v14580_v59, %v1555_v52  ;;  %2125 = vmatprep.mubr.bf16.mxu1 %v14781_v61 }
 0x194   : > { %v1812_v7 = vmax.f32 %v1684_v63, 0.0  ;;  %v1685_v12 = vadd.f32 %v14580_v59, %v1553_v1 }
 0x195   : > { %v1815_v10 = vmax.f32 %v1687_v4, 0.0 }
 0x196   : > { %v1813_v14 = vmax.f32 %v1685_v12, 0.0  ;;  %v13587_v18 = vpop.f32.mrb[84].mxu0 }
 0x197   : > { %v1558_v19 = vmul.f32 %v13587_v18, %v14575_v57  ;;  %v1291_v41 = vpop.f32.mrb[85].mxu0  ;;  %v1901_v20 = vpack.c.bf16 %v1815_v10, %v1814_v3 }
 0x198   : > { %v1556_v24 = vmul.f32 %v14575_v57, %v1291_v41  ;;  %v13588_v26 = vpop.f32.mrb[86].mxu0  ;;  %v1900_v37 = vpack.c.bf16 %v1813_v14, %v1812_v7 }
 0x199   : > { %v1690_v29 = vadd.f32 %v14580_v59, %v1558_v19  ;;  %v1559_v31 = vmul.f32 %v13588_v26, %v14575_v57  ;;  %v1294_v34 = vpop.f32.mrb[87].mxu0 }
 0x19a   : > { %v1688_v32 = vadd.f32 %v14580_v59, %v1556_v24  ;;  %v1557_v35 = vmul.f32 %v14575_v57, %v1294_v34  ;;  %13039 = vmatprep.subr.bf16.mxu1 %v1900_v37  ;;  %2126 = vmatmul.mubr.bf16.gmra.mrb[36].mxu1 %v14794_v15 }
 0x19b   : > { %v1818_v30 = vmax.f32 %v1690_v29, 0.0  ;;  %v1691_v38 = vadd.f32 %v14580_v59, %v1559_v31  ;;  %13040 = vmatpush3.bf16.msra.mxu1 %v14841_v55  ;;  %2174 = vmatprep.mubr.bf16.mxu1 %v14930_v0 }
 0x19c   : > { %v1816_v39 = vmax.f32 %v1688_v32, 0.0  ;;  %v1689_v40 = vadd.f32 %v14580_v59, %v1557_v35  ;;  %13041 = vmatprep.subr.bf16.mxu1 %v1901_v20  ;;  %v14945_v59 = vld [vmem:[%s17409_s3 + $0x1] ss:$0 sm:$0xff] }
 0x19d   : > { %v1819_v42 = vmax.f32 %v1691_v38, 0.0 }
 0x19e   : > { %v1817_v43 = vmax.f32 %v1689_v40, 0.0  ;;  %v13591_v44 = vpop.f32.mrb[88].mxu0 }
 0x19f   : > { %v1562_v46 = vmul.f32 %v13591_v44, %v14575_v57  ;;  %v1307_v45 = vpop.f32.mrb[89].mxu0  ;;  %13042 = vmatpush3.bf16.msra.mxu1 %v14838_v60  ;;  %v1903_v55 = vpack.c.bf16 %v1819_v42, %v1818_v30 }
 0x1a0   : > { %v1560_v50 = vmul.f32 %v14939_v47, %v1307_v45  ;;  %v13592_v51 = vpop.f32.mrb[90].mxu0  ;;  %v1902_v54 = vpack.c.bf16 %v1817_v43, %v1816_v39 }
 0x1a1   : > { %v1694_v57 = vadd.f32 %v14945_v59, %v1562_v46  ;;  %v1563_v56 = vmul.f32 %v14939_v47, %v13592_v51  ;;  %v1310_v60 = vpop.f32.mrb[91].mxu0 }
 0x1a2   : > { %v1692_v52 = vadd.f32 %v14945_v59, %v1560_v50  ;;  %v1561_v58 = vmul.f32 %v14939_v47, %v1310_v60  ;;  %13043 = vmatprep.subr.bf16.mxu1 %v1902_v54 }
 0x1a3   : > { %v1822_v16 = vmax.f32 %v1694_v57, 0.0  ;;  %v1695_v63 = vadd.f32 %v14945_v59, %v1563_v56  ;;  %13044 = vmatpush3.bf16.msra.mxu1 %v14855_v5 }
 0x1a4   : > { %v1820_v1 = vmax.f32 %v1692_v52, 0.0  ;;  %v1693_v21 = vadd.f32 %v14945_v59, %v1561_v58  ;;  %13045 = vmatprep.subr.bf16.mxu1 %v1903_v55 }
 0x1a5   : > { %v1823_v3 = vmax.f32 %v1695_v63, 0.0 }
 0x1a6   : > { %v1821_v4 = vmax.f32 %v1693_v21, 0.0  ;;  %v13595_v17 = vpop.f32.mrb[92].mxu0 }
 0x1a7   : > { %v1566_v7 = vmul.f32 %v14939_v47, %v13595_v17  ;;  %v1323_v12 = vpop.f32.mrb[93].mxu0  ;;  %13046 = vmatpush3.bf16.msra.mxu1 %v14852_v2  ;;  %v1905_v9 = vpack.c.bf16 %v1823_v3, %v1822_v16 }
 0x1a8   : > { %v1564_v10 = vmul.f32 %v14939_v47, %v1323_v12  ;;  %v13596_v13 = vpop.f32.mrb[94].mxu0  ;;  %v1904_v14 = vpack.c.bf16 %v1821_v4, %v1820_v1 }
 0x1a9   : > { %v1698_v18 = vadd.f32 %v14945_v59, %v1566_v7  ;;  %v1567_v5 = vmul.f32 %v14939_v47, %v13596_v13  ;;  %v1326_v8 = vpop.f32.mrb[95].mxu0 }
 0x1aa   : > { %v1696_v19 = vadd.f32 %v14945_v59, %v1564_v10  ;;  %v1565_v41 = vmul.f32 %v14939_v47, %v1326_v8  ;;  %13047 = vmatprep.subr.bf16.mxu1 %v1904_v14 }
 0x1ab   : > { %v1826_v20 = vmax.f32 %v1698_v18, 0.0  ;;  %v1699_v23 = vadd.f32 %v14945_v59, %v1567_v5  ;;  %13048 = vmatpush3.bf16.msra.mxu1 %v14869_v28 }
 0x1ac   : > { %v1824_v2 = vmax.f32 %v1696_v19, 0.0  ;;  %v1697_v24 = vadd.f32 %v14945_v59, %v1565_v41  ;;  %13049 = vmatprep.subr.bf16.mxu1 %v1905_v9 }
 0x1ad   : > { %v1827_v26 = vmax.f32 %v1699_v23, 0.0 }
 0x1ae   : > { %v1825_v37 = vmax.f32 %v1697_v24, 0.0  ;;  %v13599_v28 = vpop.f32.mrb[96].mxu0 }
 0x1af   : > { %13050 = vmatpush3.bf16.msra.mxu1 %v14866_v25  ;;  %v1907_v29 = vpack.c.bf16 %v1827_v26, %v1826_v20  ;;  %v1339_v34 = vpop.f32.mrb[97].mxu0 }
 0x1b0   : > { %v1906_v31 = vpack.c.bf16 %v1825_v37, %v1824_v2  ;;  %v13600_v32 = vpop.f32.mrb[98].mxu0 }
 0x1b1   : > { %v1342_v35 = vpop.f32.mrb[99].mxu0  ;;  %v1571_v45 = vmul.f32 %v14939_v47, %v13600_v32 }
 0x1b2   : > { %13051 = vmatprep.subr.bf16.mxu1 %v1906_v31 }
 0x1b3   : > { %13052 = vmatpush3.bf16.msra.mxu1 %v14903_v48  ;;  %v1703_v54 = vadd.f32 %v14945_v59, %v1571_v45 }
 0x1b4   : > { %13053 = vmatprep.subr.bf16.mxu1 %v1907_v29 }
 0x1b5   : > { %v1831_v58 = vmax.f32 %v1703_v54, 0.0 }
 0x1b6   : > { %v13603_v30 = vpop.f32.mrb[100].mxu0 }
 0x1b7   : > { %13054 = vmatpush3.bf16.msra.mxu1 %v14900_v62  ;;  %v1355_v25 = vpop.f32.mrb[101].mxu0  ;;  %v1574_v56 = vmul.f32 %v14939_v47, %v13603_v30 }
 0x1b8   : > { %v13604_v38 = vpop.f32.mrb[102].mxu0  ;;  %v1572_v63 = vmul.f32 %v14939_v47, %v1355_v25 }
 0x1b9   : > { %v1358_v39 = vpop.f32.mrb[103].mxu0  ;;  %v1706_v21 = vadd.f32 %v14945_v59, %v1574_v56  ;;  %v1575_v3 = vmul.f32 %v14939_v47, %v13604_v38 }
 0x1ba   : > { %2175 = vmatmul.mubr.bf16.vlgmr.msra.gmra.mrb[40].mxu1 %v14700_v49  ;;  %v1704_v9 = vadd.f32 %v14945_v59, %v1572_v63  ;;  %v1573_v10 = vmul.f32 %v14939_v47, %v1358_v39 }
 0x1bb   : > { %2182 = vmatprep.mubr.bf16.mxu1 %v14706_v22  ;;  %v1570_v22 = vmul.f32 %v14939_v47, %v13599_v28  ;;  %v1834_v13 = vmax.f32 %v1706_v21, 0.0  ;;  %v1707_v14 = vadd.f32 %v14945_v59, %v1575_v3 }
 0x1bc   : > { %v1832_v8 = vmax.f32 %v1704_v9, 0.0  ;;  %v1705_v19 = vadd.f32 %v14945_v59, %v1573_v10 }
 0x1bd   : > { %v1835_v20 = vmax.f32 %v1707_v14, 0.0 }
 0x1be   : > { %v13607_v48 = vpop.f32.mrb[104].mxu0  ;;  %v1833_v37 = vmax.f32 %v1705_v19, 0.0 }
 0x1bf   : > { %v1371_v40 = vpop.f32.mrb[105].mxu0  ;;  %v1578_v18 = vmul.f32 %v14939_v47, %v13607_v48  ;;  %v15006_v32 = vpack.c.bf16 %v1835_v20, %v1834_v13 }
 0x1c0   : > { %v13608_v42 = vpop.f32.mrb[106].mxu0  ;;  %v1576_v41 = vmul.f32 %v14939_v47, %v1371_v40  ;;  %v15010_v39 = vpack.c.bf16 %v1833_v37, %v1832_v8 }
 0x1c1   : > { %v1374_v62 = vpop.f32.mrb[107].mxu0  ;;  %v1710_v23 = vadd.f32 %v14945_v59, %v1578_v18  ;;  %v1579_v2 = vmul.f32 %v14939_v47, %v13608_v42 }
 0x1c2   : > { %2183 = vmatmul.mubr.bf16.gmra.mrb[44].mxu1 %v14725_v6  ;;  %v1702_v6 = vadd.f32 %v14945_v59, %v1570_v22  ;;  %v1708_v29 = vadd.f32 %v14945_v59, %v1576_v41  ;;  %v1577_v31 = vmul.f32 %v14939_v47, %v1374_v62 }
 0x1c3   : > { %2190 = vmatprep.mubr.bf16.mxu1 %v14733_v11  ;;  %v1568_v11 = vmul.f32 %v14939_v47, %v1339_v34  ;;  %v1711_v30 = vadd.f32 %v14945_v59, %v1579_v2 }
 0x1c4   : > { %v1830_v50 = vmax.f32 %v1702_v6, 0.0  ;;  %v1836_v48 = vmax.f32 %v1708_v29, 0.0  ;;  %v1709_v40 = vadd.f32 %v14945_v59, %v1577_v31 }
 0x1c5   : > { %v1700_v51 = vadd.f32 %v14945_v59, %v1568_v11  ;;  %v1839_v62 = vmax.f32 %v1711_v30, 0.0 }
 0x1c6   : > { %v13611_v43 = vpop.f32.mrb[108].mxu0  ;;  %v14988_v7 = vpack.c.bf16 %v1831_v58, %v1830_v50  ;;  %v1837_v45 = vmax.f32 %v1709_v40, 0.0 }
 0x1c7   : > { %v1387_v49 = vpop.f32.mrb[109].mxu0  ;;  %v1828_v52 = vmax.f32 %v1700_v51, 0.0  ;;  %v1582_v28 = vmul.f32 %v14939_v47, %v13611_v43 }
 0x1c8   : > { %v13612_v44 = vpop.f32.mrb[110].mxu0  ;;  %v1580_v43 = vmul.f32 %v14939_v47, %v1387_v49  ;;  %v15024_v56 = vpack.c.bf16 %v1837_v45, %v1836_v48 }
 0x1c9   : > { %v1390_v46 = vpop.f32.mrb[111].mxu0  ;;  %v1714_v42 = vadd.f32 %v14945_v59, %v1582_v28  ;;  %v1583_v6 = vmul.f32 %v14939_v47, %v13612_v44 }
 0x1ca   : > { %2191 = vmatmul.mubr.bf16.gmra.mrb[48].mxu1 %v14749_v27  ;;  %v1569_v27 = vmul.f32 %v14939_v47, %v1342_v35  ;;  %v1838_v35 = vmax.f32 %v1710_v23, 0.0  ;;  %v1581_v50 = vmul.f32 %v14939_v47, %v1390_v46 }
 0x1cb   : > { %2198 = vmatprep.mubr.bf16.mxu1 %v14757_v33 }
 0x1cc   : > { %v1701_v16 = vadd.f32 %v14945_v59, %v1569_v27  ;;  %v15019_v54 = vpack.c.bf16 %v1839_v62, %v1838_v35  ;;  %v1712_v27 = vadd.f32 %v14945_v59, %v1580_v43  ;;  %v1713_v44 = vadd.f32 %v14945_v59, %v1581_v50 }
 0x1ce   : > { %v13615_v55 = vpop.f32.mrb[112].mxu0  ;;  %v1829_v12 = vmax.f32 %v1701_v16, 0.0  ;;  %v1840_v46 = vmax.f32 %v1712_v27, 0.0  ;;  %v1841_v21 = vmax.f32 %v1713_v44, 0.0 }
 0x1cf   : > { %v1403_v57 = vpop.f32.mrb[113].mxu0  ;;  %v1586_v24 = vmul.f32 %v14939_v47, %v13615_v55  ;;  %v1842_v55 = vmax.f32 %v1714_v42, 0.0 }
 0x1d0   : > { %v13616_v60 = vpop.f32.mrb[114].mxu0  ;;  %v1584_v4 = vmul.f32 %v14939_v47, %v1403_v57  ;;  %v14996_v5 = vpack.c.bf16 %v1829_v12, %v1828_v52  ;;  %v1715_v57 = vadd.f32 %v14945_v59, %v1583_v6  ;;  %v1914_v18 = vpack.c.bf16 %v1841_v21, %v1840_v46  ;;  %v2305_v21 = vld [vmem:[#allocation2 + $0xe] sm:$0xff] }
 0x1d1   : > { %v1406_v1 = vpop.f32.mrb[115].mxu0  ;;  %v1718_v25 = vadd.f32 %v14945_v59, %v1586_v24  ;;  %v1587_v49 = vmul.f32 %v14939_v47, %v13616_v60 }
 0x1d2   : > { %2199 = vmatmul.mubr.bf16.gmra.mrb[52].mxu1 %v14776_v53  ;;  %v1585_v17 = vmul.f32 %v14939_v47, %v1406_v1  ;;  %v1716_v53 = vadd.f32 %v14945_v59, %v1584_v4  ;;  %v1843_v16 = vmax.f32 %v1715_v57, 0.0 }
 0x1d3   : > { %2206 = vmatprep.mubr.bf16.mxu1 %v14781_v61  ;;  %v1846_v11 = vmax.f32 %v1718_v25, 0.0 }
 0x1d4   : > { %v1844_v51 = vmax.f32 %v1716_v53, 0.0  ;;  %v1717_v52 = vadd.f32 %v14945_v59, %v1585_v17  ;;  %v15033_v9 = vpack.c.bf16 %v1843_v16, %v1842_v55 }
 0x1d6   : > { %v13619_v26 = vpop.f32.mrb[116].mxu0  ;;  %v1845_v3 = vmax.f32 %v1717_v52, 0.0 }
 0x1d7   : > { %v1419_v34 = vpop.f32.mrb[117].mxu0  ;;  %v1590_v58 = vmul.f32 %v14939_v47, %v13619_v26 }
 0x1d8   : > { %v13620_v38 = vpop.f32.mrb[118].mxu0  ;;  %v1588_v63 = vmul.f32 %v14939_v47, %v1419_v34  ;;  %v1916_v19 = vpack.c.bf16 %v1845_v3, %v1844_v51  ;;  %v12234_v3 = vpack.c.bf16 %v2305_v21, %v2305_v21 }
 0x1d9   : > { %v1422_v22 = vpop.f32.mrb[119].mxu0  ;;  %v1722_v4 = vadd.f32 %v14945_v59, %v1590_v58  ;;  %v1591_v60 = vmul.f32 %v14939_v47, %v13620_v38 }
 0x1da   : > { %2207 = vmatmul.mubr.bf16.gmra.mrb[56].mxu1 %v14794_v15  ;;  %v1720_v17 = vadd.f32 %v14945_v59, %v1588_v63  ;;  %v1589_v13 = vmul.f32 %v14939_v47, %v1422_v22  ;;  %13085 = vmatprep.subr.bf16.mxu1 %v1916_v19  ;;  %2486 = vst.msk [vmem:[#allocation5 + $0x8] sm:$0xf] %vm2484_vm3, %v12234_v3 }
 0x1db   : > { %2255 = vmatprep.mubr.bf16.mxu1 %v14930_v0  ;;  %v1719_v0 = vadd.f32 %v14945_v59, %v1587_v49  ;;  %v1850_v53 = vmax.f32 %v1722_v4, 0.0  ;;  %v1723_v8 = vadd.f32 %v14945_v59, %v1591_v60  ;;  %13086 = vmatpush3.bf16.msra.mxu1 %v14996_v5 }
 0x1dc   : > { %v1848_v20 = vmax.f32 %v1720_v17, 0.0  ;;  %v1721_v23 = vadd.f32 %v14945_v59, %v1589_v13 }
 0x1dd   : > { %v1847_v10 = vmax.f32 %v1719_v0, 0.0  ;;  %v1851_v26 = vmax.f32 %v1723_v8, 0.0  ;;  %v14282_v8 = vld [vmem:[%s17408_s2 + $0x30] ss:$12 sps:$4 sm:$0xff]  }
 0x1de   : > { %v13623_v1 = vpop.f32.mrb[120].mxu0  ;;  %v1849_v29 = vmax.f32 %v1721_v23, 0.0 }
 0x1df   : > { %v1435_v12 = vpop.f32.mrb[121].mxu0  ;;  %v1917_v2 = vpack.c.bf16 %v1847_v10, %v1846_v11  ;;  %v1594_v28 = vmul.f32 %v14939_v47, %v13623_v1  ;;  %v1919_v30 = vpack.c.bf16 %v1851_v26, %v1850_v53 }
 0x1e0   : > { %v13624_v14 = vpop.f32.mrb[122].mxu0  ;;  %v1592_v24 = vmul.f32 %v14939_v47, %v1435_v12  ;;  %v1918_v38 = vpack.c.bf16 %v1849_v29, %v1848_v20  ;;  %v14280_v12 = vld [vmem:[%s17408_s2 + $0x18] ss:$12 sps:$4 sm:$0xff]  }
 0x1e1   : > { %v1438_v41 = vpop.f32.mrb[123].mxu0  ;;  %13087 = vmatprep.subr.bf16.mxu1 %v1917_v2  ;;  %v1595_v34 = vmul.f32 %v14939_v47, %v13624_v14  ;;  %v1726_v40 = vadd.f32 %v14945_v59, %v1594_v28 }
 0x1e2   : > { %v1593_v37 = vmul.f32 %v14939_v47, %v1438_v41  ;;  %v1724_v31 = vadd.f32 %v14945_v59, %v1592_v24  ;;  %13088 = vmatpush3.bf16.msra.mxu1 %v14988_v7 }
 0x1e3   : > { %v1727_v42 = vadd.f32 %v14945_v59, %v1595_v34  ;;  %v1854_v43 = vmax.f32 %v1726_v40, 0.0  ;;  %13089 = vmatprep.subr.bf16.mxu1 %v1918_v38  ;;  %v14283_v40 = vld [vmem:[%s17408_s2 + $0x48] ss:$12 sps:$4 sm:$0xff]  }
 0x1e4   : > { %v1725_v35 = vadd.f32 %v14945_v59, %v1593_v37  ;;  %v1852_v25 = vmax.f32 %v1724_v31, 0.0 }
 0x1e5   : > { %v1855_v6 = vmax.f32 %v1727_v42, 0.0 }
 0x1e6   : > { %v13627_v48 = vpop.f32.mrb[124].mxu0  ;;  %v1853_v22 = vmax.f32 %v1725_v35, 0.0  ;;  %13090 = vmatpush3.bf16.msra.mxu1 %v15010_v39 }
 0x1e7   : > { %v1451_v62 = vpop.f32.mrb[125].mxu0  ;;  %v1921_v27 = vpack.c.bf16 %v1855_v6, %v1854_v43  ;;  %v1598_v49 = vmul.f32 %v14939_v47, %v13627_v48  ;;  %13091 = vmatprep.subr.bf16.mxu1 %v1919_v30  ;;  %v14354_v30 = vmov 0  }
 0x1e8   : > { %v13628_v5 = vpop.f32.mrb[126].mxu0  ;;  %v1596_v11 = vmul.f32 %v14939_v47, %v1451_v62  ;;  %v1920_v55 = vpack.c.bf16 %v1853_v22, %v1852_v25  ;;  %v13999_v25 = vld [vmem:[%s17407_s1 + $0x10] sm:$0xff]   ;;  %13915 = vset.pattern.permute.xlu0 %v14354_v30  ;;  %13916 = vset.pattern.permute.xlu1 %v14354_v30 }
 0x1e9   : > { %v1454_v45 = vpop.f32.mrb[127].mxu0  ;;  %v1599_v44 = vmul.f32 %v14939_v47, %v13628_v5  ;;  %v1730_v58 = vadd.f32 %v14945_v59, %v1598_v49  ;;  %v14000_v5 = vld [vmem:[%s17407_s1 + $0x18] sm:$0xff]  }
 0x1ea   : > { %v1597_v50 = vmul.f32 %v14939_v47, %v1454_v45  ;;  %v1728_v51 = vadd.f32 %v14945_v59, %v1596_v11  ;;  %13092 = vmatpush3.bf16.msra.mxu1 %v15006_v32  ;;  %v2304_v47 = vld [vmem:[#allocation2 + $0x6] sm:$0xff] }
 0x1eb   : > { %v1731_v46 = vadd.f32 %v14945_v59, %v1599_v44  ;;  %v1858_v0 = vmax.f32 %v1730_v58, 0.0  ;;  %13093 = vmatprep.subr.bf16.mxu1 %v1920_v55  ;;  %v12233_v32 = vpack.c.bf16 %v2304_v47, %v2304_v47 }
 0x1ec   : > { %v1729_v57 = vadd.f32 %v14945_v59, %v1597_v50  ;;  %v1856_v7 = vmax.f32 %v1728_v51, 0.0  ;;  %v14278_v59 = vld [vmem:[%s17408_s2] ss:$12 sps:$4 sm:$0xff]  }
 0x1ed   : > { %v1859_v63 = vmax.f32 %v1731_v46, 0.0  ;;  %2485 = vst.msk [vmem:[#allocation5] sm:$0xf] %vm2484_vm3, %v12233_v32 }
 0x1ee   : > { %v1857_v52 = vmax.f32 %v1729_v57, 0.0  ;;  %13094 = vmatpush3.bf16.msra.mxu1 %v15024_v56  ;;  %v14279_v56 = vld [vmem:[%s17408_s2 + $0x1c] ss:$12 sps:$4 sm:$0xff]  }
 0x1ef   : > { %v1923_v39 = vpack.c.bf16 %v1859_v63, %v1858_v0  ;;  %13095 = vmatprep.subr.bf16.mxu1 %v1921_v27  ;;  %v14002_v63 = vld [vmem:[%s17407_s1 + $0x28] sm:$0xff]  }
 0x1f0   : > { %v1922_v16 = vpack.c.bf16 %v1857_v52, %v1856_v7  ;;  %v14001_v7 = vld [vmem:[%s17407_s1 + $0x20] sm:$0xff]  }
 0x1f2   : > { %13096 = vmatpush3.bf16.msra.mxu1 %v15019_v54  ;;  %v2667_v54 = vpop.permute.xlu0 %2666 }
 0x1f3   : > { %13097 = vmatprep.subr.bf16.mxu1 %v1922_v16  ;;  %2775 = vst.msk [vmem:[#allocation5] sm:$0xf] %vm2774_vm2, %v2667_v54 }
 0x1f6   : > { %13098 = vmatpush3.bf16.msra.mxu1 %v1914_v18  ;;  %v2957_v1 = vpop.permute.xlu1 %2956 }
 0x1f7   : > { %13099 = vmatprep.subr.bf16.mxu1 %v1923_v39  ;;  %3065 = vst.msk [vmem:[#allocation5] sm:$0xf] %vm3064_vm4, %v2957_v1 }
 0x1f8   : > { %v2669_v4 = vpop.permute.xlu0 %2668 }
 0x1f9   : > { %2776 = vst.msk [vmem:[#allocation5 + $0x8] sm:$0xf] %vm2774_vm2, %v2669_v4 }
 0x1fa   : > { %13100 = vmatpush3.bf16.msra.mxu1 %v15033_v9  ;;  %v14281_v9 = vld [vmem:[%s17408_s2 + $0x34] ss:$12 sps:$4 sm:$0xff]  }
 0x1fb   : > { %5092 = vmatprep.subr.bf16.mxu1 %v14354_v30 }
 0x1fc   : > { %v2959_v60 = vpop.permute.xlu1 %2958 }
 0x1fd   : > { %2256 = vmatmul.mubr.bf16.vlgmr.msra.gmra.mrb[60].mxu1 %v14278_v59  ;;  %3066 = vst.msk [vmem:[#allocation5 + $0x8] sm:$0xf] %vm3064_vm4, %v2959_v60 }
 0x1fe   : > { %2263 = vmatprep.mubr.bf16.mxu1 %v14279_v56  ;;  %5093 = vmatpush1.bf16.msra.mxu1 %v13999_v25  ;;  %v14005_v25 = vld [vmem:[%s17407_s1 + $0x40] sm:$0xff]  }
 0x1ff   : > { %5094 = vmatprep.subr.bf16.mxu1 %v14354_v30 }
 0x202   : > { %5095 = vmatpush1.bf16.msra.mxu1 %v14000_v5 }
 0x203   : > { %5096 = vmatprep.subr.bf16.mxu1 %v14354_v30 }
 0x205   : > { %2264 = vmatmul.mubr.bf16.gmra.mrb[64].mxu1 %v14280_v12 }
 0x206   : > { %2271 = vmatprep.mubr.bf16.mxu1 %v14281_v9  ;;  %5097 = vmatpush1.bf16.msra.mxu1 %v14001_v7 }
 0x207   : > { %5098 = vmatprep.subr.bf16.mxu1 %v14354_v30 }
 0x20a   : > { %5099 = vmatpush1.bf16.msra.mxu1 %v14002_v63 }
 0x20b   : > { %5100 = vmatprep.subr.bf16.mxu1 %v14354_v30 }
 0x20d   : > { %v12963_v10 = vpop.f32.mrb[0].mxu1  ;;  %2272 = vmatmul.mubr.bf16.gmra.mrb[68].mxu1 %v14282_v8 }
 0x20e   : > { %v12964_v17 = vpop.f32.mrb[1].mxu1  ;;  %2279 = vmatprep.mubr.bf16.mxu1 %v14757_v33 }
 0x20f   : > { %v12965_v13 = vadd.f32 %v12964_v17, %v12963_v10  ;;  %v12966_v14 = vpop.f32.mrb[2].mxu1  ;;  %v14003_v10 = vld [vmem:[%s17407_s1 + $0x30] sm:$0xff]  }
 0x210   : > { %v12967_v18 = vpop.f32.mrb[3].mxu1  ;;  %5101 = vmatpush1.bf16.msra.mxu1 %v14003_v10 }
 0x211   : > { %2052 = vst.msk [vmem:[#allocation2 + $0x18] sm:$0xff] %vm250_vm1, %v12965_v13  ;;  %v12968_v53 = vadd.f32 %v12967_v18, %v12966_v14  ;;  %5102 = vmatprep.subr.bf16.mxu1 %v14354_v30 }
 0x213   : > { %2053 = vst.msk [vmem:[#allocation2 + $0x20] sm:$0xff] %vm250_vm1, %v12968_v53 }
 0x215   : > { %v12969_v19 = vpop.f32.mrb[4].mxu1  ;;  %2280 = vmatmul.mubr.bf16.gmra.mrb[72].mxu1 %v14283_v40 }
 0x216   : > { %v12970_v41 = vpop.f32.mrb[5].mxu1  ;;  %2287 = vmatprep.mubr.bf16.mxu1 %v14781_v61 }
 0x217   : > { %v12971_v20 = vadd.f32 %v12970_v41, %v12969_v19  ;;  %v12972_v23 = vpop.f32.mrb[6].mxu1 }
 0x218   : > { %v12973_v2 = vpop.f32.mrb[7].mxu1  ;;  %v3102_v24 = vld [vmem:[#allocation2 + $0x18] sm:$0xff] }
 0x219   : > { %v2306_v26 = vld [vmem:[#allocation2 + $0x16] sm:$0xff]  ;;  %2054 = vst.msk [vmem:[#allocation2 + $0x28] sm:$0xff] %vm250_vm1, %v12971_v20  ;;  %v12974_v37 = vadd.f32 %v12973_v2, %v12972_v23  ;;  %v12341_v29 = vpack.c.bf16 %v3102_v24, %v3102_v24 }
 0x21a   : > { %v12235_v31 = vpack.c.bf16 %v2306_v26, %v2306_v26  ;;  %v3103_v28 = vld [vmem:[#allocation2 + $0x20] sm:$0xff]  ;;  %v2524_v34 = vld [vmem:[#allocation2 + $0x17] sm:$0xff] }
 0x21b   : > { %2055 = vst.msk [vmem:[#allocation2 + $0x30] sm:$0xff] %vm250_vm1, %v12974_v37  ;;  %3246 = vrot.lane.b32.xlu0 %v12341_v29, %s14353_s15  ;;  %v12342_v33 = vpack.c.bf16 %v3103_v28, %v3103_v28  ;;  %v2307_v35 = vld [vmem:[#allocation2 + $0x1e] sm:$0xff]  ;;  %v12271_v22 = vpack.c.bf16 %v2524_v34, %v2524_v34 }
 0x21c   : > { %2487 = vst.msk [vmem:[#allocation5 + $0x10] sm:$0xf] %vm2484_vm3, %v12235_v31  ;;  %v2525_v38 = vld [vmem:[#allocation2 + $0x1f] sm:$0xff]  ;;  %v12236_v48 = vpack.c.bf16 %v2307_v35, %v2307_v35 }
 0x21d   : > { %v12975_v42 = vpop.f32.mrb[8].mxu1  ;;  %3248 = vrot.lane.b32.xlu1 %v12342_v33, %s14353_s15  ;;  %v12272_v6 = vpack.c.bf16 %v2525_v38, %v2525_v38  ;;  %v3392_v27 = vld [vmem:[#allocation2 + $0x19] sm:$0xff]  ;;  %2288 = vmatmul.mubr.bf16.gmra.mrb[76].mxu1 %v14794_v15 }
 0x21e   : > { %v12976_v62 = vpop.f32.mrb[9].mxu1  ;;  %2488 = vst.msk [vmem:[#allocation5 + $0x18] sm:$0xf] %vm2484_vm3, %v12236_v48  ;;  %v12377_v52 = vpack.c.bf16 %v3392_v27, %v3392_v27  ;;  %v3682_v16 = vld [vmem:[#allocation2 + $0x1a] sm:$0xff] }
 0x21f   : > { %v12977_v43 = vadd.f32 %v12976_v62, %v12975_v42  ;;  %2670 = vrot.lane.b32.xlu0 %v12271_v22, %s14351_s10  ;;  %v12978_v11 = vpop.f32.mrb[10].mxu1  ;;  %v12413_v1 = vpack.c.bf16 %v3682_v16, %v3682_v16  ;;  %v14004_v20 = vld [vmem:[%s17407_s1 + $0x38] sm:$0xff]   ;;  %v14006_v62 = vld [vmem:[%s17407_s1 + $0x48] sm:$0xff]  }
 0x220   : > { %v12979_v45 = vpop.f32.mrb[11].mxu1  ;;  %v2308_v50 = vld [vmem:[#allocation2 + $0x26] sm:$0xff]  ;;  %5103 = vmatpush1.bf16.msra.mxu1 %v14004_v20 }
 0x221   : > { %2056 = vst.msk [vmem:[#allocation2 + $0x38] sm:$0xff] %vm250_vm1, %v12977_v43  ;;  %2672 = vrot.lane.b32.xlu1 %v12272_v6, %s14351_s10  ;;  %v12980_v55 = vadd.f32 %v12979_v45, %v12978_v11  ;;  %v12237_v57 = vpack.c.bf16 %v2308_v50, %v2308_v50  ;;  %v3393_v61 = vld [vmem:[#allocation2 + $0x21] sm:$0xff]  ;;  %5104 = vmatprep.subr.bf16.mxu1 %v14354_v30 }
 0x222   : > { %v4552_v51 = vld [vmem:[#allocation2 + $0x2c] sm:$0xff]  ;;  %v12378_v39 = vpack.c.bf16 %v3393_v61, %v3393_v61  ;;  %v3683_v32 = vld [vmem:[#allocation2 + $0x22] sm:$0xff] }
 0x223   : > { %v12521_v49 = vpack.c.bf16 %v4552_v51, %v4552_v51  ;;  %2960 = vrot.lane.b32.xlu0 %v12341_v29, %s14352_s11  ;;  %2057 = vst.msk [vmem:[#allocation2 + $0x40] sm:$0xff] %vm250_vm1, %v12980_v55  ;;  %v2309_v44 = vld [vmem:[#allocation2 + $0x2e] sm:$0xff]  ;;  %v12414_v12 = vpack.c.bf16 %v3683_v32, %v3683_v32 }
 0x224   : > { %2489 = vst.msk [vmem:[#allocation5 + $0x20] sm:$0xf] %vm2484_vm3, %v12237_v57  ;;  %v12238_v46 = vpack.c.bf16 %v2309_v44, %v2309_v44  ;;  %v3104_v4 = vld [vmem:[#allocation2 + $0x28] sm:$0xff]  ;;  %v3105_v9 = vld [vmem:[#allocation2 + $0x30] sm:$0xff]  ;;  %5105 = vmatpush1.bf16.msra.mxu1 %v14005_v25 }
 0x225   : > { %4732 = vst.msk [vmem:[#allocation5 + $0x4] sm:$0xf] %vm2484_vm3, %v12521_v49  ;;  %2962 = vrot.lane.b32.xlu1 %v12342_v33, %s14352_s11  ;;  %v12981_v58 = vpop.f32.mrb[12].mxu1  ;;  %v12343_v14 = vpack.c.bf16 %v3104_v4, %v3104_v4  ;;  %v2526_v19 = vld [vmem:[#allocation2 + $0x27] sm:$0xff]  ;;  %v12344_v23 = vpack.c.bf16 %v3105_v9, %v3105_v9  ;;  %v2527_v37 = vld [vmem:[#allocation2 + $0x2f] sm:$0xff]  ;;  %5106 = vmatprep.subr.bf16.mxu1 %v14354_v30 }
 0x226   : > { %v12982_v0 = vpop.f32.mrb[13].mxu1  ;;  %2490 = vst.msk [vmem:[#allocation5 + $0x28] sm:$0xf] %vm2484_vm3, %v12238_v46  ;;  %v12273_v28 = vpack.c.bf16 %v2526_v19, %v2526_v19  ;;  %v12274_v33 = vpack.c.bf16 %v2527_v37, %v2527_v37  ;;  %v3972_v22 = vld [vmem:[#allocation2 + $0x2a] sm:$0xff] }
 0x227   : > { %3536 = vrot.lane.b32.xlu0 %v12377_v52, %s14355_s13  ;;  %v12983_v47 = vadd.f32 %v12982_v0, %v12981_v58  ;;  %v12984_v15 = vpop.f32.mrb[14].mxu1  ;;  %v12449_v6 = vpack.c.bf16 %v3972_v22, %v3972_v22  ;;  %v4262_v45 = vld [vmem:[#allocation2 + $0x2b] sm:$0xff] }
 0x228   : > { %v4553_v59 = vld [vmem:[#allocation2 + $0x34] sm:$0xff]  ;;  %v12985_v56 = vpop.f32.mrb[15].mxu1  ;;  %5107 = vmatpush1.bf16.msra.mxu1 %v14006_v62  ;;  %v12485_v49 = vpack.c.bf16 %v4262_v45, %v4262_v45  ;;  %v3394_v61 = vld [vmem:[#allocation2 + $0x29] sm:$0xff] }
 0x229   : > { %v12522_v54 = vpack.c.bf16 %v4553_v59, %v4553_v59  ;;  %3538 = vrot.lane.b32.xlu1 %v12378_v39, %s14355_s13  ;;  %2058 = vst.msk [vmem:[#allocation2 + $0x48] sm:$0xff] %vm250_vm1, %v12983_v47  ;;  %v12986_v21 = vadd.f32 %v12985_v56, %v12984_v15  ;;  %v2310_v17 = vld [vmem:[#allocation2 + $0x36] sm:$0xff]  ;;  %5108 = vmatprep.subr.bf16.mxu1 %v14354_v30 }
 0x22a   : > { %v4554_v3 = vld [vmem:[#allocation2 + $0x3c] sm:$0xff]  ;;  %v12239_v53 = vpack.c.bf16 %v2310_v17, %v2310_v17  ;;  %v3973_v5 = vld [vmem:[#allocation2 + $0x32] sm:$0xff]  ;;  %v12379_v52 = vpack.c.bf16 %v3394_v61, %v3394_v61 }
 0x22b   : > { %4733 = vst.msk [vmem:[#allocation5 + $0xc] sm:$0xf] %vm2484_vm3, %v12522_v54  ;;  %3826 = vrot.lane.b32.xlu0 %v12413_v1, %s14356_s14  ;;  %v12523_v60 = vpack.c.bf16 %v4554_v3, %v4554_v3  ;;  %v2311_v13 = vld [vmem:[#allocation2 + $0x3e] sm:$0xff]  ;;  %v14007_v55 = vld [vmem:[%s17407_s1 + $0x50] sm:$0xff]   ;;  %v12450_v51 = vpack.c.bf16 %v3973_v5, %v3973_v5 }
 0x22c   : > { %2059 = vst.msk [vmem:[#allocation2 + $0x50] sm:$0xff] %vm250_vm1, %v12986_v21  ;;  %v12240_v8 = vpack.c.bf16 %v2311_v13, %v2311_v13  ;;  %v4263_v57 = vld [vmem:[#allocation2 + $0x33] sm:$0xff]  ;;  %5109 = vmatpush1.bf16.msra.mxu1 %v14007_v55  ;;  %v3107_v46 = vld [vmem:[#allocation2 + $0x40] sm:$0xff] }
 0x22d   : > { %4734 = vst.msk [vmem:[#allocation5 + $0x14] sm:$0xf] %vm2484_vm3, %v12523_v60  ;;  %3828 = vrot.lane.b32.xlu1 %v12414_v12, %s14356_s14  ;;  %v12987_v18 = vpop.f32.mrb[16].mxu1  ;;  %2491 = vst.msk [vmem:[#allocation5 + $0x30] sm:$0xf] %vm2484_vm3, %v12239_v53  ;;  %v12486_v7 = vpack.c.bf16 %v4263_v57, %v4263_v57  ;;  %v3395_v44 = vld [vmem:[#allocation2 + $0x31] sm:$0xff]  ;;  %v12346_v63 = vpack.c.bf16 %v3107_v46, %v3107_v46 }
 0x22e   : > { %v12988_v41 = vpop.f32.mrb[17].mxu1  ;;  %2492 = vst.msk [vmem:[#allocation5 + $0x38] sm:$0xf] %vm2484_vm3, %v12240_v8  ;;  %v12380_v30 = vpack.c.bf16 %v3395_v44, %v3395_v44  ;;  %v3106_v58 = vld [vmem:[#allocation2 + $0x38] sm:$0xff] }
 0x22f   : > { %3250 = vrot.lane.b32.xlu0 %v12343_v14, %s14353_s15  ;;  %v12989_v2 = vadd.f32 %v12988_v41, %v12987_v18  ;;  %v12990_v24 = vpop.f32.mrb[18].mxu1  ;;  %v12345_v16 = vpack.c.bf16 %v3106_v58, %v3106_v58  ;;  %v2528_v0 = vld [vmem:[#allocation2 + $0x37] sm:$0xff]  ;;  %v2529_v39 = vld [vmem:[#allocation2 + $0x3f] sm:$0xff] }
 0x230   : > { %v4555_v26 = vld [vmem:[#allocation2 + $0x44] sm:$0xff]  ;;  %v12991_v29 = vpop.f32.mrb[19].mxu1  ;;  %v12275_v47 = vpack.c.bf16 %v2528_v0, %v2528_v0  ;;  %v12276_v32 = vpack.c.bf16 %v2529_v39, %v2529_v39  ;;  %v3974_v3 = vld [vmem:[#allocation2 + $0x3a] sm:$0xff] }
 0x231   : > { %v12524_v31 = vpack.c.bf16 %v4555_v26, %v4555_v26  ;;  %3252 = vrot.lane.b32.xlu1 %v12344_v23, %s14353_s15  ;;  %2060 = vst.msk [vmem:[#allocation2 + $0x58] sm:$0xff] %vm250_vm1, %v12989_v2  ;;  %v2312_v38 = vld [vmem:[#allocation2 + $0x46] sm:$0xff]  ;;  %v12451_v60 = vpack.c.bf16 %v3974_v3, %v3974_v3  ;;  %v4264_v9 = vld [vmem:[#allocation2 + $0x3b] sm:$0xff] }
 0x232   : > { %v12241_v40 = vpack.c.bf16 %v2312_v38, %v2312_v38  ;;  %v3975_v4 = vld [vmem:[#allocation2 + $0x42] sm:$0xff]  ;;  %v12487_v19 = vpack.c.bf16 %v4264_v9, %v4264_v9 }
 0x233   : > { %v4556_v34 = vld [vmem:[#allocation2 + $0x4c] sm:$0xff]  ;;  %4735 = vst.msk [vmem:[#allocation5 + $0x1c] sm:$0xf] %vm2484_vm3, %v12524_v31  ;;  %2674 = vrot.lane.b32.xlu0 %v12273_v28, %s14351_s10  ;;  %v12452_v17 = vpack.c.bf16 %v3975_v4, %v3975_v4  ;;  %v4265_v18 = vld [vmem:[#allocation2 + $0x43] sm:$0xff] }
 0x234   : > { %v12525_v35 = vpack.c.bf16 %v4556_v34, %v4556_v34  ;;  %v2313_v48 = vld [vmem:[#allocation2 + $0x4e] sm:$0xff]  ;;  %2493 = vst.msk [vmem:[#allocation5 + $0x40] sm:$0xf] %vm2484_vm3, %v12241_v40  ;;  %v12488_v24 = vpack.c.bf16 %v4265_v18, %v4265_v18  ;;  %v3397_v37 = vld [vmem:[#allocation2 + $0x41] sm:$0xff] }
 0x235   : > { %2676 = vrot.lane.b32.xlu1 %v12274_v33, %s14351_s10  ;;  %v12242_v42 = vpack.c.bf16 %v2313_v48, %v2313_v48  ;;  %v12382_v38 = vpack.c.bf16 %v3397_v37, %v3397_v37  ;;  %v3109_v45 = vld [vmem:[#allocation2 + $0x50] sm:$0xff]  ;;  %v2530_v61 = vld [vmem:[#allocation2 + $0x47] sm:$0xff] }
 0x236   : > { %4736 = vst.msk [vmem:[#allocation5 + $0x24] sm:$0xf] %vm2484_vm3, %v12525_v35  ;;  %v12348_v44 = vpack.c.bf16 %v3109_v45, %v3109_v45  ;;  %v2531_v58 = vld [vmem:[#allocation2 + $0x4f] sm:$0xff]  ;;  %v12277_v0 = vpack.c.bf16 %v2530_v61, %v2530_v61 }
 0x237   : > { %2964 = vrot.lane.b32.xlu0 %v12343_v14, %s14352_s11  ;;  %2494 = vst.msk [vmem:[#allocation5 + $0x48] sm:$0xf] %vm2484_vm3, %v12242_v42  ;;  %v3976_v3 = vld [vmem:[#allocation2 + $0x4a] sm:$0xff] }
 0x238   : > { %v4557_v43 = vld [vmem:[#allocation2 + $0x54] sm:$0xff]  ;;  %v4266_v18 = vld [vmem:[#allocation2 + $0x4b] sm:$0xff] }
 0x239   : > { %2966 = vrot.lane.b32.xlu1 %v12344_v23, %s14352_s11  ;;  %v12526_v11 = vpack.c.bf16 %v4557_v43, %v4557_v43  ;;  %v2314_v50 = vld [vmem:[#allocation2 + $0x56] sm:$0xff]  ;;  %v3108_v43 = vld [vmem:[#allocation2 + $0x48] sm:$0xff] }
 0x23a   : > { %v12243_v27 = vpack.c.bf16 %v2314_v50, %v2314_v50  ;;  %v3396_v23 = vld [vmem:[#allocation2 + $0x39] sm:$0xff]  ;;  %v3398_v37 = vld [vmem:[#allocation2 + $0x49] sm:$0xff] }
 0x23b   : > { %4116 = vrot.lane.b32.xlu0 %v12449_v6, %s14357_s16  ;;  %4737 = vst.msk [vmem:[#allocation5 + $0x2c] sm:$0xf] %vm2484_vm3, %v12526_v11  ;;  %v12381_v28 = vpack.c.bf16 %v3396_v23, %v3396_v23  ;;  %v3977_v9 = vld [vmem:[#allocation2 + $0x52] sm:$0xff] }
 0x23c   : > { %2495 = vst.msk [vmem:[#allocation5 + $0x50] sm:$0xf] %vm2484_vm3, %v12243_v27 }
 0x23d   : > { %4118 = vrot.lane.b32.xlu1 %v12450_v51, %s14357_s16 }
 0x23f   : > { %4406 = vrot.lane.b32.xlu0 %v12485_v49, %s14358_s17 }
 0x241   : > { %4408 = vrot.lane.b32.xlu1 %v12486_v7, %s14358_s17 }
 0x243   : > { %3540 = vrot.lane.b32.xlu0 %v12379_v52, %s14355_s13 }
 0x245   : > { %3542 = vrot.lane.b32.xlu1 %v12380_v30, %s14355_s13 }
 0x247   : > { %3830 = vrot.lane.b32.xlu0 %v12449_v6, %s14356_s14 }
 0x249   : > { %3832 = vrot.lane.b32.xlu1 %v12450_v51, %s14356_s14  ;;  %v12347_v51 = vpack.c.bf16 %v3108_v43, %v3108_v43 }
 0x24b   : > { %3254 = vrot.lane.b32.xlu0 %v12345_v16, %s14353_s15 }
 0x24d   : > { %3256 = vrot.lane.b32.xlu1 %v12346_v63, %s14353_s15  ;;  %v13009_v15 = vpop.f32.mrb[20].mxu1 }
 0x24e   : > { %v13010_v59 = vpop.f32.mrb[21].mxu1 }
 0x24f   : > { %2678 = vrot.lane.b32.xlu0 %v12275_v47, %s14351_s10  ;;  %v13011_v56 = vadd.f32 %v13010_v59, %v13009_v15  ;;  %v13012_v54 = vpop.f32.mrb[22].mxu1  ;;  %v12278_v15 = vpack.c.bf16 %v2531_v58, %v2531_v58 }
 0x250   : > { %v13013_v1 = vpop.f32.mrb[23].mxu1 }
 0x251   : > { %2680 = vrot.lane.b32.xlu1 %v12276_v32, %s14351_s10  ;;  %2133 = vst.msk [vmem:[#allocation2 + $0x60] sm:$0xff] %vm250_vm1, %v13011_v56  ;;  %v13014_v21 = vadd.f32 %v13013_v1, %v13012_v54 }
 0x253   : > { %2968 = vrot.lane.b32.xlu0 %v12345_v16, %s14352_s11  ;;  %2134 = vst.msk [vmem:[#allocation2 + $0x68] sm:$0xff] %vm250_vm1, %v13014_v21 }
 0x255   : > { %2970 = vrot.lane.b32.xlu1 %v12346_v63, %s14352_s11  ;;  %v13015_v12 = vpop.f32.mrb[24].mxu1 }
 0x256   : > { %v13016_v10 = vpop.f32.mrb[25].mxu1 }
 0x257   : > { %4120 = vrot.lane.b32.xlu0 %v12451_v60, %s14357_s16  ;;  %v13017_v13 = vadd.f32 %v13016_v10, %v13015_v12  ;;  %v13018_v14 = vpop.f32.mrb[26].mxu1 }
 0x258   : > { %v4558_v53 = vld [vmem:[#allocation2 + $0x5c] sm:$0xff]  ;;  %v13019_v8 = vpop.f32.mrb[27].mxu1 }
 0x259   : > { %4122 = vrot.lane.b32.xlu1 %v12452_v17, %s14357_s16  ;;  %v12527_v41 = vpack.c.bf16 %v4558_v53, %v4558_v53  ;;  %2135 = vst.msk [vmem:[#allocation2 + $0x70] sm:$0xff] %vm250_vm1, %v13017_v13  ;;  %v13020_v20 = vadd.f32 %v13019_v8, %v13018_v14  ;;  %v2315_v29 = vld [vmem:[#allocation2 + $0x5e] sm:$0xff]  ;;  %v12453_v13 = vpack.c.bf16 %v3976_v3, %v3976_v3 }
 0x25a   : > { %v4559_v2 = vld [vmem:[#allocation2 + $0x64] sm:$0xff]  ;;  %v12244_v33 = vpack.c.bf16 %v2315_v29, %v2315_v29  ;;  %v12454_v8 = vpack.c.bf16 %v3977_v9, %v3977_v9 }
 0x25b   : > { %4410 = vrot.lane.b32.xlu0 %v12487_v19, %s14358_s17  ;;  %4738 = vst.msk [vmem:[#allocation5 + $0x34] sm:$0xf] %vm2484_vm3, %v12527_v41  ;;  %v12528_v26 = vpack.c.bf16 %v4559_v2, %v4559_v2  ;;  %v2316_v31 = vld [vmem:[#allocation2 + $0x66] sm:$0xff]  ;;  %v4267_v41 = vld [vmem:[#allocation2 + $0x53] sm:$0xff]  ;;  %v12489_v2 = vpack.c.bf16 %v4266_v18, %v4266_v18 }
 0x25c   : > { %2136 = vst.msk [vmem:[#allocation2 + $0x78] sm:$0xff] %vm250_vm1, %v13020_v20  ;;  %v12245_v35 = vpack.c.bf16 %v2316_v31, %v2316_v31  ;;  %v12490_v29 = vpack.c.bf16 %v4267_v41, %v4267_v41  ;;  %v3399_v31 = vld [vmem:[#allocation2 + $0x51] sm:$0xff]  ;;  %v3979_v45 = vld [vmem:[#allocation2 + $0x62] sm:$0xff] }
 0x25d   : > { %4412 = vrot.lane.b32.xlu1 %v12488_v24, %s14358_s17  ;;  %4739 = vst.msk [vmem:[#allocation5 + $0x3c] sm:$0xf] %vm2484_vm3, %v12528_v26  ;;  %v13021_v34 = vpop.f32.mrb[28].mxu1  ;;  %2496 = vst.msk [vmem:[#allocation5 + $0x58] sm:$0xf] %vm2484_vm3, %v12244_v33  ;;  %v12456_v61 = vpack.c.bf16 %v3979_v45, %v3979_v45 }
 0x25e   : > { %v13022_v25 = vpop.f32.mrb[29].mxu1  ;;  %2497 = vst.msk [vmem:[#allocation5 + $0x60] sm:$0xf] %vm2484_vm3, %v12245_v35 }
 0x25f   : > { %3544 = vrot.lane.b32.xlu0 %v12381_v28, %s14355_s13  ;;  %v13023_v48 = vadd.f32 %v13022_v25, %v13021_v34  ;;  %v13024_v40 = vpop.f32.mrb[30].mxu1  ;;  %v12383_v34 = vpack.c.bf16 %v3398_v37, %v3398_v37  ;;  %v12384_v25 = vpack.c.bf16 %v3399_v31, %v3399_v31  ;;  %v2534_v37 = vld [vmem:[#allocation2 + $0x67] sm:$0xff] }
 0x260   : > { %v4560_v42 = vld [vmem:[#allocation2 + $0x6c] sm:$0xff]  ;;  %v13025_v22 = vpop.f32.mrb[31].mxu1 }
 0x261   : > { %3546 = vrot.lane.b32.xlu1 %v12382_v38, %s14355_s13  ;;  %v12529_v62 = vpack.c.bf16 %v4560_v42, %v4560_v42  ;;  %2137 = vst.msk [vmem:[#allocation2 + $0x80] sm:$0xff] %vm250_vm1, %v13023_v48  ;;  %v13026_v5 = vadd.f32 %v13025_v22, %v13024_v40  ;;  %v2317_v55 = vld [vmem:[#allocation2 + $0x6e] sm:$0xff]  ;;  %v3110_v48 = vld [vmem:[#allocation2 + $0x58] sm:$0xff]  ;;  %v3111_v40 = vld [vmem:[#allocation2 + $0x60] sm:$0xff] }
 0x262   : > { %v12246_v57 = vpack.c.bf16 %v2317_v55, %v2317_v55  ;;  %v12349_v42 = vpack.c.bf16 %v3110_v48, %v3110_v48  ;;  %v12350_v22 = vpack.c.bf16 %v3111_v40, %v3111_v40  ;;  %v3980_v45 = vld [vmem:[#allocation2 + $0x6a] sm:$0xff] }
 0x263   : > { %v4561_v6 = vld [vmem:[#allocation2 + $0x74] sm:$0xff]  ;;  %3834 = vrot.lane.b32.xlu0 %v12451_v60, %s14356_s14  ;;  %4740 = vst.msk [vmem:[#allocation5 + $0x44] sm:$0xf] %vm2484_vm3, %v12529_v62 }
 0x264   : > { %v12530_v11 = vpack.c.bf16 %v4561_v6, %v4561_v6  ;;  %2138 = vst.msk [vmem:[#allocation2 + $0x88] sm:$0xff] %vm250_vm1, %v13026_v5  ;;  %v2318_v50 = vld [vmem:[#allocation2 + $0x76] sm:$0xff]  ;;  %v2533_v5 = vld [vmem:[#allocation2 + $0x5f] sm:$0xff] }
 0x265   : > { %3836 = vrot.lane.b32.xlu1 %v12452_v17, %s14356_s14  ;;  %v13027_v27 = vpop.f32.mrb[32].mxu1  ;;  %v12247_v49 = vpack.c.bf16 %v2318_v50, %v2318_v50  ;;  %2498 = vst.msk [vmem:[#allocation5 + $0x68] sm:$0xf] %vm2484_vm3, %v12246_v57  ;;  %v2532_v62 = vld [vmem:[#allocation2 + $0x57] sm:$0xff]  ;;  %v12280_v6 = vpack.c.bf16 %v2533_v5, %v2533_v5 }
 0x266   : > { %4741 = vst.msk [vmem:[#allocation5 + $0x4c] sm:$0xf] %vm2484_vm3, %v12530_v11  ;;  %v13028_v7 = vpop.f32.mrb[33].mxu1  ;;  %v12279_v43 = vpack.c.bf16 %v2532_v62, %v2532_v62  ;;  %v3978_v11 = vld [vmem:[#allocation2 + $0x5a] sm:$0xff] }
 0x267   : > { %3258 = vrot.lane.b32.xlu0 %v12347_v51, %s14353_s15  ;;  %v13029_v52 = vadd.f32 %v13028_v7, %v13027_v27  ;;  %v13030_v30 = vpop.f32.mrb[34].mxu1  ;;  %2499 = vst.msk [vmem:[#allocation5 + $0x70] sm:$0xf] %vm2484_vm3, %v12247_v49  ;;  %v12455_v50 = vpack.c.bf16 %v3978_v11, %v3978_v11  ;;  %v4268_v27 = vld [vmem:[#allocation2 + $0x5b] sm:$0xff] }
 0x268   : > { %v4562_v46 = vld [vmem:[#allocation2 + $0x7c] sm:$0xff]  ;;  %v13031_v16 = vpop.f32.mrb[35].mxu1 }
 0x269   : > { %3260 = vrot.lane.b32.xlu1 %v12348_v44, %s14353_s15  ;;  %v12531_v63 = vpack.c.bf16 %v4562_v46, %v4562_v46  ;;  %2139 = vst.msk [vmem:[#allocation2 + $0x90] sm:$0xff] %vm250_vm1, %v13029_v52  ;;  %v13032_v39 = vadd.f32 %v13031_v16, %v13030_v30  ;;  %v2319_v32 = vld [vmem:[#allocation2 + $0x7e] sm:$0xff]  ;;  %v12491_v46 = vpack.c.bf16 %v4268_v27, %v4268_v27 }
 0x26a   : > { %v12248_v1 = vpack.c.bf16 %v2319_v32, %v2319_v32  ;;  %v4269_v52 = vld [vmem:[#allocation2 + $0x63] sm:$0xff] }
 0x26b   : > { %v4563_v47 = vld [vmem:[#allocation2 + $0x84] sm:$0xff]  ;;  %2682 = vrot.lane.b32.xlu0 %v12277_v0, %s14351_s10  ;;  %4742 = vst.msk [vmem:[#allocation5 + $0x54] sm:$0xf] %vm2484_vm3, %v12531_v63  ;;  %v3400_v0 = vld [vmem:[#allocation2 + $0x59] sm:$0xff] }
 0x26c   : > { %v12532_v59 = vpack.c.bf16 %v4563_v47, %v4563_v47  ;;  %2140 = vst.msk [vmem:[#allocation2 + $0x98] sm:$0xff] %vm250_vm1, %v13032_v39  ;;  %v2320_v56 = vld [vmem:[#allocation2 + $0x86] sm:$0xff]  ;;  %v12492_v39 = vpack.c.bf16 %v4269_v52, %v4269_v52 }
 0x26d   : > { %2684 = vrot.lane.b32.xlu1 %v12278_v15, %s14351_s10  ;;  %v13033_v54 = vpop.f32.mrb[36].mxu1  ;;  %v12249_v21 = vpack.c.bf16 %v2320_v56, %v2320_v56  ;;  %2500 = vst.msk [vmem:[#allocation5 + $0x78] sm:$0xf] %vm2484_vm3, %v12248_v1  ;;  %v3401_v47 = vld [vmem:[#allocation2 + $0x61] sm:$0xff] }
 0x26e   : > { %4743 = vst.msk [vmem:[#allocation5 + $0x5c] sm:$0xf] %vm2484_vm3, %v12532_v59  ;;  %v13034_v4 = vpop.f32.mrb[37].mxu1  ;;  %v12385_v59 = vpack.c.bf16 %v3400_v0, %v3400_v0  ;;  %v12386_v1 = vpack.c.bf16 %v3401_v47, %v3401_v47 }
 0x26f   : > { %2972 = vrot.lane.b32.xlu0 %v12347_v51, %s14352_s11  ;;  %v13035_v60 = vadd.f32 %v13034_v4, %v13033_v54  ;;  %v13036_v12 = vpop.f32.mrb[38].mxu1  ;;  %2501 = vst.msk [vmem:[#allocation5 + $0x80] sm:$0xf] %vm2484_vm3, %v12249_v21 }
 0x270   : > { %v4564_v10 = vld [vmem:[#allocation2 + $0x8c] sm:$0xff]  ;;  %v13037_v17 = vpop.f32.mrb[39].mxu1 }
 0x271   : > { %2974 = vrot.lane.b32.xlu1 %v12348_v44, %s14352_s11  ;;  %v12533_v14 = vpack.c.bf16 %v4564_v10, %v4564_v10  ;;  %2141 = vst.msk [vmem:[#allocation2 + $0xa0] sm:$0xff] %vm250_vm1, %v13035_v60  ;;  %v2321_v20 = vld [vmem:[#allocation2 + $0x8e] sm:$0xff] }
 0x272   : > { %v12250_v24 = vpack.c.bf16 %v2321_v20, %v2321_v20  ;;  %v3112_v17 = vld [vmem:[#allocation2 + $0x68] sm:$0xff] }
 0x273   : > { %v4565_v53 = vld [vmem:[#allocation2 + $0x94] sm:$0xff]  ;;  %4124 = vrot.lane.b32.xlu0 %v12453_v13, %s14357_s16  ;;  %4744 = vst.msk [vmem:[#allocation5 + $0x64] sm:$0xf] %vm2484_vm3, %v12533_v14  ;;  %v12351_v20 = vpack.c.bf16 %v3112_v17, %v3112_v17 }
 0x274   : > { %v12534_v19 = vpack.c.bf16 %v4565_v53, %v4565_v53  ;;  %v2322_v23 = vld [vmem:[#allocation2 + $0x96] sm:$0xff]  ;;  %2502 = vst.msk [vmem:[#allocation5 + $0x88] sm:$0xf] %vm2484_vm3, %v12250_v24 }
 0x275   : > { %4126 = vrot.lane.b32.xlu1 %v12454_v8, %s14357_s16  ;;  %v12251_v26 = vpack.c.bf16 %v2322_v23, %v2322_v23 }
 0x276   : > { %4745 = vst.msk [vmem:[#allocation5 + $0x6c] sm:$0xf] %vm2484_vm3, %v12534_v19 }
 0x277   : > { %4414 = vrot.lane.b32.xlu0 %v12489_v2, %s14358_s17  ;;  %2503 = vst.msk [vmem:[#allocation5 + $0x90] sm:$0xf] %vm2484_vm3, %v12251_v26 }
 0x278   : > { %v4566_v28 = vld [vmem:[#allocation2 + $0x9c] sm:$0xff] }
 0x279   : > { %4416 = vrot.lane.b32.xlu1 %v12490_v29, %s14358_s17  ;;  %v12535_v33 = vpack.c.bf16 %v4566_v28, %v4566_v28  ;;  %v2323_v35 = vld [vmem:[#allocation2 + $0x9e] sm:$0xff] }
 0x27a   : > { %v12252_v38 = vpack.c.bf16 %v2323_v35, %v2323_v35 }
 0x27b   : > { %3548 = vrot.lane.b32.xlu0 %v12383_v34, %s14355_s13  ;;  %4746 = vst.msk [vmem:[#allocation5 + $0x74] sm:$0xf] %vm2484_vm3, %v12535_v33  ;;  %v2535_v34 = vld [vmem:[#allocation2 + $0x6f] sm:$0xff] }
 0x27c   : > { %2504 = vst.msk [vmem:[#allocation5 + $0x98] sm:$0xf] %vm2484_vm3, %v12252_v38 }
 0x27d   : > { %3550 = vrot.lane.b32.xlu1 %v12384_v25, %s14355_s13  ;;  %v12281_v25 = vpack.c.bf16 %v2534_v37, %v2534_v37 }
 0x27f   : > { %3838 = vrot.lane.b32.xlu0 %v12453_v13, %s14356_s14  ;;  %v3113_v13 = vld [vmem:[#allocation2 + $0x70] sm:$0xff] }
 0x280   : > { %v12352_v23 = vpack.c.bf16 %v3113_v13, %v3113_v13 }
 0x281   : > { %3840 = vrot.lane.b32.xlu1 %v12454_v8, %s14356_s14 }
 0x283   : > { %3262 = vrot.lane.b32.xlu0 %v12349_v42, %s14353_s15 }
 0x285   : > { %3264 = vrot.lane.b32.xlu1 %v12350_v22, %s14353_s15 }
 0x287   : > { %2686 = vrot.lane.b32.xlu0 %v12279_v43, %s14351_s10 }
 0x289   : > { %2688 = vrot.lane.b32.xlu1 %v12280_v6, %s14351_s10 }
 0x28b   : > { %2976 = vrot.lane.b32.xlu0 %v12349_v42, %s14352_s11  ;;  %v12282_v42 = vpack.c.bf16 %v2535_v34, %v2535_v34 }
 0x28d   : > { %v3247_v55 = vpop.permute.xlu0 %3246  ;;  %2978 = vrot.lane.b32.xlu1 %v12350_v22, %s14352_s11  ;;  %v13055_v51 = vpop.f32.mrb[40].mxu1 }
 0x28e   : > { %3355 = vst.msk [vmem:[#allocation5] sm:$0xf] %vm3354_vm5, %v3247_v55  ;;  %v13056_v57 = vpop.f32.mrb[41].mxu1 }
 0x28f   : > { %v3249_v49 = vpop.permute.xlu1 %3248  ;;  %4128 = vrot.lane.b32.xlu0 %v12455_v50, %s14357_s16  ;;  %v13057_v7 = vadd.f32 %v13056_v57, %v13055_v51  ;;  %v13058_v44 = vpop.f32.mrb[42].mxu1  ;;  %v12457_v57 = vpack.c.bf16 %v3980_v45, %v3980_v45 }
 0x290   : > { %3356 = vst.msk [vmem:[#allocation5 + $0x8] sm:$0xf] %vm3354_vm5, %v3249_v49  ;;  %v13059_v30 = vpop.f32.mrb[43].mxu1 }
 0x291   : > { %v2671_v58 = vpop.permute.xlu0 %2670  ;;  %4130 = vrot.lane.b32.xlu1 %v12456_v61, %s14357_s16  ;;  %2214 = vst.msk [vmem:[#allocation2 + $0xa8] sm:$0xff] %vm250_vm1, %v13057_v7  ;;  %v13060_v16 = vadd.f32 %v13059_v30, %v13058_v44  ;;  %v4270_v7 = vld [vmem:[#allocation2 + $0x6b] sm:$0xff] }
 0x292   : > { %2777 = vst.msk [vmem:[#allocation5 + $0x10] sm:$0xf] %vm2774_vm2, %v2671_v58  ;;  %v4271_v58 = vld [vmem:[#allocation2 + $0x73] sm:$0xff]  ;;  %v12493_v0 = vpack.c.bf16 %v4270_v7, %v4270_v7 }
 0x293   : > { %v2673_v63 = vpop.permute.xlu1 %2672  ;;  %4418 = vrot.lane.b32.xlu0 %v12491_v46, %s14358_s17  ;;  %2215 = vst.msk [vmem:[#allocation2 + $0xb0] sm:$0xff] %vm250_vm1, %v13060_v16 }
 0x294   : > { %2778 = vst.msk [vmem:[#allocation5 + $0x18] sm:$0xf] %vm2774_vm2, %v2673_v63 }
 0x295   : > { %v2961_v15 = vpop.permute.xlu0 %2960  ;;  %4420 = vrot.lane.b32.xlu1 %v12492_v39, %s14358_s17  ;;  %v13061_v32 = vpop.f32.mrb[44].mxu1  ;;  %v3402_v39 = vld [vmem:[#allocation2 + $0x69] sm:$0xff] }
 0x296   : > { %3067 = vst.msk [vmem:[#allocation5 + $0x10] sm:$0xf] %vm3064_vm4, %v2961_v15  ;;  %v13062_v56 = vpop.f32.mrb[45].mxu1 }
 0x297   : > { %v2963_v54 = vpop.permute.xlu1 %2962  ;;  %3552 = vrot.lane.b32.xlu0 %v12385_v59, %s14355_s13  ;;  %v13063_v21 = vadd.f32 %v13062_v56, %v13061_v32  ;;  %v13064_v3 = vpop.f32.mrb[46].mxu1  ;;  %v12494_v32 = vpack.c.bf16 %v4271_v58, %v4271_v58 }
 0x298   : > { %3068 = vst.msk [vmem:[#allocation5 + $0x18] sm:$0xf] %vm3064_vm4, %v2963_v54  ;;  %v4567_v4 = vld [vmem:[#allocation2 + $0xa4] sm:$0xff]  ;;  %v13065_v60 = vpop.f32.mrb[47].mxu1  ;;  %v3403_v54 = vld [vmem:[#allocation2 + $0x71] sm:$0xff] }
 0x299   : > { %v3537_v12 = vpop.permute.xlu0 %3536  ;;  %3554 = vrot.lane.b32.xlu1 %v12386_v1, %s14355_s13  ;;  %v12536_v9 = vpack.c.bf16 %v4567_v4, %v4567_v4  ;;  %2216 = vst.msk [vmem:[#allocation2 + $0xb8] sm:$0xff] %vm250_vm1, %v13063_v21  ;;  %v13066_v10 = vadd.f32 %v13065_v60, %v13064_v3  ;;  %v2324_v8 = vld [vmem:[#allocation2 + $0xa6] sm:$0xff]  ;;  %v12387_v3 = vpack.c.bf16 %v3402_v39, %v3402_v39 }
 0x29a   : > { %3645 = vst.msk [vmem:[#allocation5] sm:$0xf] %vm3644_vm6, %v3537_v12  ;;  %v4568_v14 = vld [vmem:[#allocation2 + $0xac] sm:$0xff]  ;;  %v12253_v24 = vpack.c.bf16 %v2324_v8, %v2324_v8  ;;  %v12388_v60 = vpack.c.bf16 %v3403_v54, %v3403_v54 }
 0x29b   : > { %v3539_v18 = vpop.permute.xlu1 %3538  ;;  %3842 = vrot.lane.b32.xlu0 %v12455_v50, %s14356_s14  ;;  %4747 = vst.msk [vmem:[#allocation5 + $0x7c] sm:$0xf] %vm2484_vm3, %v12536_v9  ;;  %v12537_v53 = vpack.c.bf16 %v4568_v14, %v4568_v14  ;;  %v2325_v19 = vld [vmem:[#allocation2 + $0xae] sm:$0xff]  ;;  %v3114_v9 = vld [vmem:[#allocation2 + $0x78] sm:$0xff] }
 0x29c   : > { %2217 = vst.msk [vmem:[#allocation2 + $0xc0] sm:$0xff] %vm250_vm1, %v13066_v10  ;;  %v12254_v26 = vpack.c.bf16 %v2325_v19, %v2325_v19  ;;  %v3981_v50 = vld [vmem:[#allocation2 + $0x72] sm:$0xff]  ;;  %v3115_v10 = vld [vmem:[#allocation2 + $0x80] sm:$0xff] }
 0x29d   : > { %3646 = vst.msk [vmem:[#allocation5 + $0x8] sm:$0xf] %vm3644_vm6, %v3539_v18  ;;  %v3827_v41 = vpop.permute.xlu0 %3826  ;;  %3844 = vrot.lane.b32.xlu1 %v12456_v61, %s14356_s14  ;;  %v13067_v2 = vpop.f32.mrb[48].mxu1  ;;  %v12458_v30 = vpack.c.bf16 %v3981_v50, %v3981_v50  ;;  %v12354_v8 = vpack.c.bf16 %v3115_v10, %v3115_v10 }
 0x29e   : > { %4748 = vst.msk [vmem:[#allocation5 + $0x84] sm:$0xf] %vm2484_vm3, %v12537_v53  ;;  %v13068_v29 = vpop.f32.mrb[49].mxu1  ;;  %2505 = vst.msk [vmem:[#allocation5 + $0xa0] sm:$0xf] %vm2484_vm3, %v12253_v24  ;;  %v12353_v53 = vpack.c.bf16 %v3114_v9, %v3114_v9 }
 0x29f   : > { %3935 = vst.msk [vmem:[#allocation5] sm:$0xf] %vm3934_vm7, %v3827_v41  ;;  %v3829_v31 = vpop.permute.xlu1 %3828  ;;  %3266 = vrot.lane.b32.xlu0 %v12351_v20, %s14353_s15  ;;  %v13069_v28 = vadd.f32 %v13068_v29, %v13067_v2  ;;  %v13070_v46 = vpop.f32.mrb[50].mxu1  ;;  %v2536_v41 = vld [vmem:[#allocation2 + $0x77] sm:$0xff] }
 0x2a0   : > { %2506 = vst.msk [vmem:[#allocation5 + $0xa8] sm:$0xf] %vm2484_vm3, %v12254_v26  ;;  %v4569_v33 = vld [vmem:[#allocation2 + $0xb4] sm:$0xff]  ;;  %v13071_v63 = vpop.f32.mrb[51].mxu1  ;;  %v2537_v26 = vld [vmem:[#allocation2 + $0x7f] sm:$0xff]  ;;  %v12283_v29 = vpack.c.bf16 %v2536_v41, %v2536_v41 }
 0x2a1   : > { %3936 = vst.msk [vmem:[#allocation5 + $0x8] sm:$0xf] %vm3934_vm7, %v3829_v31  ;;  %v3251_v35 = vpop.permute.xlu0 %3250  ;;  %3268 = vrot.lane.b32.xlu1 %v12352_v23, %s14353_s15  ;;  %v12538_v38 = vpack.c.bf16 %v4569_v33, %v4569_v33  ;;  %v2326_v62 = vld [vmem:[#allocation2 + $0xb6] sm:$0xff]  ;;  %v13072_v47 = vadd.f32 %v13071_v63, %v13070_v46  ;;  %v12284_v33 = vpack.c.bf16 %v2537_v26, %v2537_v26 }
 0x2a2   : > { %2218 = vst.msk [vmem:[#allocation2 + $0xc8] sm:$0xff] %vm250_vm1, %v13069_v28  ;;  %v12255_v6 = vpack.c.bf16 %v2326_v62, %v2326_v62  ;;  %v14010_v24 = vld [vmem:[#allocation5 + $0x4] ss:$8 sps:$4 sm:$0xff]  }
 0x2a3   : > { %3357 = vst.msk [vmem:[#allocation5 + $0x10] sm:$0xf] %vm3354_vm5, %v3251_v35  ;;  %v4570_v48 = vld [vmem:[#allocation2 + $0xbc] sm:$0xff]  ;;  %v3253_v40 = vpop.permute.xlu1 %3252  ;;  %2690 = vrot.lane.b32.xlu0 %v12281_v25, %s14351_s10  ;;  %11596 = vmatprep.mubr.msk.bf16.mxu1 %vm250_vm1, %v14010_v24 }
 0x2a4   : > { %4749 = vst.msk [vmem:[#allocation5 + $0x8c] sm:$0xf] %vm2484_vm3, %v12538_v38  ;;  %v12539_v22 = vpack.c.bf16 %v4570_v48, %v4570_v48  ;;  %v2327_v5 = vld [vmem:[#allocation2 + $0xbe] sm:$0xff]  ;;  %2507 = vst.msk [vmem:[#allocation5 + $0xb0] sm:$0xf] %vm2484_vm3, %v12255_v6 }
 0x2a5   : > { %3358 = vst.msk [vmem:[#allocation5 + $0x18] sm:$0xf] %vm3354_vm5, %v3253_v40  ;;  %v2675_v43 = vpop.permute.xlu0 %2674  ;;  %2692 = vrot.lane.b32.xlu1 %v12282_v42, %s14351_s10  ;;  %v12256_v11 = vpack.c.bf16 %v2327_v5, %v2327_v5  ;;  %v13073_v15 = vpop.f32.mrb[52].mxu1  ;;  %v3982_v48 = vld [vmem:[#allocation2 + $0x7a] sm:$0xff]  ;;  %v3983_v42 = vld [vmem:[#allocation2 + $0x82] sm:$0xff] }
 0x2a6   : > { %4750 = vst.msk [vmem:[#allocation5 + $0x94] sm:$0xf] %vm2484_vm3, %v12539_v22  ;;  %v13074_v56 = vpop.f32.mrb[53].mxu1  ;;  %v12459_v62 = vpack.c.bf16 %v3982_v48, %v3982_v48  ;;  %v4272_v5 = vld [vmem:[#allocation2 + $0x7b] sm:$0xff]  ;;  %v12460_v6 = vpack.c.bf16 %v3983_v42, %v3983_v42  ;;  %v3406_v42 = vld [vmem:[#allocation2 + $0x89] sm:$0xff] }
 0x2a7   : > { %2779 = vst.msk [vmem:[#allocation5 + $0x20] sm:$0xf] %vm2774_vm2, %v2675_v43  ;;  %v2677_v55 = vpop.permute.xlu1 %2676  ;;  %2980 = vrot.lane.b32.xlu0 %v12351_v20, %s14352_s11  ;;  %v13075_v1 = vadd.f32 %v13074_v56, %v13073_v15  ;;  %v13076_v45 = vpop.f32.mrb[54].mxu1  ;;  %v12495_v50 = vpack.c.bf16 %v4272_v5, %v4272_v5  ;;  %v3116_v15 = vld [vmem:[#allocation2 + $0x88] sm:$0xff] }
 0x2a8   : > { %2508 = vst.msk [vmem:[#allocation5 + $0xb8] sm:$0xf] %vm2484_vm3, %v12256_v11  ;;  %v4273_v11 = vld [vmem:[#allocation2 + $0x83] sm:$0xff]  ;;  %v12355_v54 = vpack.c.bf16 %v3116_v15, %v3116_v15 }
 0x2a9   : > { %2780 = vst.msk [vmem:[#allocation5 + $0x28] sm:$0xf] %vm2774_vm2, %v2677_v55  ;;  %v4571_v51 = vld [vmem:[#allocation2 + $0xc4] sm:$0xff]  ;;  %v2965_v27 = vpop.permute.xlu0 %2964  ;;  %2982 = vrot.lane.b32.xlu1 %v12352_v23, %s14352_s11 }
 0x2aa   : > { %v12540_v49 = vpack.c.bf16 %v4571_v51, %v4571_v51  ;;  %v2328_v61 = vld [vmem:[#allocation2 + $0xc6] sm:$0xff]  ;;  %3069 = vst.msk [vmem:[#allocation5 + $0x20] sm:$0xf] %vm3064_vm4, %v2965_v27  ;;  %v13077_v51 = vpop.f32.mrb[55].mxu1  ;;  %v3404_v27 = vld [vmem:[#allocation2 + $0x79] sm:$0xff] }
 0x2ab   : > { %v12257_v44 = vpack.c.bf16 %v2328_v61, %v2328_v61  ;;  %v2967_v52 = vpop.permute.xlu1 %2966  ;;  %4132 = vrot.lane.b32.xlu0 %v12457_v57, %s14357_s16  ;;  %2219 = vst.msk [vmem:[#allocation2 + $0xd0] sm:$0xff] %vm250_vm1, %v13072_v47  ;;  %2220 = vst.msk [vmem:[#allocation2 + $0xd8] sm:$0xff] %vm250_vm1, %v13075_v1  ;;  %v12496_v61 = vpack.c.bf16 %v4273_v11, %v4273_v11  ;;  %v2541_v15 = vld [vmem:[#allocation2 + $0x9f] sm:$0xff] }
 0x2ac   : > { %4751 = vst.msk [vmem:[#allocation5 + $0x9c] sm:$0xf] %vm2484_vm3, %v12540_v49 }
 0x2ad   : > { %3070 = vst.msk [vmem:[#allocation5 + $0x28] sm:$0xf] %vm3064_vm4, %v2967_v52  ;;  %v4117_v16 = vpop.permute.xlu0 %4116  ;;  %4134 = vrot.lane.b32.xlu1 %v12458_v30, %s14357_s16  ;;  %v13078_v52 = vadd.f32 %v13077_v51, %v13076_v45 }
 0x2ae   : > { %2509 = vst.msk [vmem:[#allocation5 + $0xc0] sm:$0xf] %vm2484_vm3, %v12257_v44  ;;  %v3405_v44 = vld [vmem:[#allocation2 + $0x81] sm:$0xff] }
 0x2af   : > { %4225 = vst.msk [vmem:[#allocation5] sm:$0xf] %vm4224_vm8, %v4117_v16  ;;  %v4119_v59 = vpop.permute.xlu1 %4118  ;;  %4422 = vrot.lane.b32.xlu0 %v12493_v0, %s14358_s17  ;;  %v12389_v16 = vpack.c.bf16 %v3404_v27, %v3404_v27  ;;  %v12390_v39 = vpack.c.bf16 %v3405_v44, %v3405_v44 }
 0x2b0   : > { %4226 = vst.msk [vmem:[#allocation5 + $0x8] sm:$0xf] %vm4224_vm8, %v4119_v59  ;;  %v3117_v59 = vld [vmem:[#allocation2 + $0x90] sm:$0xff] }
 0x2b1   : > { %v4407_v21 = vpop.permute.xlu0 %4406  ;;  %4424 = vrot.lane.b32.xlu1 %v12494_v32, %s14358_s17  ;;  %2221 = vst.msk [vmem:[#allocation2 + $0xe0] sm:$0xff] %vm250_vm1, %v13078_v52  ;;  %v12356_v1 = vpack.c.bf16 %v3117_v59, %v3117_v59 }
 0x2b2   : > { %4515 = vst.msk [vmem:[#allocation5] sm:$0xf] %vm4514_vm9, %v4407_v21  ;;  %v4572_v13 = vld [vmem:[#allocation2 + $0xcc] sm:$0xff]  ;;  %v4573_v19 = vld [vmem:[#allocation2 + $0xd4] sm:$0xff] }
 0x2b3   : > { %v4409_v4 = vpop.permute.xlu1 %4408  ;;  %3556 = vrot.lane.b32.xlu0 %v12387_v3, %s14355_s13  ;;  %v12541_v14 = vpack.c.bf16 %v4572_v13, %v4572_v13  ;;  %v12542_v20 = vpack.c.bf16 %v4573_v19, %v4573_v19  ;;  %v2329_v31 = vld [vmem:[#allocation2 + $0xce] sm:$0xff]  ;;  %v2330_v28 = vld [vmem:[#allocation2 + $0xd6] sm:$0xff] }
 0x2b4   : > { %4516 = vst.msk [vmem:[#allocation5 + $0x8] sm:$0xf] %vm4514_vm9, %v4409_v4  ;;  %v12258_v35 = vpack.c.bf16 %v2329_v31, %v2329_v31  ;;  %v12259_v25 = vpack.c.bf16 %v2330_v28, %v2330_v28  ;;  %v2538_v4 = vld [vmem:[#allocation2 + $0x87] sm:$0xff]  ;;  %v3985_v31 = vld [vmem:[#allocation2 + $0x92] sm:$0xff] }
 0x2b5   : > { %v3541_v12 = vpop.permute.xlu0 %3540  ;;  %3558 = vrot.lane.b32.xlu1 %v12388_v60, %s14355_s13  ;;  %4752 = vst.msk [vmem:[#allocation5 + $0xa4] sm:$0xf] %vm2484_vm3, %v12541_v14  ;;  %4753 = vst.msk [vmem:[#allocation5 + $0xac] sm:$0xf] %vm2484_vm3, %v12542_v20  ;;  %v14011_v13 = vld [vmem:[#allocation5 + $0x14] ss:$8 sps:$4 sm:$0xff]  }
 0x2b6   : > { %3647 = vst.msk [vmem:[#allocation5 + $0x10] sm:$0xf] %vm3644_vm6, %v3541_v12 }
 0x2b7   : > { %v3543_v17 = vpop.permute.xlu1 %3542  ;;  %3846 = vrot.lane.b32.xlu0 %v12457_v57, %s14356_s14  ;;  %2510 = vst.msk [vmem:[#allocation5 + $0xc8] sm:$0xf] %vm2484_vm3, %v12258_v35  ;;  %2511 = vst.msk [vmem:[#allocation5 + $0xd0] sm:$0xf] %vm2484_vm3, %v12259_v25  ;;  %v13079_v57 = vpop.f32.mrb[56].mxu1  ;;  %v12462_v25 = vpack.c.bf16 %v3985_v31, %v3985_v31 }
 0x2b8   : > { %3648 = vst.msk [vmem:[#allocation5 + $0x18] sm:$0xf] %vm3644_vm6, %v3543_v17  ;;  %v13080_v7 = vpop.f32.mrb[57].mxu1  ;;  %v4574_v21 = vld [vmem:[#allocation2 + $0xdc] sm:$0xff] }
 0x2b9   : > { %v3831_v18 = vpop.permute.xlu0 %3830  ;;  %3848 = vrot.lane.b32.xlu1 %v12458_v30, %s14356_s14  ;;  %v13081_v30 = vadd.f32 %v13080_v7, %v13079_v57  ;;  %v13082_v58 = vpop.f32.mrb[58].mxu1  ;;  %v12543_v60 = vpack.c.bf16 %v4574_v21, %v4574_v21  ;;  %v2331_v19 = vld [vmem:[#allocation2 + $0xde] sm:$0xff] }
 0x2ba   : > { %3937 = vst.msk [vmem:[#allocation5 + $0x10] sm:$0xf] %vm3934_vm7, %v3831_v18  ;;  %v13083_v0 = vpop.f32.mrb[59].mxu1  ;;  %v2539_v18 = vld [vmem:[#allocation2 + $0x8f] sm:$0xff]  ;;  %v3118_v57 = vld [vmem:[#allocation2 + $0x98] sm:$0xff] }
 0x2bb   : > { %v3833_v23 = vpop.permute.xlu1 %3832  ;;  %3270 = vrot.lane.b32.xlu0 %v12353_v53, %s14353_s15  ;;  %v14008_v2 = vld [vmem:[#allocation5] ss:$8 sps:$4 sm:$0xff]   ;;  %2222 = vst.msk [vmem:[#allocation2 + $0xe8] sm:$0xff] %vm250_vm1, %v13081_v30  ;;  %v12357_v44 = vpack.c.bf16 %v3118_v57, %v3118_v57  ;;  %v2540_v58 = vld [vmem:[#allocation2 + $0x97] sm:$0xff] }
 0x2bc   : > { %3938 = vst.msk [vmem:[#allocation5 + $0x18] sm:$0xf] %vm3934_vm7, %v3833_v23  ;;  %5125 = vmatmul.mubr.bf16.vlgmr.msra.gmra.mrb[80].mxu1 %v14008_v2  ;;  %v12286_v23 = vpack.c.bf16 %v2539_v18, %v2539_v18  ;;  %v12260_v2 = vpack.c.bf16 %v2331_v19, %v2331_v19  ;;  %v3987_v18 = vld [vmem:[#allocation2 + $0xa2] sm:$0xff] }
 0x2bd   : > { %v3255_v37 = vpop.permute.xlu0 %3254  ;;  %3272 = vrot.lane.b32.xlu1 %v12354_v8, %s14353_s15  ;;  %4754 = vst.msk [vmem:[#allocation5 + $0xb4] sm:$0xf] %vm2484_vm3, %v12543_v60  ;;  %11597 = vmatprep.mubr.msk.bf16.mxu1 %vm250_vm1, %v14011_v13  ;;  %v12288_v60 = vpack.c.bf16 %v2541_v15, %v2541_v15  ;;  %v3986_v13 = vld [vmem:[#allocation2 + $0x9a] sm:$0xff]  ;;  %v3120_v57 = vld [vmem:[#allocation2 + $0xa8] sm:$0xff] }
 0x2be   : > { %3359 = vst.msk [vmem:[#allocation5 + $0x20] sm:$0xf] %vm3354_vm5, %v3255_v37  ;;  %v3984_v37 = vld [vmem:[#allocation2 + $0x8a] sm:$0xff]  ;;  %v4276_v19 = vld [vmem:[#allocation2 + $0x9b] sm:$0xff] }
 0x2bf   : > { %v3257_v34 = vpop.permute.xlu1 %3256  ;;  %2694 = vrot.lane.b32.xlu0 %v12283_v29, %s14351_s10  ;;  %2512 = vst.msk [vmem:[#allocation5 + $0xd8] sm:$0xf] %vm2484_vm3, %v12260_v2 }
 0x2c0   : > { %3360 = vst.msk [vmem:[#allocation5 + $0x28] sm:$0xf] %vm3354_vm5, %v3257_v34  ;;  %v12461_v34 = vpack.c.bf16 %v3984_v37, %v3984_v37 }
 0x2c1   : > { %v2679_v38 = vpop.permute.xlu0 %2678  ;;  %2696 = vrot.lane.b32.xlu1 %v12284_v33, %s14351_s10  ;;  %v4274_v33 = vld [vmem:[#allocation2 + $0x8b] sm:$0xff] }
 0x2c2   : > { %2781 = vst.msk [vmem:[#allocation5 + $0x30] sm:$0xf] %vm2774_vm2, %v2679_v38  ;;  %v4575_v3 = vld [vmem:[#allocation2 + $0xe4] sm:$0xff]  ;;  %v4275_v38 = vld [vmem:[#allocation2 + $0x93] sm:$0xff] }
 0x2c3   : > { %v2681_v40 = vpop.permute.xlu1 %2680  ;;  %2984 = vrot.lane.b32.xlu0 %v12353_v53, %s14352_s11  ;;  %v12544_v12 = vpack.c.bf16 %v4575_v3, %v4575_v3  ;;  %v2332_v41 = vld [vmem:[#allocation2 + $0xe6] sm:$0xff]  ;;  %v12498_v5 = vpack.c.bf16 %v4275_v38, %v4275_v38 }
 0x2c4   : > { %2782 = vst.msk [vmem:[#allocation5 + $0x38] sm:$0xf] %vm2774_vm2, %v2681_v40  ;;  %v12261_v24 = vpack.c.bf16 %v2332_v41, %v2332_v41  ;;  %v12497_v40 = vpack.c.bf16 %v4274_v33, %v4274_v33 }
 0x2c5   : > { %v2969_v22 = vpop.permute.xlu0 %2968  ;;  %2986 = vrot.lane.b32.xlu1 %v12354_v8, %s14352_s11  ;;  %4755 = vst.msk [vmem:[#allocation5 + $0xbc] sm:$0xf] %vm2484_vm3, %v12544_v12  ;;  %v12285_v8 = vpack.c.bf16 %v2538_v4, %v2538_v4 }
 0x2c6   : > { %3071 = vst.msk [vmem:[#allocation5 + $0x30] sm:$0xf] %vm3064_vm4, %v2969_v22 }
 0x2c7   : > { %v2971_v43 = vpop.permute.xlu1 %2970  ;;  %4136 = vrot.lane.b32.xlu0 %v12459_v62, %s14357_s16  ;;  %2513 = vst.msk [vmem:[#allocation5 + $0xe0] sm:$0xf] %vm2484_vm3, %v12261_v24  ;;  %v12499_v24 = vpack.c.bf16 %v4276_v19, %v4276_v19 }
 0x2c8   : > { %3072 = vst.msk [vmem:[#allocation5 + $0x38] sm:$0xf] %vm3064_vm4, %v2971_v43 }
 0x2c9   : > { %v4121_v55 = vpop.permute.xlu0 %4120  ;;  %4138 = vrot.lane.b32.xlu1 %v12460_v6, %s14357_s16 }
 0x2ca   : > { %4227 = vst.msk [vmem:[#allocation5 + $0x10] sm:$0xf] %vm4224_vm8, %v4121_v55  ;;  %v12391_v55 = vpack.c.bf16 %v3406_v42, %v3406_v42 }
 0x2cb   : > { %v4123_v49 = vpop.permute.xlu1 %4122  ;;  %4426 = vrot.lane.b32.xlu0 %v12495_v50, %s14358_s17 }
 0x2cc   : > { %4228 = vst.msk [vmem:[#allocation5 + $0x18] sm:$0xf] %vm4224_vm8, %v4123_v49  ;;  %v3119_v49 = vld [vmem:[#allocation2 + $0xa0] sm:$0xff] }
 0x2cd   : > { %v4411_v46 = vpop.permute.xlu0 %4410  ;;  %4428 = vrot.lane.b32.xlu1 %v12496_v61, %s14358_s17  ;;  %v12358_v52 = vpack.c.bf16 %v3119_v49, %v3119_v49 }
 0x2ce   : > { %4517 = vst.msk [vmem:[#allocation5 + $0x10] sm:$0xf] %vm4514_vm9, %v4411_v46 }
 0x2cf   : > { %v4413_v63 = vpop.permute.xlu1 %4412  ;;  %3560 = vrot.lane.b32.xlu0 %v12389_v16, %s14355_s13 }
 0x2d0   : > { %4518 = vst.msk [vmem:[#allocation5 + $0x18] sm:$0xf] %vm4514_vm9, %v4413_v63  ;;  %v13101_v22 = vpop.f32.mrb[60].mxu1 }
 0x2d1   : > { %v3545_v47 = vpop.permute.xlu0 %3544  ;;  %3562 = vrot.lane.b32.xlu1 %v12390_v39, %s14355_s13  ;;  %v13102_v43 = vpop.f32.mrb[61].mxu1  ;;  %v14013_v39 = vld [vmem:[#allocation5 + $0x24] ss:$8 sps:$4 sm:$0xff]  }
 0x2d2   : > { %3649 = vst.msk [vmem:[#allocation5 + $0x20] sm:$0xf] %vm3644_vm6, %v3545_v47  ;;  %v13103_v11 = vadd.f32 %v13102_v43, %v13101_v22  ;;  %v13104_v59 = vpop.f32.mrb[62].mxu1 }
 0x2d3   : > { %v3547_v32 = vpop.permute.xlu1 %3546  ;;  %3850 = vrot.lane.b32.xlu0 %v12459_v62, %s14356_s14 }
 0x2d4   : > { %3650 = vst.msk [vmem:[#allocation5 + $0x28] sm:$0xf] %vm3644_vm6, %v3547_v32 }
 0x2d5   : > { %v3835_v56 = vpop.permute.xlu0 %3834  ;;  %3852 = vrot.lane.b32.xlu1 %v12460_v6, %s14356_s14  ;;  %v4770_v10 = vld [vmem:[#allocation5 + $0x10] sm:$0xff]  ;;  %2295 = vst.msk [vmem:[#allocation2 + $0xf0] sm:$0xff] %vm250_vm1, %v13103_v11 }
 0x2d6   : > { %3939 = vst.msk [vmem:[#allocation5 + $0x20] sm:$0xf] %vm3934_vm7, %v3835_v56  ;;  %v3407_v6 = vld [vmem:[#allocation2 + $0x91] sm:$0xff] }
 0x2d7   : > { %v3837_v9 = vpop.permute.xlu1 %3836  ;;  %3274 = vrot.lane.b32.xlu0 %v12355_v54, %s14353_s15  ;;  %v4771_v17 = vld [vmem:[#allocation5 + $0x18] sm:$0xff]  ;;  %v12392_v51 = vpack.c.bf16 %v3407_v6, %v3407_v6 }
 0x2d8   : > { %3940 = vst.msk [vmem:[#allocation5 + $0x28] sm:$0xf] %vm3934_vm7, %v3837_v9  ;;  %v11553_v14 = vcombine.low %v4770_v10, %v4771_v17 }
 0x2d9   : > { %v3259_v53 = vpop.permute.xlu0 %3258  ;;  %3276 = vrot.lane.b32.xlu1 %v12356_v1, %s14353_s15 }
 0x2da   : > { %3361 = vst.msk [vmem:[#allocation5 + $0x30] sm:$0xf] %vm3354_vm5, %v3259_v53  ;;  %5133 = vmatmul.mubr.bf16.gmra.mrb[84].mxu1 %v11553_v14 }
 0x2db   : > { %v3261_v20 = vpop.permute.xlu1 %3260  ;;  %2698 = vrot.lane.b32.xlu0 %v12285_v8, %s14351_s10  ;;  %11598 = vmatprep.mubr.msk.bf16.mxu1 %vm250_vm1, %v14013_v39  ;;  %v12463_v8 = vpack.c.bf16 %v3986_v13, %v3986_v13 }
 0x2dc   : > { %3362 = vst.msk [vmem:[#allocation5 + $0x38] sm:$0xf] %vm3354_vm5, %v3261_v20  ;;  %v4576_v30 = vld [vmem:[#allocation2 + $0xec] sm:$0xff]  ;;  %v12464_v20 = vpack.c.bf16 %v3987_v18, %v3987_v18 }
 0x2dd   : > { %v2683_v26 = vpop.permute.xlu0 %2682  ;;  %2700 = vrot.lane.b32.xlu1 %v12286_v23, %s14351_s10  ;;  %v12545_v46 = vpack.c.bf16 %v4576_v30, %v4576_v30  ;;  %v2333_v32 = vld [vmem:[#allocation2 + $0xee] sm:$0xff]  ;;  %v4277_v23 = vld [vmem:[#allocation2 + $0xa3] sm:$0xff] }
 0x2de   : > { %2783 = vst.msk [vmem:[#allocation5 + $0x40] sm:$0xf] %vm2774_vm2, %v2683_v26  ;;  %v12262_v21 = vpack.c.bf16 %v2333_v32, %v2333_v32  ;;  %v12500_v33 = vpack.c.bf16 %v4277_v23, %v4277_v23 }
 0x2df   : > { %v2685_v29 = vpop.permute.xlu1 %2684  ;;  %2988 = vrot.lane.b32.xlu0 %v12355_v54, %s14352_s11  ;;  %4756 = vst.msk [vmem:[#allocation5 + $0xc4] sm:$0xf] %vm2484_vm3, %v12545_v46  ;;  %v12287_v54 = vpack.c.bf16 %v2540_v58, %v2540_v58  ;;  %v12359_v46 = vpack.c.bf16 %v3120_v57, %v3120_v57 }
 0x2e0   : > { %2784 = vst.msk [vmem:[#allocation5 + $0x48] sm:$0xf] %vm2774_vm2, %v2685_v29  ;;  %v3408_v29 = vld [vmem:[#allocation2 + $0x99] sm:$0xff] }
 0x2e1   : > { %v2973_v28 = vpop.permute.xlu0 %2972  ;;  %2990 = vrot.lane.b32.xlu1 %v12356_v1, %s14352_s11  ;;  %v13105_v1 = vpop.f32.mrb[63].mxu1  ;;  %2514 = vst.msk [vmem:[#allocation5 + $0xe8] sm:$0xf] %vm2484_vm3, %v12262_v21 }
 0x2e2   : > { %3073 = vst.msk [vmem:[#allocation5 + $0x40] sm:$0xf] %vm3064_vm4, %v2973_v28  ;;  %v13107_v3 = vpop.f32.mrb[64].mxu1  ;;  %v13106_v9 = vadd.f32 %v13105_v1, %v13104_v59 }
 0x2e3   : > { %v2975_v35 = vpop.permute.xlu1 %2974  ;;  %4140 = vrot.lane.b32.xlu0 %v12461_v34, %s14357_s16  ;;  %v13108_v12 = vpop.f32.mrb[65].mxu1 }
 0x2e4   : > { %3074 = vst.msk [vmem:[#allocation5 + $0x48] sm:$0xf] %vm3064_vm4, %v2975_v35  ;;  %v13109_v10 = vadd.f32 %v13108_v12, %v13107_v3  ;;  %v3409_v35 = vld [vmem:[#allocation2 + $0xa1] sm:$0xff]  ;;  %v2543_v3 = vld [vmem:[#allocation2 + $0xaf] sm:$0xff] }
 0x2e5   : > { %v4125_v48 = vpop.permute.xlu0 %4124  ;;  %4142 = vrot.lane.b32.xlu1 %v12462_v25, %s14357_s16  ;;  %2296 = vst.msk [vmem:[#allocation2 + $0xf8] sm:$0xff] %vm250_vm1, %v13106_v9  ;;  %v12394_v6 = vpack.c.bf16 %v3409_v35, %v3409_v35  ;;  %v4278_v35 = vld [vmem:[#allocation2 + $0xab] sm:$0xff] }
 0x2e6   : > { %4229 = vst.msk [vmem:[#allocation5 + $0x20] sm:$0xf] %vm4224_vm8, %v4125_v48  ;;  %v12393_v48 = vpack.c.bf16 %v3408_v29, %v3408_v29  ;;  %v3989_v29 = vld [vmem:[#allocation2 + $0xb2] sm:$0xff] }
 0x2e7   : > { %v4127_v62 = vpop.permute.xlu1 %4126  ;;  %4430 = vrot.lane.b32.xlu0 %v12497_v40, %s14358_s17  ;;  %2297 = vst.msk [vmem:[#allocation2 + $0x100] sm:$0xff] %vm250_vm1, %v13109_v10 }
 0x2e8   : > { %4230 = vst.msk [vmem:[#allocation5 + $0x28] sm:$0xf] %vm4224_vm8, %v4127_v62 }
 0x2e9   : > { %v4415_v45 = vpop.permute.xlu0 %4414  ;;  %4432 = vrot.lane.b32.xlu1 %v12498_v5, %s14358_s17 }
 0x2ea   : > { %4519 = vst.msk [vmem:[#allocation5 + $0x20] sm:$0xf] %vm4514_vm9, %v4415_v45 }
 0x2eb   : > { %v4417_v50 = vpop.permute.xlu1 %4416  ;;  %3564 = vrot.lane.b32.xlu0 %v12391_v55, %s14355_s13 }
 0x2ec   : > { %4520 = vst.msk [vmem:[#allocation5 + $0x28] sm:$0xf] %vm4514_vm9, %v4417_v50  ;;  %v4577_v26 = vld [vmem:[#allocation2 + $0xf4] sm:$0xff] }
 0x2ed   : > { %v3549_v27 = vpop.permute.xlu0 %3548  ;;  %3566 = vrot.lane.b32.xlu1 %v12392_v51, %s14355_s13  ;;  %v12546_v31 = vpack.c.bf16 %v4577_v26, %v4577_v26  ;;  %v2334_v40 = vld [vmem:[#allocation2 + $0xf6] sm:$0xff] }
 0x2ee   : > { %3651 = vst.msk [vmem:[#allocation5 + $0x30] sm:$0xf] %vm3644_vm6, %v3549_v27  ;;  %v4578_v37 = vld [vmem:[#allocation2 + $0xfc] sm:$0xff]  ;;  %v12263_v62 = vpack.c.bf16 %v2334_v40, %v2334_v40  ;;  %v12466_v40 = vpack.c.bf16 %v3989_v29, %v3989_v29 }
 0x2ef   : > { %v3551_v61 = vpop.permute.xlu1 %3550  ;;  %3854 = vrot.lane.b32.xlu0 %v12461_v34, %s14356_s14  ;;  %v12547_v28 = vpack.c.bf16 %v4578_v37, %v4578_v37  ;;  %4757 = vst.msk [vmem:[#allocation5 + $0xcc] sm:$0xf] %vm2484_vm3, %v12546_v31  ;;  %v2335_v42 = vld [vmem:[#allocation2 + $0xfe] sm:$0xff] }
 0x2f0   : > { %3652 = vst.msk [vmem:[#allocation5 + $0x38] sm:$0xf] %vm3644_vm6, %v3551_v61  ;;  %v12264_v5 = vpack.c.bf16 %v2335_v42, %v2335_v42 }
 0x2f1   : > { %v3839_v7 = vpop.permute.xlu0 %3838  ;;  %3856 = vrot.lane.b32.xlu1 %v12462_v25, %s14356_s14  ;;  %v4772_v0 = vld [vmem:[#allocation5 + $0x20] sm:$0xff]  ;;  %4758 = vst.msk [vmem:[#allocation5 + $0xd4] sm:$0xf] %vm2484_vm3, %v12547_v28  ;;  %v13110_v25 = vpop.f32.mrb[66].mxu1  ;;  %2515 = vst.msk [vmem:[#allocation5 + $0xf0] sm:$0xf] %vm2484_vm3, %v12263_v62 }
 0x2f2   : > { %3941 = vst.msk [vmem:[#allocation5 + $0x30] sm:$0xf] %vm3934_vm7, %v3839_v7  ;;  %v13111_v22 = vpop.f32.mrb[67].mxu1  ;;  %v4279_v62 = vld [vmem:[#allocation2 + $0xb3] sm:$0xff] }
 0x2f3   : > { %v3841_v16 = vpop.permute.xlu1 %3840  ;;  %3278 = vrot.lane.b32.xlu0 %v12357_v44, %s14353_s15  ;;  %v4773_v63 = vld [vmem:[#allocation5 + $0x28] sm:$0xff]  ;;  %v13112_v11 = vadd.f32 %v13111_v22, %v13110_v25  ;;  %v13113_v45 = vpop.f32.mrb[68].mxu1  ;;  %2516 = vst.msk [vmem:[#allocation5 + $0xf8] sm:$0xf] %vm2484_vm3, %v12264_v5 }
 0x2f4   : > { %3942 = vst.msk [vmem:[#allocation5 + $0x38] sm:$0xf] %vm3934_vm7, %v3841_v16  ;;  %v11555_v47 = vcombine.low %v4772_v0, %v4773_v63  ;;  %v13114_v55 = vpop.f32.mrb[69].mxu1  ;;  %v2542_v63 = vld [vmem:[#allocation2 + $0xa7] sm:$0xff] }
 0x2f5   : > { %v3263_v56 = vpop.permute.xlu0 %3262  ;;  %3280 = vrot.lane.b32.xlu1 %v12358_v52, %s14353_s15  ;;  %2298 = vst.msk [vmem:[#allocation2 + $0x108] sm:$0xff] %vm250_vm1, %v13112_v11  ;;  %v13115_v51 = vadd.f32 %v13114_v55, %v13113_v45  ;;  %v13116_v27 = vpop.f32.mrb[70].mxu1  ;;  %v12289_v9 = vpack.c.bf16 %v2542_v63, %v2542_v63  ;;  %v12502_v45 = vpack.c.bf16 %v4279_v62, %v4279_v62  ;;  %v3411_v55 = vld [vmem:[#allocation2 + $0xb1] sm:$0xff]  ;;  %v2546_v62 = vld [vmem:[#allocation2 + $0xc7] sm:$0xff] }
 0x2f6   : > { %3363 = vst.msk [vmem:[#allocation5 + $0x40] sm:$0xf] %vm3354_vm5, %v3263_v56  ;;  %5141 = vmatmul.mubr.bf16.gmra.mrb[88].mxu1 %v11555_v47  ;;  %v13117_v49 = vpop.f32.mrb[71].mxu1  ;;  %v14015_v56 = vld [vmem:[#allocation5 + $0x34] ss:$8 sps:$4 sm:$0xff]  }
 0x2f7   : > { %v3265_v4 = vpop.permute.xlu1 %3264  ;;  %2702 = vrot.lane.b32.xlu0 %v12287_v54, %s14351_s10  ;;  %2299 = vst.msk [vmem:[#allocation2 + $0x110] sm:$0xff] %vm250_vm1, %v13115_v51  ;;  %v13118_v7 = vadd.f32 %v13117_v49, %v13116_v27  ;;  %11599 = vmatprep.mubr.msk.bf16.mxu1 %vm250_vm1, %v14015_v56  ;;  %v2544_v63 = vld [vmem:[#allocation2 + $0xb7] sm:$0xff] }
 0x2f8   : > { %3364 = vst.msk [vmem:[#allocation5 + $0x48] sm:$0xf] %vm3354_vm5, %v3265_v4 }
 0x2f9   : > { %v2687_v17 = vpop.permute.xlu0 %2686  ;;  %2704 = vrot.lane.b32.xlu1 %v12288_v60, %s14351_s10  ;;  %2300 = vst.msk [vmem:[#allocation2 + $0x118] sm:$0xff] %vm250_vm1, %v13118_v7 }
 0x2fa   : > { %2785 = vst.msk [vmem:[#allocation5 + $0x50] sm:$0xf] %vm2774_vm2, %v2687_v17 }
 0x2fb   : > { %2992 = vrot.lane.b32.xlu0 %v12357_v44, %s14352_s11  ;;  %v2689_v14 = vpop.permute.xlu1 %2688  ;;  %v13119_v44 = vpop.f32.mrb[72].mxu1 }
 0x2fc   : > { %2786 = vst.msk [vmem:[#allocation5 + $0x58] sm:$0xf] %vm2774_vm2, %v2689_v14  ;;  %v13120_v30 = vpop.f32.mrb[73].mxu1  ;;  %v4579_v4 = vld [vmem:[#allocation2 + $0x104] sm:$0xff] }
 0x2fd   : > { %v2977_v53 = vpop.permute.xlu0 %2976  ;;  %2994 = vrot.lane.b32.xlu1 %v12358_v52, %s14352_s11  ;;  %v3121_v52 = vld [vmem:[#allocation2 + $0xb0] sm:$0xff]  ;;  %v13121_v16 = vadd.f32 %v13120_v30, %v13119_v44  ;;  %v13122_v0 = vpop.f32.mrb[74].mxu1  ;;  %v12548_v10 = vpack.c.bf16 %v4579_v4, %v4579_v4  ;;  %v12396_v44 = vpack.c.bf16 %v3411_v55, %v3411_v55  ;;  %v3122_v30 = vld [vmem:[#allocation2 + $0xb8] sm:$0xff] }
 0x2fe   : > { %3075 = vst.msk [vmem:[#allocation5 + $0x50] sm:$0xf] %vm3064_vm4, %v2977_v53  ;;  %v13123_v39 = vpop.f32.mrb[75].mxu1  ;;  %v12360_v15 = vpack.c.bf16 %v3121_v52, %v3121_v52  ;;  %v4580_v14 = vld [vmem:[#allocation2 + $0x10c] sm:$0xff] }
 0x2ff   : > { %4144 = vrot.lane.b32.xlu0 %v12463_v8, %s14357_s16  ;;  %v2979_v41 = vpop.permute.xlu1 %2978  ;;  %2301 = vst.msk [vmem:[#allocation2 + $0x120] sm:$0xff] %vm250_vm1, %v13121_v16  ;;  %v13124_v54 = vadd.f32 %v13123_v39, %v13122_v0  ;;  %v13125_v1 = vpop.f32.mrb[76].mxu1  ;;  %v12549_v19 = vpack.c.bf16 %v4580_v14, %v4580_v14  ;;  %v2337_v51 = vld [vmem:[#allocation2 + $0x10e] sm:$0xff]  ;;  %v12361_v0 = vpack.c.bf16 %v3122_v30, %v3122_v30  ;;  %v4280_v14 = vld [vmem:[#allocation2 + $0xbb] sm:$0xff] }
 0x300   : > { %3076 = vst.msk [vmem:[#allocation5 + $0x58] sm:$0xf] %vm3064_vm4, %v2979_v41  ;;  %v13126_v60 = vpop.f32.mrb[77].mxu1  ;;  %v4581_v41 = vld [vmem:[#allocation2 + $0x114] sm:$0xff] }
 0x301   : > { %v4129_v2 = vpop.permute.xlu0 %4128  ;;  %4146 = vrot.lane.b32.xlu1 %v12464_v20, %s14357_s16  ;;  %2302 = vst.msk [vmem:[#allocation2 + $0x128] sm:$0xff] %vm250_vm1, %v13124_v54  ;;  %v13127_v17 = vadd.f32 %v13126_v60, %v13125_v1  ;;  %v13128_v13 = vpop.f32.mrb[78].mxu1  ;;  %v12550_v23 = vpack.c.bf16 %v4581_v41, %v4581_v41  ;;  %v2545_v54 = vld [vmem:[#allocation2 + $0xbf] sm:$0xff]  ;;  %v12503_v41 = vpack.c.bf16 %v4280_v14, %v4280_v14 }
 0x302   : > { %4231 = vst.msk [vmem:[#allocation5 + $0x30] sm:$0xf] %vm4224_vm8, %v4129_v2  ;;  %v13129_v18 = vpop.f32.mrb[79].mxu1  ;;  %v3988_v2 = vld [vmem:[#allocation2 + $0xaa] sm:$0xff]  ;;  %v12292_v4 = vpack.c.bf16 %v2545_v54, %v2545_v54 }
 0x303   : > { %4434 = vrot.lane.b32.xlu0 %v12499_v24, %s14358_s17  ;;  %v4131_v34 = vpop.permute.xlu1 %4130  ;;  %4759 = vst.msk [vmem:[#allocation5 + $0xdc] sm:$0xf] %vm2484_vm3, %v12548_v10  ;;  %4760 = vst.msk [vmem:[#allocation5 + $0xe4] sm:$0xf] %vm2484_vm3, %v12549_v19  ;;  %v3991_v10 = vld [vmem:[#allocation2 + $0xc2] sm:$0xff] }
 0x304   : > { %4232 = vst.msk [vmem:[#allocation5 + $0x38] sm:$0xf] %vm4224_vm8, %v4131_v34  ;;  %v12465_v34 = vpack.c.bf16 %v3988_v2, %v3988_v2 }
 0x305   : > { %v4419_v38 = vpop.permute.xlu0 %4418  ;;  %4436 = vrot.lane.b32.xlu1 %v12500_v33, %s14358_s17  ;;  %2303 = vst.msk [vmem:[#allocation2 + $0x130] sm:$0xff] %vm250_vm1, %v13127_v17 }
 0x306   : > { %4521 = vst.msk [vmem:[#allocation5 + $0x30] sm:$0xf] %vm4514_vm9, %v4419_v38  ;;  %v4582_v24 = vld [vmem:[#allocation2 + $0x11c] sm:$0xff] }
 0x307   : > { %3568 = vrot.lane.b32.xlu0 %v12393_v48, %s14355_s13  ;;  %v4421_v43 = vpop.permute.xlu1 %4420  ;;  %4761 = vst.msk [vmem:[#allocation5 + $0xec] sm:$0xf] %vm2484_vm3, %v12550_v23  ;;  %v12551_v37 = vpack.c.bf16 %v4582_v24, %v4582_v24  ;;  %v3413_v24 = vld [vmem:[#allocation2 + $0xc1] sm:$0xff] }
 0x308   : > { %4522 = vst.msk [vmem:[#allocation5 + $0x38] sm:$0xf] %vm4514_vm9, %v4421_v43  ;;  %v4583_v31 = vld [vmem:[#allocation2 + $0x124] sm:$0xff]  ;;  %v12501_v43 = vpack.c.bf16 %v4278_v35, %v4278_v35  ;;  %v12398_v35 = vpack.c.bf16 %v3413_v24, %v3413_v24 }
 0x309   : > { %v3553_v50 = vpop.permute.xlu0 %3552  ;;  %3570 = vrot.lane.b32.xlu1 %v12394_v6, %s14355_s13  ;;  %4762 = vst.msk [vmem:[#allocation5 + $0xf4] sm:$0xf] %vm2484_vm3, %v12551_v37  ;;  %v12552_v33 = vpack.c.bf16 %v4583_v31, %v4583_v31  ;;  %v3410_v6 = vld [vmem:[#allocation2 + $0xa9] sm:$0xff]  ;;  %v2339_v37 = vld [vmem:[#allocation2 + $0x11e] sm:$0x3f] }
 0x30a   : > { %3653 = vst.msk [vmem:[#allocation5 + $0x40] sm:$0xf] %vm3644_vm6, %v3553_v50  ;;  %v2336_v50 = vld [vmem:[#allocation2 + $0x106] sm:$0xff]  ;;  %v12395_v57 = vpack.c.bf16 %v3410_v6, %v3410_v6 }
 0x30b   : > { %3858 = vrot.lane.b32.xlu0 %v12463_v8, %s14356_s14  ;;  %v3555_v61 = vpop.permute.xlu1 %3554  ;;  %v12290_v8 = vpack.c.bf16 %v2543_v3, %v2543_v3  ;;  %4763 = vst.msk [vmem:[#allocation5 + $0xfc] sm:$0xf] %vm2484_vm3, %v12552_v33  ;;  %v12265_v49 = vpack.c.bf16 %v2336_v50, %v2336_v50  ;;  %v2547_v50 = vld [vmem:[#allocation2 + $0xcf] sm:$0xff] }
 0x30c   : > { %3654 = vst.msk [vmem:[#allocation5 + $0x48] sm:$0xf] %vm3644_vm6, %v3555_v61  ;;  %v4584_v25 = vld [vmem:[#allocation2 + $0x12c] sm:$0xff]  ;;  %v4585_v38 = vld [vmem:[#allocation2 + $0x134] sm:$0xff]  ;;  %v12266_v61 = vpack.c.bf16 %v2337_v51, %v2337_v51 }
 0x30d   : > { %v3843_v58 = vpop.permute.xlu0 %3842  ;;  %3860 = vrot.lane.b32.xlu1 %v12464_v20, %s14356_s14  ;;  %v4774_v59 = vld [vmem:[#allocation5 + $0x30] sm:$0xff]  ;;  %v12553_v42 = vpack.c.bf16 %v4584_v25, %v4584_v25  ;;  %v12554_v22 = vpack.c.bf16 %v4585_v38, %v4585_v38  ;;  %2517 = vst.msk [vmem:[#allocation5 + $0x100] sm:$0xf] %vm2484_vm3, %v12265_v49  ;;  %v3124_v38 = vld [vmem:[#allocation2 + $0xc8] sm:$0xff]  ;;  %v12294_v49 = vpack.c.bf16 %v2547_v50, %v2547_v50 }
 0x30e   : > { %3943 = vst.msk [vmem:[#allocation5 + $0x40] sm:$0xf] %vm3934_vm7, %v3843_v58 }
 0x30f   : > { %v3845_v47 = vpop.permute.xlu1 %3844  ;;  %3282 = vrot.lane.b32.xlu0 %v12359_v46, %s14353_s15  ;;  %v4775_v32 = vld [vmem:[#allocation5 + $0x38] sm:$0xff]  ;;  %4764 = vst.msk [vmem:[#allocation5 + $0x104] sm:$0xf] %vm2484_vm3, %v12553_v42  ;;  %4765 = vst.msk [vmem:[#allocation5 + $0x10c] sm:$0xf] %vm2484_vm3, %v12554_v22  ;;  %v12363_v22 = vpack.c.bf16 %v3124_v38, %v3124_v38 }
 0x310   : > { %3944 = vst.msk [vmem:[#allocation5 + $0x48] sm:$0xf] %vm3934_vm7, %v3845_v47  ;;  %v11557_v21 = vcombine.low %v4774_v59, %v4775_v32  ;;  %v14017_v32 = vld [vmem:[#allocation5 + $0x44] ss:$8 sps:$4 sm:$0xff]  }
 0x311   : > { %v3267_v12 = vpop.permute.xlu0 %3266  ;;  %3284 = vrot.lane.b32.xlu1 %v12360_v15, %s14353_s15  ;;  %2518 = vst.msk [vmem:[#allocation5 + $0x108] sm:$0xf] %vm2484_vm3, %v12266_v61 }
 0x312   : > { %3365 = vst.msk [vmem:[#allocation5 + $0x50] sm:$0xf] %vm3354_vm5, %v3267_v12  ;;  %5149 = vmatmul.mubr.bf16.gmra.mrb[92].mxu1 %v11557_v21  ;;  %v12291_v21 = vpack.c.bf16 %v2544_v63, %v2544_v63  ;;  %v3990_v12 = vld [vmem:[#allocation2 + $0xba] sm:$0xff] }
 0x313   : > { %v3269_v53 = vpop.permute.xlu1 %3268  ;;  %2706 = vrot.lane.b32.xlu0 %v12289_v9, %s14351_s10  ;;  %11600 = vmatprep.mubr.msk.bf16.mxu1 %vm250_vm1, %v14017_v32  ;;  %v12467_v13 = vpack.c.bf16 %v3990_v12, %v3990_v12  ;;  %v4283_v63 = vld [vmem:[#allocation2 + $0xd3] sm:$0xff] }
 0x314   : > { %3366 = vst.msk [vmem:[#allocation5 + $0x58] sm:$0xf] %vm3354_vm5, %v3269_v53  ;;  %v12468_v53 = vpack.c.bf16 %v3991_v10, %v3991_v10  ;;  %v12506_v32 = vpack.c.bf16 %v4283_v63, %v4283_v63 }
 0x315   : > { %v2691_v20 = vpop.permute.xlu0 %2690  ;;  %2708 = vrot.lane.b32.xlu1 %v12290_v8, %s14351_s10  ;;  %v4281_v8 = vld [vmem:[#allocation2 + $0xc3] sm:$0xff] }
 0x316   : > { %2787 = vst.msk [vmem:[#allocation5 + $0x60] sm:$0xf] %vm2774_vm2, %v2691_v20  ;;  %v3412_v20 = vld [vmem:[#allocation2 + $0xb9] sm:$0xff]  ;;  %v12504_v2 = vpack.c.bf16 %v4281_v8, %v4281_v8 }
 0x317   : > { %v2693_v26 = vpop.permute.xlu1 %2692  ;;  %2996 = vrot.lane.b32.xlu0 %v12359_v46, %s14352_s11  ;;  %v3123_v46 = vld [vmem:[#allocation2 + $0xc0] sm:$0xff]  ;;  %v12397_v31 = vpack.c.bf16 %v3412_v20, %v3412_v20 }
 0x318   : > { %2788 = vst.msk [vmem:[#allocation5 + $0x68] sm:$0xf] %vm2774_vm2, %v2693_v26  ;;  %v12362_v47 = vpack.c.bf16 %v3123_v46, %v3123_v46  ;;  %v2338_v26 = vld [vmem:[#allocation2 + $0x116] sm:$0xff]  ;;  %v4282_v46 = vld [vmem:[#allocation2 + $0xcb] sm:$0xff]  ;;  %v2549_v20 = vld [vmem:[#allocation2 + $0xdf] sm:$0xff] }
 0x319   : > { %v2981_v28 = vpop.permute.xlu0 %2980  ;;  %2998 = vrot.lane.b32.xlu1 %v12360_v15, %s14352_s11 }
 0x31a   : > { %3077 = vst.msk [vmem:[#allocation5 + $0x60] sm:$0xf] %vm3064_vm4, %v2981_v28  ;;  %v12267_v28 = vpack.c.bf16 %v2338_v26, %v2338_v26  ;;  %v12296_v26 = vpack.c.bf16 %v2549_v20, %v2549_v20 }
 0x31b   : > { %v2983_v48 = vpop.permute.xlu1 %2982  ;;  %4148 = vrot.lane.b32.xlu0 %v12465_v34, %s14357_s16 }
 0x31c   : > { %3078 = vst.msk [vmem:[#allocation5 + $0x68] sm:$0xf] %vm3064_vm4, %v2983_v48 }
 0x31d   : > { %v4133_v5 = vpop.permute.xlu0 %4132  ;;  %4150 = vrot.lane.b32.xlu1 %v12466_v40, %s14357_s16  ;;  %2519 = vst.msk [vmem:[#allocation5 + $0x110] sm:$0xf] %vm2484_vm3, %v12267_v28  ;;  %v3995_v28 = vld [vmem:[#allocation2 + $0xe2] sm:$0xff] }
 0x31e   : > { %4233 = vst.msk [vmem:[#allocation5 + $0x40] sm:$0xf] %vm4224_vm8, %v4133_v5  ;;  %v12472_v38 = vpack.c.bf16 %v3995_v28, %v3995_v28 }
 0x31f   : > { %v4135_v11 = vpop.permute.xlu1 %4134  ;;  %4438 = vrot.lane.b32.xlu0 %v12501_v43, %s14358_s17 }
 0x320   : > { %4234 = vst.msk [vmem:[#allocation5 + $0x48] sm:$0xf] %vm4224_vm8, %v4135_v11 }
 0x321   : > { %v4423_v27 = vpop.permute.xlu0 %4422  ;;  %4440 = vrot.lane.b32.xlu1 %v12502_v45, %s14358_s17  ;;  %v14019_v45 = vld [vmem:[#allocation5 + $0x54] ss:$8 sps:$4 sm:$0xff]  }
 0x322   : > { %4523 = vst.msk [vmem:[#allocation5 + $0x40] sm:$0xf] %vm4514_vm9, %v4423_v27  ;;  %v12293_v27 = vpack.c.bf16 %v2546_v62, %v2546_v62 }
 0x323   : > { %v4425_v7 = vpop.permute.xlu1 %4424  ;;  %3572 = vrot.lane.b32.xlu0 %v12395_v57, %s14355_s13 }
 0x324   : > { %4524 = vst.msk [vmem:[#allocation5 + $0x48] sm:$0xf] %vm4514_vm9, %v4425_v7  ;;  %v3992_v7 = vld [vmem:[#allocation2 + $0xca] sm:$0xff] }
 0x325   : > { %v3557_v52 = vpop.permute.xlu0 %3556  ;;  %3574 = vrot.lane.b32.xlu1 %v12396_v44, %s14355_s13 }
 0x326   : > { %3655 = vst.msk [vmem:[#allocation5 + $0x50] sm:$0xf] %vm3644_vm6, %v3557_v52  ;;  %v3993_v52 = vld [vmem:[#allocation2 + $0xd2] sm:$0xff] }
 0x327   : > { %v3559_v58 = vpop.permute.xlu1 %3558  ;;  %3862 = vrot.lane.b32.xlu0 %v12465_v34, %s14356_s14  ;;  %v12268_v34 = vpack.c.bf16 %v2339_v37, %v2339_v37 }
 0x328   : > { %3656 = vst.msk [vmem:[#allocation5 + $0x58] sm:$0xf] %vm3644_vm6, %v3559_v58  ;;  %v12469_v58 = vpack.c.bf16 %v3992_v7, %v3992_v7 }
 0x329   : > { %v3847_v16 = vpop.permute.xlu0 %3846  ;;  %3864 = vrot.lane.b32.xlu1 %v12466_v40, %s14356_s14  ;;  %v4776_v15 = vld [vmem:[#allocation5 + $0x40] sm:$0xff]  ;;  %2521 = vst.msk [vmem:[#allocation5 + $0x118] sm:$0x7] %vm2520_vm10, %v12268_v34  ;;  %v3125_v40 = vld [vmem:[#allocation2 + $0xd0] sm:$0xff] }
 0x32a   : > { %3945 = vst.msk [vmem:[#allocation5 + $0x50] sm:$0xf] %vm3934_vm7, %v3847_v16  ;;  %v12364_v43 = vpack.c.bf16 %v3125_v40, %v3125_v40 }
 0x32b   : > { %v3849_v39 = vpop.permute.xlu1 %3848  ;;  %3286 = vrot.lane.b32.xlu0 %v12361_v0, %s14353_s15  ;;  %v4777_v59 = vld [vmem:[#allocation5 + $0x48] sm:$0xff] }
 0x32c   : > { %3946 = vst.msk [vmem:[#allocation5 + $0x58] sm:$0xf] %vm3934_vm7, %v3849_v39  ;;  %v11559_v56 = vcombine.low %v4776_v15, %v4777_v59  ;;  %v3414_v15 = vld [vmem:[#allocation2 + $0xc9] sm:$0xff] }
 0x32d   : > { %v3271_v1 = vpop.permute.xlu0 %3270  ;;  %3288 = vrot.lane.b32.xlu1 %v12362_v47, %s14353_s15 }
 0x32e   : > { %3367 = vst.msk [vmem:[#allocation5 + $0x60] sm:$0xf] %vm3354_vm5, %v3271_v1  ;;  %5157 = vmatmul.mubr.bf16.gmra.mrb[96].mxu1 %v11559_v56  ;;  %v3415_v56 = vld [vmem:[#allocation2 + $0xd1] sm:$0xff]  ;;  %v12399_v1 = vpack.c.bf16 %v3414_v15, %v3414_v15 }
 0x32f   : > { %v3273_v3 = vpop.permute.xlu1 %3272  ;;  %2710 = vrot.lane.b32.xlu0 %v12291_v21, %s14351_s10  ;;  %11601 = vmatprep.mubr.msk.bf16.mxu1 %vm250_vm1, %v14019_v45 }
 0x330   : > { %3368 = vst.msk [vmem:[#allocation5 + $0x68] sm:$0xf] %vm3354_vm5, %v3273_v3  ;;  %v12400_v3 = vpack.c.bf16 %v3415_v56, %v3415_v56 }
 0x331   : > { %v2695_v60 = vpop.permute.xlu0 %2694  ;;  %2712 = vrot.lane.b32.xlu1 %v12292_v4, %s14351_s10 }
 0x332   : > { %2789 = vst.msk [vmem:[#allocation5 + $0x70] sm:$0xf] %vm2774_vm2, %v2695_v60  ;;  %v3126_v60 = vld [vmem:[#allocation2 + $0xd8] sm:$0xff] }
 0x333   : > { %v2697_v9 = vpop.permute.xlu1 %2696  ;;  %3000 = vrot.lane.b32.xlu0 %v12361_v0, %s14352_s11  ;;  %v12470_v0 = vpack.c.bf16 %v3993_v52, %v3993_v52 }
 0x334   : > { %2790 = vst.msk [vmem:[#allocation5 + $0x78] sm:$0xf] %vm2774_vm2, %v2697_v9  ;;  %v3127_v9 = vld [vmem:[#allocation2 + $0xe0] sm:$0xff] }
 0x335   : > { %v2985_v17 = vpop.permute.xlu0 %2984  ;;  %3002 = vrot.lane.b32.xlu1 %v12362_v47, %s14352_s11  ;;  %v12505_v47 = vpack.c.bf16 %v4282_v46, %v4282_v46  ;;  %v14023_v46 = vld [vmem:[#allocation5 + $0x74] ss:$8 sps:$4 sm:$0xff]  }
 0x336   : > { %3079 = vst.msk [vmem:[#allocation5 + $0x70] sm:$0xf] %vm3064_vm4, %v2985_v17  ;;  %v12365_v17 = vpack.c.bf16 %v3126_v60, %v3126_v60 }
 0x337   : > { %v2987_v18 = vpop.permute.xlu1 %2986  ;;  %4152 = vrot.lane.b32.xlu0 %v12467_v13, %s14357_s16 }
 0x338   : > { %3080 = vst.msk [vmem:[#allocation5 + $0x78] sm:$0xf] %vm3064_vm4, %v2987_v18  ;;  %v12366_v18 = vpack.c.bf16 %v3127_v9, %v3127_v9 }
 0x339   : > { %v4137_v19 = vpop.permute.xlu0 %4136  ;;  %4154 = vrot.lane.b32.xlu1 %v12468_v53, %s14357_s16 }
 0x33a   : > { %4235 = vst.msk [vmem:[#allocation5 + $0x50] sm:$0xf] %vm4224_vm8, %v4137_v19  ;;  %v14021_v19 = vld [vmem:[#allocation5 + $0x64] ss:$8 sps:$4 sm:$0xff]  }
 0x33b   : > { %v4139_v23 = vpop.permute.xlu1 %4138  ;;  %4442 = vrot.lane.b32.xlu0 %v12503_v41, %s14358_s17 }
 0x33c   : > { %4236 = vst.msk [vmem:[#allocation5 + $0x58] sm:$0xf] %vm4224_vm8, %v4139_v23 }
 0x33d   : > { %v4427_v29 = vpop.permute.xlu0 %4426  ;;  %4444 = vrot.lane.b32.xlu1 %v12504_v2, %s14358_s17 }
 0x33e   : > { %4525 = vst.msk [vmem:[#allocation5 + $0x50] sm:$0xf] %vm4514_vm9, %v4427_v29  ;;  %v3994_v29 = vld [vmem:[#allocation2 + $0xda] sm:$0xff] }
 0x33f   : > { %v4429_v33 = vpop.permute.xlu1 %4428  ;;  %3576 = vrot.lane.b32.xlu0 %v12397_v31, %s14355_s13 }
 0x340   : > { %4526 = vst.msk [vmem:[#allocation5 + $0x58] sm:$0xf] %vm4514_vm9, %v4429_v33  ;;  %v12471_v33 = vpack.c.bf16 %v3994_v29, %v3994_v29 }
 0x341   : > { %v3561_v25 = vpop.permute.xlu0 %3560  ;;  %3578 = vrot.lane.b32.xlu1 %v12398_v35, %s14355_s13  ;;  %v4284_v35 = vld [vmem:[#allocation2 + $0xdb] sm:$0xff] }
 0x342   : > { %3657 = vst.msk [vmem:[#allocation5 + $0x60] sm:$0xf] %vm3644_vm6, %v3561_v25 }
 0x343   : > { %v3563_v48 = vpop.permute.xlu1 %3562  ;;  %3866 = vrot.lane.b32.xlu0 %v12467_v13, %s14356_s14  ;;  %v2548_v13 = vld [vmem:[#allocation2 + $0xd7] sm:$0xff] }
 0x344   : > { %3658 = vst.msk [vmem:[#allocation5 + $0x68] sm:$0xf] %vm3644_vm6, %v3563_v48  ;;  %v12295_v2 = vpack.c.bf16 %v2548_v13, %v2548_v13  ;;  %v4285_v48 = vld [vmem:[#allocation2 + $0xe3] sm:$0xff] }
 0x345   : > { %v3851_v42 = vpop.permute.xlu0 %3850  ;;  %3868 = vrot.lane.b32.xlu1 %v12468_v53, %s14356_s14  ;;  %v4778_v6 = vld [vmem:[#allocation5 + $0x50] sm:$0xff] }
 0x346   : > { %3947 = vst.msk [vmem:[#allocation5 + $0x60] sm:$0xf] %vm3934_vm7, %v3851_v42  ;;  %v12507_v42 = vpack.c.bf16 %v4284_v35, %v4284_v35  ;;  %v3130_v35 = vld [vmem:[#allocation2 + $0xf8] sm:$0xff] }
 0x347   : > { %v3853_v5 = vpop.permute.xlu1 %3852  ;;  %3290 = vrot.lane.b32.xlu0 %v12363_v22, %s14353_s15  ;;  %v4779_v11 = vld [vmem:[#allocation5 + $0x58] sm:$0xff] }
 0x348   : > { %3948 = vst.msk [vmem:[#allocation5 + $0x68] sm:$0xf] %vm3934_vm7, %v3853_v5  ;;  %v11561_v55 = vcombine.low %v4778_v6, %v4779_v11  ;;  %v12508_v5 = vpack.c.bf16 %v4285_v48, %v4285_v48 }
 0x349   : > { %v3275_v51 = vpop.permute.xlu0 %3274  ;;  %3292 = vrot.lane.b32.xlu1 %v12364_v43, %s14353_s15 }
 0x34a   : > { %3369 = vst.msk [vmem:[#allocation5 + $0x70] sm:$0xf] %vm3354_vm5, %v3275_v51  ;;  %5165 = vmatmul.mubr.bf16.gmra.mrb[100].mxu1 %v11561_v55  ;;  %v3128_v51 = vld [vmem:[#allocation2 + $0xe8] sm:$0xff] }
 0x34b   : > { %v3277_v57 = vpop.permute.xlu1 %3276  ;;  %2714 = vrot.lane.b32.xlu0 %v12293_v27, %s14351_s10  ;;  %11602 = vmatprep.mubr.msk.bf16.mxu1 %vm250_vm1, %v14021_v19  ;;  %v3129_v27 = vld [vmem:[#allocation2 + $0xf0] sm:$0xff] }
 0x34c   : > { %3370 = vst.msk [vmem:[#allocation5 + $0x78] sm:$0xf] %vm3354_vm5, %v3277_v57  ;;  %v12368_v7 = vpack.c.bf16 %v3129_v27, %v3129_v27 }
 0x34d   : > { %v2699_v61 = vpop.permute.xlu0 %2698  ;;  %2716 = vrot.lane.b32.xlu1 %v12294_v49, %s14351_s10 }
 0x34e   : > { %2791 = vst.msk [vmem:[#allocation5 + $0x80] sm:$0xf] %vm2774_vm2, %v2699_v61  ;;  %v12367_v61 = vpack.c.bf16 %v3128_v51, %v3128_v51  ;;  %v2553_v51 = vld [vmem:[#allocation2 + $0xff] sm:$0xff] }
 0x34f   : > { %v2701_v44 = vpop.permute.xlu1 %2700  ;;  %3004 = vrot.lane.b32.xlu0 %v12363_v22, %s14352_s11  ;;  %v3416_v22 = vld [vmem:[#allocation2 + $0xd9] sm:$0xff] }
 0x350   : > { %2792 = vst.msk [vmem:[#allocation5 + $0x88] sm:$0xf] %vm2774_vm2, %v2701_v44  ;;  %v12401_v11 = vpack.c.bf16 %v3416_v22, %v3416_v22  ;;  %v2550_v44 = vld [vmem:[#allocation2 + $0xe7] sm:$0xff]  ;;  %v12369_v22 = vpack.c.bf16 %v3130_v35, %v3130_v35 }
 0x351   : > { %v2989_v30 = vpop.permute.xlu0 %2988  ;;  %3006 = vrot.lane.b32.xlu1 %v12364_v43, %s14352_s11  ;;  %v3417_v43 = vld [vmem:[#allocation2 + $0xe1] sm:$0xff] }
 0x352   : > { %3081 = vst.msk [vmem:[#allocation5 + $0x80] sm:$0xf] %vm3064_vm4, %v2989_v30  ;;  %v12402_v55 = vpack.c.bf16 %v3417_v43, %v3417_v43  ;;  %v2552_v43 = vld [vmem:[#allocation2 + $0xf7] sm:$0xff] }
 0x353   : > { %v2991_v16 = vpop.permute.xlu1 %2990  ;;  %4156 = vrot.lane.b32.xlu0 %v12469_v58, %s14357_s16 }
 0x354   : > { %3082 = vst.msk [vmem:[#allocation5 + $0x88] sm:$0xf] %vm3064_vm4, %v2991_v16 }
 0x355   : > { %v4141_v39 = vpop.permute.xlu0 %4140  ;;  %4158 = vrot.lane.b32.xlu1 %v12470_v0, %s14357_s16 }
 0x356   : > { %4237 = vst.msk [vmem:[#allocation5 + $0x60] sm:$0xf] %vm4224_vm8, %v4141_v39  ;;  %v12297_v39 = vpack.c.bf16 %v2550_v44, %v2550_v44  ;;  %v3998_v44 = vld [vmem:[#allocation2 + $0xfa] sm:$0xff] }
 0x357   : > { %v4143_v59 = vpop.permute.xlu1 %4142  ;;  %4446 = vrot.lane.b32.xlu0 %v12505_v47, %s14358_s17 }
 0x358   : > { %4238 = vst.msk [vmem:[#allocation5 + $0x68] sm:$0xf] %vm4224_vm8, %v4143_v59 }
 0x359   : > { %v4431_v54 = vpop.permute.xlu0 %4430  ;;  %4448 = vrot.lane.b32.xlu1 %v12506_v32, %s14358_s17  ;;  %v3996_v32 = vld [vmem:[#allocation2 + $0xea] sm:$0xff] }
 0x35a   : > { %4527 = vst.msk [vmem:[#allocation5 + $0x60] sm:$0xf] %vm4514_vm9, %v4431_v54  ;;  %v3997_v54 = vld [vmem:[#allocation2 + $0xf2] sm:$0xff] }
 0x35b   : > { %v4433_v21 = vpop.permute.xlu1 %4432  ;;  %3580 = vrot.lane.b32.xlu0 %v12399_v1, %s14355_s13  ;;  %v12474_v60 = vpack.c.bf16 %v3997_v54, %v3997_v54  ;;  %v3421_v54 = vld [vmem:[#allocation2 + $0x101] sm:$0xff] }
 0x35c   : > { %4528 = vst.msk [vmem:[#allocation5 + $0x68] sm:$0xf] %vm4514_vm9, %v4433_v21  ;;  %v12473_v21 = vpack.c.bf16 %v3996_v32, %v3996_v32 }
 0x35d   : > { %v3565_v4 = vpop.permute.xlu0 %3564  ;;  %3582 = vrot.lane.b32.xlu1 %v12400_v3, %s14355_s13  ;;  %v4286_v3 = vld [vmem:[#allocation2 + $0xeb] sm:$0xff] }
 0x35e   : > { %3659 = vst.msk [vmem:[#allocation5 + $0x70] sm:$0xf] %vm3644_vm6, %v3565_v4 }
 0x35f   : > { %v3567_v12 = vpop.permute.xlu1 %3566  ;;  %3870 = vrot.lane.b32.xlu0 %v12469_v58, %s14356_s14 }
 0x360   : > { %3660 = vst.msk [vmem:[#allocation5 + $0x78] sm:$0xf] %vm3644_vm6, %v3567_v12  ;;  %v4287_v12 = vld [vmem:[#allocation2 + $0xf3] sm:$0xff] }
 0x361   : > { %v3855_v10 = vpop.permute.xlu0 %3854  ;;  %3872 = vrot.lane.b32.xlu1 %v12470_v0, %s14356_s14  ;;  %v4780_v53 = vld [vmem:[#allocation5 + $0x60] sm:$0xff] }
 0x362   : > { %3949 = vst.msk [vmem:[#allocation5 + $0x70] sm:$0xf] %vm3934_vm7, %v3855_v10  ;;  %v2551_v0 = vld [vmem:[#allocation2 + $0xef] sm:$0xff]  ;;  %v12509_v10 = vpack.c.bf16 %v4286_v3, %v4286_v3 }
 0x363   : > { %v3857_v14 = vpop.permute.xlu1 %3856  ;;  %3294 = vrot.lane.b32.xlu0 %v12365_v17, %s14353_s15  ;;  %v4781_v8 = vld [vmem:[#allocation5 + $0x68] sm:$0xff]  ;;  %v12298_v15 = vpack.c.bf16 %v2551_v0, %v2551_v0 }
 0x364   : > { %3950 = vst.msk [vmem:[#allocation5 + $0x78] sm:$0xf] %vm3934_vm7, %v3857_v14  ;;  %v11563_v41 = vcombine.low %v4780_v53, %v4781_v8  ;;  %v12510_v14 = vpack.c.bf16 %v4287_v12, %v4287_v12  ;;  %v3419_v53 = vld [vmem:[#allocation2 + $0xf1] sm:$0xff] }
 0x365   : > { %v3279_v23 = vpop.permute.xlu0 %3278  ;;  %3296 = vrot.lane.b32.xlu1 %v12366_v18, %s14353_s15 }
 0x366   : > { %3371 = vst.msk [vmem:[#allocation5 + $0x80] sm:$0xf] %vm3354_vm5, %v3279_v23  ;;  %5173 = vmatmul.mubr.bf16.gmra.mrb[104].mxu1 %v11563_v41  ;;  %v15565_v41 = vld [vmem:[%s17409_s3 + $0x3] ss:$0 sm:$0xff] }
 0x367   : > { %v3281_v24 = vpop.permute.xlu1 %3280  ;;  %2718 = vrot.lane.b32.xlu0 %v12295_v2, %s14351_s10  ;;  %11603 = vmatprep.mubr.msk.bf16.mxu1 %vm250_vm1, %v14023_v46  ;;  %v12475_v46 = vpack.c.bf16 %v3998_v44, %v3998_v44  ;;  %v3422_v44 = vld [vmem:[#allocation2 + $0x109] sm:$0xff] }
 0x368   : > { %3372 = vst.msk [vmem:[#allocation5 + $0x88] sm:$0xf] %vm3354_vm5, %v3281_v24 }
 0x369   : > { %v2703_v37 = vpop.permute.xlu0 %2702  ;;  %2720 = vrot.lane.b32.xlu1 %v12296_v26, %s14351_s10 }
 0x36a   : > { %2793 = vst.msk [vmem:[#allocation5 + $0x90] sm:$0xf] %vm2774_vm2, %v2703_v37  ;;  %v12404_v37 = vpack.c.bf16 %v3419_v53, %v3419_v53 }
 0x36b   : > { %v2705_v31 = vpop.permute.xlu1 %2704  ;;  %3008 = vrot.lane.b32.xlu0 %v12365_v17, %s14352_s11  ;;  %v3418_v17 = vld [vmem:[#allocation2 + $0xe9] sm:$0xff] }
 0x36c   : > { %2794 = vst.msk [vmem:[#allocation5 + $0x98] sm:$0xf] %vm2774_vm2, %v2705_v31  ;;  %v12403_v20 = vpack.c.bf16 %v3418_v17, %v3418_v17 }
 0x36d   : > { %v2993_v34 = vpop.permute.xlu0 %2992  ;;  %3010 = vrot.lane.b32.xlu1 %v12366_v18, %s14352_s11  ;;  %v15558_v18 = vld [vmem:[%s17409_s3 + $0x2] ss:$0 sm:$0xff] }
 0x36e   : > { %3083 = vst.msk [vmem:[#allocation5 + $0x90] sm:$0xf] %vm3064_vm4, %v2993_v34 }
 0x36f   : > { %v2995_v25 = vpop.permute.xlu1 %2994  ;;  %4160 = vrot.lane.b32.xlu0 %v12471_v33, %s14357_s16 }
 0x370   : > { %3084 = vst.msk [vmem:[#allocation5 + $0x98] sm:$0xf] %vm3064_vm4, %v2995_v25  ;;  %v3131_v25 = vld [vmem:[#allocation2 + $0x100] sm:$0xff] }
 0x371   : > { %v4145_v40 = vpop.permute.xlu0 %4144  ;;  %4162 = vrot.lane.b32.xlu1 %v12472_v38, %s14357_s16 }
 0x372   : > { %4239 = vst.msk [vmem:[#allocation5 + $0x70] sm:$0xf] %vm4224_vm8, %v4145_v40 }
 0x373   : > { %v4147_v62 = vpop.permute.xlu1 %4146  ;;  %4450 = vrot.lane.b32.xlu0 %v12507_v42, %s14358_s17 }
 0x374   : > { %4240 = vst.msk [vmem:[#allocation5 + $0x78] sm:$0xf] %vm4224_vm8, %v4147_v62  ;;  %v12370_v62 = vpack.c.bf16 %v3131_v25, %v3131_v25  ;;  %v14027_v25 = vld [vmem:[#allocation5 + $0x94] ss:$8 sps:$4 sm:$0xff]  }
 0x375   : > { %v4435_v6 = vpop.permute.xlu0 %4434  ;;  %4452 = vrot.lane.b32.xlu1 %v12508_v5, %s14358_s17 }
 0x376   : > { %4529 = vst.msk [vmem:[#allocation5 + $0x70] sm:$0xf] %vm4514_vm9, %v4435_v6 }
 0x377   : > { %v4437_v45 = vpop.permute.xlu1 %4436  ;;  %3584 = vrot.lane.b32.xlu0 %v12401_v11, %s14355_s13 }
 0x378   : > { %4530 = vst.msk [vmem:[#allocation5 + $0x78] sm:$0xf] %vm4514_vm9, %v4437_v45 }
 0x379   : > { %v3569_v50 = vpop.permute.xlu0 %3568  ;;  %3586 = vrot.lane.b32.xlu1 %v12402_v55, %s14355_s13  ;;  %v14025_v55 = vld [vmem:[#allocation5 + $0x84] ss:$8 sps:$4 sm:$0xff]  }
 0x37a   : > { %3661 = vst.msk [vmem:[#allocation5 + $0x80] sm:$0xf] %vm3644_vm6, %v3569_v50 }
 0x37b   : > { %v3571_v57 = vpop.permute.xlu1 %3570  ;;  %3874 = vrot.lane.b32.xlu0 %v12471_v33, %s14356_s14 }
 0x37c   : > { %3662 = vst.msk [vmem:[#allocation5 + $0x88] sm:$0xf] %vm3644_vm6, %v3571_v57  ;;  %v12299_v57 = vpack.c.bf16 %v2552_v43, %v2552_v43 }
 0x37d   : > { %v3859_v49 = vpop.permute.xlu0 %3858  ;;  %3876 = vrot.lane.b32.xlu1 %v12472_v38, %s14356_s14  ;;  %v4782_v30 = vld [vmem:[#allocation5 + $0x70] sm:$0xff] }
 0x37e   : > { %3951 = vst.msk [vmem:[#allocation5 + $0x80] sm:$0xf] %vm3934_vm7, %v3859_v49 }
 0x37f   : > { %v3861_v52 = vpop.permute.xlu1 %3860  ;;  %3298 = vrot.lane.b32.xlu0 %v12367_v61, %s14353_s15  ;;  %v4783_v58 = vld [vmem:[#allocation5 + $0x78] sm:$0xff] }
 0x380   : > { %3952 = vst.msk [vmem:[#allocation5 + $0x88] sm:$0xf] %vm3934_vm7, %v3861_v52  ;;  %v11565_v16 = vcombine.low %v4782_v30, %v4783_v58  ;;  %v3999_v30 = vld [vmem:[#allocation2 + $0x102] sm:$0xff] }
 0x381   : > { %v3283_v63 = vpop.permute.xlu0 %3282  ;;  %3300 = vrot.lane.b32.xlu1 %v12368_v7, %s14353_s15 }
 0x382   : > { %3373 = vst.msk [vmem:[#allocation5 + $0x90] sm:$0xf] %vm3354_vm5, %v3283_v63  ;;  %5181 = vmatmul.mubr.bf16.gmra.mrb[108].mxu1 %v11565_v16  ;;  %v4288_v16 = vld [vmem:[#allocation2 + $0xfb] sm:$0xff]  ;;  %v12476_v63 = vpack.c.bf16 %v3999_v30, %v3999_v30 }
 0x383   : > { %v3285_v47 = vpop.permute.xlu1 %3284  ;;  %2722 = vrot.lane.b32.xlu0 %v12297_v39, %s14351_s10  ;;  %11604 = vmatprep.mubr.msk.bf16.mxu1 %vm250_vm1, %v14025_v55  ;;  %v4289_v39 = vld [vmem:[#allocation2 + $0x103] sm:$0xff] }
 0x384   : > { %3374 = vst.msk [vmem:[#allocation5 + $0x98] sm:$0xf] %vm3354_vm5, %v3285_v47 }
 0x385   : > { %v2707_v59 = vpop.permute.xlu0 %2706  ;;  %2724 = vrot.lane.b32.xlu1 %v12298_v15, %s14351_s10  ;;  %v12511_v15 = vpack.c.bf16 %v4288_v16, %v4288_v16 }
 0x386   : > { %2795 = vst.msk [vmem:[#allocation5 + $0xa0] sm:$0xf] %vm2774_vm2, %v2707_v59  ;;  %v3420_v59 = vld [vmem:[#allocation2 + $0xf9] sm:$0xff] }
 0x387   : > { %v2709_v56 = vpop.permute.xlu1 %2708  ;;  %3012 = vrot.lane.b32.xlu0 %v12367_v61, %s14352_s11  ;;  %v12300_v61 = vpack.c.bf16 %v2553_v51, %v2553_v51  ;;  %v12405_v3 = vpack.c.bf16 %v3420_v59, %v3420_v59  ;;  %v4290_v51 = vld [vmem:[#allocation2 + $0x10b] sm:$0xff] }
 0x388   : > { %2796 = vst.msk [vmem:[#allocation5 + $0xa8] sm:$0xf] %vm2774_vm2, %v2709_v56  ;;  %v12512_v56 = vpack.c.bf16 %v4289_v39, %v4289_v39 }
 0x389   : > { %v2997_v1 = vpop.permute.xlu0 %2996  ;;  %3014 = vrot.lane.b32.xlu1 %v12368_v7, %s14352_s11 }
 0x38a   : > { %3085 = vst.msk [vmem:[#allocation5 + $0xa0] sm:$0xf] %vm3064_vm4, %v2997_v1 }
 0x38b   : > { %v2999_v4 = vpop.permute.xlu1 %2998  ;;  %4164 = vrot.lane.b32.xlu0 %v12473_v21, %s14357_s16 }
 0x38c   : > { %3086 = vst.msk [vmem:[#allocation5 + $0xa8] sm:$0xf] %vm3064_vm4, %v2999_v4 }
 0x38d   : > { %v4149_v9 = vpop.permute.xlu0 %4148  ;;  %4166 = vrot.lane.b32.xlu1 %v12474_v60, %s14357_s16 }
 0x38e   : > { %4241 = vst.msk [vmem:[#allocation5 + $0x80] sm:$0xf] %vm4224_vm8, %v4149_v9 }
 0x38f   : > { %v4151_v13 = vpop.permute.xlu1 %4150  ;;  %4454 = vrot.lane.b32.xlu0 %v12509_v10, %s14358_s17  ;;  %v5126_v19 = vpop.f32.mrb[80].mxu1  ;;  %v12406_v10 = vpack.c.bf16 %v3421_v54, %v3421_v54 }
 0x390   : > { %4242 = vst.msk [vmem:[#allocation5 + $0x88] sm:$0xf] %vm4224_vm8, %v4151_v13  ;;  %v5275_v23 = vmul.f32 %v15558_v18, %v5126_v19  ;;  %v5128_v2 = vpop.f32.mrb[81].mxu1  ;;  %v3132_v19 = vld [vmem:[#allocation2 + $0x108] sm:$0xff] }
 0x391   : > { %v4439_v8 = vpop.permute.xlu0 %4438  ;;  %4456 = vrot.lane.b32.xlu1 %v12510_v14, %s14358_s17  ;;  %v5129_v26 = vpop.f32.mrb[82].mxu1 }
 0x392   : > { %4531 = vst.msk [vmem:[#allocation5 + $0x80] sm:$0xf] %vm4514_vm9, %v4439_v8  ;;  %v5315_v29 = vadd.f32 %v15565_v41, %v5275_v23  ;;  %v5276_v31 = vmul.f32 %v15558_v18, %v5129_v26  ;;  %v5131_v28 = vpop.f32.mrb[83].mxu1 }
 0x393   : > { %v4441_v24 = vpop.permute.xlu1 %4440  ;;  %3588 = vrot.lane.b32.xlu0 %v12403_v20, %s14355_s13  ;;  %v3133_v20 = vld [vmem:[#allocation2 + $0x110] sm:$0xff]  ;;  %v2554_v28 = vld [vmem:[#allocation2 + $0x107] sm:$0xff] }
 0x394   : > { %4532 = vst.msk [vmem:[#allocation5 + $0x88] sm:$0xf] %vm4514_vm9, %v4441_v24  ;;  %v5316_v33 = vadd.f32 %v15565_v41, %v5276_v31  ;;  %v5351_v48 = vmax.f32 %v5315_v29, 0.0  ;;  %v12372_v29 = vpack.c.bf16 %v3133_v20, %v3133_v20 }
 0x395   : > { %v3573_v34 = vpop.permute.xlu0 %3572  ;;  %3590 = vrot.lane.b32.xlu1 %v12404_v37, %s14355_s13  ;;  %v12371_v37 = vpack.c.bf16 %v3132_v19, %v3132_v19  ;;  %v2556_v19 = vld [vmem:[#allocation2 + $0x117] sm:$0xff] }
 0x396   : > { %3663 = vst.msk [vmem:[#allocation5 + $0x90] sm:$0xf] %vm3644_vm6, %v3573_v34  ;;  %v5352_v40 = vmax.f32 %v5316_v33, 0.0 }
 0x397   : > { %v3575_v38 = vpop.permute.xlu1 %3574  ;;  %3878 = vrot.lane.b32.xlu0 %v12473_v21, %s14356_s14 }
 0x398   : > { %3664 = vst.msk [vmem:[#allocation5 + $0x98] sm:$0xf] %vm3644_vm6, %v3575_v38  ;;  %v15579_v5 = vpack.c.bf16 %v5352_v40, %v5351_v48  ;;  %v2555_v48 = vld [vmem:[#allocation2 + $0x10f] sm:$0xff] }
 0x399   : > { %v3863_v42 = vpop.permute.xlu0 %3862  ;;  %3880 = vrot.lane.b32.xlu1 %v12474_v60, %s14356_s14  ;;  %v4784_v11 = vld [vmem:[#allocation5 + $0x80] sm:$0xff] }
 0x39a   : > { %3953 = vst.msk [vmem:[#allocation5 + $0x90] sm:$0xf] %vm3934_vm7, %v3863_v42  ;;  %v12301_v42 = vpack.c.bf16 %v2554_v28, %v2554_v28  ;;  %v12303_v28 = vpack.c.bf16 %v2556_v19, %v2556_v19 }
 0x39b   : > { %v3865_v6 = vpop.permute.xlu1 %3864  ;;  %3302 = vrot.lane.b32.xlu0 %v12369_v22, %s14353_s15  ;;  %v4785_v45 = vld [vmem:[#allocation5 + $0x88] sm:$0xff] }
 0x39c   : > { %3954 = vst.msk [vmem:[#allocation5 + $0x98] sm:$0xf] %vm3934_vm7, %v3865_v6  ;;  %v11567_v50 = vcombine.low %v4784_v11, %v4785_v45  ;;  %v4000_v6 = vld [vmem:[#allocation2 + $0x10a] sm:$0xff]  ;;  %v4001_v45 = vld [vmem:[#allocation2 + $0x112] sm:$0xff] }
 0x39d   : > { %v3287_v27 = vpop.permute.xlu0 %3286  ;;  %3304 = vrot.lane.b32.xlu1 %v12370_v62, %s14353_s15 }
 0x39e   : > { %3375 = vst.msk [vmem:[#allocation5 + $0xa0] sm:$0xf] %vm3354_vm5, %v3287_v27  ;;  %5189 = vmatmul.mubr.bf16.gmra.mrb[112].mxu1 %v11567_v50  ;;  %v12477_v50 = vpack.c.bf16 %v4000_v6, %v4000_v6 }
 0x39f   : > { %v3289_v49 = vpop.permute.xlu1 %3288  ;;  %2726 = vrot.lane.b32.xlu0 %v12299_v57, %s14351_s10  ;;  %11605 = vmatprep.mubr.msk.bf16.mxu1 %vm250_vm1, %v14027_v25  ;;  %v12478_v57 = vpack.c.bf16 %v4001_v45, %v4001_v45  ;;  %v4003_v25 = vld [vmem:[#allocation2 + $0x122] sm:$0xff] }
 0x3a0   : > { %3376 = vst.msk [vmem:[#allocation5 + $0xa8] sm:$0xf] %vm3354_vm5, %v3289_v49  ;;  %v4291_v49 = vld [vmem:[#allocation2 + $0x113] sm:$0xff] }
 0x3a1   : > { %v2711_v7 = vpop.permute.xlu0 %2710  ;;  %2728 = vrot.lane.b32.xlu1 %v12300_v61, %s14351_s10  ;;  %v12514_v30 = vpack.c.bf16 %v4291_v49, %v4291_v49 }
 0x3a2   : > { %2797 = vst.msk [vmem:[#allocation5 + $0xb0] sm:$0xf] %vm2774_vm2, %v2711_v7  ;;  %v12513_v7 = vpack.c.bf16 %v4290_v51, %v4290_v51  ;;  %v3424_v51 = vld [vmem:[#allocation2 + $0x119] sm:$0xff] }
 0x3a3   : > { %v2713_v52 = vpop.permute.xlu1 %2712  ;;  %3016 = vrot.lane.b32.xlu0 %v12369_v22, %s14352_s11 }
 0x3a4   : > { %2798 = vst.msk [vmem:[#allocation5 + $0xb8] sm:$0xf] %vm2774_vm2, %v2713_v52 }
 0x3a5   : > { %v3001_v58 = vpop.permute.xlu0 %3000  ;;  %3018 = vrot.lane.b32.xlu1 %v12370_v62, %s14352_s11  ;;  %v12302_v62 = vpack.c.bf16 %v2555_v48, %v2555_v48 }
 0x3a6   : > { %3087 = vst.msk [vmem:[#allocation5 + $0xb0] sm:$0xf] %vm3064_vm4, %v3001_v58  ;;  %v3423_v58 = vld [vmem:[#allocation2 + $0x111] sm:$0xff] }
 0x3a7   : > { %v3003_v0 = vpop.permute.xlu1 %3002  ;;  %4168 = vrot.lane.b32.xlu0 %v12475_v46, %s14357_s16 }
 0x3a8   : > { %3088 = vst.msk [vmem:[#allocation5 + $0xb8] sm:$0xf] %vm3064_vm4, %v3003_v0  ;;  %v12407_v0 = vpack.c.bf16 %v3422_v44, %v3422_v44  ;;  %v12409_v44 = vpack.c.bf16 %v3424_v51, %v3424_v51 }
 0x3a9   : > { %v4153_v47 = vpop.permute.xlu0 %4152  ;;  %4170 = vrot.lane.b32.xlu1 %v12476_v63, %s14357_s16 }
 0x3aa   : > { %4243 = vst.msk [vmem:[#allocation5 + $0x90] sm:$0xf] %vm4224_vm8, %v4153_v47  ;;  %v4587_v47 = vld [vmem:[#allocation2 + $0x144] sm:$0x3f] }
 0x3ab   : > { %v4155_v32 = vpop.permute.xlu1 %4154  ;;  %4458 = vrot.lane.b32.xlu0 %v12511_v15, %s14358_s17 }
 0x3ac   : > { %4244 = vst.msk [vmem:[#allocation5 + $0x98] sm:$0xf] %vm4224_vm8, %v4155_v32  ;;  %v12408_v32 = vpack.c.bf16 %v3423_v58, %v3423_v58 }
 0x3ad   : > { %v4443_v1 = vpop.permute.xlu0 %4442  ;;  %4460 = vrot.lane.b32.xlu1 %v12512_v56, %s14358_s17  ;;  %v5134_v21 = vpop.f32.mrb[84].mxu1  ;;  %v12556_v56 = vpack.c.bf16 %v4587_v47, %v4587_v47  ;;  %v3425_v47 = vld [vmem:[#allocation2 + $0x121] sm:$0xff] }
 0x3ae   : > { %4533 = vst.msk [vmem:[#allocation5 + $0x90] sm:$0xf] %vm4514_vm9, %v4443_v1  ;;  %v5277_v4 = vmul.f32 %v15558_v18, %v5134_v21  ;;  %v5136_v60 = vpop.f32.mrb[85].mxu1 }
 0x3af   : > { %v4445_v12 = vpop.permute.xlu1 %4444  ;;  %3592 = vrot.lane.b32.xlu0 %v12405_v3, %s14355_s13  ;;  %v5137_v9 = vpop.f32.mrb[86].mxu1  ;;  %4767 = vst.msk [vmem:[#allocation5 + $0x11c] sm:$0x7] %vm2520_vm10, %v12556_v56  ;;  %v3134_v60 = vld [vmem:[#allocation2 + $0x118] sm:$0xff]  ;;  %vm5992_vm10 = vcmask 1044224  }
 0x3b0   : > { %v5317_v17 = vadd.f32 %v15565_v41, %v5277_v4  ;;  %4534 = vst.msk [vmem:[#allocation5 + $0x98] sm:$0xf] %vm4514_vm9, %v4445_v12  ;;  %v5278_v13 = vmul.f32 %v15558_v18, %v5137_v9  ;;  %v5139_v14 = vpop.f32.mrb[87].mxu1  ;;  %v3135_v12 = vld [vmem:[#allocation2 + $0x120] sm:$0xff] }
 0x3b1   : > { %v3577_v53 = vpop.permute.xlu0 %3576  ;;  %3594 = vrot.lane.b32.xlu1 %v12406_v10, %s14355_s13  ;;  %v12373_v14 = vpack.c.bf16 %v3134_v60, %v3134_v60 }
 0x3b2   : > { %v5318_v8 = vadd.f32 %v15565_v41, %v5278_v13  ;;  %3665 = vst.msk [vmem:[#allocation5 + $0xa0] sm:$0xf] %vm3644_vm6, %v3577_v53  ;;  %v5353_v2 = vmax.f32 %v5317_v17, 0.0  ;;  %v12374_v53 = vpack.c.bf16 %v3135_v12, %v3135_v12  ;;  %v3136_v12 = vld [vmem:[#allocation2 + $0x128] sm:$0xff] }
 0x3b3   : > { %v3579_v23 = vpop.permute.xlu1 %3578  ;;  %3882 = vrot.lane.b32.xlu0 %v12475_v46, %s14356_s14 }
 0x3b4   : > { %v5354_v24 = vmax.f32 %v5318_v8, 0.0  ;;  %3666 = vst.msk [vmem:[#allocation5 + $0xa8] sm:$0xf] %vm3644_vm6, %v3579_v23 }
 0x3b5   : > { %v3867_v26 = vpop.permute.xlu0 %3866  ;;  %3884 = vrot.lane.b32.xlu1 %v12476_v63, %s14356_s14  ;;  %v4786_v33 = vld [vmem:[#allocation5 + $0x90] sm:$0xff] }
 0x3b6   : > { %v15614_v31 = vpack.c.bf16 %v5354_v24, %v5353_v2  ;;  %3955 = vst.msk [vmem:[#allocation5 + $0xa0] sm:$0xf] %vm3934_vm7, %v3867_v26  ;;  %v14029_v24 = vld [vmem:[#allocation5 + $0xa4] ss:$8 sps:$4 sm:$0xff]  }
 0x3b7   : > { %v3869_v34 = vpop.permute.xlu1 %3868  ;;  %3306 = vrot.lane.b32.xlu0 %v12371_v37, %s14353_s15  ;;  %v4787_v35 = vld [vmem:[#allocation5 + $0x98] sm:$0xff] }
 0x3b8   : > { %3956 = vst.msk [vmem:[#allocation5 + $0xa8] sm:$0xf] %vm3934_vm7, %v3869_v34  ;;  %v11569_v38 = vcombine.low %v4786_v33, %v4787_v35  ;;  %v4002_v34 = vld [vmem:[#allocation2 + $0x11a] sm:$0xff] }
 0x3b9   : > { %v3291_v40 = vpop.permute.xlu0 %3290  ;;  %3308 = vrot.lane.b32.xlu1 %v12372_v29, %s14353_s15  ;;  %v12479_v48 = vpack.c.bf16 %v4002_v34, %v4002_v34  ;;  %v3137_v34 = vld [vmem:[#allocation2 + $0x130] sm:$0x3f] }
 0x3ba   : > { %3377 = vst.msk [vmem:[#allocation5 + $0xb0] sm:$0xf] %vm3354_vm5, %v3291_v40  ;;  %5197 = vmatmul.mubr.bf16.gmra.mrb[116].mxu1 %v11569_v38  ;;  %v4292_v40 = vld [vmem:[#allocation2 + $0x11b] sm:$0xff] }
 0x3bb   : > { %v3293_v22 = vpop.permute.xlu1 %3292  ;;  %2730 = vrot.lane.b32.xlu0 %v12301_v42, %s14351_s10  ;;  %11606 = vmatprep.mubr.msk.bf16.mxu1 %vm250_vm1, %v14029_v24  ;;  %v12515_v6 = vpack.c.bf16 %v4292_v40, %v4292_v40  ;;  %v3427_v40 = vld [vmem:[#allocation2 + $0x131] sm:$0x3f] }
 0x3bc   : > { %3378 = vst.msk [vmem:[#allocation5 + $0xb8] sm:$0xf] %vm3354_vm5, %v3293_v22  ;;  %v12480_v22 = vpack.c.bf16 %v4003_v25, %v4003_v25  ;;  %v3426_v25 = vld [vmem:[#allocation2 + $0x129] sm:$0xff] }
 0x3bd   : > { %v2715_v43 = vpop.permute.xlu0 %2714  ;;  %2732 = vrot.lane.b32.xlu1 %v12302_v62, %s14351_s10  ;;  %v4293_v62 = vld [vmem:[#allocation2 + $0x123] sm:$0xff] }
 0x3be   : > { %2799 = vst.msk [vmem:[#allocation5 + $0xc0] sm:$0xf] %vm2774_vm2, %v2715_v43  ;;  %v12516_v45 = vpack.c.bf16 %v4293_v62, %v4293_v62  ;;  %v4586_v62 = vld [vmem:[#allocation2 + $0x13c] sm:$0xff] }
 0x3bf   : > { %v2717_v11 = vpop.permute.xlu1 %2716  ;;  %3020 = vrot.lane.b32.xlu0 %v12371_v37, %s14352_s11  ;;  %v2557_v37 = vld [vmem:[#allocation2 + $0x11f] sm:$0x3f] }
 0x3c0   : > { %2800 = vst.msk [vmem:[#allocation5 + $0xc8] sm:$0xf] %vm2774_vm2, %v2717_v11  ;;  %v12304_v35 = vpack.c.bf16 %v2557_v37, %v2557_v37  ;;  %v4294_v37 = vld [vmem:[#allocation2 + $0x12b] sm:$0xff] }
 0x3c1   : > { %v3005_v55 = vpop.permute.xlu0 %3004  ;;  %3022 = vrot.lane.b32.xlu1 %v12372_v29, %s14352_s11 }
 0x3c2   : > { %3089 = vst.msk [vmem:[#allocation5 + $0xc0] sm:$0xf] %vm3064_vm4, %v3005_v55  ;;  %v2847_v55 = vld [vmem:[#allocation2 + $0x120] sm:$0x3f] }
 0x3c3   : > { %v3007_v27 = vpop.permute.xlu1 %3006  ;;  %4172 = vrot.lane.b32.xlu0 %v12477_v50, %s14357_s16  ;;  %v12340_v49 = vpack.c.bf16 %v2847_v55, %v2847_v55  ;;  %v4296_v55 = vld [vmem:[#allocation2 + $0x13b] sm:$0xff] }
 0x3c4   : > { %3090 = vst.msk [vmem:[#allocation5 + $0xc8] sm:$0xf] %vm3064_vm4, %v3007_v27  ;;  %v4007_v27 = vld [vmem:[#allocation2 + $0x142] sm:$0x3f] }
 0x3c5   : > { %v4157_v61 = vpop.permute.xlu0 %4156  ;;  %4174 = vrot.lane.b32.xlu1 %v12478_v57, %s14357_s16 }
 0x3c6   : > { %4245 = vst.msk [vmem:[#allocation5 + $0xa0] sm:$0xf] %vm4224_vm8, %v4157_v61 }
 0x3c7   : > { %v4159_v52 = vpop.permute.xlu1 %4158  ;;  %4462 = vrot.lane.b32.xlu0 %v12513_v7, %s14358_s17 }
 0x3c8   : > { %4246 = vst.msk [vmem:[#allocation5 + $0xa8] sm:$0xf] %vm4224_vm8, %v4159_v52  ;;  %v12484_v52 = vpack.c.bf16 %v4007_v27, %v4007_v27 }
 0x3c9   : > { %v4447_v46 = vpop.permute.xlu0 %4446  ;;  %4464 = vrot.lane.b32.xlu1 %v12514_v30, %s14358_s17  ;;  %v5142_v16 = vpop.f32.mrb[88].mxu1 }
 0x3ca   : > { %4535 = vst.msk [vmem:[#allocation5 + $0xa0] sm:$0xf] %vm4514_vm9, %v4447_v46  ;;  %v5279_v63 = vmul.f32 %v15558_v18, %v5142_v16  ;;  %v5144_v39 = vpop.f32.mrb[89].mxu1 }
 0x3cb   : > { %v4449_v15 = vpop.permute.xlu1 %4448  ;;  %3596 = vrot.lane.b32.xlu0 %v12407_v0, %s14355_s13  ;;  %v5145_v59 = vpop.f32.mrb[90].mxu1 }
 0x3cc   : > { %v5319_v54 = vadd.f32 %v15565_v41, %v5279_v63  ;;  %4536 = vst.msk [vmem:[#allocation5 + $0xa8] sm:$0xf] %vm4514_vm9, %v4449_v15  ;;  %v5280_v1 = vmul.f32 %v15558_v18, %v5145_v59  ;;  %v5147_v21 = vpop.f32.mrb[91].mxu1  ;;  %v4006_v15 = vld [vmem:[#allocation2 + $0x13a] sm:$0xff] }
 0x3cd   : > { %v3581_v3 = vpop.permute.xlu0 %3580  ;;  %3598 = vrot.lane.b32.xlu1 %v12408_v32, %s14355_s13 }
 0x3ce   : > { %v5320_v4 = vadd.f32 %v15565_v41, %v5280_v1  ;;  %3667 = vst.msk [vmem:[#allocation5 + $0xb0] sm:$0xf] %vm3644_vm6, %v3581_v3  ;;  %v5355_v10 = vmax.f32 %v5319_v54, 0.0  ;;  %v12410_v54 = vpack.c.bf16 %v3425_v47, %v3425_v47  ;;  %v12483_v1 = vpack.c.bf16 %v4006_v15, %v4006_v15 }
 0x3cf   : > { %v3583_v9 = vpop.permute.xlu1 %3582  ;;  %3886 = vrot.lane.b32.xlu0 %v12477_v50, %s14356_s14 }
 0x3d0   : > { %v5356_v17 = vmax.f32 %v5320_v4, 0.0  ;;  %3668 = vst.msk [vmem:[#allocation5 + $0xb8] sm:$0xf] %vm3644_vm6, %v3583_v9  ;;  %v4005_v9 = vld [vmem:[#allocation2 + $0x132] sm:$0xff] }
 0x3d1   : > { %v3871_v13 = vpop.permute.xlu0 %3870  ;;  %3888 = vrot.lane.b32.xlu1 %v12478_v57, %s14356_s14  ;;  %v4788_v23 = vld [vmem:[#allocation5 + $0xa0] sm:$0xff]  ;;  %v12482_v19 = vpack.c.bf16 %v4005_v9, %v4005_v9 }
 0x3d2   : > { %v15650_v8 = vpack.c.bf16 %v5356_v17, %v5355_v10  ;;  %3957 = vst.msk [vmem:[#allocation5 + $0xb0] sm:$0xf] %vm3934_vm7, %v3871_v13  ;;  %v14031_v17 = vld [vmem:[#allocation5 + $0xb4] ss:$8 sps:$4 sm:$0xff]  }
 0x3d3   : > { %v3873_v20 = vpop.permute.xlu1 %3872  ;;  %3310 = vrot.lane.b32.xlu0 %v12373_v14, %s14353_s15  ;;  %v4789_v2 = vld [vmem:[#allocation5 + $0xa8] sm:$0xff] }
 0x3d4   : > { %3958 = vst.msk [vmem:[#allocation5 + $0xb8] sm:$0xf] %vm3934_vm7, %v3873_v20  ;;  %v11571_v26 = vcombine.low %v4788_v23, %v4789_v2  ;;  %v4004_v20 = vld [vmem:[#allocation2 + $0x12a] sm:$0xff]  ;;  %v4295_v2 = vld [vmem:[#allocation2 + $0x133] sm:$0xff] }
 0x3d5   : > { %v3295_v29 = vpop.permute.xlu0 %3294  ;;  %3312 = vrot.lane.b32.xlu1 %v12374_v53, %s14353_s15  ;;  %v12375_v53 = vpack.c.bf16 %v3136_v12, %v3136_v12 }
 0x3d6   : > { %3379 = vst.msk [vmem:[#allocation5 + $0xc0] sm:$0xf] %vm3354_vm5, %v3295_v29  ;;  %5205 = vmatmul.mubr.bf16.gmra.mrb[120].mxu1 %v11571_v26  ;;  %v12481_v26 = vpack.c.bf16 %v4004_v20, %v4004_v20 }
 0x3d7   : > { %v3297_v33 = vpop.permute.xlu1 %3296  ;;  %2734 = vrot.lane.b32.xlu0 %v12303_v28, %s14351_s10  ;;  %11607 = vmatprep.mubr.msk.bf16.mxu1 %vm250_vm1, %v14031_v17  ;;  %v12518_v28 = vpack.c.bf16 %v4295_v2, %v4295_v2 }
 0x3d8   : > { %3380 = vst.msk [vmem:[#allocation5 + $0xc8] sm:$0xf] %vm3354_vm5, %v3297_v33 }
 0x3d9   : > { %v2719_v38 = vpop.permute.xlu0 %2718  ;;  %2736 = vrot.lane.b32.xlu1 %v12304_v35, %s14351_s10  ;;  %v12517_v35 = vpack.c.bf16 %v4294_v37, %v4294_v37  ;;  %s12229_s10 = sshll.u32 %s14418_s25, 4 }
 0x3da   : > { %2801 = vst.msk [vmem:[#allocation5 + $0xd0] sm:$0xf] %vm2774_vm2, %v2719_v38  ;;  %s17364_s29 = scalar_lea.hbm %s17412_s6, %s12229_s10 }
 0x3db   : > { %v2721_v42 = vpop.permute.xlu1 %2720  ;;  %4176 = vrot.lane.b32.xlu0 %v12479_v48, %s14357_s16 }
 0x3dc   : > { %2802 = vst.msk [vmem:[#allocation5 + $0xd8] sm:$0xf] %vm2774_vm2, %v2721_v42 }
 0x3dd   : > { %v3009_v43 = vpop.permute.xlu0 %3008  ;;  %4178 = vrot.lane.b32.xlu1 %v12480_v22, %s14357_s16 }
 0x3de   : > { %3091 = vst.msk [vmem:[#allocation5 + $0xd0] sm:$0xf] %vm3064_vm4, %v3009_v43  ;;  %v12555_v43 = vpack.c.bf16 %v4586_v62, %v4586_v62 }
 0x3df   : > { %v3011_v11 = vpop.permute.xlu1 %3010  ;;  %4466 = vrot.lane.b32.xlu0 %v12515_v6, %s14358_s17 }
 0x3e0   : > { %3092 = vst.msk [vmem:[#allocation5 + $0xd8] sm:$0xf] %vm3064_vm4, %v3011_v11  ;;  %v12412_v11 = vpack.c.bf16 %v3427_v40, %v3427_v40  ;;  %v14037_v40 = vld [vmem:[#allocation5 + $0xd4] ss:$8 sps:$4 sm:$0xff]  }
 0x3e1   : > { %v4161_v50 = vpop.permute.xlu0 %4160  ;;  %4468 = vrot.lane.b32.xlu1 %v12516_v45, %s14358_s17  ;;  %v3717_v45 = vld [vmem:[#allocation2 + $0x132] sm:$0x3f]  ;;  %4766 = vst.msk [vmem:[#allocation5 + $0x114] sm:$0xf] %vm2484_vm3, %v12555_v43  ;;  %vm4550_vm3 = vcmask 1043328  }
 0x3e2   : > { %4247 = vst.msk [vmem:[#allocation5 + $0xb0] sm:$0xf] %vm4224_vm8, %v4161_v50 }
 0x3e3   : > { %v4163_v57 = vpop.permute.xlu1 %4162  ;;  %3024 = vrot.lane.b32.xlu0 %v12373_v14, %s14352_s11 }
 0x3e4   : > { %4248 = vst.msk [vmem:[#allocation5 + $0xb8] sm:$0xf] %vm4224_vm8, %v4163_v57 }
 0x3e5   : > { %v4451_v61 = vpop.permute.xlu0 %4450  ;;  %3026 = vrot.lane.b32.xlu1 %v12340_v49, %s14352_s11  ;;  %v5150_v7 = vpop.f32.mrb[92].mxu1  ;;  %v4297_v49 = vld [vmem:[#allocation2 + $0x143] sm:$0x3f] }
 0x3e6   : > { %4537 = vst.msk [vmem:[#allocation5 + $0xb0] sm:$0xf] %vm4514_vm9, %v4451_v61  ;;  %v5281_v30 = vmul.f32 %v15558_v18, %v5150_v7  ;;  %v5152_v58 = vpop.f32.mrb[93].mxu1 }
 0x3e7   : > { %v4453_v46 = vpop.permute.xlu1 %4452  ;;  %3600 = vrot.lane.b32.xlu0 %v12409_v44, %s14355_s13  ;;  %v5153_v16 = vpop.f32.mrb[94].mxu1  ;;  %v12448_v44 = vpack.c.bf16 %v3717_v45, %v3717_v45 }
 0x3e8   : > { %v5321_v0 = vadd.f32 %v15565_v41, %v5281_v30  ;;  %4538 = vst.msk [vmem:[#allocation5 + $0xb8] sm:$0xf] %vm4514_vm9, %v4453_v46  ;;  %v5282_v63 = vmul.f32 %v15558_v18, %v5153_v16  ;;  %v5155_v39 = vpop.f32.mrb[95].mxu1 }
 0x3e9   : > { %v3585_v59 = vpop.permute.xlu0 %3584  ;;  %4186 = vrot.lane.b32.xlu1 %v12484_v52, %s14357_s16  ;;  %v12519_v52 = vpack.c.bf16 %v4296_v55, %v4296_v55 }
 0x3ea   : > { %v5322_v32 = vadd.f32 %v15565_v41, %v5282_v63  ;;  %3669 = vst.msk [vmem:[#allocation5 + $0xc0] sm:$0xf] %vm3644_vm6, %v3585_v59  ;;  %v5357_v21 = vmax.f32 %v5321_v0, 0.0  ;;  %v12520_v0 = vpack.c.bf16 %v4297_v49, %v4297_v49 }
 0x3eb   : > { %v3587_v56 = vpop.permute.xlu1 %3586  ;;  %3890 = vrot.lane.b32.xlu0 %v12479_v48, %s14356_s14  ;;  %v12376_v48 = vpack.c.bf16 %v3137_v34, %v3137_v34 }
 0x3ec   : > { %v5358_v3 = vmax.f32 %v5322_v32, 0.0  ;;  %3670 = vst.msk [vmem:[#allocation5 + $0xc8] sm:$0xf] %vm3644_vm6, %v3587_v56 }
 0x3ed   : > { %v3875_v4 = vpop.permute.xlu0 %3874  ;;  %3602 = vrot.lane.b32.xlu1 %v12410_v54, %s14355_s13  ;;  %v14034_v54 = vld [vmem:[#allocation5 + $0xc4] ss:$8 sps:$4 sm:$0xff]  }
 0x3ee   : > { %v15685_v60 = vpack.c.bf16 %v5358_v3, %v5357_v21  ;;  %3959 = vst.msk [vmem:[#allocation5 + $0xc0] sm:$0xf] %vm3934_vm7, %v3875_v4 }
 0x3ef   : > { %v3877_v10 = vpop.permute.xlu1 %3876  ;;  %4184 = vrot.lane.b32.xlu0 %v12483_v1, %s14357_s16  ;;  %v14033_v13 = vld [vmem:[#allocation5 + $0xb0] ss:$8 sps:$4 sm:$0xff]  }
 0x3f0   : > { %3960 = vst.msk [vmem:[#allocation5 + $0xc8] sm:$0xf] %vm3934_vm7, %v3877_v10  ;;  %5213 = vmatmul.mubr.bf16.gmra.mrb[124].mxu1 %v14033_v13 }
 0x3f1   : > { %v3299_v14 = vpop.permute.xlu0 %3298  ;;  %3892 = vrot.lane.b32.xlu1 %v12480_v22, %s14356_s14  ;;  %v12411_v22 = vpack.c.bf16 %v3426_v25, %v3426_v25  ;;  %11608 = vmatprep.mubr.msk.bf16.mxu1 %vm250_vm1, %v14034_v54  ;;  %v14040_v54 = vld [vmem:[#allocation5 + $0xe4] ss:$8 sps:$4 sm:$0xff]  }
 0x3f2   : > { %3381 = vst.msk [vmem:[#allocation5 + $0xd0] sm:$0xf] %vm3354_vm5, %v3299_v14 }
 0x3f3   : > { %v3301_v23 = vpop.permute.xlu1 %3300  ;;  %3314 = vrot.lane.b32.xlu0 %v12375_v53, %s14353_s15 }
 0x3f4   : > { %3382 = vst.msk [vmem:[#allocation5 + $0xd8] sm:$0xf] %vm3354_vm5, %v3301_v23 }
 0x3f5   : > { %v2723_v24 = vpop.permute.xlu0 %2722  ;;  %4182 = vrot.lane.b32.xlu1 %v12482_v19, %s14357_s16 }
 0x3f6   : > { %2803 = vst.msk [vmem:[#allocation5 + $0xe0] sm:$0xf] %vm2774_vm2, %v2723_v24 }
 0x3f7   : > { %4180 = vrot.lane.b32.xlu0 %v12481_v26, %s14357_s16  ;;  %v2725_v29 = vpop.permute.xlu1 %2724 }
 0x3f8   : > { %2804 = vst.msk [vmem:[#allocation5 + $0xe8] sm:$0xf] %vm2774_vm2, %v2725_v29 }
 0x3f9   : > { %v3013_v33 = vpop.permute.xlu0 %3012  ;;  %4472 = vrot.lane.b32.xlu1 %v12518_v28, %s14358_s17 }
 0x3fa   : > { %3093 = vst.msk [vmem:[#allocation5 + $0xe0] sm:$0xf] %vm3064_vm4, %v3013_v33 }
 0x3fb   : > { %4470 = vrot.lane.b32.xlu0 %v12517_v35, %s14358_s17  ;;  %v3015_v38 = vpop.permute.xlu1 %3014 }
 0x3fc   : > { %3094 = vst.msk [vmem:[#allocation5 + $0xe8] sm:$0xf] %vm3064_vm4, %v3015_v38 }
 0x3fd   : > { %v4165_v42 = vpop.permute.xlu0 %4164  ;;  %3316 = vrot.lane.b32.xlu1 %v12376_v48, %s14353_s15 }
 0x3fe   : > { %4249 = vst.msk [vmem:[#allocation5 + $0xc0] sm:$0xf] %vm4224_vm8, %v4165_v42 }
 0x3ff   : > { %3604 = vrot.lane.b32.xlu0 %v12411_v22, %s14355_s13  ;;  %v4167_v6 = vpop.permute.xlu1 %4166 }
 0x400   : > { %4250 = vst.msk [vmem:[#allocation5 + $0xc8] sm:$0xf] %vm4224_vm8, %v4167_v6 }
 0x401   : > { %v4455_v50 = vpop.permute.xlu0 %4454  ;;  %3606 = vrot.lane.b32.xlu1 %v12412_v11, %s14355_s13  ;;  %v5158_v51 = vpop.f32.mrb[96].mxu1 }
 0x402   : > { %4539 = vst.msk [vmem:[#allocation5 + $0xc0] sm:$0xf] %vm4514_vm9, %v4455_v50  ;;  %v5283_v27 = vmul.f32 %v15558_v18, %v5158_v51  ;;  %v5160_v57 = vpop.f32.mrb[97].mxu1 }
 0x403   : > { %3894 = vrot.lane.b32.xlu0 %v12481_v26, %s14356_s14  ;;  %v4457_v61 = vpop.permute.xlu1 %4456  ;;  %v5161_v7 = vpop.f32.mrb[98].mxu1 }
 0x404   : > { %v5323_v30 = vadd.f32 %v15565_v41, %v5283_v27  ;;  %4540 = vst.msk [vmem:[#allocation5 + $0xc8] sm:$0xf] %vm4514_vm9, %v4457_v61  ;;  %v5284_v58 = vmul.f32 %v15558_v18, %v5161_v7  ;;  %v5163_v46 = vpop.f32.mrb[99].mxu1 }
 0x405   : > { %v3589_v16 = vpop.permute.xlu0 %3588  ;;  %3896 = vrot.lane.b32.xlu1 %v12448_v44, %s14356_s14 }
 0x406   : > { %v5324_v63 = vadd.f32 %v15565_v41, %v5284_v58  ;;  %3671 = vst.msk [vmem:[#allocation5 + $0xd0] sm:$0xf] %vm3644_vm6, %v3589_v16  ;;  %v5359_v47 = vmax.f32 %v5323_v30, 0.0 }
 0x407   : > { %v3591_v39 = vpop.permute.xlu1 %3590  ;;  %4474 = vrot.lane.b32.xlu0 %v12519_v52, %s14358_s17 }
 0x408   : > { %v5360_v15 = vmax.f32 %v5324_v63, 0.0  ;;  %3672 = vst.msk [vmem:[#allocation5 + $0xd8] sm:$0xf] %vm3644_vm6, %v3591_v39 }
 0x409   : > { %v3879_v59 = vpop.permute.xlu0 %3878  ;;  %4476 = vrot.lane.b32.xlu1 %v12520_v0, %s14358_s17  ;;  %s14290_s17 = sshll.u32 %s14361_s12, 4  ;;  %s14291_s17 = int_to_ptr.vmem [resolvable:$false] %s14290_s17 }
 0x40a   : > { %v15721_v32 = vpack.c.bf16 %v5360_v15, %v5359_v47  ;;  %3961 = vst.msk [vmem:[#allocation5 + $0xd0] sm:$0xf] %vm3934_vm7, %v3879_v59  ;;  %s14292_s18 = scalar_lea.vmem %s14291_s17, 32 }
 0x40b   : > { %v3881_v56 = vpop.permute.xlu1 %3880  ;;  %v14036_v1 = vld [vmem:[#allocation5 + $0xc0] ss:$8 sps:$4 sm:$0xff]  }
 0x40c   : > { %3962 = vst.msk [vmem:[#allocation5 + $0xd8] sm:$0xf] %vm3934_vm7, %v3881_v56  ;;  %5221 = vmatmul.mubr.bf16.gmra.mrb[128].mxu1 %v14036_v1 }
 0x40d   : > { %v3303_v21 = vpop.permute.xlu0 %3302  ;;  %11609 = vmatprep.mubr.msk.bf16.mxu1 %vm250_vm1, %v14037_v40 }
 0x40e   : > { %3383 = vst.msk [vmem:[#allocation5 + $0xe0] sm:$0xf] %vm3354_vm5, %v3303_v21 }
 0x40f   : > { %v3305_v3 = vpop.permute.xlu1 %3304 }
 0x410   : > { %3384 = vst.msk [vmem:[#allocation5 + $0xe8] sm:$0xf] %vm3354_vm5, %v3305_v3 }
 0x411   : > { %v2727_v4 = vpop.permute.xlu0 %2726 }
 0x412   : > { %2805 = vst.msk [vmem:[#allocation5 + $0xf0] sm:$0xf] %vm2774_vm2, %v2727_v4 }
 0x413   : > { %v2729_v12 = vpop.permute.xlu1 %2728 }
 0x414   : > { %2806 = vst.msk [vmem:[#allocation5 + $0xf8] sm:$0xf] %vm2774_vm2, %v2729_v12 }
 0x415   : > { %v3017_v9 = vpop.permute.xlu0 %3016 }
 0x416   : > { %3095 = vst.msk [vmem:[#allocation5 + $0xf0] sm:$0xf] %vm3064_vm4, %v3017_v9 }
 0x417   : > { %v3019_v10 = vpop.permute.xlu1 %3018 }
 0x418   : > { %3096 = vst.msk [vmem:[#allocation5 + $0xf8] sm:$0xf] %vm3064_vm4, %v3019_v10 }
 0x419   : > { %v4169_v17 = vpop.permute.xlu0 %4168 }
 0x41a   : > { %4251 = vst.msk [vmem:[#allocation5 + $0xd0] sm:$0xf] %vm4224_vm8, %v4169_v17 }
 0x41b   : > { %v4171_v13 = vpop.permute.xlu1 %4170 }
 0x41c   : > { %4252 = vst.msk [vmem:[#allocation5 + $0xd8] sm:$0xf] %vm4224_vm8, %v4171_v13 }
 0x41d   : > { %v4459_v14 = vpop.permute.xlu0 %4458  ;;  %v5166_v53 = vpop.f32.mrb[100].mxu1 }
 0x41e   : > { %4541 = vst.msk [vmem:[#allocation5 + $0xd0] sm:$0xf] %vm4514_vm9, %v4459_v14  ;;  %v5285_v19 = vmul.f32 %v15558_v18, %v5166_v53  ;;  %v5168_v20 = vpop.f32.mrb[101].mxu1 }
 0x41f   : > { %v4461_v23 = vpop.permute.xlu1 %4460  ;;  %v5169_v2 = vpop.f32.mrb[102].mxu1 }
 0x420   : > { %v5325_v24 = vadd.f32 %v15565_v41, %v5285_v19  ;;  %4542 = vst.msk [vmem:[#allocation5 + $0xd8] sm:$0xf] %vm4514_vm9, %v4461_v23  ;;  %v5286_v26 = vmul.f32 %v15558_v18, %v5169_v2  ;;  %v5171_v37 = vpop.f32.mrb[103].mxu1 }
 0x421   : > { %v3593_v29 = vpop.permute.xlu0 %3592 }
 0x422   : > { %v5326_v28 = vadd.f32 %v15565_v41, %v5286_v26  ;;  %3673 = vst.msk [vmem:[#allocation5 + $0xe0] sm:$0xf] %vm3644_vm6, %v3593_v29  ;;  %v5361_v33 = vmax.f32 %v5325_v24, 0.0 }
 0x423   : > { %v3595_v34 = vpop.permute.xlu1 %3594 }
 0x424   : > { %v5362_v35 = vmax.f32 %v5326_v28, 0.0  ;;  %3674 = vst.msk [vmem:[#allocation5 + $0xe8] sm:$0xf] %vm3644_vm6, %v3595_v34 }
 0x425   : > { %v3883_v25 = vpop.permute.xlu0 %3882 }
 0x426   : > { %v15742_v38 = vpack.c.bf16 %v5362_v35, %v5361_v33  ;;  %3963 = vst.msk [vmem:[#allocation5 + $0xe0] sm:$0xf] %vm3934_vm7, %v3883_v25  ;;  %v14042_v25 = vld [vmem:[#allocation5 + $0xf4] ss:$8 sps:$4 sm:$0xff]  }
 0x427   : > { %v3885_v48 = vpop.permute.xlu1 %3884  ;;  %v14039_v42 = vld [vmem:[#allocation5 + $0xd0] ss:$8 sps:$4 sm:$0xff]  }
 0x428   : > { %3964 = vst.msk [vmem:[#allocation5 + $0xe8] sm:$0xf] %vm3934_vm7, %v3885_v48  ;;  %5229 = vmatmul.mubr.bf16.gmra.mrb[132].mxu1 %v14039_v42 }
 0x429   : > { %v3307_v22 = vpop.permute.xlu0 %3306  ;;  %11610 = vmatprep.mubr.msk.bf16.mxu1 %vm250_vm1, %v14040_v54 }
 0x42a   : > { %3385 = vst.msk [vmem:[#allocation5 + $0xf0] sm:$0xf] %vm3354_vm5, %v3307_v22 }
 0x42b   : > { %v3309_v62 = vpop.permute.xlu1 %3308 }
 0x42c   : > { %3386 = vst.msk [vmem:[#allocation5 + $0xf8] sm:$0xf] %vm3354_vm5, %v3309_v62 }
 0x42d   : > { %v2731_v43 = vpop.permute.xlu0 %2730 }
 0x42e   : > { %2807 = vst.msk [vmem:[#allocation5 + $0x100] sm:$0xf] %vm2774_vm2, %v2731_v43 }
 0x42f   : > { %v2733_v6 = vpop.permute.xlu1 %2732 }
 0x430   : > { %2808 = vst.msk [vmem:[#allocation5 + $0x108] sm:$0xf] %vm2774_vm2, %v2733_v6 }
 0x431   : > { %v3021_v11 = vpop.permute.xlu0 %3020 }
 0x432   : > { %3097 = vst.msk [vmem:[#allocation5 + $0x100] sm:$0xf] %vm3064_vm4, %v3021_v11 }
 0x433   : > { %v3023_v45 = vpop.permute.xlu1 %3022 }
 0x434   : > { %3098 = vst.msk [vmem:[#allocation5 + $0x108] sm:$0xf] %vm3064_vm4, %v3023_v45 }
 0x435   : > { %v4173_v55 = vpop.permute.xlu0 %4172 }
 0x436   : > { %4253 = vst.msk [vmem:[#allocation5 + $0xe0] sm:$0xf] %vm4224_vm8, %v4173_v55 }
 0x437   : > { %v4175_v50 = vpop.permute.xlu1 %4174 }
 0x438   : > { %4254 = vst.msk [vmem:[#allocation5 + $0xe8] sm:$0xf] %vm4224_vm8, %v4175_v50 }
 0x439   : > { %v4463_v51 = vpop.permute.xlu0 %4462  ;;  %v5174_v27 = vpop.f32.mrb[104].mxu1 }
 0x43a   : > { %4543 = vst.msk [vmem:[#allocation5 + $0xe0] sm:$0xf] %vm4514_vm9, %v4463_v51  ;;  %v5287_v57 = vmul.f32 %v15558_v18, %v5174_v27  ;;  %v5176_v49 = vpop.f32.mrb[105].mxu1 }
 0x43b   : > { %v4465_v61 = vpop.permute.xlu1 %4464  ;;  %v5177_v7 = vpop.f32.mrb[106].mxu1  ;;  %v15796_v49 = vld [vmem:[%s17409_s3 + $0x2] ss:$0 sm:$0xff] }
 0x43c   : > { %v5327_v44 = vadd.f32 %v15565_v41, %v5287_v57  ;;  %4544 = vst.msk [vmem:[#allocation5 + $0xe8] sm:$0xf] %vm4514_vm9, %v4465_v61  ;;  %v5288_v52 = vmul.f32 %v15558_v18, %v5177_v7  ;;  %v5179_v30 = vpop.f32.mrb[107].mxu1 }
 0x43d   : > { %v3597_v58 = vpop.permute.xlu0 %3596  ;;  %v15802_v30 = vld [vmem:[%s17409_s3 + $0x3] ss:$0 sm:$0xff] }
 0x43e   : > { %v5328_v46 = vadd.f32 %v15565_v41, %v5288_v52  ;;  %3675 = vst.msk [vmem:[#allocation5 + $0xf0] sm:$0xf] %vm3644_vm6, %v3597_v58  ;;  %v5363_v0 = vmax.f32 %v5327_v44, 0.0 }
 0x43f   : > { %v3599_v16 = vpop.permute.xlu1 %3598 }
 0x440   : > { %v5364_v63 = vmax.f32 %v5328_v46, 0.0  ;;  %3676 = vst.msk [vmem:[#allocation5 + $0xf8] sm:$0xf] %vm3644_vm6, %v3599_v16 }
 0x441   : > { %v3887_v39 = vpop.permute.xlu0 %3886  ;;  %v4796_v59 = vld [vmem:[#allocation5 + $0xe0] sm:$0xff] }
 0x442   : > { %v15763_v47 = vpack.c.bf16 %v5364_v63, %v5363_v0  ;;  %3965 = vst.msk [vmem:[#allocation5 + $0xf0] sm:$0xf] %vm3934_vm7, %v3887_v39  ;;  %v14044_v63 = vld [vmem:[#allocation5 + $0x104] ss:$8 sps:$4 sm:$0xff]  }
 0x443   : > { %v3889_v15 = vpop.permute.xlu1 %3888  ;;  %v4797_v56 = vld [vmem:[#allocation5 + $0xe8] sm:$0xff] }
 0x444   : > { %3966 = vst.msk [vmem:[#allocation5 + $0xf8] sm:$0xf] %vm3934_vm7, %v3889_v15  ;;  %v11579_v1 = vcombine.low %v4796_v59, %v4797_v56 }
 0x445   : > { %v3311_v21 = vpop.permute.xlu0 %3310 }
 0x446   : > { %3387 = vst.msk [vmem:[#allocation5 + $0x100] sm:$0xf] %vm3354_vm5, %v3311_v21  ;;  %5237 = vmatmul.mubr.bf16.gmra.mrb[136].mxu1 %v11579_v1 }
 0x447   : > { %v3313_v3 = vpop.permute.xlu1 %3312  ;;  %11611 = vmatprep.mubr.msk.bf16.mxu1 %vm250_vm1, %v14042_v25 }
 0x448   : > { %3388 = vst.msk [vmem:[#allocation5 + $0x108] sm:$0xf] %vm3354_vm5, %v3313_v3 }
 0x449   : > { %v2735_v4 = vpop.permute.xlu0 %2734 }
 0x44a   : > { %2809 = vst.msk [vmem:[#allocation5 + $0x110] sm:$0xf] %vm2774_vm2, %v2735_v4  ;;  %vm4260_vm2 = vcmask 912128   ;;  %v14047_v4 = vld [vmem:[#allocation5 + $0x114] ss:$8 sps:$4 sm:$0x7f]  }
 0x44b   : > { %v2737_v12 = vpop.permute.xlu1 %2736 }
 0x44c   : > { %2811 = vst.msk [vmem:[#allocation5 + $0x118] sm:$0x7] %vm2810_vm11, %v2737_v12  ;;  %vm5838_vm11 = vcmask 518400  }
 0x44d   : > { %v4177_v9 = vpop.permute.xlu0 %4176 }
 0x44e   : > { %4255 = vst.msk [vmem:[#allocation5 + $0xf0] sm:$0xf] %vm4224_vm8, %v4177_v9 }
 0x44f   : > { %v4179_v10 = vpop.permute.xlu1 %4178 }
 0x450   : > { %4256 = vst.msk [vmem:[#allocation5 + $0xf8] sm:$0xf] %vm4224_vm8, %v4179_v10 }
 0x451   : > { %v4467_v17 = vpop.permute.xlu0 %4466 }
 0x452   : > { %4545 = vst.msk [vmem:[#allocation5 + $0xf0] sm:$0xf] %vm4514_vm9, %v4467_v17 }
 0x453   : > { %v4469_v13 = vpop.permute.xlu1 %4468 }
 0x454   : > { %4546 = vst.msk [vmem:[#allocation5 + $0xf8] sm:$0xf] %vm4514_vm9, %v4469_v13 }
 0x455   : > { %v3025_v14 = vpop.permute.xlu0 %3024  ;;  %v5182_v53 = vpop.f32.mrb[108].mxu1 }
 0x456   : > { %3099 = vst.msk [vmem:[#allocation5 + $0x110] sm:$0xf] %vm3064_vm4, %v3025_v14  ;;  %v5289_v19 = vmul.f32 %v15558_v18, %v5182_v53  ;;  %v5184_v20 = vpop.f32.mrb[109].mxu1  ;;  %vm14359_vm4 = vmmov 0  }
 0x457   : > { %v3027_v23 = vpop.permute.xlu1 %3026  ;;  %v5185_v2 = vpop.f32.mrb[110].mxu1 }
 0x458   : > { %v5329_v24 = vadd.f32 %v15565_v41, %v5289_v19  ;;  %3101 = vst.msk [vmem:[#allocation5 + $0x118] sm:$0x7] %vm3100_vm12, %v3027_v23  ;;  %v5290_v26 = vmul.f32 %v15558_v18, %v5185_v2  ;;  %v5187_v37 = vpop.f32.mrb[111].mxu1  ;;  %vm5920_vm12 = vcmask 780800  }
 0x459   : > { %v3601_v29 = vpop.permute.xlu0 %3600  ;;  %v4798_v33 = vld [vmem:[#allocation5 + $0xf0] sm:$0xff] }
 0x45a   : > { %v5330_v28 = vadd.f32 %v15565_v41, %v5290_v26  ;;  %3677 = vst.msk [vmem:[#allocation5 + $0x100] sm:$0xf] %vm3644_vm6, %v3601_v29  ;;  %v5365_v48 = vmax.f32 %v5329_v24, 0.0 }
 0x45b   : > { %v4187_v34 = vpop.permute.xlu1 %4186  ;;  %v4799_v35 = vld [vmem:[#allocation5 + $0xf8] sm:$0xff] }
 0x45c   : > { %v5366_v40 = vmax.f32 %v5330_v28, 0.0  ;;  %v11581_v42 = vcombine.low %v4798_v33, %v4799_v35 }
 0x45d   : > { %v3891_v22 = vpop.permute.xlu0 %3890 }
 0x45e   : > { %v15782_v62 = vpack.c.bf16 %v5366_v40, %v5365_v48  ;;  %3967 = vst.msk [vmem:[#allocation5 + $0x100] sm:$0xf] %vm3934_vm7, %v3891_v22  ;;  %5245 = vmatmul.mubr.bf16.gmra.mrb[140].mxu1 %v11581_v42 }
 0x45f   : > { %v3603_v18 = vpop.permute.xlu1 %3602  ;;  %11612 = vmatprep.mubr.msk.bf16.mxu1 %vm250_vm1, %v14044_v63 }
 0x460   : > { %3678 = vst.msk [vmem:[#allocation5 + $0x108] sm:$0xf] %vm3644_vm6, %v3603_v18 }
 0x461   : > { %v4185_v41 = vpop.permute.xlu0 %4184 }
 0x463   : > { %v3893_v43 = vpop.permute.xlu1 %3892 }
 0x464   : > { %3968 = vst.msk [vmem:[#allocation5 + $0x108] sm:$0xf] %vm3934_vm7, %v3893_v43 }
 0x465   : > { %v3315_v6 = vpop.permute.xlu0 %3314 }
 0x466   : > { %3389 = vst.msk [vmem:[#allocation5 + $0x110] sm:$0xf] %vm3354_vm5, %v3315_v6  ;;  %vm5500_vm5 = vcmask 244736  }
 0x467   : > { %v4183_v11 = vpop.permute.xlu1 %4182 }
 0x468   : > { %4258 = vst.msk [vmem:[#allocation5 + $0x108] sm:$0xf] %vm4224_vm8, %v4183_v11 }
 0x469   : > { %v4181_v45 = vpop.permute.xlu0 %4180 }
 0x46a   : > { %4257 = vst.msk [vmem:[#allocation5 + $0x100] sm:$0xf] %vm4224_vm8, %v4181_v45 }
 0x46b   : > { %v4473_v55 = vpop.permute.xlu1 %4472 }
 0x46c   : > { %4548 = vst.msk [vmem:[#allocation5 + $0x108] sm:$0xf] %vm4514_vm9, %v4473_v55 }
 0x46d   : > { %v4471_v50 = vpop.permute.xlu0 %4470 }
 0x46e   : > { %4547 = vst.msk [vmem:[#allocation5 + $0x100] sm:$0xf] %vm4514_vm9, %v4471_v50 }
 0x46f   : > { %v3317_v51 = vpop.permute.xlu1 %3316 }
 0x470   : > { %3391 = vst.msk [vmem:[#allocation5 + $0x118] sm:$0x7] %vm3390_vm13, %v3317_v51  ;;  %vm6002_vm13 = vcmask 1043200  }
 0x471   : > { %v3605_v27 = vpop.permute.xlu0 %3604  ;;  %v5190_v57 = vpop.f32.mrb[112].mxu1 }
 0x472   : > { %3679 = vst.msk [vmem:[#allocation5 + $0x110] sm:$0xf] %vm3644_vm6, %v3605_v27  ;;  %v5291_v61 = vmul.f32 %v15796_v49, %v5190_v57  ;;  %v5192_v7 = vpop.f32.mrb[113].mxu1  ;;  %vm5756_vm6 = vcmask 256000  }
 0x473   : > { %v3607_v44 = vpop.permute.xlu1 %3606  ;;  %v5193_v52 = vpop.f32.mrb[114].mxu1 }
 0x474   : > { %v5331_v58 = vadd.f32 %v15802_v30, %v5291_v61  ;;  %3681 = vst.msk [vmem:[#allocation5 + $0x118] sm:$0x7] %vm3680_vm14, %v3607_v44  ;;  %v5292_v46 = vmul.f32 %v15796_v49, %v5193_v52  ;;  %v5195_v16 = vpop.f32.mrb[115].mxu1  ;;  %vm6873_vm14 = vcmask 259072  }
 0x475   : > { %v3895_v0 = vpop.permute.xlu0 %3894  ;;  %v14046_v39 = vld [vmem:[#allocation5 + $0x100] ss:$8 sps:$4 sm:$0xff]  }
 0x476   : > { %v5332_v15 = vadd.f32 %v15802_v30, %v5292_v46  ;;  %3969 = vst.msk [vmem:[#allocation5 + $0x110] sm:$0xf] %vm3934_vm7, %v3895_v0  ;;  %v5367_v56 = vmax.f32 %v5331_v58, 0.0  ;;  %5253 = vmatmul.mubr.bf16.gmra.mrb[144].mxu1 %v14046_v39  ;;  %vm5746_vm7 = vcmask 257024  }
 0x477   : > { %4259 = vst.msk [vmem:[#allocation5 + $0x110] sm:$0xf] %vm4224_vm8, %v4185_v41  ;;  %v3897_v59 = vpop.permute.xlu1 %3896  ;;  %11613 = vmatprep.mubr.msk.bf16.mxu1 %vm250_vm1, %v14047_v4  ;;  %vm5516_vm1 = vcmask 1046528   ;;  %vm5828_vm8 = vcmask 519424  }
 0x478   : > { %v5368_v54 = vmax.f32 %v5332_v15, 0.0  ;;  %3971 = vst.msk [vmem:[#allocation5 + $0x118] sm:$0x7] %vm3970_vm15, %v3897_v59  ;;  %vm262_vm15 = vcmask 523264  }
 0x479   : > { %v4475_v1 = vpop.permute.xlu0 %4474  ;;  %4261 = vst.msk [vmem:[#allocation5 + $0x118] sm:$0x7] %vm4260_vm2, %v4187_v34  ;;  %vm9214_vm2 = vcmask 519168  }
 0x47a   : > { %4549 = vst.msk [vmem:[#allocation5 + $0x110] sm:$0xf] %vm4514_vm9, %v4475_v1  ;;  %v5415_v21 = vpack.c.bf16 %v5368_v54, %v5367_v56  ;;  %vm5910_vm9 = vcmask 781824  }
 0x47b   : > { %v4477_v3 = vpop.permute.xlu1 %4476  ;;  %263 = vst.msk [vmem:[#allocation4] sm:$0xff] %vm262_vm15, %v14350_v36  ;;  %264 = vst.msk [vmem:[#allocation4 + $0x20] sm:$0xff] %vm262_vm15, %v14350_v36 }
 0x47c   : > { %4551 = vst.msk [vmem:[#allocation5 + $0x118] sm:$0x7] %vm4550_vm3, %v4477_v3  ;;  %13131 = vmatprep.subr.bf16.mxu0 %v5415_v21  ;;  %vm9217_vm3 = vcmask 518144  }
 0x47d   : > { %13132 = vmatpush3.bf16.msra.mxu0 %v15579_v5 }
 0x483   : > { %v14049_v12 = vld [vmem:[#allocation5 + $0x110] ss:$8 sps:$4 sm:$0x7f]  }
 0x484   : > { %5261 = vmatmul.mubr.bf16.gmra.mrb[148].mxu1 %v14049_v12 }
 0x48d   : > { %v5198_v9 = vpop.f32.mrb[116].mxu1 }
 0x48e   : > { %v5293_v10 = vmul.f32 %v15796_v49, %v5198_v9  ;;  %v5200_v17 = vpop.f32.mrb[117].mxu1 }
 0x48f   : > { %v5201_v13 = vpop.f32.mrb[118].mxu1 }
 0x490   : > { %v5333_v14 = vadd.f32 %v15802_v30, %v5293_v10  ;;  %v5294_v53 = vmul.f32 %v15796_v49, %v5201_v13  ;;  %v5203_v19 = vpop.f32.mrb[119].mxu1 }
 0x492   : > { %v5334_v20 = vadd.f32 %v15802_v30, %v5294_v53  ;;  %v5369_v23 = vmax.f32 %v5333_v14, 0.0 }
 0x494   : > { %v5370_v2 = vmax.f32 %v5334_v20, 0.0 }
 0x496   : > { %v5416_v5 = vpack.c.bf16 %v5370_v2, %v5369_v23 }
 0x498   : > { %13133 = vmatprep.subr.bf16.mxu0 %v5416_v5 }
 0x499   : > { %13134 = vmatpush3.bf16.msra.mxu0 %v15614_v31  ;;  %v14052_v31 = vld [vmem:[%s17408_s2 + $0x70] ss:$12 sps:$4 sm:$0xff]  }
 0x49a   : > { %5552 = vmatprep.mubr.bf16.mxu0 %v14052_v31 }
 0x4a9   : > { %v5206_v24 = vpop.f32.mrb[120].mxu1 }
 0x4aa   : > { %v5295_v26 = vmul.f32 %v15796_v49, %v5206_v24  ;;  %v5208_v37 = vpop.f32.mrb[121].mxu1 }
 0x4ab   : > { %v5209_v29 = vpop.f32.mrb[122].mxu1 }
 0x4ac   : > { %v5335_v28 = vadd.f32 %v15802_v30, %v5295_v26  ;;  %v5296_v34 = vmul.f32 %v15796_v49, %v5209_v29  ;;  %v5211_v33 = vpop.f32.mrb[123].mxu1 }
 0x4ae   : > { %v5336_v35 = vadd.f32 %v15802_v30, %v5296_v34  ;;  %v5371_v25 = vmax.f32 %v5335_v28, 0.0 }
 0x4b0   : > { %v5372_v48 = vmax.f32 %v5336_v35, 0.0 }
 0x4b2   : > { %v5417_v40 = vpack.c.bf16 %v5372_v48, %v5371_v25  ;;  %v14053_v25 = vld [vmem:[%s17408_s2 + $0x88] ss:$12 sps:$4 sm:$0xff]   ;;  %v14055_v48 = vld [vmem:[%s17408_s2 + $0x84] ss:$12 sps:$4 sm:$0xff]  }
 0x4b4   : > { %13135 = vmatprep.subr.bf16.mxu0 %v5417_v40  ;;  %v14056_v40 = vld [vmem:[%s17408_s2 + $0xa0] ss:$12 sps:$4 sm:$0xff]  }
 0x4b5   : > { %13136 = vmatpush3.bf16.msra.mxu0 %v15650_v8 }
 0x4c3   : > { %v5214_v42 = vpop.f32.mrb[124].mxu1 }
 0x4c4   : > { %v5297_v22 = vmul.f32 %v15796_v49, %v5214_v42  ;;  %v5216_v18 = vpop.f32.mrb[125].mxu1 }
 0x4c5   : > { %v5217_v41 = vpop.f32.mrb[126].mxu1 }
 0x4c6   : > { %v5337_v43 = vadd.f32 %v15802_v30, %v5297_v22  ;;  %v5298_v6 = vmul.f32 %v15796_v49, %v5217_v41  ;;  %v5219_v11 = vpop.f32.mrb[127].mxu1  ;;  %v14058_v22 = vld [vmem:[%s17408_s2 + $0x9c] ss:$12 sps:$4 sm:$0xff]   ;;  %v14059_v41 = vld [vmem:[%s17408_s2 + $0xb8] ss:$12 sps:$4 sm:$0xff]  }
 0x4c8   : > { %v5338_v45 = vadd.f32 %v15802_v30, %v5298_v6  ;;  %v5373_v55 = vmax.f32 %v5337_v43, 0.0 }
 0x4ca   : > { %v5374_v50 = vmax.f32 %v5338_v45, 0.0 }
 0x4cc   : > { %v5418_v8 = vpack.c.bf16 %v5374_v50, %v5373_v55 }
 0x4ce   : > { %13137 = vmatprep.subr.bf16.mxu0 %v5418_v8 }
 0x4cf   : > { %13138 = vmatpush3.bf16.msra.mxu0 %v15685_v60 }
 0x4df   : > { %v5222_v51 = vpop.f32.mrb[128].mxu1 }
 0x4e0   : > { %v5299_v27 = vmul.f32 %v15796_v49, %v5222_v51  ;;  %v5224_v57 = vpop.f32.mrb[129].mxu1  ;;  %v14061_v51 = vld [vmem:[%s17408_s2 + $0xb4] ss:$12 sps:$4 sm:$0xff]  }
 0x4e1   : > { %v5225_v61 = vpop.f32.mrb[130].mxu1 }
 0x4e2   : > { %v5339_v7 = vadd.f32 %v15802_v30, %v5299_v27  ;;  %v5300_v44 = vmul.f32 %v15796_v49, %v5225_v61  ;;  %v5227_v52 = vpop.f32.mrb[131].mxu1  ;;  %v14062_v27 = vld [vmem:[%s17408_s2 + $0xd0] ss:$12 sps:$4 sm:$0xff]  }
 0x4e4   : > { %v5340_v58 = vadd.f32 %v15802_v30, %v5300_v44  ;;  %v5375_v46 = vmax.f32 %v5339_v7, 0.0 }
 0x4e6   : > { %v5376_v16 = vmax.f32 %v5340_v58, 0.0 }
 0x4e8   : > { %v5419_v0 = vpack.c.bf16 %v5376_v16, %v5375_v46  ;;  %v14064_v46 = vld [vmem:[%s17408_s2 + $0xcc] ss:$12 sps:$4 sm:$0xff]  }
 0x4ea   : > { %13139 = vmatprep.subr.bf16.mxu0 %v5419_v0 }
 0x4eb   : > { %13140 = vmatpush3.bf16.msra.mxu0 %v15721_v32 }
 0x4fb   : > { %v5230_v63 = vpop.f32.mrb[132].mxu1 }
 0x4fc   : > { %v5301_v60 = vmul.f32 %v15796_v49, %v5230_v63  ;;  %v5232_v39 = vpop.f32.mrb[133].mxu1 }
 0x4fd   : > { %v5233_v15 = vpop.f32.mrb[134].mxu1 }
 0x4fe   : > { %v5341_v59 = vadd.f32 %v15802_v30, %v5301_v60  ;;  %v5302_v56 = vmul.f32 %v15796_v49, %v5233_v15  ;;  %v5235_v54 = vpop.f32.mrb[135].mxu1 }
 0x4ff   : > { %v14069_v54 = vld [vmem:[%s17408_s2 + $0xd4] ss:$12 sps:$4 sm:$0xff]  }
 0x500   : > { %v5342_v1 = vadd.f32 %v15802_v30, %v5302_v56  ;;  %v5377_v21 = vmax.f32 %v5341_v59, 0.0  ;;  %v14067_v59 = vld [vmem:[%s17408_s2 + $0xa4] ss:$12 sps:$4 sm:$0xff]   ;;  %v14068_v56 = vld [vmem:[%s17408_s2 + $0xbc] ss:$12 sps:$4 sm:$0xff]  }
 0x502   : > { %v5378_v3 = vmax.f32 %v5342_v1, 0.0  ;;  %v5758_v1 = vld [vmem:[#allocation3 + $0x7] sm:$0xff] }
 0x504   : > { %v5420_v4 = vpack.c.bf16 %v5378_v3, %v5377_v21  ;;  %v12567_v21 = vpack.c.bf16 %v5758_v1, %v5758_v1  ;;  %v5840_v3 = vld [vmem:[#allocation3 + $0x8] sm:$0xff] }
 0x506   : > { %13141 = vmatprep.subr.bf16.mxu0 %v5420_v4  ;;  %5798 = vrot.lane.b32.xlu0 %v12567_v21, %s14352_s11  ;;  %v12577_v4 = vpack.c.bf16 %v5840_v3, %v5840_v3 }
 0x507   : > { %13142 = vmatpush3.bf16.msra.mxu0 %v15742_v38 }
 0x50a   : > { %5880 = vrot.lane.b32.xlu0 %v12577_v4, %s14355_s13  ;;  %v14074_v4 = vld [vmem:[%s17407_s1 + $0xa8] sm:$0xff]  }
 0x519   : > { %v5238_v12 = vpop.f32.mrb[136].mxu1 }
 0x51a   : > { %v5303_v32 = vmul.f32 %v15796_v49, %v5238_v12  ;;  %v5240_v9 = vpop.f32.mrb[137].mxu1  ;;  %v6313_v12 = vld [vmem:[#allocation3 + $0x64] sm:$0x3f] }
 0x51b   : > { %v5241_v10 = vpop.f32.mrb[138].mxu1 }
 0x51c   : > { %v5343_v17 = vadd.f32 %v15802_v30, %v5303_v32  ;;  %v5304_v13 = vmul.f32 %v15796_v49, %v5241_v10  ;;  %v5243_v14 = vpop.f32.mrb[139].mxu1  ;;  %v12646_v32 = vpack.c.bf16 %v6313_v12, %v6313_v12 }
 0x51e   : > { %v5344_v53 = vadd.f32 %v15802_v30, %v5304_v13  ;;  %v5379_v19 = vmax.f32 %v5343_v17, 0.0  ;;  %6363 = vst.msk [vmem:[#allocation6 + $0x74] sm:$0x7] %vm5756_vm6, %v12646_v32 }
 0x520   : > { %v5380_v20 = vmax.f32 %v5344_v53, 0.0 }
 0x522   : > { %v5421_v23 = vpack.c.bf16 %v5380_v20, %v5379_v19 }
 0x524   : > { %13143 = vmatprep.subr.bf16.mxu0 %v5421_v23 }
 0x525   : > { %13144 = vmatpush3.bf16.msra.mxu0 %v15763_v47  ;;  %v14050_v47 = vld [vmem:[%s17408_s2 + $0x6c] ss:$12 sps:$4 sm:$0xff]  }
 0x531   : > { %v5246_v2 = vpop.f32.mrb[140].mxu1 }
 0x532   : > { %v5305_v38 = vmul.f32 %v15796_v49, %v5246_v2  ;;  %v5248_v5 = vpop.f32.mrb[141].mxu1 }
 0x533   : > { %v5249_v24 = vpop.f32.mrb[142].mxu1 }
 0x534   : > { %v5345_v26 = vadd.f32 %v15802_v30, %v5305_v38  ;;  %v5306_v37 = vmul.f32 %v15796_v49, %v5249_v24  ;;  %v5251_v29 = vpop.f32.mrb[143].mxu1 }
 0x535   : > { %v14071_v29 = vld [vmem:[%s17407_s1 + $0x58] sm:$0xff]  }
 0x536   : > { %v5346_v28 = vadd.f32 %v15802_v30, %v5306_v37  ;;  %v5381_v34 = vmax.f32 %v5345_v26, 0.0  ;;  %v14070_v37 = vld [vmem:[%s17407_s1 + $0x98] sm:$0xff]  }
 0x537   : > { %13819 = vmatprep.subr.bf16.mxu1 %v14070_v37 }
 0x538   : > { %v5382_v33 = vmax.f32 %v5346_v28, 0.0  ;;  %13827 = vmatpush3.bf16.msra.mxu1 %v14071_v29 }
 0x53a   : > { %v5422_v35 = vpack.c.bf16 %v5382_v33, %v5381_v34 }
 0x53c   : > { %13145 = vmatprep.subr.bf16.mxu0 %v5422_v35 }
 0x53d   : > { %13146 = vmatpush3.bf16.msra.mxu0 %v15782_v62 }
 0x53e   : > { %13629 = vmatprep.subr.bf16.mxu0 %v14350_v36 }
 0x540   : > { %5553 = vmatmul.mubr.bf16.vlgmr.msra.gmra.mrb[128].mxu0 %v14050_v47 }
 0x541   : > { %5560 = vmatprep.mubr.bf16.mxu0 %v14053_v25 }
 0x548   : > { %5561 = vmatmul.mubr.bf16.gmra.mrb[132].mxu0 %v14055_v48 }
 0x549   : > { %5568 = vmatprep.mubr.bf16.mxu0 %v14056_v40  ;;  %v5254_v31 = vpop.f32.mrb[144].mxu1 }
 0x54a   : > { %v5307_v62 = vmul.f32 %v15796_v49, %v5254_v31  ;;  %v5256_v42 = vpop.f32.mrb[145].mxu1 }
 0x54b   : > { %v5257_v18 = vpop.f32.mrb[146].mxu1  ;;  %v5696_v42 = vld [vmem:[#allocation3 + $0x6] sm:$0xff] }
 0x54c   : > { %v5347_v43 = vadd.f32 %v15802_v30, %v5307_v62  ;;  %v5308_v6 = vmul.f32 %v15796_v49, %v5257_v18  ;;  %v5259_v11 = vpop.f32.mrb[147].mxu1 }
 0x54e   : > { %v5348_v45 = vadd.f32 %v15802_v30, %v5308_v6  ;;  %v5383_v55 = vmax.f32 %v5347_v43, 0.0  ;;  %v14072_v43 = vld [vmem:[%s17407_s1 + $0xa0] sm:$0xff]  }
 0x54f   : > { %13820 = vmatprep.subr.bf16.mxu1 %v14072_v43 }
 0x550   : > { %5569 = vmatmul.mubr.bf16.gmra.mrb[136].mxu0 %v14058_v22  ;;  %v5384_v50 = vmax.f32 %v5348_v45, 0.0  ;;  %v12557_v22 = vpack.c.bf16 %v5696_v42, %v5696_v42 }
 0x551   : > { %5576 = vmatprep.mubr.bf16.mxu0 %v14059_v41 }
 0x552   : > { %v5423_v8 = vpack.c.bf16 %v5384_v50, %v5383_v55  ;;  %5747 = vst.msk [vmem:[#allocation6] sm:$0xf] %vm5746_vm7, %v12557_v22 }
 0x554   : > { %13630 = vmatpush3.bf16.msra.mxu0 %v5423_v8  ;;  %v14073_v8 = vld [vmem:[%s17407_s1 + $0x60] sm:$0xff]  }
 0x555   : > { %13631 = vmatprep.subr.bf16.mxu0 %v14350_v36  ;;  %13828 = vmatpush3.bf16.msra.mxu1 %v14073_v8 }
 0x556   : > { %13821 = vmatprep.subr.bf16.mxu1 %v14074_v4 }
 0x557   : > { %v5262_v57 = vpop.f32.mrb[148].mxu1 }
 0x558   : > { %5577 = vmatmul.mubr.bf16.gmra.mrb[140].mxu0 %v14061_v51  ;;  %v5309_v61 = vmul.f32 %v15796_v49, %v5262_v57  ;;  %v5264_v7 = vpop.f32.mrb[149].mxu1 }
 0x559   : > { %5584 = vmatprep.mubr.bf16.mxu0 %v14062_v27  ;;  %v5265_v44 = vpop.f32.mrb[150].mxu1 }
 0x55a   : > { %v5349_v52 = vadd.f32 %v15802_v30, %v5309_v61  ;;  %v5310_v58 = vmul.f32 %v15796_v49, %v5265_v44  ;;  %v5267_v16 = vpop.f32.mrb[151].mxu1  ;;  %v14065_v49 = vld [vmem:[%s17408_s2 + $0x74] ss:$12 sps:$4 sm:$0xff]  }
 0x55c   : > { %v5350_v0 = vadd.f32 %v15802_v30, %v5310_v58  ;;  %v5385_v63 = vmax.f32 %v5349_v52, 0.0  ;;  %v14066_v30 = vld [vmem:[%s17408_s2 + $0x8c] ss:$12 sps:$4 sm:$0xff]  }
 0x55e   : > { %v5386_v60 = vmax.f32 %v5350_v0, 0.0 }
 0x560   : > { %5585 = vmatmul.mubr.bf16.gmra.mrb[144].mxu0 %v14064_v46  ;;  %v5424_v39 = vpack.c.bf16 %v5386_v60, %v5385_v63 }
 0x561   : > { %13633 = vmatprep.mubr.msk.bf16.mxu0 %vm14359_vm4, %v14350_v36 }
 0x562   : > { %v5518_v15 = vsel %vm5516_vm1, %v5424_v39, 0 }
 0x563   : > { %13632 = vmatpush3.bf16.msra.mxu0 %v5518_v15 }
 0x564   : > { %13184 = vmatprep.subr.bf16.mxu0 %v14070_v37 }
 0x568   : > { %13634 = vmatmul.mubr.msk.bf16.vlgmr.msra.gmra.mrb[148].mxu0 %vm5500_vm5, %v14065_v49 }
 0x569   : > { %13637 = vmatprep.mubr.msk.bf16.mxu0 %vm14359_vm4, %v14350_v36  ;;  %13185 = vmatpush3.bf16.msra.mxu0 %v14071_v29 }
 0x56a   : > { %13186 = vmatprep.subr.bf16.mxu0 %v14072_v43 }
 0x56d   : > { %13187 = vmatpush3.bf16.msra.mxu0 %v14073_v8 }
 0x56e   : > { %13188 = vmatprep.subr.bf16.mxu0 %v14074_v4 }
 0x570   : > { %13638 = vmatmul.mubr.msk.bf16.gmra.mrb[152].mxu0 %vm5500_vm5, %v14066_v30 }
 0x571   : > { %13641 = vmatprep.mubr.msk.bf16.mxu0 %vm14359_vm4, %v14350_v36 }
 0x578   : > { %13642 = vmatmul.mubr.msk.bf16.gmra.mrb[156].mxu0 %vm5500_vm5, %v14067_v59  ;;  %v5799_v55 = vpop.permute.xlu0 %5798 }
 0x579   : > { %13645 = vmatprep.mubr.msk.bf16.mxu0 %vm14359_vm4, %v14350_v36  ;;  %5829 = vst.msk [vmem:[#allocation6] sm:$0xf] %vm5828_vm8, %v5799_v55  ;;  %v14078_v55 = vld [vmem:[%s17407_s1 + $0xb8] sm:$0xff]  }
 0x57c   : > { %v5881_v51 = vpop.permute.xlu0 %5880 }
 0x57d   : > { %5911 = vst.msk [vmem:[#allocation6] sm:$0xf] %vm5910_vm9, %v5881_v51 }
 0x580   : > { %13646 = vmatmul.mubr.msk.bf16.gmra.mrb[160].mxu0 %vm5500_vm5, %v14068_v56 }
 0x581   : > { %13649 = vmatprep.mubr.msk.bf16.mxu0 %vm14359_vm4, %v14350_v36 }
 0x588   : > { %13650 = vmatmul.mubr.msk.bf16.gmra.mrb[164].mxu0 %vm5500_vm5, %v14069_v54  ;;  %vm9244_vm5 = vcmask 1042944  }
 0x613   : > { %v13147_v9 = vpop.f32.mrb[128].mxu0 }
 0x614   : > { %v13148_v10 = vpop.f32.mrb[129].mxu0 }
 0x615   : > { %v13149_v17 = vadd.f32 %v13148_v10, %v13147_v9  ;;  %v13150_v13 = vpop.f32.mrb[130].mxu0 }
 0x616   : > { %v13151_v14 = vpop.f32.mrb[131].mxu0 }
 0x617   : > { %v13152_v53 = vadd.f32 %v13151_v14, %v13150_v13  ;;  %v14075_v13 = vld [vmem:[%s17407_s1 + $0x68] sm:$0xff]   ;;  %v14076_v14 = vld [vmem:[%s17407_s1 + $0xb0] sm:$0xff]  }
 0x618   : > { %13189 = vmatpush3.bf16.msra.mxu0 %v14075_v13  ;;  %13829 = vmatpush3.bf16.msra.mxu1 %v14075_v13 }
 0x619   : > { %13190 = vmatprep.subr.bf16.mxu0 %v14076_v14  ;;  %13822 = vmatprep.subr.bf16.mxu1 %v14076_v14 }
 0x61b   : > { %v13153_v19 = vpop.f32.mrb[132].mxu0 }
 0x61c   : > { %v13154_v20 = vpop.f32.mrb[133].mxu0 }
 0x61d   : > { %v13155_v23 = vadd.f32 %v13154_v20, %v13153_v19  ;;  %v13156_v2 = vpop.f32.mrb[134].mxu0 }
 0x61e   : > { %v13157_v38 = vpop.f32.mrb[135].mxu0 }
 0x61f   : > { %v13158_v5 = vadd.f32 %v13157_v38, %v13156_v2 }
 0x623   : > { %v13159_v24 = vpop.f32.mrb[136].mxu0 }
 0x624   : > { %v13160_v26 = vpop.f32.mrb[137].mxu0 }
 0x625   : > { %v15923_v28 = vadd.f32 %v13160_v26, %v13159_v24  ;;  %v13162_v34 = vpop.f32.mrb[138].mxu0 }
 0x626   : > { %v13163_v33 = vpop.f32.mrb[139].mxu0 }
 0x627   : > { %v15925_v35 = vadd.f32 %v13163_v33, %v13162_v34 }
 0x62b   : > { %v13165_v47 = vpop.f32.mrb[140].mxu0 }
 0x62c   : > { %v13166_v25 = vpop.f32.mrb[141].mxu0 }
 0x62d   : > { %v15927_v48 = vadd.f32 %v13166_v25, %v13165_v47  ;;  %v13168_v40 = vpop.f32.mrb[142].mxu0 }
 0x62e   : > { %v13169_v31 = vpop.f32.mrb[143].mxu0 }
 0x62f   : > { %v15929_v62 = vadd.f32 %v13169_v31, %v13168_v40  ;;  %v14077_v40 = vld [vmem:[%s17407_s1 + $0x70] sm:$0xff]  }
 0x630   : > { %13191 = vmatpush3.bf16.msra.mxu0 %v14077_v40  ;;  %13830 = vmatpush3.bf16.msra.mxu1 %v14077_v40 }
 0x631   : > { %13192 = vmatprep.subr.bf16.mxu0 %v14078_v55  ;;  %13823 = vmatprep.subr.bf16.mxu1 %v14078_v55 }
 0x633   : > { %v13171_v18 = vpop.f32.mrb[144].mxu0 }
 0x634   : > { %v13172_v41 = vpop.f32.mrb[145].mxu0 }
 0x635   : > { %v15935_v6 = vadd.f32 %v13172_v41, %v13171_v18  ;;  %v13174_v11 = vpop.f32.mrb[146].mxu0 }
 0x636   : > { %v13175_v45 = vpop.f32.mrb[147].mxu0 }
 0x637   : > { %v15937_v50 = vadd.f32 %v13175_v45, %v13174_v11 }
 0x63b   : > { %v5627_v27 = vpop.f32.mrb[148].mxu0 }
 0x63c   : > { %v5628_v57 = vadd.f32 %v13149_v17, %v5627_v27  ;;  %v13635_v61 = vpop.f32.mrb[149].mxu0 }
 0x63d   : > { %v5630_v7 = vpop.f32.mrb[150].mxu0 }
 0x63e   : > { %5666 = vst.msk [vmem:[#allocation3 + $0x10] sm:$0xff] %vm257_vm0, %v5628_v57  ;;  %v5631_v44 = vadd.f32 %v13152_v53, %v5630_v7  ;;  %v13636_v52 = vpop.f32.mrb[151].mxu0 }
 0x640   : > { %5667 = vst.msk [vmem:[#allocation3 + $0x18] sm:$0xff] %vm257_vm0, %v5631_v44 }
 0x643   : > { %v5635_v58 = vpop.f32.mrb[152].mxu0 }
 0x644   : > { %v5636_v46 = vadd.f32 %v13155_v23, %v5635_v58  ;;  %v13639_v16 = vpop.f32.mrb[153].mxu0 }
 0x645   : > { %v5922_v0 = vld [vmem:[#allocation3 + $0x10] sm:$0xff]  ;;  %v5638_v60 = vpop.f32.mrb[154].mxu0 }
 0x646   : > { %v5759_v63 = vld [vmem:[#allocation3 + $0xf] sm:$0xff]  ;;  %5668 = vst.msk [vmem:[#allocation3 + $0x20] sm:$0xff] %vm257_vm0, %v5636_v46  ;;  %v12587_v15 = vpack.c.bf16 %v5922_v0, %v5922_v0  ;;  %v5639_v30 = vadd.f32 %v13158_v5, %v5638_v60  ;;  %v13640_v59 = vpop.f32.mrb[155].mxu0 }
 0x647   : > { %v5697_v39 = vld [vmem:[#allocation3 + $0xe] sm:$0xff]  ;;  %v12568_v49 = vpack.c.bf16 %v5759_v63, %v5759_v63  ;;  %v5698_v3 = vld [vmem:[#allocation3 + $0x16] sm:$0xff] }
 0x648   : > { %v12558_v56 = vpack.c.bf16 %v5697_v39, %v5697_v39  ;;  %v15947_v54 = vld [vmem:[#allocation3 + $0x11] sm:$0xff]  ;;  %5962 = vrot.lane.b32.xlu0 %v12587_v15, %s14357_s16  ;;  %5669 = vst.msk [vmem:[#allocation3 + $0x28] sm:$0xff] %vm257_vm0, %v5639_v30  ;;  %v12559_v12 = vpack.c.bf16 %v5698_v3, %v5698_v3  ;;  %v14079_v63 = vld [vmem:[%s17407_s1 + $0x78] sm:$0xff]  }
 0x649   : > { %v6064_v1 = vld [vmem:[#allocation3 + $0x12] sm:$0xff]  ;;  %5800 = vrot.lane.b32.xlu1 %v12568_v49, %s14352_s11  ;;  %v12597_v21 = vpack.c.bf16 %v15947_v54, %v15947_v54  ;;  %13193 = vmatpush3.bf16.msra.mxu0 %v14079_v63 }
 0x64a   : > { %5748 = vst.msk [vmem:[#allocation6 + $0xc] sm:$0xf] %vm5746_vm7, %v12558_v56  ;;  %v12607_v32 = vpack.c.bf16 %v6064_v1, %v6064_v1  ;;  %v5923_v9 = vld [vmem:[#allocation3 + $0x18] sm:$0xff]  ;;  %5749 = vst.msk [vmem:[#allocation6 + $0x18] sm:$0xf] %vm5746_vm7, %v12559_v12  ;;  %v14080_v60 = vld [vmem:[%s17407_s1 + $0xc0] sm:$0xff]   ;;  %13831 = vmatpush3.bf16.msra.mxu1 %v14079_v63 }
 0x64b   : > { %6054 = vst.msk [vmem:[#allocation6 + $0x4] sm:$0xf] %vm5746_vm7, %v12597_v21  ;;  %v5760_v10 = vld [vmem:[#allocation3 + $0x17] sm:$0xff]  ;;  %v5643_v17 = vpop.f32.mrb[156].mxu0  ;;  %v12588_v2 = vpack.c.bf16 %v5923_v9, %v5923_v9  ;;  %13194 = vmatprep.subr.bf16.mxu0 %v14080_v60  ;;  %13824 = vmatprep.subr.bf16.mxu1 %v14080_v60 }
 0x64c   : > { %6104 = vrot.lane.b32.xlu0 %v12607_v32, %s14352_s11  ;;  %v5644_v53 = vadd.f32 %v15923_v28, %v5643_v17  ;;  %v13643_v19 = vpop.f32.mrb[157].mxu0  ;;  %v12569_v24 = vpack.c.bf16 %v5760_v10, %v5760_v10  ;;  %v14081_v56 = vld [vmem:[%s17407_s1 + $0x80] sm:$0xff]   ;;  %v14082_v17 = vld [vmem:[%s17407_s1 + $0xc8] sm:$0xff]  }
 0x64d   : > { %5882 = vrot.lane.b32.xlu1 %v12587_v15, %s14355_s13  ;;  %v15969_v20 = vld [vmem:[#allocation3 + $0x19] sm:$0xff]  ;;  %v5646_v38 = vpop.f32.mrb[158].mxu0  ;;  %13195 = vmatpush3.bf16.msra.mxu0 %v14081_v56 }
 0x64e   : > { %v6304_v23 = vld [vmem:[#allocation3 + $0x1c] sm:$0xff]  ;;  %5670 = vst.msk [vmem:[#allocation3 + $0x30] sm:$0xff] %vm257_vm0, %v5644_v53  ;;  %v5647_v26 = vadd.f32 %v15925_v35, %v5646_v38  ;;  %v13644_v37 = vpop.f32.mrb[159].mxu0  ;;  %v12598_v29 = vpack.c.bf16 %v15969_v20, %v15969_v20  ;;  %13832 = vmatpush3.bf16.msra.mxu1 %v14081_v56  ;;  %13196 = vmatprep.subr.bf16.mxu0 %v14082_v17 }
 0x64f   : > { %v12637_v5 = vpack.c.bf16 %v6304_v23, %v6304_v23  ;;  %v15975_v28 = vld [vmem:[#allocation3 + $0x21] sm:$0xff]  ;;  %13825 = vmatprep.subr.bf16.mxu1 %v14082_v17 }
 0x650   : > { %v6305_v34 = vld [vmem:[#allocation3 + $0x24] sm:$0xff]  ;;  %v6065_v33 = vld [vmem:[#allocation3 + $0x1a] sm:$0xff]  ;;  %5802 = vrot.lane.b32.xlu0 %v12569_v24, %s14352_s11  ;;  %5671 = vst.msk [vmem:[#allocation3 + $0x38] sm:$0xff] %vm257_vm0, %v5647_v26  ;;  %v12599_v35 = vpack.c.bf16 %v15975_v28, %v15975_v28 }
 0x651   : > { %6354 = vst.msk [vmem:[#allocation6 + $0x8] sm:$0xf] %vm5746_vm7, %v12637_v5  ;;  %5964 = vrot.lane.b32.xlu1 %v12588_v2, %s14357_s16  ;;  %v12638_v47 = vpack.c.bf16 %v6305_v34, %v6305_v34  ;;  %6055 = vst.msk [vmem:[#allocation6 + $0x10] sm:$0xf] %vm5746_vm7, %v12598_v29  ;;  %v5699_v25 = vld [vmem:[#allocation3 + $0x1e] sm:$0xff]  ;;  %v5700_v31 = vld [vmem:[#allocation3 + $0x26] sm:$0xff]  ;;  %v12608_v42 = vpack.c.bf16 %v6065_v33, %v6065_v33 }
 0x652   : > { %v12560_v22 = vpack.c.bf16 %v5699_v25, %v5699_v25  ;;  %6056 = vst.msk [vmem:[#allocation6 + $0x1c] sm:$0xf] %vm5746_vm7, %v12599_v35  ;;  %v12561_v18 = vpack.c.bf16 %v5700_v31, %v5700_v31  ;;  %v5761_v41 = vld [vmem:[#allocation3 + $0x1f] sm:$0xff]  ;;  %v5925_v24 = vld [vmem:[#allocation3 + $0x28] sm:$0xff] }
 0x653   : > { %6355 = vst.msk [vmem:[#allocation6 + $0x14] sm:$0xf] %vm5746_vm7, %v12638_v47  ;;  %v5651_v43 = vpop.f32.mrb[160].mxu0  ;;  %v12570_v61 = vpack.c.bf16 %v5761_v41, %v5761_v41  ;;  %v6224_v7 = vld [vmem:[#allocation3 + $0x1b] sm:$0xff]  ;;  %v6225_v38 = vld [vmem:[#allocation3 + $0x23] sm:$0xff] }
 0x654   : > { %5884 = vrot.lane.b32.xlu0 %v12588_v2, %s14355_s13  ;;  %v5652_v11 = vadd.f32 %v15927_v48, %v5651_v43  ;;  %v13647_v45 = vpop.f32.mrb[161].mxu0  ;;  %5750 = vst.msk [vmem:[#allocation6 + $0x24] sm:$0xf] %vm5746_vm7, %v12560_v22  ;;  %5751 = vst.msk [vmem:[#allocation6 + $0x30] sm:$0xf] %vm5746_vm7, %v12561_v18  ;;  %v5843_v16 = vld [vmem:[#allocation3 + $0x20] sm:$0xff]  ;;  %v12627_v39 = vpack.c.bf16 %v6224_v7, %v6224_v7  ;;  %v12628_v29 = vpack.c.bf16 %v6225_v38, %v6225_v38 }
 0x655   : > { %6106 = vrot.lane.b32.xlu1 %v12608_v42, %s14352_s11  ;;  %v15997_v8 = vld [vmem:[#allocation3 + $0x29] sm:$0xff]  ;;  %v5654_v27 = vpop.f32.mrb[162].mxu0  ;;  %v12580_v15 = vpack.c.bf16 %v5843_v16, %v5843_v16  ;;  %v14083_v26 = vld [vmem:[%s17407_s1 + $0x88] sm:$0xff]   ;;  %v14084_v37 = vld [vmem:[%s17407_s1 + $0xd0] sm:$0xff]   ;;  %v12590_v18 = vpack.c.bf16 %v5925_v24, %v5925_v24 }
 0x656   : > { %v6306_v51 = vld [vmem:[#allocation3 + $0x2c] sm:$0xff]  ;;  %5672 = vst.msk [vmem:[#allocation3 + $0x40] sm:$0xff] %vm257_vm0, %v5652_v11  ;;  %v5655_v48 = vadd.f32 %v15929_v62, %v5654_v27  ;;  %v13648_v44 = vpop.f32.mrb[163].mxu0  ;;  %v12600_v52 = vpack.c.bf16 %v15997_v8, %v15997_v8  ;;  %v6145_v30 = vld [vmem:[#allocation3 + $0x22] sm:$0xff]  ;;  %13197 = vmatpush3.bf16.msra.mxu0 %v14083_v26  ;;  %13833 = vmatpush3.bf16.msra.mxu1 %v14083_v26 }
 0x657   : > { %v12639_v57 = vpack.c.bf16 %v6306_v51, %v6306_v51  ;;  %v16003_v58 = vld [vmem:[#allocation3 + $0x31] sm:$0xff]  ;;  %v12618_v14 = vpack.c.bf16 %v6145_v30, %v6145_v30  ;;  %v5762_v34 = vld [vmem:[#allocation3 + $0x27] sm:$0xff]  ;;  %13198 = vmatprep.subr.bf16.mxu0 %v14084_v37  ;;  %13826 = vmatprep.subr.bf16.mxu1 %v14084_v37 }
 0x658   : > { %v6307_v46 = vld [vmem:[#allocation3 + $0x34] sm:$0xff]  ;;  %6184 = vrot.lane.b32.xlu0 %v12608_v42, %s14355_s13  ;;  %5673 = vst.msk [vmem:[#allocation3 + $0x48] sm:$0xff] %vm257_vm0, %v5655_v48  ;;  %v12601_v62 = vpack.c.bf16 %v16003_v58, %v16003_v58  ;;  %v14085_v33 = vld [vmem:[%s17407_s1 + $0x90] sm:$0xff]   ;;  %v12571_v41 = vpack.c.bf16 %v5762_v34, %v5762_v34  ;;  %v6067_v55 = vld [vmem:[#allocation3 + $0x2a] sm:$0xff] }
 0x659   : > { %6356 = vst.msk [vmem:[#allocation6 + $0x20] sm:$0xf] %vm5746_vm7, %v12639_v57  ;;  %5804 = vrot.lane.b32.xlu1 %v12570_v61, %s14352_s11  ;;  %v12640_v0 = vpack.c.bf16 %v6307_v46, %v6307_v46  ;;  %6057 = vst.msk [vmem:[#allocation6 + $0x28] sm:$0xf] %vm5746_vm7, %v12600_v52  ;;  %v5701_v49 = vld [vmem:[#allocation3 + $0x2e] sm:$0xff]  ;;  %v5702_v21 = vld [vmem:[#allocation3 + $0x36] sm:$0xff]  ;;  %v12610_v7 = vpack.c.bf16 %v6067_v55, %v6067_v55 }
 0x65a   : > { %6058 = vst.msk [vmem:[#allocation6 + $0x34] sm:$0xf] %vm5746_vm7, %v12601_v62  ;;  %v12562_v1 = vpack.c.bf16 %v5701_v49, %v5701_v49  ;;  %v12563_v12 = vpack.c.bf16 %v5702_v21, %v5702_v21  ;;  %13199 = vmatpush3.bf16.msra.mxu0 %v14085_v33  ;;  %13834 = vmatpush3.bf16.msra.mxu1 %v14085_v33  ;;  %v5763_v48 = vld [vmem:[#allocation3 + $0x2f] sm:$0xff]  ;;  %v5927_v56 = vld [vmem:[#allocation3 + $0x38] sm:$0xff] }
 0x65b   : > { %6357 = vst.msk [vmem:[#allocation6 + $0x2c] sm:$0xf] %vm5746_vm7, %v12640_v0  ;;  %v5659_v59 = vpop.f32.mrb[164].mxu0  ;;  %13653 = vmatprep.subr.bf16.mxu0 %v14350_v36  ;;  %v12572_v0 = vpack.c.bf16 %v5763_v48, %v5763_v48  ;;  %v6226_v62 = vld [vmem:[#allocation3 + $0x2b] sm:$0xff]  ;;  %v6227_v30 = vld [vmem:[#allocation3 + $0x33] sm:$0xff]  ;;  %v12592_v21 = vpack.c.bf16 %v5927_v56, %v5927_v56 }
 0x65c   : > { %6264 = vrot.lane.b32.xlu0 %v12627_v39, %s14357_s16  ;;  %v5660_v3 = vadd.f32 %v15935_v6, %v5659_v59  ;;  %v13651_v4 = vpop.f32.mrb[165].mxu0  ;;  %5752 = vst.msk [vmem:[#allocation6 + $0x3c] sm:$0xf] %vm5746_vm7, %v12562_v1  ;;  %5753 = vst.msk [vmem:[#allocation6 + $0x48] sm:$0xf] %vm5746_vm7, %v12563_v12  ;;  %v5845_v63 = vld [vmem:[#allocation3 + $0x30] sm:$0xff]  ;;  %v12629_v60 = vpack.c.bf16 %v6226_v62, %v6226_v62  ;;  %v12630_v59 = vpack.c.bf16 %v6227_v30, %v6227_v30 }
 0x65d   : > { %5886 = vrot.lane.b32.xlu1 %v12580_v15, %s14355_s13  ;;  %v16026_v32 = vld [vmem:[#allocation3 + $0x39] sm:$0xff]  ;;  %v5662_v10 = vpop.f32.mrb[166].mxu0  ;;  %v12582_v39 = vpack.c.bf16 %v5845_v63, %v5845_v63  ;;  %v6233_v62 = vld [vmem:[#allocation3 + $0x63] sm:$0x3f] }
 0x65e   : > { %v6308_v9 = vld [vmem:[#allocation3 + $0x3c] sm:$0xff]  ;;  %5674 = vst.msk [vmem:[#allocation3 + $0x50] sm:$0xff] %vm257_vm0, %v5660_v3  ;;  %v5663_v6 = vadd.f32 %v15937_v50, %v5662_v10  ;;  %v13652_v53 = vpop.f32.mrb[167].mxu0  ;;  %v12602_v19 = vpack.c.bf16 %v16026_v32, %v16026_v32  ;;  %v5679_v30 = vld [vmem:[%s17411_s5 + $0x18] sm:$0xff] }
 0x65f   : > { %v12641_v13 = vpack.c.bf16 %v6308_v9, %v6308_v9  ;;  %v16037_v23 = vld [vmem:[#allocation3 + $0x41] sm:$0xff]  ;;  %v5764_v1 = vld [vmem:[#allocation3 + $0x37] sm:$0xff] }
 0x660   : > { %v6309_v2 = vld [vmem:[#allocation3 + $0x44] sm:$0xff]  ;;  %5966 = vrot.lane.b32.xlu0 %v12580_v15, %s14357_s16  ;;  %5675 = vst.msk [vmem:[#allocation3 + $0x58] sm:$0xff] %vm257_vm0, %v5663_v6  ;;  %v12603_v50 = vpack.c.bf16 %v16037_v23, %v16037_v23  ;;  %v6147_v15 = vld [vmem:[#allocation3 + $0x32] sm:$0xff]  ;;  %v12573_v3 = vpack.c.bf16 %v5764_v1, %v5764_v1  ;;  %v6069_v4 = vld [vmem:[#allocation3 + $0x3a] sm:$0xff] }
 0x661   : > { %6358 = vst.msk [vmem:[#allocation6 + $0x38] sm:$0xf] %vm5746_vm7, %v12641_v13  ;;  %6186 = vrot.lane.b32.xlu1 %v12618_v14, %s14355_s13  ;;  %v12642_v5 = vpack.c.bf16 %v6309_v2, %v6309_v2  ;;  %6059 = vst.msk [vmem:[#allocation6 + $0x40] sm:$0xf] %vm5746_vm7, %v12602_v19  ;;  %v5703_v47 = vld [vmem:[#allocation3 + $0x3e] sm:$0xff]  ;;  %v5704_v35 = vld [vmem:[#allocation3 + $0x46] sm:$0xff]  ;;  %v12620_v49 = vpack.c.bf16 %v6147_v15, %v6147_v15  ;;  %v12612_v12 = vpack.c.bf16 %v6069_v4, %v6069_v4 }
 0x662   : > { %6060 = vst.msk [vmem:[#allocation6 + $0x4c] sm:$0xf] %vm5746_vm7, %v12603_v50  ;;  %v12564_v25 = vpack.c.bf16 %v5703_v47, %v5703_v47  ;;  %v12565_v40 = vpack.c.bf16 %v5704_v35, %v5704_v35  ;;  %v5765_v9 = vld [vmem:[#allocation3 + $0x3f] sm:$0xff]  ;;  %v5929_v26 = vld [vmem:[#allocation3 + $0x48] sm:$0xff] }
 0x663   : > { %6359 = vst.msk [vmem:[#allocation6 + $0x44] sm:$0xf] %vm5746_vm7, %v12642_v5  ;;  %v12574_v10 = vpack.c.bf16 %v5765_v9, %v5765_v9  ;;  %v6228_v17 = vld [vmem:[#allocation3 + $0x3b] sm:$0xff]  ;;  %v7484_v2 = vld [vmem:[#allocation3 + $0x64] sm:$0x3f] }
 0x664   : > { %6108 = vrot.lane.b32.xlu0 %v12618_v14, %s14352_s11  ;;  %5754 = vst.msk [vmem:[#allocation6 + $0x54] sm:$0xf] %vm5746_vm7, %v12564_v25  ;;  %5755 = vst.msk [vmem:[#allocation6 + $0x60] sm:$0xf] %vm5746_vm7, %v12565_v40  ;;  %v5847_v13 = vld [vmem:[#allocation3 + $0x40] sm:$0xff]  ;;  %v12631_v14 = vpack.c.bf16 %v6228_v17, %v6228_v17  ;;  %v12736_v5 = vpack.c.bf16 %v7484_v2, %v7484_v2  ;;  %v5683_v9 = vld [vmem:[%s17411_s5 + $0x38] sm:$0xff] }
 0x665   : > { %6266 = vrot.lane.b32.xlu1 %v12628_v29, %s14357_s16  ;;  %v16059_v31 = vld [vmem:[#allocation3 + $0x49] sm:$0xff]  ;;  %v12584_v6 = vpack.c.bf16 %v5847_v13, %v5847_v13  ;;  %v12594_v29 = vpack.c.bf16 %v5929_v26, %v5929_v26 }
 0x666   : > { %v6310_v42 = vld [vmem:[#allocation3 + $0x4c] sm:$0xff]  ;;  %v12604_v43 = vpack.c.bf16 %v16059_v31, %v16059_v31  ;;  %v6149_v53 = vld [vmem:[#allocation3 + $0x42] sm:$0xff] }
 0x667   : > { %v12643_v22 = vpack.c.bf16 %v6310_v42, %v6310_v42  ;;  %v16065_v11 = vld [vmem:[#allocation3 + $0x51] sm:$0xff]  ;;  %v6312_v51 = vld [vmem:[#allocation3 + $0x5c] sm:$0xff]  ;;  %v12622_v19 = vpack.c.bf16 %v6149_v53, %v6149_v53  ;;  %v5766_v35 = vld [vmem:[#allocation3 + $0x47] sm:$0xff] }
 0x668   : > { %v6311_v45 = vld [vmem:[#allocation3 + $0x54] sm:$0xff]  ;;  %5806 = vrot.lane.b32.xlu0 %v12571_v41, %s14352_s11  ;;  %6061 = vst.msk [vmem:[#allocation6 + $0x58] sm:$0xf] %vm5746_vm7, %v12604_v43  ;;  %v12605_v57 = vpack.c.bf16 %v16065_v11, %v16065_v11  ;;  %v12645_v61 = vpack.c.bf16 %v6312_v51, %v6312_v51  ;;  %v5705_v44 = vld [vmem:[#allocation3 + $0x4e] sm:$0x3f]  ;;  %v6229_v38 = vld [vmem:[#allocation3 + $0x43] sm:$0xff]  ;;  %v12575_v40 = vpack.c.bf16 %v5766_v35, %v5766_v35 }
 0x669   : > { %6360 = vst.msk [vmem:[#allocation6 + $0x50] sm:$0xf] %vm5746_vm7, %v12643_v22  ;;  %5968 = vrot.lane.b32.xlu1 %v12590_v18, %s14357_s16  ;;  %v12644_v27 = vpack.c.bf16 %v6311_v45, %v6311_v45  ;;  %v6013_v52 = vld [vmem:[#allocation3 + $0x59] sm:$0x3f]  ;;  %v12566_v46 = vpack.c.bf16 %v5705_v44, %v5705_v44  ;;  %v12632_v24 = vpack.c.bf16 %v6229_v38, %v6229_v38  ;;  %v6150_v37 = vld [vmem:[#allocation3 + $0x4a] sm:$0xff] }
 0x66a   : > { %6062 = vst.msk [vmem:[#allocation6 + $0x64] sm:$0xf] %vm5746_vm7, %v12605_v57  ;;  %6362 = vst.msk [vmem:[#allocation6 + $0x68] sm:$0xf] %vm5746_vm7, %v12645_v61  ;;  %v12606_v16 = vpack.c.bf16 %v6013_v52, %v6013_v52  ;;  %v12623_v34 = vpack.c.bf16 %v6150_v37, %v6150_v37  ;;  %v6230_v33 = vld [vmem:[#allocation3 + $0x4b] sm:$0xff]  ;;  %v6231_v22 = vld [vmem:[#allocation3 + $0x53] sm:$0xff] }
 0x66b   : > { %6361 = vst.msk [vmem:[#allocation6 + $0x5c] sm:$0xf] %vm5746_vm7, %v12644_v27  ;;  %v12633_v47 = vpack.c.bf16 %v6230_v33, %v6230_v33  ;;  %v6151_v25 = vld [vmem:[#allocation3 + $0x52] sm:$0xff]  ;;  %v6153_v27 = vld [vmem:[#allocation3 + $0x62] sm:$0x3f]  ;;  %v6152_v61 = vld [vmem:[#allocation3 + $0x5a] sm:$0xff] }
 0x66c   : > { %5888 = vrot.lane.b32.xlu0 %v12590_v18, %s14355_s13  ;;  %5757 = vst.msk [vmem:[#allocation6 + $0x6c] sm:$0x7] %vm5756_vm6, %v12566_v46  ;;  %6063 = vst.msk [vmem:[#allocation6 + $0x70] sm:$0x7] %vm5756_vm6, %v12606_v16  ;;  %v12624_v42 = vpack.c.bf16 %v6151_v25, %v6151_v25  ;;  %v12634_v18 = vpack.c.bf16 %v6231_v22, %v6231_v22  ;;  %v5930_v41 = vld [vmem:[#allocation3 + $0x50] sm:$0xff]  ;;  %v12625_v48 = vpack.c.bf16 %v6152_v61, %v6152_v61  ;;  %v6232_v52 = vld [vmem:[#allocation3 + $0x5b] sm:$0xff] }
 0x66d   : > { %6110 = vrot.lane.b32.xlu1 %v12610_v7, %s14352_s11  ;;  %v5767_v43 = vld [vmem:[#allocation3 + $0x4f] sm:$0x3f]  ;;  %v12595_v45 = vpack.c.bf16 %v5930_v41, %v5930_v41  ;;  %v6073_v44 = vld [vmem:[#allocation3 + $0x5a] sm:$0x3f]  ;;  %v12635_v16 = vpack.c.bf16 %v6232_v52, %v6232_v52 }
 0x66e   : > { %v12576_v55 = vpack.c.bf16 %v5767_v43, %v5767_v43  ;;  %v5849_v51 = vld [vmem:[#allocation3 + $0x50] sm:$0x3f]  ;;  %v12616_v46 = vpack.c.bf16 %v6073_v44, %v6073_v44  ;;  %v14089_v44 = vld [vmem:[#allocation6 + $0x20] ss:$12 sps:$4 sm:$0xff]  }
 0x66f   : > { %v12586_v57 = vpack.c.bf16 %v5849_v51, %v5849_v51  ;;  %v5684_v2 = vld [vmem:[%s17411_s5 + $0x40] sm:$0xff] }
 0x670   : > { %6188 = vrot.lane.b32.xlu0 %v12610_v7, %s14355_s13  ;;  %v12626_v7 = vpack.c.bf16 %v6153_v27, %v6153_v27  ;;  %v14088_v27 = vld [vmem:[#allocation6 + $0x8] ss:$12 sps:$4 sm:$0xff]  }
 0x671   : > { %5808 = vrot.lane.b32.xlu1 %v12572_v0, %s14352_s11  ;;  %v16099_v50 = vld [vmem:[#allocation6 + $0x68] ss:$12 sps:$4 sm:$0x7f]   ;;  %v5931_v0 = vld [vmem:[#allocation3 + $0x58] sm:$0x3f] }
 0x672   : > { %7534 = vst.msk [vmem:[#allocation6 + $0x74] sm:$0x7] %vm5756_vm6, %v12736_v5  ;;  %v12596_v63 = vpack.c.bf16 %v5931_v0, %v5931_v0 }
 0x674   : > { %6268 = vrot.lane.b32.xlu0 %v12629_v60, %s14357_s16  ;;  %v12636_v60 = vpack.c.bf16 %v6233_v62, %v6233_v62 }
 0x675   : > { %5890 = vrot.lane.b32.xlu1 %v12582_v39, %s14355_s13 }
 0x678   : > { %5970 = vrot.lane.b32.xlu0 %v12582_v39, %s14357_s16 }
 0x679   : > { %6190 = vrot.lane.b32.xlu1 %v12620_v49, %s14355_s13 }
 0x67c   : > { %6112 = vrot.lane.b32.xlu0 %v12620_v49, %s14352_s11  ;;  %v5676_v49 = vld [vmem:[%s17411_s5] sm:$0xff] }
 0x67d   : > { %6270 = vrot.lane.b32.xlu1 %v12630_v59, %s14357_s16  ;;  %v5677_v59 = vld [vmem:[%s17411_s5 + $0x8] sm:$0xff] }
 0x680   : > { %5810 = vrot.lane.b32.xlu0 %v12573_v3, %s14352_s11  ;;  %v5678_v3 = vld [vmem:[%s17411_s5 + $0x10] sm:$0xff] }
 0x681   : > { %5972 = vrot.lane.b32.xlu1 %v12592_v21, %s14357_s16 }
 0x684   : > { %5892 = vrot.lane.b32.xlu0 %v12592_v21, %s14355_s13  ;;  %v5681_v21 = vld [vmem:[%s17411_s5 + $0x28] sm:$0xff] }
 0x685   : > { %6114 = vrot.lane.b32.xlu1 %v12612_v12, %s14352_s11 }
 0x688   : > { %6192 = vrot.lane.b32.xlu0 %v12612_v12, %s14355_s13 }
 0x689   : > { %5812 = vrot.lane.b32.xlu1 %v12574_v10, %s14352_s11  ;;  %v5680_v10 = vld [vmem:[%s17411_s5 + $0x20] sm:$0xff] }
 0x68c   : > { %6272 = vrot.lane.b32.xlu0 %v12631_v14, %s14357_s16  ;;  %v5685_v14 = vld [vmem:[%s17411_s5 + $0x48] sm:$0x3f] }
 0x68d   : > { %5894 = vrot.lane.b32.xlu1 %v12584_v6, %s14355_s13 }
 0x690   : > { %5974 = vrot.lane.b32.xlu0 %v12584_v6, %s14357_s16  ;;  %v5682_v6 = vld [vmem:[%s17411_s5 + $0x30] sm:$0xff] }
 0x691   : > { %6194 = vrot.lane.b32.xlu1 %v12622_v19, %s14355_s13 }
 0x694   : > { %6116 = vrot.lane.b32.xlu0 %v12622_v19, %s14352_s11 }
 0x695   : > { %6274 = vrot.lane.b32.xlu1 %v12632_v24, %s14357_s16 }
 0x698   : > { %6196 = vrot.lane.b32.xlu0 %v12623_v34, %s14355_s13 }
 0x699   : > { %5976 = vrot.lane.b32.xlu1 %v12594_v29, %s14357_s16 }
 0x69c   : > { %6276 = vrot.lane.b32.xlu0 %v12633_v47, %s14357_s16 }
 0x69d   : > { %6118 = vrot.lane.b32.xlu1 %v12623_v34, %s14352_s11 }
 0x6a0   : > { %5814 = vrot.lane.b32.xlu0 %v12575_v40, %s14352_s11 }
 0x6a1   : > { %6198 = vrot.lane.b32.xlu1 %v12624_v42, %s14355_s13 }
 0x6a4   : > { %5896 = vrot.lane.b32.xlu0 %v12594_v29, %s14355_s13 }
 0x6a5   : > { %6278 = vrot.lane.b32.xlu1 %v12634_v18, %s14357_s16  ;;  %v14086_v18 = vld [vmem:[%s17407_s1 + $0xd8] sm:$0xff]  }
 0x6a8   : > { %5978 = vrot.lane.b32.xlu0 %v12595_v45, %s14357_s16  ;;  %v14087_v45 = vld [vmem:[%s17407_s1 + $0xe0] sm:$0xff]  }
 0x6a9   : > { %5816 = vrot.lane.b32.xlu1 %v12576_v55, %s14352_s11 }
 0x6ac   : > { %6120 = vrot.lane.b32.xlu0 %v12624_v42, %s14352_s11 }
 0x6ad   : > { %5898 = vrot.lane.b32.xlu1 %v12586_v57, %s14355_s13 }
 0x6b0   : > { %6200 = vrot.lane.b32.xlu0 %v12625_v48, %s14355_s13 }
 0x6b1   : > { %6202 = vrot.lane.b32.xlu1 %v12626_v7, %s14355_s13 }
 0x6b4   : > { %6280 = vrot.lane.b32.xlu0 %v12635_v16, %s14357_s16 }
 0x6b5   : > { %6122 = vrot.lane.b32.xlu1 %v12616_v46, %s14352_s11 }
 0x6b8   : > { %6806 = vperm.xlu0 %13915, %v5676_v49  }
 0x6b9   : > { %5980 = vrot.lane.b32.xlu1 %v12596_v63, %s14357_s16 }
 0x6ba   : > { %v5963_v39 = vpop.permute.xlu0 %5962 }
 0x6bb   : > { %v5801_v15 = vpop.permute.xlu1 %5800  ;;  %5993 = vst.msk [vmem:[#allocation6] sm:$0xf] %vm5992_vm10, %v5963_v39 }
 0x6bc   : > { %5830 = vst.msk [vmem:[#allocation6 + $0xc] sm:$0xf] %vm5828_vm8, %v5801_v15  ;;  %6821 = vperm.xlu0 %13915, %v5679_v30   ;;  %v14090_v15 = vld [vmem:[#allocation6 + $0x38] ss:$12 sps:$4 sm:$0xff]  }
 0x6bd   : > { %6282 = vrot.lane.b32.xlu1 %v12636_v60, %s14357_s16 }
 0x6be   : > { %v6105_v1 = vpop.permute.xlu0 %6104 }
 0x6bf   : > { %v5883_v56 = vpop.permute.xlu1 %5882  ;;  %6134 = vst.msk [vmem:[#allocation6 + $0x4] sm:$0xf] %vm5828_vm8, %v6105_v1  ;;  %v14091_v1 = vld [vmem:[#allocation6 + $0x50] ss:$12 sps:$4 sm:$0xff]  }
 0x6c0   : > { %5912 = vst.msk [vmem:[#allocation6 + $0xc] sm:$0xf] %vm5910_vm9, %v5883_v56  ;;  %6831 = vperm.xlu0 %13915, %v5681_v21  }
 0x6c1   : > { %6811 = vperm.xlu1 %13916, %v5677_v59  }
 0x6c2   : > { %v5803_v12 = vpop.permute.xlu0 %5802 }
 0x6c3   : > { %v5965_v4 = vpop.permute.xlu1 %5964  ;;  %5831 = vst.msk [vmem:[#allocation6 + $0x18] sm:$0xf] %vm5828_vm8, %v5803_v12 }
 0x6c4   : > { %5994 = vst.msk [vmem:[#allocation6 + $0xc] sm:$0xf] %vm5992_vm10, %v5965_v4  ;;  %6841 = vperm.xlu0 %13915, %v5683_v9  }
 0x6c5   : > { %6816 = vperm.xlu1 %13916, %v5678_v3  }
 0x6c6   : > { %v5885_v17 = vpop.permute.xlu0 %5884 }
 0x6c7   : > { %v6107_v13 = vpop.permute.xlu1 %6106  ;;  %5913 = vst.msk [vmem:[#allocation6 + $0x18] sm:$0xf] %vm5910_vm9, %v5885_v17 }
 0x6c8   : > { %6135 = vst.msk [vmem:[#allocation6 + $0x10] sm:$0xf] %vm5828_vm8, %v6107_v13  ;;  %6851 = vperm.xlu0 %13915, %v5685_v14  }
 0x6c9   : > { %6826 = vperm.xlu1 %13916, %v5680_v10  }
 0x6ca   : > { %v6185_v53 = vpop.permute.xlu0 %6184 }
 0x6cb   : > { %v5805_v19 = vpop.permute.xlu1 %5804  ;;  %6214 = vst.msk [vmem:[#allocation6 + $0x4] sm:$0xf] %vm5910_vm9, %v6185_v53 }
 0x6cc   : > { %5832 = vst.msk [vmem:[#allocation6 + $0x24] sm:$0xf] %vm5828_vm8, %v5805_v19 }
 0x6cd   : > { %6836 = vperm.xlu1 %13916, %v5682_v6  }
 0x6ce   : > { %v6265_v38 = vpop.permute.xlu0 %6264 }
 0x6cf   : > { %v5887_v5 = vpop.permute.xlu1 %5886  ;;  %6294 = vst.msk [vmem:[#allocation6 + $0x4] sm:$0xf] %vm5992_vm10, %v6265_v38 }
 0x6d0   : > { %5914 = vst.msk [vmem:[#allocation6 + $0x24] sm:$0xf] %vm5910_vm9, %v5887_v5 }
 0x6d1   : > { %6846 = vperm.xlu1 %13916, %v5684_v2  }
 0x6d2   : > { %v5967_v24 = vpop.permute.xlu0 %5966 }
 0x6d3   : > { %v6187_v26 = vpop.permute.xlu1 %6186  ;;  %5995 = vst.msk [vmem:[#allocation6 + $0x18] sm:$0xf] %vm5992_vm10, %v5967_v24 }
 0x6d4   : > { %6215 = vst.msk [vmem:[#allocation6 + $0x10] sm:$0xf] %vm5910_vm9, %v6187_v26 }
 0x6d6   : > { %v6109_v29 = vpop.permute.xlu0 %6108  ;;  %v6364_v47 = vld [vmem:[#allocation6] sm:$0xff] }
 0x6d7   : > { %v6267_v37 = vpop.permute.xlu1 %6266  ;;  %6136 = vst.msk [vmem:[#allocation6 + $0x1c] sm:$0xf] %vm5828_vm8, %v6109_v29 }
 0x6d8   : > { %6295 = vst.msk [vmem:[#allocation6 + $0x10] sm:$0xf] %vm5992_vm10, %v6267_v37 }
 0x6da   : > { %v5807_v33 = vpop.permute.xlu0 %5806 }
 0x6db   : > { %v5969_v34 = vpop.permute.xlu1 %5968  ;;  %5833 = vst.msk [vmem:[#allocation6 + $0x30] sm:$0xf] %vm5828_vm8, %v5807_v33 }
 0x6dc   : > { %5996 = vst.msk [vmem:[#allocation6 + $0x24] sm:$0xf] %vm5992_vm10, %v5969_v34 }
 0x6de   : > { %v5889_v25 = vpop.permute.xlu0 %5888 }
 0x6df   : > { %v6366_v35 = vld [vmem:[#allocation6 + $0xc] sm:$0xff]  ;;  %v6111_v40 = vpop.permute.xlu1 %6110  ;;  %5915 = vst.msk [vmem:[#allocation6 + $0x30] sm:$0xf] %vm5910_vm9, %v5889_v25 }
 0x6e0   : > { %6137 = vst.msk [vmem:[#allocation6 + $0x28] sm:$0xf] %vm5828_vm8, %v6111_v40  ;;  %v11727_v42 = vcombine.high %v6364_v47, %v6366_v35  ;;  %v11726_v22 = vcombine.low %v6364_v47, %v6366_v35 }
 0x6e2   : > { %6650 = vmatprep.mubr.bf16.mxu0 %v11727_v42  ;;  %v6189_v41 = vpop.permute.xlu0 %6188 }
 0x6e3   : > { %6651 = vmatmul.mubr.bf16.vlgmr.msra.gmra.mrb[168].mxu0 %v11726_v22  ;;  %v5809_v43 = vpop.permute.xlu1 %5808  ;;  %6216 = vst.msk [vmem:[#allocation6 + $0x1c] sm:$0xf] %vm5910_vm9, %v6189_v41 }
 0x6e4   : > { %5834 = vst.msk [vmem:[#allocation6 + $0x3c] sm:$0xf] %vm5828_vm8, %v5809_v43  ;;  %13654 = vmatpush3.bf16.msra.mxu0 %v14086_v18  ;;  %13657 = vmatprep.mubr.msk.bf16.mxu0 %vm14359_vm4, %v14350_v36 }
 0x6e5   : > { %13655 = vmatprep.subr.bf16.mxu0 %v14350_v36 }
 0x6e6   : > { %v6269_v55 = vpop.permute.xlu0 %6268 }
 0x6e7   : > { %v5891_v51 = vpop.permute.xlu1 %5890  ;;  %6296 = vst.msk [vmem:[#allocation6 + $0x1c] sm:$0xf] %vm5992_vm10, %v6269_v55 }
 0x6e8   : > { %5916 = vst.msk [vmem:[#allocation6 + $0x3c] sm:$0xf] %vm5910_vm9, %v5891_v51  ;;  %13656 = vmatpush3.bf16.msra.mxu0 %v14087_v45 }
 0x6e9   : > { %13677 = vmatprep.subr.bf16.mxu0 %v14350_v36 }
 0x6ea   : > { %v5971_v57 = vpop.permute.xlu0 %5970 }
 0x6eb   : > { %13658 = vmatmul.mubr.msk.bf16.vlgmr.msra.gmra.mrb[172].mxu0 %vm257_vm0, %v14088_v27  ;;  %v6191_v61 = vpop.permute.xlu1 %6190  ;;  %5997 = vst.msk [vmem:[#allocation6 + $0x30] sm:$0xf] %vm5992_vm10, %v5971_v57  ;;  %v6935_v27 = vld [vmem:[#allocation3 + $0x7] sm:$0xff] }
 0x6ec   : > { %6217 = vst.msk [vmem:[#allocation6 + $0x28] sm:$0xf] %vm5910_vm9, %v6191_v61  ;;  %13661 = vmatprep.mubr.msk.bf16.mxu0 %vm14359_vm4, %v14350_v36  ;;  %v12657_v57 = vpack.c.bf16 %v6935_v27, %v6935_v27  ;;  %v7324_v61 = vld [vmem:[#allocation3 + $0x62] sm:$0x3f] }
 0x6ee   : > { %v6113_v48 = vpop.permute.xlu0 %6112  ;;  %v6368_v16 = vld [vmem:[#allocation6 + $0x18] sm:$0xff]  ;;  %6975 = vrot.lane.b32.xlu1 %v12657_v57, %s14352_s11 }
 0x6ef   : > { %v6271_v7 = vpop.permute.xlu1 %6270  ;;  %6138 = vst.msk [vmem:[#allocation6 + $0x34] sm:$0xf] %vm5828_vm8, %v6113_v48  ;;  %v12716_v48 = vpack.c.bf16 %v7324_v61, %v7324_v61 }
 0x6f0   : > { %6297 = vst.msk [vmem:[#allocation6 + $0x28] sm:$0xf] %vm5992_vm10, %v6271_v7  ;;  %v7015_v7 = vld [vmem:[#allocation3 + $0x8] sm:$0xff] }
 0x6f1   : > { %7373 = vrot.lane.b32.xlu0 %v12716_v48, %s14355_s13 }
 0x6f2   : > { %v5811_v46 = vpop.permute.xlu0 %5810 }
 0x6f3   : > { %13662 = vmatmul.mubr.msk.bf16.gmra.mrb[176].mxu0 %vm257_vm0, %v14089_v44  ;;  %v5973_v52 = vpop.permute.xlu1 %5972  ;;  %5835 = vst.msk [vmem:[#allocation6 + $0x48] sm:$0xf] %vm5828_vm8, %v5811_v46  ;;  %v12667_v44 = vpack.c.bf16 %v7015_v7, %v7015_v7  ;;  %v14094_v46 = vld [vmem:[%s17407_s1 + $0xe0] sm:$0xff]  }
 0x6f4   : > { %5998 = vst.msk [vmem:[#allocation6 + $0x3c] sm:$0xf] %vm5992_vm10, %v5973_v52  ;;  %13665 = vmatprep.mubr.msk.bf16.mxu0 %vm14359_vm4, %v14350_v36  ;;  %v14093_v52 = vld [vmem:[%s17407_s1 + $0xd8] sm:$0xff]  }
 0x6f5   : > { %7055 = vrot.lane.b32.xlu1 %v12667_v44, %s14355_s13  ;;  %13678 = vmatpush3.bf16.msra.mxu0 %v14093_v52 }
 0x6f6   : > { %v5893_v62 = vpop.permute.xlu0 %5892  ;;  %13679 = vmatprep.subr.bf16.mxu0 %v14350_v36 }
 0x6f7   : > { %v6370_v0 = vld [vmem:[#allocation6 + $0x24] sm:$0xff]  ;;  %v6115_v63 = vpop.permute.xlu1 %6114  ;;  %5917 = vst.msk [vmem:[#allocation6 + $0x48] sm:$0xf] %vm5910_vm9, %v5893_v62 }
 0x6f8   : > { %6139 = vst.msk [vmem:[#allocation6 + $0x40] sm:$0xf] %vm5828_vm8, %v6115_v63  ;;  %v11730_v60 = vcombine.high %v6368_v16, %v6370_v0  ;;  %v11729_v39 = vcombine.low %v6368_v16, %v6370_v0 }
 0x6f9   : > { %13680 = vmatpush3.bf16.msra.mxu0 %v14094_v46 }
 0x6fa   : > { %6658 = vmatprep.mubr.bf16.mxu1 %v11730_v60  ;;  %v6193_v49 = vpop.permute.xlu0 %6192 }
 0x6fb   : > { %6659 = vmatmul.mubr.bf16.vlgmr.msra.gmra.mrb[152].mxu1 %v11729_v39  ;;  %v5813_v30 = vpop.permute.xlu1 %5812  ;;  %13666 = vmatmul.mubr.msk.bf16.gmra.mrb[180].mxu0 %vm257_vm0, %v14090_v15  ;;  %6218 = vst.msk [vmem:[#allocation6 + $0x34] sm:$0xf] %vm5910_vm9, %v6193_v49 }
 0x6fc   : > { %5836 = vst.msk [vmem:[#allocation6 + $0x54] sm:$0xf] %vm5828_vm8, %v5813_v30  ;;  %13669 = vmatprep.mubr.msk.bf16.mxu0 %vm14359_vm4, %v14350_v36 }
 0x6fe   : > { %v6273_v59 = vpop.permute.xlu0 %6272 }
 0x6ff   : > { %v5895_v56 = vpop.permute.xlu1 %5894  ;;  %6298 = vst.msk [vmem:[#allocation6 + $0x34] sm:$0xf] %vm5992_vm10, %v6273_v59 }
 0x700   : > { %5918 = vst.msk [vmem:[#allocation6 + $0x54] sm:$0xf] %vm5910_vm9, %v5895_v56  ;;  %v6875_v56 = vld [vmem:[#allocation3 + $0x6] sm:$0xff] }
 0x702   : > { %v5975_v21 = vpop.permute.xlu0 %5974 }
 0x703   : > { %v6195_v3 = vpop.permute.xlu1 %6194  ;;  %13670 = vmatmul.mubr.msk.bf16.gmra.mrb[184].mxu0 %vm257_vm0, %v14091_v1  ;;  %5999 = vst.msk [vmem:[#allocation6 + $0x48] sm:$0xf] %vm5992_vm10, %v5975_v21  ;;  %v12647_v1 = vpack.c.bf16 %v6875_v56, %v6875_v56 }
 0x704   : > { %6219 = vst.msk [vmem:[#allocation6 + $0x40] sm:$0xf] %vm5910_vm9, %v6195_v3  ;;  %13673 = vmatprep.mubr.msk.bf16.mxu0 %vm14359_vm4, %v14350_v36 }
 0x705   : > { %6925 = vst.msk [vmem:[#allocation6] sm:$0xf] %vm5746_vm7, %v12647_v1 }
 0x706   : > { %v6117_v12 = vpop.permute.xlu0 %6116  ;;  %v6372_v17 = vld [vmem:[#allocation6 + $0x30] sm:$0xff] }
 0x707   : > { %v6275_v4 = vpop.permute.xlu1 %6274  ;;  %6140 = vst.msk [vmem:[#allocation6 + $0x4c] sm:$0xf] %vm5828_vm8, %v6117_v12 }
 0x708   : > { %6299 = vst.msk [vmem:[#allocation6 + $0x40] sm:$0xf] %vm5992_vm10, %v6275_v4  ;;  %v16260_v4 = vld [vmem:[%s17409_s3 + $0x4] ss:$0 sm:$0xff] }
 0x70a   : > { %v6197_v10 = vpop.permute.xlu0 %6196 }
 0x70b   : > { %v5977_v9 = vpop.permute.xlu1 %5976  ;;  %13674 = vmatmul.mubr.msk.bf16.gmra.mrb[188].mxu0 %vm257_vm0, %v16099_v50  ;;  %6220 = vst.msk [vmem:[#allocation6 + $0x4c] sm:$0xf] %vm5910_vm9, %v6197_v10  ;;  %v16265_v10 = vld [vmem:[%s17409_s3 + $0x5] ss:$0 sm:$0xff] }
 0x70c   : > { %6000 = vst.msk [vmem:[#allocation6 + $0x54] sm:$0xf] %vm5992_vm10, %v5977_v9  ;;  %13681 = vmatprep.mubr.msk.bf16.mxu0 %vm14359_vm4, %v14350_v36 }
 0x70e   : > { %v6277_v14 = vpop.permute.xlu0 %6276 }
 0x70f   : > { %v6374_v13 = vld [vmem:[#allocation6 + $0x3c] sm:$0xff]  ;;  %v6119_v6 = vpop.permute.xlu1 %6118  ;;  %6300 = vst.msk [vmem:[#allocation6 + $0x4c] sm:$0xf] %vm5992_vm10, %v6277_v14 }
 0x710   : > { %6141 = vst.msk [vmem:[#allocation6 + $0x58] sm:$0xf] %vm5828_vm8, %v6119_v6  ;;  %v11733_v53 = vcombine.high %v6372_v17, %v6374_v13  ;;  %v11732_v19 = vcombine.low %v6372_v17, %v6374_v13 }
 0x712   : > { %6666 = vmatprep.mubr.bf16.mxu1 %v11733_v53  ;;  %v5815_v50 = vpop.permute.xlu0 %5814 }
 0x713   : > { %6667 = vmatmul.mubr.bf16.gmra.mrb[156].mxu1 %v11732_v19  ;;  %v6199_v2 = vpop.permute.xlu1 %6198  ;;  %5837 = vst.msk [vmem:[#allocation6 + $0x60] sm:$0xf] %vm5828_vm8, %v5815_v50 }
 0x714   : > { %6221 = vst.msk [vmem:[#allocation6 + $0x58] sm:$0xf] %vm5910_vm9, %v6199_v2 }
 0x716   : > { %v5897_v38 = vpop.permute.xlu0 %5896  ;;  %v6376_v37 = vld [vmem:[#allocation6 + $0x48] sm:$0xff] }
 0x717   : > { %v6279_v5 = vpop.permute.xlu1 %6278  ;;  %5919 = vst.msk [vmem:[#allocation6 + $0x60] sm:$0xf] %vm5910_vm9, %v5897_v38 }
 0x718   : > { %6301 = vst.msk [vmem:[#allocation6 + $0x58] sm:$0xf] %vm5992_vm10, %v6279_v5 }
 0x71a   : > { %v5979_v24 = vpop.permute.xlu0 %5978 }
 0x71b   : > { %v5817_v26 = vpop.permute.xlu1 %5816  ;;  %6001 = vst.msk [vmem:[#allocation6 + $0x60] sm:$0xf] %vm5992_vm10, %v5979_v24 }
 0x71c   : > { %5839 = vst.msk [vmem:[#allocation6 + $0x6c] sm:$0x7] %vm5838_vm11, %v5817_v26 }
 0x71e   : > { %v6121_v33 = vpop.permute.xlu0 %6120 }
 0x71f   : > { %v6378_v29 = vld [vmem:[#allocation6 + $0x54] sm:$0xff]  ;;  %v5899_v34 = vpop.permute.xlu1 %5898  ;;  %6142 = vst.msk [vmem:[#allocation6 + $0x64] sm:$0xf] %vm5828_vm8, %v6121_v33 }
 0x720   : > { %5921 = vst.msk [vmem:[#allocation6 + $0x6c] sm:$0x7] %vm5920_vm12, %v5899_v34  ;;  %v11736_v47 = vcombine.high %v6376_v37, %v6378_v29  ;;  %v11735_v35 = vcombine.low %v6376_v37, %v6378_v29 }
 0x722   : > { %6674 = vmatprep.mubr.bf16.mxu1 %v11736_v47  ;;  %v6201_v40 = vpop.permute.xlu0 %6200 }
 0x723   : > { %6675 = vmatmul.mubr.bf16.gmra.mrb[160].mxu1 %v11735_v35  ;;  %v6203_v25 = vpop.permute.xlu1 %6202  ;;  %6222 = vst.msk [vmem:[#allocation6 + $0x64] sm:$0xf] %vm5910_vm9, %v6201_v40 }
 0x726   : > { %v6281_v22 = vpop.permute.xlu0 %6280 }
 0x727   : > { %v6123_v42 = vpop.permute.xlu1 %6122  ;;  %6302 = vst.msk [vmem:[#allocation6 + $0x64] sm:$0xf] %vm5992_vm10, %v6281_v22 }
 0x728   : > { %6143 = vst.msk [vmem:[#allocation6 + $0x70] sm:$0x7] %vm5838_vm11, %v6123_v42 }
 0x729   : > { %6223 = vst.msk [vmem:[#allocation6 + $0x70] sm:$0x7] %vm5920_vm12, %v6203_v25 }
 0x72b   : > { %v5981_v18 = vpop.permute.xlu1 %5980 }
 0x72c   : > { %6003 = vst.msk [vmem:[#allocation6 + $0x6c] sm:$0x7] %vm6002_vm13, %v5981_v18 }
 0x72e   : > { %v6380_v43 = vld [vmem:[#allocation6 + $0x60] sm:$0xff] }
 0x72f   : > { %v6283_v41 = vpop.permute.xlu1 %6282 }
 0x730   : > { %6303 = vst.msk [vmem:[#allocation6 + $0x70] sm:$0x7] %vm6002_vm13, %v6283_v41 }
 0x737   : > { %v6382_v45 = vld [vmem:[#allocation6 + $0x6c] sm:$0x77]  ;;  %v16273_v24 = vpop.permute.xlu0 %6806 }
 0x738   : > { %v11739_v55 = vcombine.high %v6380_v43, %v6382_v45  ;;  %v11738_v51 = vcombine.low %v6380_v43, %v6382_v45 }
 0x73a   : > { %6682 = vmatprep.mubr.bf16.mxu1 %v11739_v55 }
 0x73b   : > { %6683 = vmatmul.mubr.bf16.gmra.mrb[164].mxu1 %v11738_v51 }
 0x740   : > { %v16246_v16 = vpop.permute.xlu1 %6811 }
 0x744   : > { %v16248_v0 = vpop.permute.xlu1 %6816 }
 0x748   : > { %v16250_v62 = vpop.permute.xlu1 %6826 }
 0x74c   : > { %v16252_v60 = vpop.permute.xlu1 %6836 }
 0x750   : > { %v16254_v21 = vpop.permute.xlu1 %6846 }
 0x760   : > { %v6976_v13 = vpop.permute.xlu1 %6975 }
 0x761   : > { %7005 = vst.msk [vmem:[#allocation6] sm:$0xf] %vm5828_vm8, %v6976_v13 }
 0x767   : > { %v7056_v2 = vpop.permute.xlu1 %7055 }
 0x768   : > { %7085 = vst.msk [vmem:[#allocation6] sm:$0xf] %vm5910_vm9, %v7056_v2 }
 0x7b6   : > { %v13200_v63 = vpop.f32.mrb[168].mxu0 }
 0x7b7   : > { %v13201_v39 = vpop.f32.mrb[169].mxu0 }
 0x7b8   : > { %v13202_v15 = vadd.f32 %v13201_v39, %v13200_v63  ;;  %v13203_v49 = vpop.f32.mrb[170].mxu0 }
 0x7b9   : > { %v13204_v30 = vpop.f32.mrb[171].mxu0 }
 0x7ba   : > { %v13205_v59 = vadd.f32 %v13204_v30, %v13203_v49  ;;  %v14100_v49 = vld [vmem:[%s17407_s1 + $0x98] sm:$0xff]  }
 0x7bb   : > { %v14101_v30 = vld [vmem:[%s17407_s1 + $0x58] sm:$0xff]   ;;  %13237 = vmatprep.subr.bf16.mxu1 %v14100_v49 }
 0x7bc   : > { %13238 = vmatpush3.bf16.msra.mxu1 %v14101_v30 }
 0x7be   : > { %v6725_v3 = vpop.f32.mrb[172].mxu0 }
 0x7bf   : > { %v6726_v12 = vadd.f32 %v13202_v15, %v6725_v3  ;;  %v13659_v9 = vpop.f32.mrb[173].mxu0  ;;  %v14102_v3 = vld [vmem:[%s17407_s1 + $0xa0] sm:$0xff]  }
 0x7c0   : > { %v6728_v17 = vpop.f32.mrb[174].mxu0  ;;  %13239 = vmatprep.subr.bf16.mxu1 %v14102_v3  ;;  %v14109_v3 = vld [vmem:[%s17407_s1 + $0x78] sm:$0xff]  }
 0x7c1   : > { %v6770_v14 = vmul.f32 %v16260_v4, %v6726_v12  ;;  %v6729_v6 = vadd.f32 %v13205_v59, %v6728_v17  ;;  %v13660_v53 = vpop.f32.mrb[175].mxu0 }
 0x7c3   : > { %v6784_v19 = vadd.f32 %v16265_v10, %v6770_v14  ;;  %v6771_v50 = vmul.f32 %v16260_v4, %v6729_v6 }
 0x7c5   : > { %v6794_v38 = vmax.f32 %v6784_v19, 0.0  ;;  %v6785_v5 = vadd.f32 %v16265_v10, %v6771_v50 }
 0x7c6   : > { %v6733_v26 = vpop.f32.mrb[176].mxu0 }
 0x7c7   : > { %v6795_v37 = vmax.f32 %v6785_v5, 0.0  ;;  %v6854_v29 = vmul.f32 %v16273_v24, %v6794_v38  ;;  %v13663_v34 = vpop.f32.mrb[177].mxu0 }
 0x7c8   : > { %v6736_v33 = vpop.f32.mrb[178].mxu0  ;;  %v14103_v34 = vld [vmem:[%s17407_s1 + $0x60] sm:$0xff]  }
 0x7c9   : > { %6864 = vst.msk [vmem:[#allocation3 + $0x11] sm:$0xff] %vm257_vm0, %v6854_v29  ;;  %v6855_v47 = vmul.f32 %v16246_v16, %v6795_v37  ;;  %v13664_v35 = vpop.f32.mrb[179].mxu0  ;;  %13240 = vmatpush3.bf16.msra.mxu1 %v14103_v34 }
 0x7cb   : > { %6865 = vst.msk [vmem:[#allocation3 + $0x19] sm:$0xff] %vm257_vm0, %v6855_v47 }
 0x7ce   : > { %v13206_v25 = vpop.f32.mrb[152].mxu1  ;;  %v16279_v40 = vpop.f32.mrb[180].mxu0 }
 0x7cf   : > { %v13207_v42 = vpop.f32.mrb[153].mxu1  ;;  %v13667_v22 = vpop.f32.mrb[181].mxu0 }
 0x7d0   : > { %v13208_v18 = vadd.f32 %v13207_v42, %v13206_v25  ;;  %v13209_v41 = vpop.f32.mrb[154].mxu1  ;;  %v16281_v43 = vpop.f32.mrb[182].mxu0  ;;  %v7095_v45 = vld [vmem:[#allocation3 + $0x10] sm:$0xff]  ;;  %v14105_v22 = vld [vmem:[%s17407_s1 + $0x68] sm:$0xff]  }
 0x7d1   : > { %v6936_v55 = vld [vmem:[#allocation3 + $0xf] sm:$0xff]  ;;  %v13210_v27 = vpop.f32.mrb[155].mxu1  ;;  %v13668_v57 = vpop.f32.mrb[183].mxu0  ;;  %v12677_v61 = vpack.c.bf16 %v7095_v45, %v7095_v45 }
 0x7d2   : > { %v6876_v51 = vld [vmem:[#allocation3 + $0xe] sm:$0xff]  ;;  %v12658_v7 = vpack.c.bf16 %v6936_v55, %v6936_v55  ;;  %v6734_v52 = vadd.f32 %v13208_v18, %v6733_v26  ;;  %v13211_v46 = vadd.f32 %v13210_v27, %v13209_v41  ;;  %v6877_v15 = vld [vmem:[#allocation3 + $0x16] sm:$0xff]  ;;  %v16315_v25 = vpop.permute.xlu0 %6821  ;;  %v14106_v18 = vld [vmem:[%s17407_s1 + $0xb0] sm:$0xff]  }
 0x7d3   : > { %v12648_v48 = vpack.c.bf16 %v6876_v51, %v6876_v51  ;;  %v7175_v44 = vld [vmem:[#allocation3 + $0x11] sm:$0xff]  ;;  %7135 = vrot.lane.b32.xlu1 %v12677_v61, %s14357_s16  ;;  %v12649_v1 = vpack.c.bf16 %v6877_v15, %v6877_v15  ;;  %v7176_v12 = vld [vmem:[#allocation3 + $0x19] sm:$0xff]  ;;  %v14108_v57 = vld [vmem:[%s17407_s1 + $0xb8] sm:$0xff]  }
 0x7d4   : > { %v7235_v63 = vld [vmem:[#allocation3 + $0x12] sm:$0xff]  ;;  %v12687_v39 = vpack.c.bf16 %v7175_v44, %v7175_v44  ;;  %6977 = vrot.lane.b32.xlu0 %v12658_v7, %s14352_s11  ;;  %v6772_v59 = vmul.f32 %v16260_v4, %v6734_v52  ;;  %v6737_v56 = vadd.f32 %v13211_v46, %v6736_v33  ;;  %v12688_v17 = vpack.c.bf16 %v7176_v12, %v7176_v12  ;;  %v14107_v27 = vld [vmem:[%s17407_s1 + $0x70] sm:$0xff]  }
 0x7d5   : > { %6926 = vst.msk [vmem:[#allocation6 + $0xc] sm:$0xf] %vm5746_vm7, %v12648_v48  ;;  %v12697_v9 = vpack.c.bf16 %v7235_v63, %v7235_v63  ;;  %v6937_v53 = vld [vmem:[#allocation3 + $0x17] sm:$0xff]  ;;  %6927 = vst.msk [vmem:[#allocation6 + $0x18] sm:$0xf] %vm5746_vm7, %v12649_v1 }
 0x7d6   : > { %7225 = vst.msk [vmem:[#allocation6 + $0x4] sm:$0xf] %vm5746_vm7, %v12687_v39  ;;  %v6773_v13 = vmul.f32 %v16260_v4, %v6737_v56  ;;  %v16298_v14 = vpop.f32.mrb[184].mxu0  ;;  %v6786_v6 = vadd.f32 %v16265_v10, %v6772_v59  ;;  %v7096_v19 = vld [vmem:[#allocation3 + $0x18] sm:$0xff]  ;;  %7226 = vst.msk [vmem:[#allocation6 + $0x10] sm:$0xf] %vm5746_vm7, %v12688_v17  ;;  %v12659_v37 = vpack.c.bf16 %v6937_v53, %v6937_v53 }
 0x7d7   : > { %v13671_v50 = vpop.f32.mrb[185].mxu0  ;;  %7275 = vrot.lane.b32.xlu1 %v12697_v9, %s14352_s11  ;;  %v12678_v29 = vpack.c.bf16 %v7096_v19, %v7096_v19  ;;  %v14104_v33 = vld [vmem:[%s17407_s1 + $0xa8] sm:$0xff]   ;;  %v14110_v12 = vld [vmem:[%s17407_s1 + $0xc0] sm:$0xff]  }
 0x7d8   : > { %7057 = vrot.lane.b32.xlu0 %v12677_v61, %s14355_s13  ;;  %v16305_v2 = vpop.f32.mrb[186].mxu0  ;;  %v6796_v38 = vmax.f32 %v6786_v6, 0.0  ;;  %v6787_v5 = vadd.f32 %v16265_v10, %v6773_v13  ;;  %13241 = vmatprep.subr.bf16.mxu1 %v14104_v33  ;;  %v14112_v33 = vld [vmem:[%s17407_s1 + $0xc8] sm:$0xff]  }
 0x7d9   : > { %v13672_v26 = vpop.f32.mrb[187].mxu0  ;;  %13242 = vmatpush3.bf16.msra.mxu1 %v14105_v22  ;;  %v14113_v22 = vld [vmem:[%s17407_s1 + $0x88] sm:$0xff]  }
 0x7da   : > { %v6856_v47 = vmul.f32 %v16248_v0, %v6796_v38  ;;  %v6797_v35 = vmax.f32 %v6787_v5, 0.0  ;;  %13243 = vmatprep.subr.bf16.mxu1 %v14106_v18  ;;  %v14111_v26 = vld [vmem:[%s17407_s1 + $0x80] sm:$0xff]  }
 0x7db   : > { %6979 = vrot.lane.b32.xlu1 %v12659_v37, %s14352_s11 }
 0x7dc   : > { %7137 = vrot.lane.b32.xlu0 %v12678_v29, %s14357_s16  ;;  %6866 = vst.msk [vmem:[#allocation3 + $0x21] sm:$0xff] %vm257_vm0, %v6856_v47  ;;  %v6857_v42 = vmul.f32 %v16315_v25, %v6797_v35 }
 0x7dd   : > { %13244 = vmatpush3.bf16.msra.mxu1 %v14107_v27 }
 0x7de   : > { %6867 = vst.msk [vmem:[#allocation3 + $0x29] sm:$0xff] %vm257_vm0, %v6857_v42  ;;  %v16328_v41 = vpop.f32.mrb[188].mxu0  ;;  %13245 = vmatprep.subr.bf16.mxu1 %v14108_v57 }
 0x7df   : > { %v13675_v45 = vpop.f32.mrb[189].mxu0  ;;  %7059 = vrot.lane.b32.xlu1 %v12678_v29, %s14355_s13 }
 0x7e0   : > { %v16331_v55 = vpop.f32.mrb[190].mxu0 }
 0x7e1   : > { %v13676_v51 = vpop.f32.mrb[191].mxu0  ;;  %13246 = vmatpush3.bf16.msra.mxu1 %v14109_v3 }
 0x7e2   : > { %13247 = vmatprep.subr.bf16.mxu1 %v14110_v12 }
 0x7e3   : > { %v7315_v61 = vld [vmem:[#allocation3 + $0x1a] sm:$0xff] }
 0x7e4   : > { %v12707_v7 = vpack.c.bf16 %v7315_v61, %v7315_v61  ;;  %v7475_v48 = vld [vmem:[#allocation3 + $0x1c] sm:$0xff] }
 0x7e5   : > { %v6878_v44 = vld [vmem:[#allocation3 + $0x1e] sm:$0xff]  ;;  %v12727_v39 = vpack.c.bf16 %v7475_v48, %v7475_v48  ;;  %v6879_v9 = vld [vmem:[#allocation3 + $0x26] sm:$0xff]  ;;  %13248 = vmatpush3.bf16.msra.mxu1 %v14111_v26 }
 0x7e6   : > { %v7395_v52 = vld [vmem:[#allocation3 + $0x1b] sm:$0xff]  ;;  %v7476_v63 = vld [vmem:[#allocation3 + $0x24] sm:$0xff]  ;;  %v12650_v15 = vpack.c.bf16 %v6878_v44, %v6878_v44  ;;  %v13212_v49 = vpop.f32.mrb[156].mxu1  ;;  %7355 = vrot.lane.b32.xlu1 %v12707_v7, %s14355_s13  ;;  %7277 = vrot.lane.b32.xlu0 %v12707_v7, %s14352_s11  ;;  %v12651_v19 = vpack.c.bf16 %v6879_v9, %v6879_v9 }
 0x7e7   : > { %v6938_v46 = vld [vmem:[#allocation3 + $0x1f] sm:$0xff]  ;;  %v12728_v30 = vpack.c.bf16 %v7476_v63, %v7476_v63  ;;  %v13213_v56 = vpop.f32.mrb[157].mxu1  ;;  %7525 = vst.msk [vmem:[#allocation6 + $0x8] sm:$0xf] %vm5746_vm7, %v12727_v39  ;;  %v12717_v6 = vpack.c.bf16 %v7395_v52, %v7395_v52  ;;  %v7178_v50 = vld [vmem:[#allocation3 + $0x29] sm:$0xff]  ;;  %13249 = vmatprep.subr.bf16.mxu1 %v14112_v33  ;;  %v16382_v63 = vpop.permute.xlu0 %6831 }
 0x7e8   : > { %v7177_v59 = vld [vmem:[#allocation3 + $0x21] sm:$0xff]  ;;  %6928 = vst.msk [vmem:[#allocation6 + $0x24] sm:$0xf] %vm5746_vm7, %v12650_v15  ;;  %v13214_v17 = vadd.f32 %v13213_v56, %v13212_v49  ;;  %v13215_v13 = vpop.f32.mrb[158].mxu1  ;;  %v12660_v53 = vpack.c.bf16 %v6938_v46, %v6938_v46  ;;  %v12690_v37 = vpack.c.bf16 %v7178_v50, %v7178_v50  ;;  %6929 = vst.msk [vmem:[#allocation6 + $0x30] sm:$0xf] %vm5746_vm7, %v12651_v19 }
 0x7e9   : > { %v12689_v1 = vpack.c.bf16 %v7177_v59, %v7177_v59  ;;  %7526 = vst.msk [vmem:[#allocation6 + $0x14] sm:$0xf] %vm5746_vm7, %v12728_v30  ;;  %v13216_v38 = vpop.f32.mrb[159].mxu1  ;;  %v7097_v5 = vld [vmem:[#allocation3 + $0x20] sm:$0xff]  ;;  %13250 = vmatpush3.bf16.msra.mxu1 %v14113_v22  ;;  %v7019_v30 = vld [vmem:[#allocation3 + $0x28] sm:$0xff] }
 0x7ea   : > { %v6742_v29 = vadd.f32 %v13214_v17, %v16279_v40  ;;  %v13217_v34 = vadd.f32 %v13216_v38, %v13215_v13  ;;  %7435 = vrot.lane.b32.xlu1 %v12717_v6, %s14357_s16  ;;  %6981 = vrot.lane.b32.xlu0 %v12660_v53, %s14352_s11  ;;  %7228 = vst.msk [vmem:[#allocation6 + $0x28] sm:$0xf] %vm5746_vm7, %v12690_v37  ;;  %v7237_v40 = vld [vmem:[#allocation3 + $0x22] sm:$0xff] }
 0x7eb   : > { %7227 = vst.msk [vmem:[#allocation6 + $0x1c] sm:$0xf] %vm5746_vm7, %v12689_v1  ;;  %v12679_v42 = vpack.c.bf16 %v7097_v5, %v7097_v5  ;;  %v12699_v57 = vpack.c.bf16 %v7237_v40, %v7237_v40  ;;  %v6939_v7 = vld [vmem:[#allocation3 + $0x27] sm:$0xff]  ;;  %v12671_v12 = vpack.c.bf16 %v7019_v30, %v7019_v30 }
 0x7ec   : > { %v6774_v47 = vmul.f32 %v16260_v4, %v6742_v29  ;;  %v6745_v35 = vadd.f32 %v13217_v34, %v16281_v43  ;;  %v14114_v43 = vld [vmem:[%s17407_s1 + $0xd0] sm:$0xff]   ;;  %v12661_v15 = vpack.c.bf16 %v6939_v7, %v6939_v7 }
 0x7ed   : > { %v7396_v48 = vld [vmem:[#allocation3 + $0x23] sm:$0xff]  ;;  %13251 = vmatprep.subr.bf16.mxu1 %v14114_v43 }
 0x7ee   : > { %v6775_v18 = vmul.f32 %v16260_v4, %v6745_v35  ;;  %7139 = vrot.lane.b32.xlu1 %v12679_v42, %s14357_s16  ;;  %7061 = vrot.lane.b32.xlu0 %v12679_v42, %s14355_s13  ;;  %v6788_v45 = vadd.f32 %v16265_v10, %v6774_v47  ;;  %v14115_v44 = vld [vmem:[%s17407_s1 + $0x90] sm:$0xff]   ;;  %v12718_v49 = vpack.c.bf16 %v7396_v48, %v7396_v48 }
 0x7ef   : > { %13252 = vmatpush3.bf16.msra.mxu1 %v14115_v44  ;;  %v16409_v44 = vpop.permute.xlu0 %6841 }
 0x7f0   : > { %v14095_v51 = vld [vmem:[#allocation6 + $0x8] ss:$12 sps:$4 sm:$0xff]   ;;  %v6798_v27 = vmax.f32 %v6788_v45, 0.0  ;;  %v6789_v61 = vadd.f32 %v16265_v10, %v6775_v18 }
 0x7f1   : > { %13682 = vmatmul.mubr.msk.bf16.vlgmr.msra.gmra.mrb[192].mxu0 %vm257_vm0, %v14095_v51 }
 0x7f2   : > { %v6858_v52 = vmul.f32 %v16250_v62, %v6798_v27  ;;  %7279 = vrot.lane.b32.xlu1 %v12699_v57, %s14352_s11  ;;  %7357 = vrot.lane.b32.xlu0 %v12699_v57, %s14355_s13  ;;  %v6799_v46 = vmax.f32 %v6789_v61, 0.0 }
 0x7f3   : > { %13685 = vmatprep.mubr.msk.bf16.mxu0 %vm14359_vm4, %v14350_v36 }
 0x7f4   : > { %6868 = vst.msk [vmem:[#allocation3 + $0x31] sm:$0xff] %vm257_vm0, %v6858_v52  ;;  %v6859_v39 = vmul.f32 %v16382_v63, %v6799_v46 }
 0x7f6   : > { %6869 = vst.msk [vmem:[#allocation3 + $0x39] sm:$0xff] %vm257_vm0, %v6859_v39  ;;  %v13218_v59 = vpop.f32.mrb[160].mxu1  ;;  %6983 = vrot.lane.b32.xlu1 %v12661_v15, %s14352_s11  ;;  %7437 = vrot.lane.b32.xlu0 %v12718_v49, %s14357_s16 }
 0x7f7   : > { %v13219_v56 = vpop.f32.mrb[161].mxu1 }
 0x7f8   : > { %v13220_v1 = vadd.f32 %v13219_v56, %v13218_v59  ;;  %v13221_v3 = vpop.f32.mrb[162].mxu1 }
 0x7f9   : > { %v13222_v9 = vpop.f32.mrb[163].mxu1 }
 0x7fa   : > { %v6750_v17 = vadd.f32 %v13220_v1, %v16298_v14  ;;  %v13223_v13 = vadd.f32 %v13222_v9, %v13221_v3  ;;  %7063 = vrot.lane.b32.xlu1 %v12671_v12, %s14355_s13  ;;  %7141 = vrot.lane.b32.xlu0 %v12671_v12, %s14357_s16 }
 0x7fb   : > { %v7317_v6 = vld [vmem:[#allocation3 + $0x2a] sm:$0xff] }
 0x7fc   : > { %v7397_v53 = vld [vmem:[#allocation3 + $0x2b] sm:$0xff]  ;;  %v6776_v19 = vmul.f32 %v16260_v4, %v6750_v17  ;;  %v6753_v50 = vadd.f32 %v13223_v13, %v16305_v2  ;;  %v12709_v38 = vpack.c.bf16 %v7317_v6, %v7317_v6 }
 0x7fd   : > { %v6940_v5 = vld [vmem:[#allocation3 + $0x2f] sm:$0xff]  ;;  %v12719_v40 = vpack.c.bf16 %v7397_v53, %v7397_v53  ;;  %v7180_v18 = vld [vmem:[#allocation3 + $0x39] sm:$0xff] }
 0x7fe   : > { %v7477_v26 = vld [vmem:[#allocation3 + $0x2c] sm:$0xff]  ;;  %v7478_v29 = vld [vmem:[#allocation3 + $0x34] sm:$0xff]  ;;  %v6777_v14 = vmul.f32 %v16260_v4, %v6753_v50  ;;  %7359 = vrot.lane.b32.xlu1 %v12709_v38, %s14355_s13  ;;  %7281 = vrot.lane.b32.xlu0 %v12709_v38, %s14352_s11  ;;  %v6790_v47 = vadd.f32 %v16265_v10, %v6776_v19  ;;  %v12662_v22 = vpack.c.bf16 %v6940_v5, %v6940_v5 }
 0x7ff   : > { %v6880_v37 = vld [vmem:[#allocation3 + $0x2e] sm:$0xff]  ;;  %v12729_v34 = vpack.c.bf16 %v7477_v26, %v7477_v26  ;;  %v12730_v35 = vpack.c.bf16 %v7478_v29, %v7478_v29  ;;  %v6881_v2 = vld [vmem:[#allocation3 + $0x36] sm:$0xff]  ;;  %v12692_v61 = vpack.c.bf16 %v7180_v18, %v7180_v18 }
 0x800   : > { %v12652_v33 = vpack.c.bf16 %v6880_v37, %v6880_v37  ;;  %v7179_v42 = vld [vmem:[#allocation3 + $0x31] sm:$0xff]  ;;  %v6800_v45 = vmax.f32 %v6790_v47, 0.0  ;;  %v6791_v51 = vadd.f32 %v16265_v10, %v6777_v14  ;;  %v12653_v27 = vpack.c.bf16 %v6881_v2, %v6881_v2 }
 0x801   : > { %7527 = vst.msk [vmem:[#allocation6 + $0x20] sm:$0xf] %vm5746_vm7, %v12729_v34  ;;  %7528 = vst.msk [vmem:[#allocation6 + $0x2c] sm:$0xf] %vm5746_vm7, %v12730_v35  ;;  %v12691_v43 = vpack.c.bf16 %v7179_v42, %v7179_v42  ;;  %v7099_v57 = vld [vmem:[#allocation3 + $0x30] sm:$0xff]  ;;  %v7021_v17 = vld [vmem:[#allocation3 + $0x38] sm:$0xff] }
 0x802   : > { %6930 = vst.msk [vmem:[#allocation6 + $0x3c] sm:$0xf] %vm5746_vm7, %v12652_v33  ;;  %v6860_v7 = vmul.f32 %v16252_v60, %v6800_v45  ;;  %7439 = vrot.lane.b32.xlu1 %v12719_v40, %s14357_s16  ;;  %6985 = vrot.lane.b32.xlu0 %v12662_v22, %s14352_s11  ;;  %v6801_v48 = vmax.f32 %v6791_v51, 0.0  ;;  %6931 = vst.msk [vmem:[#allocation6 + $0x48] sm:$0xf] %vm5746_vm7, %v12653_v27  ;;  %v12681_v46 = vpack.c.bf16 %v7099_v57, %v7099_v57  ;;  %v7239_v39 = vld [vmem:[#allocation3 + $0x32] sm:$0xff] }
 0x803   : > { %7229 = vst.msk [vmem:[#allocation6 + $0x34] sm:$0xf] %vm5746_vm7, %v12691_v43  ;;  %7230 = vst.msk [vmem:[#allocation6 + $0x40] sm:$0xf] %vm5746_vm7, %v12692_v61  ;;  %v12701_v49 = vpack.c.bf16 %v7239_v39, %v7239_v39  ;;  %v6941_v30 = vld [vmem:[#allocation3 + $0x37] sm:$0xff]  ;;  %v12673_v33 = vpack.c.bf16 %v7021_v17, %v7021_v17 }
 0x804   : > { %6870 = vst.msk [vmem:[#allocation3 + $0x41] sm:$0xff] %vm257_vm0, %v6860_v7  ;;  %v6861_v52 = vmul.f32 %v16409_v44, %v6801_v48  ;;  %v7398_v59 = vld [vmem:[#allocation3 + $0x33] sm:$0xff]  ;;  %v12663_v1 = vpack.c.bf16 %v6941_v30, %v6941_v30 }
 0x805   : > { %v12720_v3 = vpack.c.bf16 %v7398_v59, %v7398_v59 }
 0x806   : > { %6871 = vst.msk [vmem:[#allocation3 + $0x49] sm:$0xff] %vm257_vm0, %v6861_v52  ;;  %7143 = vrot.lane.b32.xlu1 %v12681_v46, %s14357_s16  ;;  %7065 = vrot.lane.b32.xlu0 %v12681_v46, %s14355_s13 }
 0x808   : > { %v14096_v15 = vld [vmem:[#allocation6 + $0x20] ss:$12 sps:$4 sm:$0xff]  }
 0x809   : > { %13686 = vmatmul.mubr.msk.bf16.gmra.mrb[196].mxu0 %vm257_vm0, %v14096_v15 }
 0x80a   : > { %7283 = vrot.lane.b32.xlu1 %v12701_v49, %s14352_s11  ;;  %7361 = vrot.lane.b32.xlu0 %v12701_v49, %s14355_s13  ;;  %v16450_v49 = vld [vmem:[#allocation3 + $0x59] sm:$0x3f] }
 0x80b   : > { %13689 = vmatprep.mubr.msk.bf16.mxu0 %vm14359_vm4, %v14350_v36  ;;  %v7479_v56 = vld [vmem:[#allocation3 + $0x3c] sm:$0xff] }
 0x80c   : > { %v12731_v12 = vpack.c.bf16 %v7479_v56, %v7479_v56  ;;  %v6882_v9 = vld [vmem:[#allocation3 + $0x3e] sm:$0xff] }
 0x80d   : > { %v7480_v13 = vld [vmem:[#allocation3 + $0x44] sm:$0xff]  ;;  %v12654_v6 = vpack.c.bf16 %v6882_v9, %v6882_v9  ;;  %v7319_v42 = vld [vmem:[#allocation3 + $0x3a] sm:$0xff] }
 0x80e   : > { %v13224_v53 = vpop.f32.mrb[164].mxu1  ;;  %6987 = vrot.lane.b32.xlu1 %v12663_v1, %s14352_s11  ;;  %7441 = vrot.lane.b32.xlu0 %v12720_v3, %s14357_s16  ;;  %v12732_v19 = vpack.c.bf16 %v7480_v13, %v7480_v13  ;;  %7529 = vst.msk [vmem:[#allocation6 + $0x38] sm:$0xf] %vm5746_vm7, %v12731_v12  ;;  %v7181_v50 = vld [vmem:[#allocation3 + $0x41] sm:$0xff]  ;;  %v7182_v37 = vld [vmem:[#allocation3 + $0x49] sm:$0xff]  ;;  %v12711_v45 = vpack.c.bf16 %v7319_v42, %v7319_v42 }
 0x80f   : > { %v13225_v38 = vpop.f32.mrb[165].mxu1  ;;  %6932 = vst.msk [vmem:[#allocation6 + $0x54] sm:$0xf] %vm5746_vm7, %v12654_v6  ;;  %v12693_v5 = vpack.c.bf16 %v7181_v50, %v7181_v50  ;;  %v6883_v26 = vld [vmem:[#allocation3 + $0x46] sm:$0xff]  ;;  %v12694_v47 = vpack.c.bf16 %v7182_v37, %v7182_v37  ;;  %v7399_v51 = vld [vmem:[#allocation3 + $0x3b] sm:$0xff] }
 0x810   : > { %v13226_v29 = vadd.f32 %v13225_v38, %v13224_v53  ;;  %v13227_v34 = vpop.f32.mrb[166].mxu1  ;;  %7530 = vst.msk [vmem:[#allocation6 + $0x44] sm:$0xf] %vm5746_vm7, %v12732_v19  ;;  %v12655_v14 = vpack.c.bf16 %v6883_v26, %v6883_v26  ;;  %v6942_v43 = vld [vmem:[#allocation3 + $0x3f] sm:$0xff]  ;;  %v12721_v48 = vpack.c.bf16 %v7399_v51, %v7399_v51  ;;  %v6943_v56 = vld [vmem:[#allocation3 + $0x47] sm:$0xff] }
 0x811   : > { %v13228_v35 = vpop.f32.mrb[167].mxu1  ;;  %7231 = vst.msk [vmem:[#allocation6 + $0x4c] sm:$0xf] %vm5746_vm7, %v12693_v5  ;;  %7232 = vst.msk [vmem:[#allocation6 + $0x58] sm:$0xf] %vm5746_vm7, %v12694_v47  ;;  %v12664_v52 = vpack.c.bf16 %v6942_v43, %v6942_v43  ;;  %v7241_v30 = vld [vmem:[#allocation3 + $0x42] sm:$0xff]  ;;  %v12665_v12 = vpack.c.bf16 %v6943_v56, %v6943_v56 }
 0x812   : > { %v6758_v40 = vadd.f32 %v13226_v29, %v16328_v41  ;;  %v13229_v22 = vadd.f32 %v13228_v35, %v13227_v34  ;;  %7067 = vrot.lane.b32.xlu1 %v12673_v33, %s14355_s13  ;;  %7145 = vrot.lane.b32.xlu0 %v12673_v33, %s14357_s16  ;;  %6933 = vst.msk [vmem:[#allocation6 + $0x60] sm:$0xf] %vm5746_vm7, %v12655_v14  ;;  %v7400_v1 = vld [vmem:[#allocation3 + $0x43] sm:$0xff] }
 0x813   : > { %v12703_v59 = vpack.c.bf16 %v7241_v30, %v7241_v30  ;;  %v12722_v9 = vpack.c.bf16 %v7400_v1, %v7400_v1  ;;  %v7023_v13 = vld [vmem:[#allocation3 + $0x48] sm:$0xff] }
 0x814   : > { %v6778_v2 = vmul.f32 %v16260_v4, %v6758_v40  ;;  %v6761_v18 = vadd.f32 %v13229_v22, %v16331_v55  ;;  %v7101_v55 = vld [vmem:[#allocation3 + $0x40] sm:$0xff]  ;;  %v12675_v5 = vpack.c.bf16 %v7023_v13, %v7023_v13 }
 0x815   : > { %v12683_v15 = vpack.c.bf16 %v7101_v55, %v7101_v55  ;;  %v8624_v47 = vld [vmem:[#allocation3 + $0x64] sm:$0x3f] }
 0x816   : > { %v6792_v27 = vadd.f32 %v16265_v10, %v6778_v2  ;;  %v6779_v41 = vmul.f32 %v16260_v4, %v6761_v18  ;;  %7363 = vrot.lane.b32.xlu1 %v12711_v45, %s14355_s13  ;;  %7285 = vrot.lane.b32.xlu0 %v12711_v45, %s14352_s11  ;;  %v16444_v4 = vpop.permute.xlu0 %6851  ;;  %v12826_v22 = vpack.c.bf16 %v8624_v47, %v8624_v47  ;;  %v7404_v1 = vld [vmem:[#allocation3 + $0x63] sm:$0x3f] }
 0x817   : > { %v14097_v57 = vld [vmem:[#allocation6 + $0x38] ss:$12 sps:$4 sm:$0xff]  }
 0x818   : > { %v6802_v61 = vmax.f32 %v6792_v27, 0.0  ;;  %v6793_v7 = vadd.f32 %v16265_v10, %v6779_v41  ;;  %13690 = vmatmul.mubr.msk.bf16.gmra.mrb[200].mxu0 %vm257_vm0, %v14097_v57 }
 0x819   : > { %13693 = vmatprep.mubr.msk.bf16.mxu0 %vm14359_vm4, %v14350_v36 }
 0x81a   : > { %v6862_v46 = vmul.f32 %v16254_v21, %v6802_v61  ;;  %v6803_v39 = vmax.f32 %v6793_v7, 0.0  ;;  %7443 = vrot.lane.b32.xlu1 %v12721_v48, %s14357_s16  ;;  %6989 = vrot.lane.b32.xlu0 %v12664_v52, %s14352_s11 }
 0x81c   : > { %6872 = vst.msk [vmem:[#allocation3 + $0x51] sm:$0xff] %vm257_vm0, %v6862_v46  ;;  %v6863_v10 = vmul.f32 %v16444_v4, %v6803_v39 }
 0x81e   : > { %7147 = vrot.lane.b32.xlu1 %v12683_v15, %s14357_s16  ;;  %7069 = vrot.lane.b32.xlu0 %v12683_v15, %s14355_s13  ;;  %6874 = vst.msk [vmem:[#allocation3 + $0x59] sm:$0x3f] %vm6873_vm14, %v6863_v10  ;;  %v16482_v15 = vpop.permute.xlu0 %7373 }
 0x822   : > { %7287 = vrot.lane.b32.xlu1 %v12703_v59, %s14352_s11  ;;  %7365 = vrot.lane.b32.xlu0 %v12703_v59, %s14355_s13 }
 0x823   : > { %v7481_v3 = vld [vmem:[#allocation3 + $0x4c] sm:$0xff] }
 0x824   : > { %v12733_v17 = vpack.c.bf16 %v7481_v3, %v7481_v3  ;;  %v6884_v38 = vld [vmem:[#allocation3 + $0x4e] sm:$0x3f] }
 0x825   : > { %v7482_v6 = vld [vmem:[#allocation3 + $0x54] sm:$0xff]  ;;  %v7483_v53 = vld [vmem:[#allocation3 + $0x5c] sm:$0xff]  ;;  %v12656_v26 = vpack.c.bf16 %v6884_v38, %v6884_v38  ;;  %v7321_v34 = vld [vmem:[#allocation3 + $0x4a] sm:$0xff] }
 0x826   : > { %6991 = vrot.lane.b32.xlu1 %v12665_v12, %s14352_s11  ;;  %7445 = vrot.lane.b32.xlu0 %v12722_v9, %s14357_s16  ;;  %v12734_v19 = vpack.c.bf16 %v7482_v6, %v7482_v6  ;;  %7531 = vst.msk [vmem:[#allocation6 + $0x50] sm:$0xf] %vm5746_vm7, %v12733_v17  ;;  %v12735_v50 = vpack.c.bf16 %v7483_v53, %v7483_v53  ;;  %v7183_v37 = vld [vmem:[#allocation3 + $0x51] sm:$0xff]  ;;  %v7184_v29 = vld [vmem:[#allocation3 + $0x59] sm:$0x3f] }
 0x827   : > { %v12695_v33 = vpack.c.bf16 %v7183_v37, %v7183_v37  ;;  %v12696_v14 = vpack.c.bf16 %v7184_v29, %v7184_v29  ;;  %6934 = vst.msk [vmem:[#allocation6 + $0x6c] sm:$0x7] %vm5756_vm6, %v12656_v26  ;;  %v12713_v35 = vpack.c.bf16 %v7321_v34, %v7321_v34  ;;  %v7401_v42 = vld [vmem:[#allocation3 + $0x4b] sm:$0xff]  ;;  %v7323_v48 = vld [vmem:[#allocation3 + $0x5a] sm:$0xff]  ;;  %v12726_v17 = vpack.c.bf16 %v7404_v1, %v7404_v1 }
 0x828   : > { %7532 = vst.msk [vmem:[#allocation6 + $0x5c] sm:$0xf] %vm5746_vm7, %v12734_v19  ;;  %7533 = vst.msk [vmem:[#allocation6 + $0x68] sm:$0xf] %vm5746_vm7, %v12735_v50  ;;  %v6944_v40 = vld [vmem:[#allocation3 + $0x4f] sm:$0x3f]  ;;  %v12723_v18 = vpack.c.bf16 %v7401_v42, %v7401_v42  ;;  %v12715_v55 = vpack.c.bf16 %v7323_v48, %v7323_v48 }
 0x829   : > { %7233 = vst.msk [vmem:[#allocation6 + $0x64] sm:$0xf] %vm5746_vm7, %v12695_v33  ;;  %v12666_v45 = vpack.c.bf16 %v6944_v40, %v6944_v40  ;;  %v7103_v43 = vld [vmem:[#allocation3 + $0x50] sm:$0xff]  ;;  %v7403_v39 = vld [vmem:[#allocation3 + $0x5b] sm:$0xff] }
 0x82a   : > { %7071 = vrot.lane.b32.xlu1 %v12675_v5, %s14355_s13  ;;  %7149 = vrot.lane.b32.xlu0 %v12675_v5, %s14357_s16  ;;  %7234 = vst.msk [vmem:[#allocation6 + $0x70] sm:$0x7] %vm5756_vm6, %v12696_v14  ;;  %v7024_v27 = vld [vmem:[#allocation3 + $0x50] sm:$0x3f]  ;;  %v12685_v41 = vpack.c.bf16 %v7103_v43, %v7103_v43  ;;  %v7244_v10 = vld [vmem:[#allocation3 + $0x5a] sm:$0x3f]  ;;  %v12725_v30 = vpack.c.bf16 %v7403_v39, %v7403_v39 }
 0x82b   : > { %v12676_v57 = vpack.c.bf16 %v7024_v27, %v7024_v27  ;;  %v7243_v61 = vld [vmem:[#allocation3 + $0x52] sm:$0xff]  ;;  %v12706_v59 = vpack.c.bf16 %v7244_v10, %v7244_v10 }
 0x82c   : > { %v12705_v7 = vpack.c.bf16 %v7243_v61, %v7243_v61  ;;  %v7402_v52 = vld [vmem:[#allocation3 + $0x53] sm:$0xff] }
 0x82d   : > { %v12724_v46 = vpack.c.bf16 %v7402_v52, %v7402_v52  ;;  %v7104_v56 = vld [vmem:[#allocation3 + $0x58] sm:$0x3f] }
 0x82e   : > { %7367 = vrot.lane.b32.xlu1 %v12713_v35, %s14355_s13  ;;  %7289 = vrot.lane.b32.xlu0 %v12713_v35, %s14352_s11  ;;  %v12686_v3 = vpack.c.bf16 %v7104_v56, %v7104_v56 }
 0x82f   : > { %v14098_v2 = vld [vmem:[#allocation6 + $0x50] ss:$12 sps:$4 sm:$0xff]   ;;  %v14099_v51 = vld [vmem:[#allocation6 + $0x68] ss:$12 sps:$4 sm:$0x7f]  }
 0x830   : > { %13694 = vmatmul.mubr.msk.bf16.gmra.mrb[204].mxu0 %vm257_vm0, %v14098_v2  ;;  %8674 = vst.msk [vmem:[#allocation6 + $0x74] sm:$0x7] %vm5756_vm6, %v12826_v22 }
 0x831   : > { %13697 = vmatprep.mubr.msk.bf16.mxu0 %vm14359_vm4, %v14350_v36 }
 0x832   : > { %7447 = vrot.lane.b32.xlu1 %v12723_v18, %s14357_s16  ;;  %6993 = vrot.lane.b32.xlu0 %v12666_v45, %s14352_s11 }
 0x836   : > { %7151 = vrot.lane.b32.xlu1 %v12685_v41, %s14357_s16  ;;  %7073 = vrot.lane.b32.xlu0 %v12676_v57, %s14355_s13 }
 0x838   : > { %13698 = vmatmul.mubr.msk.bf16.gmra.mrb[208].mxu0 %vm257_vm0, %v14099_v51 }
 0x83a   : > { %7291 = vrot.lane.b32.xlu1 %v12705_v7, %s14352_s11  ;;  %7369 = vrot.lane.b32.xlu0 %v12705_v7, %s14355_s13 }
 0x83e   : > { %7371 = vrot.lane.b32.xlu1 %v12715_v55, %s14355_s13  ;;  %7449 = vrot.lane.b32.xlu0 %v12724_v46, %s14357_s16 }
 0x842   : > { %7451 = vrot.lane.b32.xlu1 %v12725_v30, %s14357_s16  ;;  %7293 = vrot.lane.b32.xlu0 %v12706_v59, %s14352_s11 }
 0x845   : > { %v7136_v12 = vpop.permute.xlu1 %7135 }
 0x846   : > { %v6978_v9 = vpop.permute.xlu0 %6977  ;;  %7165 = vst.msk [vmem:[#allocation6] sm:$0xf] %vm5992_vm10, %v7136_v12  ;;  %7153 = vrot.lane.b32.xlu0 %v12686_v3, %s14357_s16 }
 0x847   : > { %7006 = vst.msk [vmem:[#allocation6 + $0xc] sm:$0xf] %vm5828_vm8, %v6978_v9 }
 0x849   : > { %v7276_v13 = vpop.permute.xlu1 %7275 }
 0x84a   : > { %v7058_v6 = vpop.permute.xlu0 %7057  ;;  %7305 = vst.msk [vmem:[#allocation6 + $0x4] sm:$0xf] %vm5828_vm8, %v7276_v13  ;;  %7453 = vrot.lane.b32.xlu0 %v12726_v17, %s14357_s16 }
 0x84b   : > { %7086 = vst.msk [vmem:[#allocation6 + $0xc] sm:$0xf] %vm5910_vm9, %v7058_v6 }
 0x84d   : > { %v6980_v53 = vpop.permute.xlu1 %6979 }
 0x84e   : > { %v7138_v19 = vpop.permute.xlu0 %7137  ;;  %7007 = vst.msk [vmem:[#allocation6 + $0x18] sm:$0xf] %vm5828_vm8, %v6980_v53 }
 0x84f   : > { %7166 = vst.msk [vmem:[#allocation6 + $0xc] sm:$0xf] %vm5992_vm10, %v7138_v19 }
 0x851   : > { %v7060_v50 = vpop.permute.xlu1 %7059 }
 0x852   : > { %7087 = vst.msk [vmem:[#allocation6 + $0x18] sm:$0xf] %vm5910_vm9, %v7060_v50 }
 0x858   : > { %v7356_v38 = vpop.permute.xlu1 %7355  ;;  %v7278_v5 = vpop.permute.xlu0 %7277 }
 0x859   : > { %7385 = vst.msk [vmem:[#allocation6 + $0x4] sm:$0xf] %vm5910_vm9, %v7356_v38 }
 0x85a   : > { %7306 = vst.msk [vmem:[#allocation6 + $0x10] sm:$0xf] %vm5828_vm8, %v7278_v5 }
 0x85c   : > { %v7436_v26 = vpop.permute.xlu1 %7435  ;;  %v6982_v37 = vpop.permute.xlu0 %6981 }
 0x85d   : > { %7465 = vst.msk [vmem:[#allocation6 + $0x4] sm:$0xf] %vm5992_vm10, %v7436_v26 }
 0x85e   : > { %7008 = vst.msk [vmem:[#allocation6 + $0x24] sm:$0xf] %vm5828_vm8, %v6982_v37 }
 0x860   : > { %v7140_v29 = vpop.permute.xlu1 %7139  ;;  %v7062_v34 = vpop.permute.xlu0 %7061 }
 0x861   : > { %7167 = vst.msk [vmem:[#allocation6 + $0x18] sm:$0xf] %vm5992_vm10, %v7140_v29 }
 0x862   : > { %7088 = vst.msk [vmem:[#allocation6 + $0x24] sm:$0xf] %vm5910_vm9, %v7062_v34 }
 0x864   : > { %v7280_v33 = vpop.permute.xlu1 %7279  ;;  %v7358_v14 = vpop.permute.xlu0 %7357  ;;  %v7535_v18 = vld [vmem:[#allocation6] sm:$0xff] }
 0x865   : > { %7307 = vst.msk [vmem:[#allocation6 + $0x1c] sm:$0xf] %vm5828_vm8, %v7280_v33 }
 0x866   : > { %7386 = vst.msk [vmem:[#allocation6 + $0x10] sm:$0xf] %vm5910_vm9, %v7358_v14 }
 0x868   : > { %v6984_v47 = vpop.permute.xlu1 %6983  ;;  %v7438_v35 = vpop.permute.xlu0 %7437 }
 0x869   : > { %7009 = vst.msk [vmem:[#allocation6 + $0x30] sm:$0xf] %vm5828_vm8, %v6984_v47 }
 0x86a   : > { %7466 = vst.msk [vmem:[#allocation6 + $0x10] sm:$0xf] %vm5992_vm10, %v7438_v35 }
 0x86c   : > { %v7064_v42 = vpop.permute.xlu1 %7063  ;;  %v7142_v40 = vpop.permute.xlu0 %7141 }
 0x86d   : > { %7089 = vst.msk [vmem:[#allocation6 + $0x30] sm:$0xf] %vm5910_vm9, %v7064_v42 }
 0x86e   : > { %7168 = vst.msk [vmem:[#allocation6 + $0x24] sm:$0xf] %vm5992_vm10, %v7142_v40 }
 0x870   : > { %v7360_v22 = vpop.permute.xlu1 %7359  ;;  %v7282_v2 = vpop.permute.xlu0 %7281 }
 0x871   : > { %v7537_v45 = vld [vmem:[#allocation6 + $0xc] sm:$0xff]  ;;  %7387 = vst.msk [vmem:[#allocation6 + $0x1c] sm:$0xf] %vm5910_vm9, %v7360_v22 }
 0x872   : > { %v14116_v51 = vld [vmem:[#allocation6 + $0x4] ss:$12 sps:$4 sm:$0xff]   ;;  %7308 = vst.msk [vmem:[#allocation6 + $0x28] sm:$0xf] %vm5828_vm8, %v7282_v2  ;;  %v11856_v43 = vcombine.low %v7535_v18, %v7537_v45 }
 0x873   : > { %7821 = vmatprep.mubr.bf16.mxu1 %v14116_v51 }
 0x874   : > { %7822 = vmatmul.mubr.bf16.vlgmr.msra.gmra.mrb[168].mxu1 %v11856_v43  ;;  %v7440_v27 = vpop.permute.xlu1 %7439  ;;  %v6986_v41 = vpop.permute.xlu0 %6985 }
 0x875   : > { %7467 = vst.msk [vmem:[#allocation6 + $0x1c] sm:$0xf] %vm5992_vm10, %v7440_v27 }
 0x876   : > { %7010 = vst.msk [vmem:[#allocation6 + $0x3c] sm:$0xf] %vm5828_vm8, %v6986_v41 }
 0x878   : > { %v7144_v57 = vpop.permute.xlu1 %7143  ;;  %v7066_v61 = vpop.permute.xlu0 %7065 }
 0x879   : > { %7169 = vst.msk [vmem:[#allocation6 + $0x30] sm:$0xf] %vm5992_vm10, %v7144_v57 }
 0x87a   : > { %7090 = vst.msk [vmem:[#allocation6 + $0x3c] sm:$0xf] %vm5910_vm9, %v7066_v61 }
 0x87c   : > { %v7284_v7 = vpop.permute.xlu1 %7283  ;;  %v7362_v48 = vpop.permute.xlu0 %7361  ;;  %v7539_v59 = vld [vmem:[#allocation6 + $0x18] sm:$0xff] }
 0x87d   : > { %7309 = vst.msk [vmem:[#allocation6 + $0x34] sm:$0xf] %vm5828_vm8, %v7284_v7 }
 0x87e   : > { %7388 = vst.msk [vmem:[#allocation6 + $0x28] sm:$0xf] %vm5910_vm9, %v7362_v48 }
 0x880   : > { %v6988_v52 = vpop.permute.xlu1 %6987  ;;  %v7442_v55 = vpop.permute.xlu0 %7441 }
 0x881   : > { %7011 = vst.msk [vmem:[#allocation6 + $0x48] sm:$0xf] %vm5828_vm8, %v6988_v52 }
 0x882   : > { %7468 = vst.msk [vmem:[#allocation6 + $0x28] sm:$0xf] %vm5992_vm10, %v7442_v55 }
 0x884   : > { %v7068_v46 = vpop.permute.xlu1 %7067  ;;  %v7146_v39 = vpop.permute.xlu0 %7145 }
 0x885   : > { %7091 = vst.msk [vmem:[#allocation6 + $0x48] sm:$0xf] %vm5910_vm9, %v7068_v46 }
 0x886   : > { %7170 = vst.msk [vmem:[#allocation6 + $0x3c] sm:$0xf] %vm5992_vm10, %v7146_v39 }
 0x888   : > { %v7364_v10 = vpop.permute.xlu1 %7363  ;;  %v7286_v30 = vpop.permute.xlu0 %7285 }
 0x889   : > { %v7541_v56 = vld [vmem:[#allocation6 + $0x24] sm:$0xff]  ;;  %7389 = vst.msk [vmem:[#allocation6 + $0x34] sm:$0xf] %vm5910_vm9, %v7364_v10 }
 0x88a   : > { %v14118_v1 = vld [vmem:[#allocation6 + $0x1c] ss:$12 sps:$4 sm:$0xff]   ;;  %7310 = vst.msk [vmem:[#allocation6 + $0x40] sm:$0xf] %vm5828_vm8, %v7286_v30  ;;  %v11859_v3 = vcombine.low %v7539_v59, %v7541_v56  ;;  %v8075_v30 = vld [vmem:[#allocation3 + $0x7] sm:$0xff] }
 0x88b   : > { %7829 = vmatprep.mubr.bf16.mxu1 %v14118_v1  ;;  %v8155_v59 = vld [vmem:[#allocation3 + $0x8] sm:$0xff]  ;;  %v8464_v56 = vld [vmem:[#allocation3 + $0x62] sm:$0x3f]  ;;  %v12747_v1 = vpack.c.bf16 %v8075_v30, %v8075_v30 }
 0x88c   : > { %7830 = vmatmul.mubr.bf16.gmra.mrb[172].mxu1 %v11859_v3  ;;  %v7444_v12 = vpop.permute.xlu1 %7443  ;;  %v6990_v9 = vpop.permute.xlu0 %6989  ;;  %v12806_v3 = vpack.c.bf16 %v8464_v56, %v8464_v56 }
 0x88d   : > { %7469 = vst.msk [vmem:[#allocation6 + $0x34] sm:$0xf] %vm5992_vm10, %v7444_v12  ;;  %8115 = vrot.lane.b32.xlu1 %v12747_v1, %s14352_s11 }
 0x88e   : > { %7012 = vst.msk [vmem:[#allocation6 + $0x54] sm:$0xf] %vm5828_vm8, %v6990_v9  ;;  %8513 = vrot.lane.b32.xlu0 %v12806_v3, %s14355_s13 }
 0x890   : > { %v7148_v17 = vpop.permute.xlu1 %7147  ;;  %v7070_v13 = vpop.permute.xlu0 %7069 }
 0x891   : > { %7171 = vst.msk [vmem:[#allocation6 + $0x48] sm:$0xf] %vm5992_vm10, %v7148_v17  ;;  %v12757_v17 = vpack.c.bf16 %v8155_v59, %v8155_v59 }
 0x892   : > { %7092 = vst.msk [vmem:[#allocation6 + $0x54] sm:$0xf] %vm5910_vm9, %v7070_v13 }
 0x893   : > { %8195 = vrot.lane.b32.xlu1 %v12757_v17, %s14355_s13 }
 0x894   : > { %v7288_v6 = vpop.permute.xlu1 %7287  ;;  %v7366_v53 = vpop.permute.xlu0 %7365  ;;  %v7543_v29 = vld [vmem:[#allocation6 + $0x30] sm:$0xff] }
 0x895   : > { %7311 = vst.msk [vmem:[#allocation6 + $0x4c] sm:$0xf] %vm5828_vm8, %v7288_v6 }
 0x896   : > { %7390 = vst.msk [vmem:[#allocation6 + $0x40] sm:$0xf] %vm5910_vm9, %v7366_v53 }
 0x898   : > { %v6992_v19 = vpop.permute.xlu1 %6991  ;;  %v7446_v50 = vpop.permute.xlu0 %7445 }
 0x899   : > { %7013 = vst.msk [vmem:[#allocation6 + $0x60] sm:$0xf] %vm5828_vm8, %v6992_v19 }
 0x89a   : > { %7470 = vst.msk [vmem:[#allocation6 + $0x40] sm:$0xf] %vm5992_vm10, %v7446_v50 }
 0x89c   : > { %v7072_v38 = vpop.permute.xlu1 %7071  ;;  %v7150_v5 = vpop.permute.xlu0 %7149 }
 0x89d   : > { %7093 = vst.msk [vmem:[#allocation6 + $0x60] sm:$0xf] %vm5910_vm9, %v7072_v38 }
 0x89e   : > { %7172 = vst.msk [vmem:[#allocation6 + $0x54] sm:$0xf] %vm5992_vm10, %v7150_v5 }
 0x8a0   : > { %v7368_v26 = vpop.permute.xlu1 %7367  ;;  %v7290_v37 = vpop.permute.xlu0 %7289 }
 0x8a1   : > { %v7545_v34 = vld [vmem:[#allocation6 + $0x3c] sm:$0xff]  ;;  %7391 = vst.msk [vmem:[#allocation6 + $0x4c] sm:$0xf] %vm5910_vm9, %v7368_v26 }
 0x8a2   : > { %v14120_v33 = vld [vmem:[#allocation6 + $0x34] ss:$12 sps:$4 sm:$0xff]   ;;  %7312 = vst.msk [vmem:[#allocation6 + $0x58] sm:$0xf] %vm5828_vm8, %v7290_v37  ;;  %v11862_v14 = vcombine.low %v7543_v29, %v7545_v34 }
 0x8a3   : > { %7837 = vmatprep.mubr.bf16.mxu1 %v14120_v33 }
 0x8a4   : > { %7838 = vmatmul.mubr.bf16.gmra.mrb[176].mxu1 %v11862_v14  ;;  %v7448_v47 = vpop.permute.xlu1 %7447  ;;  %v6994_v35 = vpop.permute.xlu0 %6993 }
 0x8a5   : > { %7471 = vst.msk [vmem:[#allocation6 + $0x4c] sm:$0xf] %vm5992_vm10, %v7448_v47 }
 0x8a6   : > { %7014 = vst.msk [vmem:[#allocation6 + $0x6c] sm:$0x7] %vm5838_vm11, %v6994_v35 }
 0x8a8   : > { %v7152_v42 = vpop.permute.xlu1 %7151  ;;  %v7074_v40 = vpop.permute.xlu0 %7073 }
 0x8a9   : > { %7173 = vst.msk [vmem:[#allocation6 + $0x60] sm:$0xf] %vm5992_vm10, %v7152_v42 }
 0x8aa   : > { %7094 = vst.msk [vmem:[#allocation6 + $0x6c] sm:$0x7] %vm5920_vm12, %v7074_v40 }
 0x8ac   : > { %v7292_v22 = vpop.permute.xlu1 %7291  ;;  %v7370_v2 = vpop.permute.xlu0 %7369  ;;  %v7547_v41 = vld [vmem:[#allocation6 + $0x48] sm:$0xff] }
 0x8ad   : > { %7313 = vst.msk [vmem:[#allocation6 + $0x64] sm:$0xf] %vm5828_vm8, %v7292_v22 }
 0x8ae   : > { %7392 = vst.msk [vmem:[#allocation6 + $0x58] sm:$0xf] %vm5910_vm9, %v7370_v2  ;;  %v16569_v2 = vld [vmem:[%s17409_s3 + $0x4] ss:$0 sm:$0xff] }
 0x8b0   : > { %v7372_v18 = vpop.permute.xlu1 %7371  ;;  %v7450_v45 = vpop.permute.xlu0 %7449 }
 0x8b1   : > { %7393 = vst.msk [vmem:[#allocation6 + $0x64] sm:$0xf] %vm5910_vm9, %v7372_v18 }
 0x8b2   : > { %7472 = vst.msk [vmem:[#allocation6 + $0x58] sm:$0xf] %vm5992_vm10, %v7450_v45 }
 0x8b4   : > { %v7452_v51 = vpop.permute.xlu1 %7451  ;;  %v7294_v43 = vpop.permute.xlu0 %7293 }
 0x8b5   : > { %7473 = vst.msk [vmem:[#allocation6 + $0x64] sm:$0xf] %vm5992_vm10, %v7452_v51 }
 0x8b6   : > { %7314 = vst.msk [vmem:[#allocation6 + $0x70] sm:$0x7] %vm5838_vm11, %v7294_v43  ;;  %v8015_v43 = vld [vmem:[#allocation3 + $0x6] sm:$0xff] }
 0x8b7   : > { %7394 = vst.msk [vmem:[#allocation6 + $0x70] sm:$0x7] %vm5920_vm12, %v16482_v15 }
 0x8b8   : > { %v7154_v27 = vpop.permute.xlu0 %7153 }
 0x8b9   : > { %v7549_v57 = vld [vmem:[#allocation6 + $0x54] sm:$0xff]  ;;  %7174 = vst.msk [vmem:[#allocation6 + $0x6c] sm:$0x7] %vm6002_vm13, %v7154_v27  ;;  %v16574_v27 = vld [vmem:[%s17409_s3 + $0x5] ss:$0 sm:$0xff] }
 0x8ba   : > { %v14122_v61 = vld [vmem:[#allocation6 + $0x4c] ss:$12 sps:$4 sm:$0xff]   ;;  %v11865_v7 = vcombine.low %v7547_v41, %v7549_v57  ;;  %v12737_v41 = vpack.c.bf16 %v8015_v43, %v8015_v43 }
 0x8bb   : > { %7845 = vmatprep.mubr.bf16.mxu1 %v14122_v61  ;;  %v14129_v43 = vld [vmem:[%s17407_s1 + $0x130] sm:$0xff]  }
 0x8bc   : > { %7846 = vmatmul.mubr.bf16.gmra.mrb[180].mxu1 %v11865_v7  ;;  %v7454_v48 = vpop.permute.xlu0 %7453  ;;  %8065 = vst.msk [vmem:[#allocation6] sm:$0xf] %vm5746_vm7, %v12737_v41 }
 0x8bd   : > { %7474 = vst.msk [vmem:[#allocation6 + $0x70] sm:$0x7] %vm6002_vm13, %v7454_v48 }
 0x8c0   : > { %v14126_v39 = vld [vmem:[#allocation6 + $0x60] ss:$12 sps:$4 sm:$0x7f]  }
 0x8c4   : > { %v7896_v52 = vpop.f32.mrb[192].mxu0  ;;  %v14124_v55 = vld [vmem:[#allocation6 + $0x64] ss:$12 sps:$4 sm:$0x7f]  }
 0x8c5   : > { %v13683_v46 = vpop.f32.mrb[193].mxu0  ;;  %7853 = vmatprep.mubr.bf16.mxu1 %v14124_v55 }
 0x8c6   : > { %v7899_v10 = vpop.f32.mrb[194].mxu0  ;;  %7854 = vmatmul.mubr.bf16.gmra.mrb[184].mxu1 %v14126_v39 }
 0x8c7   : > { %v13684_v15 = vpop.f32.mrb[195].mxu0 }
 0x8dc   : > { %v16547_v12 = vpop.f32.mrb[196].mxu0 }
 0x8dd   : > { %v13687_v9 = vpop.f32.mrb[197].mxu0 }
 0x8de   : > { %v16551_v13 = vpop.f32.mrb[198].mxu0 }
 0x8df   : > { %v13688_v6 = vpop.f32.mrb[199].mxu0 }
 0x8eb   : > { %v16554_v53 = vpop.f32.mrb[200].mxu0 }
 0x8ec   : > { %v13691_v19 = vpop.f32.mrb[201].mxu0 }
 0x8ed   : > { %v16556_v50 = vpop.f32.mrb[202].mxu0 }
 0x8ee   : > { %v13692_v38 = vpop.f32.mrb[203].mxu0 }
 0x8ff   : > { %v8116_v55 = vpop.permute.xlu1 %8115 }
 0x900   : > { %8145 = vst.msk [vmem:[#allocation6] sm:$0xf] %vm5828_vm8, %v8116_v55 }
 0x903   : > { %v16558_v5 = vpop.f32.mrb[204].mxu0 }
 0x904   : > { %v13695_v26 = vpop.f32.mrb[205].mxu0 }
 0x905   : > { %v16560_v37 = vpop.f32.mrb[206].mxu0  ;;  %v8196_v30 = vpop.permute.xlu1 %8195 }
 0x906   : > { %v13696_v29 = vpop.f32.mrb[207].mxu0  ;;  %8225 = vst.msk [vmem:[#allocation6] sm:$0xf] %vm5910_vm9, %v8196_v30 }
 0x90b   : > { %v16562_v34 = vpop.f32.mrb[208].mxu0 }
 0x90c   : > { %v13699_v33 = vpop.f32.mrb[209].mxu0 }
 0x90d   : > { %v16564_v14 = vpop.f32.mrb[210].mxu0 }
 0x90e   : > { %v13700_v47 = vpop.f32.mrb[211].mxu0 }
 0x947   : > { %v13253_v35 = vpop.f32.mrb[168].mxu1 }
 0x948   : > { %v13254_v42 = vpop.f32.mrb[169].mxu1 }
 0x949   : > { %v13255_v40 = vadd.f32 %v13254_v42, %v13253_v35  ;;  %v13256_v22 = vpop.f32.mrb[170].mxu1 }
 0x94a   : > { %v13257_v18 = vpop.f32.mrb[171].mxu1 }
 0x94b   : > { %v7897_v45 = vadd.f32 %v13255_v40, %v7896_v52  ;;  %v13258_v51 = vadd.f32 %v13257_v18, %v13256_v22  ;;  %v14127_v18 = vld [vmem:[%s17407_s1 + $0x128] sm:$0xff]  }
 0x94c   : > { %13290 = vmatprep.subr.bf16.mxu0 %v14127_v18  ;;  %13835 = vmatprep.subr.bf16.mxu1 %v14127_v18 }
 0x94d   : > { %v7941_v57 = vmul.f32 %v16569_v2, %v7897_v45  ;;  %v7900_v61 = vadd.f32 %v13258_v51, %v7899_v10  ;;  %v14128_v45 = vld [vmem:[%s17407_s1 + $0xe8] sm:$0xff]  }
 0x94e   : > { %13291 = vmatpush3.bf16.msra.mxu0 %v14128_v45  ;;  %13843 = vmatpush3.bf16.msra.mxu1 %v14128_v45 }
 0x94f   : > { %v7955_v7 = vadd.f32 %v16574_v27, %v7941_v57  ;;  %v7942_v48 = vmul.f32 %v16569_v2, %v7900_v61  ;;  %13292 = vmatprep.subr.bf16.mxu0 %v14129_v43  ;;  %13836 = vmatprep.subr.bf16.mxu1 %v14129_v43 }
 0x951   : > { %v7965_v46 = vmax.f32 %v7955_v7, 0.0  ;;  %v7956_v52 = vadd.f32 %v16574_v27, %v7942_v48 }
 0x953   : > { %v7975_v39 = vadd.f32 %v7965_v46, %v15947_v54  ;;  %v7966_v15 = vmax.f32 %v7956_v52, 0.0 }
 0x955   : > { %v7985_v59 = vmax.f32 %v7975_v39, 0.0  ;;  %v7976_v56 = vadd.f32 %v7966_v15, %v15969_v20 }
 0x957   : > { %v7995_v10 = vmul.f32 %v7985_v59, %v16273_v24  ;;  %v7986_v1 = vmax.f32 %v7976_v56, 0.0 }
 0x959   : > { %8005 = vst.msk [vmem:[#allocation3 + $0x11] sm:$0xff] %vm257_vm0, %v7995_v10  ;;  %v7996_v3 = vmul.f32 %v7986_v1, %v16246_v16 }
 0x95b   : > { %8006 = vst.msk [vmem:[#allocation3 + $0x19] sm:$0xff] %vm257_vm0, %v7996_v3  ;;  %v14130_v3 = vld [vmem:[%s17407_s1 + $0xf0] sm:$0xff]  }
 0x95c   : > { %13293 = vmatpush3.bf16.msra.mxu0 %v14130_v3  ;;  %13844 = vmatpush3.bf16.msra.mxu1 %v14130_v3 }
 0x95f   : > { %v13259_v9 = vpop.f32.mrb[172].mxu1 }
 0x960   : > { %v13260_v17 = vpop.f32.mrb[173].mxu1  ;;  %v8235_v6 = vld [vmem:[#allocation3 + $0x10] sm:$0xff] }
 0x961   : > { %v8076_v54 = vld [vmem:[#allocation3 + $0xf] sm:$0xff]  ;;  %v13261_v38 = vadd.f32 %v13260_v17, %v13259_v9  ;;  %v13262_v26 = vpop.f32.mrb[174].mxu1  ;;  %v12767_v29 = vpack.c.bf16 %v8235_v6, %v8235_v6 }
 0x962   : > { %v8016_v19 = vld [vmem:[#allocation3 + $0xe] sm:$0xff]  ;;  %v12748_v20 = vpack.c.bf16 %v8076_v54, %v8076_v54  ;;  %v13263_v35 = vpop.f32.mrb[175].mxu1  ;;  %v8017_v16 = vld [vmem:[#allocation3 + $0x16] sm:$0xff] }
 0x963   : > { %v12738_v33 = vpack.c.bf16 %v8016_v19, %v8016_v19  ;;  %v8315_v47 = vld [vmem:[#allocation3 + $0x11] sm:$0xff]  ;;  %v7905_v40 = vadd.f32 %v13261_v38, %v16547_v12  ;;  %v13264_v22 = vadd.f32 %v13263_v35, %v13262_v26  ;;  %8275 = vrot.lane.b32.xlu1 %v12767_v29, %s14357_s16  ;;  %v12739_v12 = vpack.c.bf16 %v8017_v16, %v8017_v16  ;;  %v8316_v41 = vld [vmem:[#allocation3 + $0x19] sm:$0xff]  ;;  %v14131_v9 = vld [vmem:[%s17407_s1 + $0x138] sm:$0xff]  }
 0x964   : > { %v8375_v24 = vld [vmem:[#allocation3 + $0x12] sm:$0xff]  ;;  %v12777_v42 = vpack.c.bf16 %v8315_v47, %v8315_v47  ;;  %8117 = vrot.lane.b32.xlu0 %v12748_v20, %s14352_s11  ;;  %v12778_v7 = vpack.c.bf16 %v8316_v41, %v8316_v41  ;;  %13294 = vmatprep.subr.bf16.mxu0 %v14131_v9 }
 0x965   : > { %8066 = vst.msk [vmem:[#allocation6 + $0xc] sm:$0xf] %vm5746_vm7, %v12738_v33  ;;  %v12787_v51 = vpack.c.bf16 %v8375_v24, %v8375_v24  ;;  %v7943_v57 = vmul.f32 %v16569_v2, %v7905_v40  ;;  %v7908_v61 = vadd.f32 %v13264_v22, %v16551_v13  ;;  %v8236_v48 = vld [vmem:[#allocation3 + $0x18] sm:$0xff]  ;;  %8067 = vst.msk [vmem:[#allocation6 + $0x18] sm:$0xf] %vm5746_vm7, %v12739_v12  ;;  %13837 = vmatprep.subr.bf16.mxu1 %v14131_v9  ;;  %v14133_v54 = vld [vmem:[%s17407_s1 + $0x140] sm:$0xff]  }
 0x966   : > { %8365 = vst.msk [vmem:[#allocation6 + $0x4] sm:$0xf] %vm5746_vm7, %v12777_v42  ;;  %v8077_v55 = vld [vmem:[#allocation3 + $0x17] sm:$0xff]  ;;  %8366 = vst.msk [vmem:[#allocation6 + $0x10] sm:$0xf] %vm5746_vm7, %v12778_v7  ;;  %v12768_v15 = vpack.c.bf16 %v8236_v48, %v8236_v48  ;;  %v14137_v12 = vld [vmem:[%s17407_s1 + $0x150] sm:$0xff]  }
 0x967   : > { %v7957_v46 = vadd.f32 %v16574_v27, %v7943_v57  ;;  %v7944_v52 = vmul.f32 %v16569_v2, %v7908_v61  ;;  %8415 = vrot.lane.b32.xlu1 %v12787_v51, %s14352_s11  ;;  %v12749_v30 = vpack.c.bf16 %v8077_v55, %v8077_v55  ;;  %v14136_v51 = vld [vmem:[%s17407_s1 + $0x108] sm:$0xff]  }
 0x968   : > { %8197 = vrot.lane.b32.xlu0 %v12767_v29, %s14355_s13 }
 0x969   : > { %v7967_v13 = vmax.f32 %v7957_v46, 0.0  ;;  %v7958_v39 = vadd.f32 %v16574_v27, %v7944_v52 }
 0x96b   : > { %v7977_v59 = vadd.f32 %v7967_v13, %v15975_v28  ;;  %v7968_v56 = vmax.f32 %v7958_v39, 0.0  ;;  %8119 = vrot.lane.b32.xlu1 %v12749_v30, %s14352_s11  ;;  %v14138_v39 = vld [vmem:[%s17407_s1 + $0x110] sm:$0xff]  }
 0x96c   : > { %8277 = vrot.lane.b32.xlu0 %v12768_v15, %s14357_s16 }
 0x96d   : > { %v7987_v10 = vmax.f32 %v7977_v59, 0.0  ;;  %v7978_v1 = vadd.f32 %v7968_v56, %v15997_v8  ;;  %v14132_v8 = vld [vmem:[%s17407_s1 + $0xf8] sm:$0xff]  }
 0x96e   : > { %13295 = vmatpush3.bf16.msra.mxu0 %v14132_v8  ;;  %13845 = vmatpush3.bf16.msra.mxu1 %v14132_v8 }
 0x96f   : > { %v7997_v17 = vmul.f32 %v7987_v10, %v16248_v0  ;;  %v7988_v6 = vmax.f32 %v7978_v1, 0.0  ;;  %8199 = vrot.lane.b32.xlu1 %v12768_v15, %s14355_s13  ;;  %13296 = vmatprep.subr.bf16.mxu0 %v14133_v54  ;;  %v14134_v0 = vld [vmem:[%s17407_s1 + $0x100] sm:$0xff]   ;;  %v14139_v15 = vld [vmem:[%s17407_s1 + $0x158] sm:$0xff]  }
 0x970   : > { %13838 = vmatprep.subr.bf16.mxu1 %v14133_v54 }
 0x971   : > { %8007 = vst.msk [vmem:[#allocation3 + $0x21] sm:$0xff] %vm257_vm0, %v7997_v17  ;;  %v7998_v28 = vmul.f32 %v7988_v6, %v16315_v25  ;;  %v14135_v25 = vld [vmem:[%s17407_s1 + $0x148] sm:$0xff]   ;;  %v14140_v17 = vld [vmem:[%s17407_s1 + $0x118] sm:$0xff]   ;;  %v14141_v6 = vld [vmem:[%s17407_s1 + $0x160] sm:$0xff]  }
 0x972   : > { %13297 = vmatpush3.bf16.msra.mxu0 %v14134_v0  ;;  %13846 = vmatpush3.bf16.msra.mxu1 %v14134_v0 }
 0x973   : > { %8008 = vst.msk [vmem:[#allocation3 + $0x29] sm:$0xff] %vm257_vm0, %v7998_v28  ;;  %13298 = vmatprep.subr.bf16.mxu0 %v14135_v25  ;;  %13839 = vmatprep.subr.bf16.mxu1 %v14135_v25 }
 0x976   : > { %13299 = vmatpush3.bf16.msra.mxu0 %v14136_v51  ;;  %13847 = vmatpush3.bf16.msra.mxu1 %v14136_v51 }
 0x977   : > { %v13265_v19 = vpop.f32.mrb[176].mxu1  ;;  %13300 = vmatprep.subr.bf16.mxu0 %v14137_v12  ;;  %13840 = vmatprep.subr.bf16.mxu1 %v14137_v12 }
 0x978   : > { %v13266_v38 = vpop.f32.mrb[177].mxu1  ;;  %v8455_v26 = vld [vmem:[#allocation3 + $0x1a] sm:$0xff] }
 0x979   : > { %v8535_v29 = vld [vmem:[#allocation3 + $0x1b] sm:$0xff]  ;;  %v13267_v20 = vadd.f32 %v13266_v38, %v13265_v19  ;;  %v13268_v33 = vpop.f32.mrb[178].mxu1  ;;  %v12797_v47 = vpack.c.bf16 %v8455_v26, %v8455_v26  ;;  %v14142_v26 = vld [vmem:[%s17407_s1 + $0x120] sm:$0xff]  }
 0x97a   : > { %v8078_v35 = vld [vmem:[#allocation3 + $0x1f] sm:$0xff]  ;;  %v13269_v40 = vpop.f32.mrb[179].mxu1  ;;  %v12807_v43 = vpack.c.bf16 %v8535_v29, %v8535_v29  ;;  %v8318_v57 = vld [vmem:[#allocation3 + $0x29] sm:$0xff]  ;;  %13301 = vmatpush3.bf16.msra.mxu0 %v14138_v39  ;;  %13848 = vmatpush3.bf16.msra.mxu1 %v14138_v39 }
 0x97b   : > { %v8018_v24 = vld [vmem:[#allocation3 + $0x1e] sm:$0xff]  ;;  %v7913_v18 = vadd.f32 %v13267_v20, %v16554_v53  ;;  %v13270_v45 = vadd.f32 %v13269_v40, %v13268_v33  ;;  %8495 = vrot.lane.b32.xlu1 %v12797_v47, %s14355_s13  ;;  %8417 = vrot.lane.b32.xlu0 %v12797_v47, %s14352_s11  ;;  %v12750_v41 = vpack.c.bf16 %v8078_v35, %v8078_v35  ;;  %v8019_v53 = vld [vmem:[#allocation3 + $0x26] sm:$0xff] }
 0x97c   : > { %v8317_v42 = vld [vmem:[#allocation3 + $0x21] sm:$0xff]  ;;  %v12740_v22 = vpack.c.bf16 %v8018_v24, %v8018_v24  ;;  %v12741_v55 = vpack.c.bf16 %v8019_v53, %v8019_v53  ;;  %v12780_v46 = vpack.c.bf16 %v8318_v57, %v8318_v57  ;;  %13302 = vmatprep.subr.bf16.mxu0 %v14139_v15  ;;  %13841 = vmatprep.subr.bf16.mxu1 %v14139_v15 }
 0x97d   : > { %v12779_v16 = vpack.c.bf16 %v8317_v42, %v8317_v42  ;;  %v8615_v61 = vld [vmem:[#allocation3 + $0x1c] sm:$0xff]  ;;  %v7945_v7 = vmul.f32 %v16569_v2, %v7913_v18  ;;  %v7916_v48 = vadd.f32 %v13270_v45, %v16556_v50  ;;  %v8616_v52 = vld [vmem:[#allocation3 + $0x24] sm:$0xff] }
 0x97e   : > { %8068 = vst.msk [vmem:[#allocation6 + $0x24] sm:$0xf] %vm5746_vm7, %v12740_v22  ;;  %v8237_v13 = vld [vmem:[#allocation3 + $0x20] sm:$0xff]  ;;  %v12817_v30 = vpack.c.bf16 %v8615_v61, %v8615_v61  ;;  %v12818_v59 = vpack.c.bf16 %v8616_v52, %v8616_v52  ;;  %8069 = vst.msk [vmem:[#allocation6 + $0x30] sm:$0xf] %vm5746_vm7, %v12741_v55  ;;  %13303 = vmatpush3.bf16.msra.mxu0 %v14140_v17  ;;  %13849 = vmatpush3.bf16.msra.mxu1 %v14140_v17  ;;  %v8159_v47 = vld [vmem:[#allocation3 + $0x28] sm:$0xff] }
 0x97f   : > { %8367 = vst.msk [vmem:[#allocation6 + $0x1c] sm:$0xf] %vm5746_vm7, %v12779_v16  ;;  %v7959_v56 = vadd.f32 %v16574_v27, %v7945_v7  ;;  %v7946_v50 = vmul.f32 %v16569_v2, %v7916_v48  ;;  %8575 = vrot.lane.b32.xlu1 %v12807_v43, %s14357_s16  ;;  %8121 = vrot.lane.b32.xlu0 %v12750_v41, %s14352_s11  ;;  %8368 = vst.msk [vmem:[#allocation6 + $0x28] sm:$0xf] %vm5746_vm7, %v12780_v46  ;;  %v8377_v9 = vld [vmem:[#allocation3 + $0x22] sm:$0xff] }
 0x980   : > { %8665 = vst.msk [vmem:[#allocation6 + $0x8] sm:$0xf] %vm5746_vm7, %v12817_v30  ;;  %8666 = vst.msk [vmem:[#allocation6 + $0x14] sm:$0xf] %vm5746_vm7, %v12818_v59  ;;  %v12769_v3 = vpack.c.bf16 %v8237_v13, %v8237_v13  ;;  %v12789_v25 = vpack.c.bf16 %v8377_v9, %v8377_v9  ;;  %v8079_v19 = vld [vmem:[#allocation3 + $0x27] sm:$0xff]  ;;  %13304 = vmatprep.subr.bf16.mxu0 %v14141_v6  ;;  %13842 = vmatprep.subr.bf16.mxu1 %v14141_v6 }
 0x981   : > { %v7969_v10 = vmax.f32 %v7959_v56, 0.0  ;;  %v7960_v1 = vadd.f32 %v16574_v27, %v7946_v50  ;;  %v8536_v38 = vld [vmem:[#allocation3 + $0x23] sm:$0xff]  ;;  %v12751_v20 = vpack.c.bf16 %v8079_v19, %v8079_v19 }
 0x982   : > { %v12808_v33 = vpack.c.bf16 %v8536_v38, %v8536_v38  ;;  %13305 = vmatpush3.bf16.msra.mxu0 %v14142_v26  ;;  %13850 = vmatpush3.bf16.msra.mxu1 %v14142_v26 }
 0x983   : > { %v7979_v28 = vadd.f32 %v7969_v10, %v16003_v58  ;;  %v7970_v8 = vmax.f32 %v7960_v1, 0.0  ;;  %8279 = vrot.lane.b32.xlu1 %v12769_v3, %s14357_s16  ;;  %8201 = vrot.lane.b32.xlu0 %v12769_v3, %s14355_s13 }
 0x984   : > { %13701 = vmatprep.subr.bf16.mxu0 %v14350_v36 }
 0x985   : > { %v7989_v54 = vmax.f32 %v7979_v28, 0.0  ;;  %v7980_v0 = vadd.f32 %v7970_v8, %v16026_v32 }
 0x987   : > { %v7999_v58 = vmul.f32 %v7989_v54, %v16250_v62  ;;  %v7990_v29 = vmax.f32 %v7980_v0, 0.0  ;;  %8419 = vrot.lane.b32.xlu1 %v12789_v25, %s14352_s11  ;;  %8497 = vrot.lane.b32.xlu0 %v12789_v25, %s14355_s13  ;;  %v12761_v62 = vpack.c.bf16 %v8159_v47, %v8159_v47 }
 0x989   : > { %8009 = vst.msk [vmem:[#allocation3 + $0x31] sm:$0xff] %vm257_vm0, %v7999_v58  ;;  %v8000_v32 = vmul.f32 %v7990_v29, %v16382_v63 }
 0x98b   : > { %8010 = vst.msk [vmem:[#allocation3 + $0x39] sm:$0xff] %vm257_vm0, %v8000_v32  ;;  %8123 = vrot.lane.b32.xlu1 %v12751_v20, %s14352_s11  ;;  %8577 = vrot.lane.b32.xlu0 %v12808_v33, %s14357_s16 }
 0x98f   : > { %v13271_v35 = vpop.f32.mrb[180].mxu1  ;;  %8203 = vrot.lane.b32.xlu1 %v12761_v62, %s14355_s13  ;;  %8281 = vrot.lane.b32.xlu0 %v12761_v62, %s14357_s16 }
 0x990   : > { %v13272_v63 = vpop.f32.mrb[181].mxu1  ;;  %v8457_v24 = vld [vmem:[#allocation3 + $0x2a] sm:$0xff] }
 0x991   : > { %v8537_v42 = vld [vmem:[#allocation3 + $0x2b] sm:$0xff]  ;;  %v13273_v40 = vadd.f32 %v13272_v63, %v13271_v35  ;;  %v13274_v22 = vpop.f32.mrb[182].mxu1  ;;  %v12799_v16 = vpack.c.bf16 %v8457_v24, %v8457_v24 }
 0x992   : > { %v8080_v18 = vld [vmem:[#allocation3 + $0x2f] sm:$0xff]  ;;  %v13275_v12 = vpop.f32.mrb[183].mxu1  ;;  %v8320_v7 = vld [vmem:[#allocation3 + $0x39] sm:$0xff]  ;;  %v12809_v48 = vpack.c.bf16 %v8537_v42, %v8537_v42 }
 0x993   : > { %v8020_v45 = vld [vmem:[#allocation3 + $0x2e] sm:$0xff]  ;;  %v7921_v53 = vadd.f32 %v13273_v40, %v16558_v5  ;;  %v13276_v57 = vadd.f32 %v13275_v12, %v13274_v22  ;;  %8499 = vrot.lane.b32.xlu1 %v12799_v16, %s14355_s13  ;;  %8421 = vrot.lane.b32.xlu0 %v12799_v16, %s14352_s11  ;;  %v8021_v61 = vld [vmem:[#allocation3 + $0x36] sm:$0xff]  ;;  %v12752_v55 = vpack.c.bf16 %v8080_v18, %v8080_v18 }
 0x994   : > { %v8319_v51 = vld [vmem:[#allocation3 + $0x31] sm:$0xff]  ;;  %v12742_v43 = vpack.c.bf16 %v8020_v45, %v8020_v45  ;;  %v12743_v46 = vpack.c.bf16 %v8021_v61, %v8021_v61  ;;  %v12782_v15 = vpack.c.bf16 %v8320_v7, %v8320_v7 }
 0x995   : > { %v12781_v41 = vpack.c.bf16 %v8319_v51, %v8319_v51  ;;  %v8617_v52 = vld [vmem:[#allocation3 + $0x2c] sm:$0xff]  ;;  %v8618_v13 = vld [vmem:[#allocation3 + $0x34] sm:$0xff]  ;;  %v7947_v39 = vmul.f32 %v16569_v2, %v7921_v53  ;;  %v7924_v5 = vadd.f32 %v13276_v57, %v16560_v37 }
 0x996   : > { %8070 = vst.msk [vmem:[#allocation6 + $0x3c] sm:$0xf] %vm5746_vm7, %v12742_v43  ;;  %v12819_v30 = vpack.c.bf16 %v8617_v52, %v8617_v52  ;;  %v8239_v59 = vld [vmem:[#allocation3 + $0x30] sm:$0xff]  ;;  %8071 = vst.msk [vmem:[#allocation6 + $0x48] sm:$0xf] %vm5746_vm7, %v12743_v46  ;;  %v12820_v56 = vpack.c.bf16 %v8618_v13, %v8618_v13  ;;  %v8161_v24 = vld [vmem:[#allocation3 + $0x38] sm:$0xff] }
 0x997   : > { %8369 = vst.msk [vmem:[#allocation6 + $0x34] sm:$0xf] %vm5746_vm7, %v12781_v41  ;;  %v7961_v50 = vadd.f32 %v16574_v27, %v7947_v39  ;;  %v7948_v10 = vmul.f32 %v16569_v2, %v7924_v5  ;;  %8579 = vrot.lane.b32.xlu1 %v12809_v48, %s14357_s16  ;;  %8125 = vrot.lane.b32.xlu0 %v12752_v55, %s14352_s11  ;;  %8370 = vst.msk [vmem:[#allocation6 + $0x40] sm:$0xf] %vm5746_vm7, %v12782_v15  ;;  %v8379_v9 = vld [vmem:[#allocation3 + $0x32] sm:$0xff] }
 0x998   : > { %8667 = vst.msk [vmem:[#allocation6 + $0x20] sm:$0xf] %vm5746_vm7, %v12819_v30  ;;  %8668 = vst.msk [vmem:[#allocation6 + $0x2c] sm:$0xf] %vm5746_vm7, %v12820_v56  ;;  %v12771_v3 = vpack.c.bf16 %v8239_v59, %v8239_v59  ;;  %v12791_v38 = vpack.c.bf16 %v8379_v9, %v8379_v9  ;;  %v8081_v26 = vld [vmem:[#allocation3 + $0x37] sm:$0xff] }
 0x999   : > { %v7971_v37 = vmax.f32 %v7961_v50, 0.0  ;;  %v7962_v1 = vadd.f32 %v16574_v27, %v7948_v10  ;;  %v13277_v28 = vpop.f32.mrb[184].mxu1  ;;  %v8538_v29 = vld [vmem:[#allocation3 + $0x33] sm:$0xff]  ;;  %v12753_v47 = vpack.c.bf16 %v8081_v26, %v8081_v26 }
 0x99a   : > { %v13278_v8 = vpop.f32.mrb[185].mxu1  ;;  %v12810_v63 = vpack.c.bf16 %v8538_v29, %v8538_v29 }
 0x99b   : > { %v7981_v17 = vadd.f32 %v7971_v37, %v16037_v23  ;;  %v7972_v6 = vmax.f32 %v7962_v1, 0.0  ;;  %8283 = vrot.lane.b32.xlu1 %v12771_v3, %s14357_s16  ;;  %8205 = vrot.lane.b32.xlu0 %v12771_v3, %s14355_s13  ;;  %v13279_v25 = vadd.f32 %v13278_v8, %v13277_v28  ;;  %v13280_v19 = vpop.f32.mrb[186].mxu1 }
 0x99c   : > { %v13281_v58 = vpop.f32.mrb[187].mxu1 }
 0x99d   : > { %v7991_v54 = vmax.f32 %v7981_v17, 0.0  ;;  %v7982_v0 = vadd.f32 %v7972_v6, %v16059_v31  ;;  %v7929_v23 = vadd.f32 %v13279_v25, %v16562_v34  ;;  %v13282_v33 = vadd.f32 %v13281_v58, %v13280_v19 }
 0x99f   : > { %v8001_v32 = vmul.f32 %v7991_v54, %v16252_v60  ;;  %v7992_v20 = vmax.f32 %v7982_v0, 0.0  ;;  %8423 = vrot.lane.b32.xlu1 %v12791_v38, %s14352_s11  ;;  %8501 = vrot.lane.b32.xlu0 %v12791_v38, %s14355_s13  ;;  %v7949_v62 = vmul.f32 %v16569_v2, %v7929_v23  ;;  %v7932_v35 = vadd.f32 %v13282_v33, %v16564_v14 }
 0x9a1   : > { %8011 = vst.msk [vmem:[#allocation3 + $0x41] sm:$0xff] %vm257_vm0, %v8001_v32  ;;  %v8002_v31 = vmul.f32 %v7992_v20, %v16409_v44  ;;  %v7963_v60 = vadd.f32 %v16574_v27, %v7949_v62  ;;  %v7950_v34 = vmul.f32 %v16569_v2, %v7932_v35  ;;  %v12763_v44 = vpack.c.bf16 %v8161_v24, %v8161_v24 }
 0x9a3   : > { %8012 = vst.msk [vmem:[#allocation3 + $0x49] sm:$0xff] %vm257_vm0, %v8002_v31  ;;  %8127 = vrot.lane.b32.xlu1 %v12753_v47, %s14352_s11  ;;  %8581 = vrot.lane.b32.xlu0 %v12810_v63, %s14357_s16  ;;  %v7973_v42 = vmax.f32 %v7963_v60, 0.0  ;;  %v7964_v40 = vadd.f32 %v16574_v27, %v7950_v34 }
 0x9a5   : > { %v7983_v22 = vadd.f32 %v7973_v42, %v16065_v11  ;;  %v7974_v16 = vmax.f32 %v7964_v40, 0.0  ;;  %v16765_v40 = vpop.permute.xlu0 %8513 }
 0x9a7   : > { %8207 = vrot.lane.b32.xlu1 %v12763_v44, %s14355_s13  ;;  %8285 = vrot.lane.b32.xlu0 %v12763_v44, %s14357_s16  ;;  %v7993_v18 = vmax.f32 %v7983_v22, 0.0  ;;  %v7984_v45 = vadd.f32 %v7974_v16, %v16450_v49 }
 0x9a8   : > { %v8459_v14 = vld [vmem:[#allocation3 + $0x3a] sm:$0xff] }
 0x9a9   : > { %v12801_v2 = vpack.c.bf16 %v8459_v14, %v8459_v14  ;;  %v8539_v51 = vld [vmem:[#allocation3 + $0x3b] sm:$0xff]  ;;  %v8003_v27 = vmul.f32 %v7993_v18, %v16254_v21  ;;  %v7994_v61 = vmax.f32 %v7984_v45, 0.0 }
 0x9aa   : > { %v8022_v12 = vld [vmem:[#allocation3 + $0x3e] sm:$0xff]  ;;  %v8023_v11 = vld [vmem:[#allocation3 + $0x46] sm:$0xff]  ;;  %v12811_v48 = vpack.c.bf16 %v8539_v51, %v8539_v51 }
 0x9ab   : > { %v8321_v43 = vld [vmem:[#allocation3 + $0x41] sm:$0xff]  ;;  %v12744_v53 = vpack.c.bf16 %v8022_v12, %v8022_v12  ;;  %8503 = vrot.lane.b32.xlu1 %v12801_v2, %s14355_s13  ;;  %8425 = vrot.lane.b32.xlu0 %v12801_v2, %s14352_s11  ;;  %v8322_v7 = vld [vmem:[#allocation3 + $0x49] sm:$0xff]  ;;  %v12745_v49 = vpack.c.bf16 %v8023_v11, %v8023_v11  ;;  %8013 = vst.msk [vmem:[#allocation3 + $0x51] sm:$0xff] %vm257_vm0, %v8003_v27 }
 0x9ac   : > { %v8082_v41 = vld [vmem:[#allocation3 + $0x3f] sm:$0xff]  ;;  %v12783_v57 = vpack.c.bf16 %v8321_v43, %v8321_v43  ;;  %v12784_v55 = vpack.c.bf16 %v8322_v7, %v8322_v7  ;;  %v8004_v21 = vmul.f32 %v7994_v61, %v16444_v4  ;;  %v8083_v50 = vld [vmem:[#allocation3 + $0x47] sm:$0xff] }
 0x9ad   : > { %8072 = vst.msk [vmem:[#allocation6 + $0x54] sm:$0xf] %vm5746_vm7, %v12744_v53  ;;  %v8619_v46 = vld [vmem:[#allocation3 + $0x3c] sm:$0xff]  ;;  %v8620_v52 = vld [vmem:[#allocation3 + $0x44] sm:$0xff]  ;;  %v12754_v13 = vpack.c.bf16 %v8082_v41, %v8082_v41  ;;  %8073 = vst.msk [vmem:[#allocation6 + $0x60] sm:$0xf] %vm5746_vm7, %v12745_v49  ;;  %v12755_v1 = vpack.c.bf16 %v8083_v50, %v8083_v50 }
 0x9ae   : > { %8371 = vst.msk [vmem:[#allocation6 + $0x4c] sm:$0xf] %vm5746_vm7, %v12783_v57  ;;  %v12821_v39 = vpack.c.bf16 %v8619_v46, %v8619_v46  ;;  %v12822_v5 = vpack.c.bf16 %v8620_v52, %v8620_v52  ;;  %v8241_v15 = vld [vmem:[#allocation3 + $0x40] sm:$0xff]  ;;  %8372 = vst.msk [vmem:[#allocation6 + $0x58] sm:$0xf] %vm5746_vm7, %v12784_v55  ;;  %v8163_v28 = vld [vmem:[#allocation3 + $0x48] sm:$0xff] }
 0x9af   : > { %8014 = vst.msk [vmem:[#allocation3 + $0x59] sm:$0x3f] %vm6873_vm14, %v8004_v21  ;;  %8583 = vrot.lane.b32.xlu1 %v12811_v48, %s14357_s16  ;;  %8129 = vrot.lane.b32.xlu0 %v12754_v13, %s14352_s11  ;;  %v12773_v30 = vpack.c.bf16 %v8241_v15, %v8241_v15  ;;  %v8381_v4 = vld [vmem:[#allocation3 + $0x42] sm:$0xff]  ;;  %v12765_v58 = vpack.c.bf16 %v8163_v28, %v8163_v28 }
 0x9b0   : > { %8669 = vst.msk [vmem:[#allocation6 + $0x38] sm:$0xf] %vm5746_vm7, %v12821_v39  ;;  %8670 = vst.msk [vmem:[#allocation6 + $0x44] sm:$0xf] %vm5746_vm7, %v12822_v5  ;;  %v12793_v59 = vpack.c.bf16 %v8381_v4, %v8381_v4  ;;  %v8540_v10 = vld [vmem:[#allocation3 + $0x43] sm:$0xff] }
 0x9b1   : > { %v12812_v3 = vpack.c.bf16 %v8540_v10, %v8540_v10  ;;  %v8544_v43 = vld [vmem:[#allocation3 + $0x63] sm:$0x3f] }
 0x9b2   : > { %v8024_v56 = vld [vmem:[#allocation3 + $0x4e] sm:$0x3f]  ;;  %v12816_v27 = vpack.c.bf16 %v8544_v43, %v8544_v43 }
 0x9b3   : > { %8287 = vrot.lane.b32.xlu1 %v12773_v30, %s14357_s16  ;;  %8209 = vrot.lane.b32.xlu0 %v12773_v30, %s14355_s13  ;;  %v12746_v37 = vpack.c.bf16 %v8024_v56, %v8024_v56  ;;  %v8323_v9 = vld [vmem:[#allocation3 + $0x51] sm:$0xff] }
 0x9b4   : > { %v8621_v17 = vld [vmem:[#allocation3 + $0x4c] sm:$0xff]  ;;  %v12785_v8 = vpack.c.bf16 %v8323_v9, %v8323_v9  ;;  %v14149_v9 = vld [vmem:[%s17407_s1 + $0x170] sm:$0xff]  }
 0x9b5   : > { %8074 = vst.msk [vmem:[#allocation6 + $0x6c] sm:$0x7] %vm5756_vm6, %v12746_v37  ;;  %v12823_v54 = vpack.c.bf16 %v8621_v17, %v8621_v17  ;;  %v8461_v29 = vld [vmem:[#allocation3 + $0x4a] sm:$0xff] }
 0x9b6   : > { %v8622_v6 = vld [vmem:[#allocation3 + $0x54] sm:$0xff]  ;;  %v8623_v19 = vld [vmem:[#allocation3 + $0x5c] sm:$0xff]  ;;  %8373 = vst.msk [vmem:[#allocation6 + $0x64] sm:$0xf] %vm5746_vm7, %v12785_v8  ;;  %v12803_v32 = vpack.c.bf16 %v8461_v29, %v8461_v29  ;;  %v8541_v20 = vld [vmem:[#allocation3 + $0x4b] sm:$0xff] }
 0x9b7   : > { %8427 = vrot.lane.b32.xlu1 %v12793_v59, %s14352_s11  ;;  %8505 = vrot.lane.b32.xlu0 %v12793_v59, %s14355_s13  ;;  %v12824_v0 = vpack.c.bf16 %v8622_v6, %v8622_v6  ;;  %v8324_v25 = vld [vmem:[#allocation3 + $0x59] sm:$0x3f]  ;;  %v12825_v26 = vpack.c.bf16 %v8623_v19, %v8623_v19  ;;  %8671 = vst.msk [vmem:[#allocation6 + $0x50] sm:$0xf] %vm5746_vm7, %v12823_v54  ;;  %v8084_v23 = vld [vmem:[#allocation3 + $0x4f] sm:$0x3f] }
 0x9b8   : > { %v12786_v38 = vpack.c.bf16 %v8324_v25, %v8324_v25  ;;  %v12813_v33 = vpack.c.bf16 %v8541_v20, %v8541_v20  ;;  %v12756_v47 = vpack.c.bf16 %v8084_v23, %v8084_v23  ;;  %v8243_v31 = vld [vmem:[#allocation3 + $0x50] sm:$0xff]  ;;  %v8463_v34 = vld [vmem:[#allocation3 + $0x5a] sm:$0xff] }
 0x9b9   : > { %8672 = vst.msk [vmem:[#allocation6 + $0x5c] sm:$0xf] %vm5746_vm7, %v12824_v0  ;;  %8673 = vst.msk [vmem:[#allocation6 + $0x68] sm:$0xf] %vm5746_vm7, %v12825_v26  ;;  %v8164_v62 = vld [vmem:[#allocation3 + $0x50] sm:$0x3f]  ;;  %v12775_v35 = vpack.c.bf16 %v8243_v31, %v8243_v31  ;;  %v12805_v44 = vpack.c.bf16 %v8463_v34, %v8463_v34 }
 0x9ba   : > { %8374 = vst.msk [vmem:[#allocation6 + $0x70] sm:$0x7] %vm5756_vm6, %v12786_v38  ;;  %v12766_v63 = vpack.c.bf16 %v8164_v62, %v8164_v62  ;;  %v8383_v24 = vld [vmem:[#allocation3 + $0x52] sm:$0xff]  ;;  %v8543_v16 = vld [vmem:[#allocation3 + $0x5b] sm:$0xff]  ;;  %vm9925_vm6 = vcmask 521216   ;;  %vm10652_vm7 = vcmask 1042432  }
 0x9bb   : > { %8131 = vrot.lane.b32.xlu1 %v12755_v1, %s14352_s11  ;;  %8585 = vrot.lane.b32.xlu0 %v12812_v3, %s14357_s16  ;;  %v12795_v60 = vpack.c.bf16 %v8383_v24, %v8383_v24  ;;  %v8542_v42 = vld [vmem:[#allocation3 + $0x53] sm:$0xff]  ;;  %v12815_v2 = vpack.c.bf16 %v8543_v16, %v8543_v16  ;;  %v14150_v62 = vld [vmem:[#allocation6 + $0x8] ss:$12 sps:$4 sm:$0xff]  }
 0x9bc   : > { %v12814_v22 = vpack.c.bf16 %v8542_v42, %v8542_v42  ;;  %v8384_v14 = vld [vmem:[#allocation3 + $0x5a] sm:$0x3f] }
 0x9bd   : > { %v12796_v51 = vpack.c.bf16 %v8384_v14, %v8384_v14  ;;  %v8244_v12 = vld [vmem:[#allocation3 + $0x58] sm:$0x3f] }
 0x9be   : > { %v12776_v57 = vpack.c.bf16 %v8244_v12, %v8244_v12  ;;  %v14148_v59 = vld [vmem:[%s17407_s1 + $0x168] sm:$0xff]  }
 0x9bf   : > { %8211 = vrot.lane.b32.xlu1 %v12765_v58, %s14355_s13  ;;  %8289 = vrot.lane.b32.xlu0 %v12765_v58, %s14357_s16  ;;  %v14151_v34 = vld [vmem:[#allocation6 + $0x20] ss:$12 sps:$4 sm:$0xff]  }
 0x9c3   : > { %8507 = vrot.lane.b32.xlu1 %v12803_v32, %s14355_s13  ;;  %8429 = vrot.lane.b32.xlu0 %v12803_v32, %s14352_s11 }
 0x9c7   : > { %8587 = vrot.lane.b32.xlu1 %v12813_v33, %s14357_s16  ;;  %8133 = vrot.lane.b32.xlu0 %v12756_v47, %s14352_s11 }
 0x9cb   : > { %8291 = vrot.lane.b32.xlu1 %v12775_v35, %s14357_s16  ;;  %8213 = vrot.lane.b32.xlu0 %v12766_v63, %s14355_s13 }
 0x9cf   : > { %8431 = vrot.lane.b32.xlu1 %v12795_v60, %s14352_s11  ;;  %8509 = vrot.lane.b32.xlu0 %v12795_v60, %s14355_s13 }
 0x9d3   : > { %8511 = vrot.lane.b32.xlu1 %v12805_v44, %s14355_s13  ;;  %8589 = vrot.lane.b32.xlu0 %v12814_v22, %s14357_s16 }
 0x9d5   : > { %v8276_v18 = vpop.permute.xlu1 %8275 }
 0x9d6   : > { %v8118_v45 = vpop.permute.xlu0 %8117  ;;  %8305 = vst.msk [vmem:[#allocation6] sm:$0xf] %vm5992_vm10, %v8276_v18 }
 0x9d7   : > { %8146 = vst.msk [vmem:[#allocation6 + $0xc] sm:$0xf] %vm5828_vm8, %v8118_v45  ;;  %8591 = vrot.lane.b32.xlu1 %v12815_v2, %s14357_s16  ;;  %8433 = vrot.lane.b32.xlu0 %v12796_v51, %s14352_s11  ;;  %v14155_v45 = vld [vmem:[#allocation6 + $0x38] ss:$12 sps:$4 sm:$0xff]  }
 0x9d9   : > { %v8416_v53 = vpop.permute.xlu1 %8415 }
 0x9da   : > { %v8198_v41 = vpop.permute.xlu0 %8197  ;;  %8445 = vst.msk [vmem:[#allocation6 + $0x4] sm:$0xf] %vm5828_vm8, %v8416_v53 }
 0x9db   : > { %8226 = vst.msk [vmem:[#allocation6 + $0xc] sm:$0xf] %vm5910_vm9, %v8198_v41  ;;  %8293 = vrot.lane.b32.xlu0 %v12776_v57, %s14357_s16  ;;  %v14156_v41 = vld [vmem:[#allocation6 + $0x50] ss:$12 sps:$4 sm:$0xff]  }
 0x9dd   : > { %v8120_v11 = vpop.permute.xlu1 %8119 }
 0x9de   : > { %v8278_v61 = vpop.permute.xlu0 %8277  ;;  %8147 = vst.msk [vmem:[#allocation6 + $0x18] sm:$0xf] %vm5828_vm8, %v8120_v11  ;;  %v14157_v11 = vld [vmem:[#allocation6 + $0x68] ss:$12 sps:$4 sm:$0x7f]  }
 0x9df   : > { %8306 = vst.msk [vmem:[#allocation6 + $0xc] sm:$0xf] %vm5992_vm10, %v8278_v61  ;;  %8593 = vrot.lane.b32.xlu0 %v12816_v27, %s14357_s16  ;;  %s242_s16 = sand.u32 1, %s14340_s22  }
 0x9e0   : > { %s243_s15 = scalar_lea.vmem [#allocation8], %s242_s16  ;;  %s11012_s9 = scalar_lea.sflag [#allocation9], %s242_s16 }
 0x9e1   : > { %v8200_v7 = vpop.permute.xlu1 %8199 }
 0x9e2   : > { %8227 = vst.msk [vmem:[#allocation6 + $0x18] sm:$0xf] %vm5910_vm9, %v8200_v7 }
 0x9e6   : > { %v14143_v10 = vld [vmem:[#allocation6] ss:$12 sps:$4 sm:$0xff]  }
 0x9ed   : > { %v8496_v48 = vpop.permute.xlu1 %8495  ;;  %v8418_v49 = vpop.permute.xlu0 %8417 }
 0x9ee   : > { %8525 = vst.msk [vmem:[#allocation6 + $0x4] sm:$0xf] %vm5910_vm9, %v8496_v48 }
 0x9ef   : > { %8446 = vst.msk [vmem:[#allocation6 + $0x10] sm:$0xf] %vm5828_vm8, %v8418_v49 }
 0x9f1   : > { %v8576_v55 = vpop.permute.xlu1 %8575  ;;  %v8122_v46 = vpop.permute.xlu0 %8121 }
 0x9f2   : > { %8605 = vst.msk [vmem:[#allocation6 + $0x4] sm:$0xf] %vm5992_vm10, %v8576_v55 }
 0x9f3   : > { %8148 = vst.msk [vmem:[#allocation6 + $0x24] sm:$0xf] %vm5828_vm8, %v8122_v46 }
 0x9f5   : > { %v8280_v52 = vpop.permute.xlu1 %8279  ;;  %v8202_v21 = vpop.permute.xlu0 %8201 }
 0x9f6   : > { %8307 = vst.msk [vmem:[#allocation6 + $0x18] sm:$0xf] %vm5992_vm10, %v8280_v52 }
 0x9f7   : > { %8228 = vst.msk [vmem:[#allocation6 + $0x24] sm:$0xf] %vm5910_vm9, %v8202_v21 }
 0x9f9   : > { %v8420_v13 = vpop.permute.xlu1 %8419  ;;  %v8498_v39 = vpop.permute.xlu0 %8497 }
 0x9fa   : > { %8447 = vst.msk [vmem:[#allocation6 + $0x1c] sm:$0xf] %vm5828_vm8, %v8420_v13 }
 0x9fb   : > { %8526 = vst.msk [vmem:[#allocation6 + $0x10] sm:$0xf] %vm5910_vm9, %v8498_v39 }
 0x9fd   : > { %v8124_v5 = vpop.permute.xlu1 %8123  ;;  %v8578_v15 = vpop.permute.xlu0 %8577 }
 0x9fe   : > { %8149 = vst.msk [vmem:[#allocation6 + $0x30] sm:$0xf] %vm5828_vm8, %v8124_v5 }
 0x9ff   : > { %8606 = vst.msk [vmem:[#allocation6 + $0x10] sm:$0xf] %vm5992_vm10, %v8578_v15 }
 0xa01   : > { %v8204_v30 = vpop.permute.xlu1 %8203  ;;  %v8282_v4 = vpop.permute.xlu0 %8281 }
 0xa02   : > { %8229 = vst.msk [vmem:[#allocation6 + $0x30] sm:$0xf] %vm5910_vm9, %v8204_v30 }
 0xa03   : > { %8308 = vst.msk [vmem:[#allocation6 + $0x24] sm:$0xf] %vm5992_vm10, %v8282_v4 }
 0xa05   : > { %v8500_v56 = vpop.permute.xlu1 %8499  ;;  %v8422_v50 = vpop.permute.xlu0 %8421 }
 0xa06   : > { %v14145_v37 = vld [vmem:[#allocation6 + $0x4] ss:$12 sps:$4 sm:$0xff]   ;;  %8527 = vst.msk [vmem:[#allocation6 + $0x1c] sm:$0xf] %vm5910_vm9, %v8500_v56 }
 0xa07   : > { %8448 = vst.msk [vmem:[#allocation6 + $0x28] sm:$0xf] %vm5828_vm8, %v8422_v50  ;;  %8961 = vmatprep.mubr.bf16.mxu0 %v14145_v37 }
 0xa08   : > { %8962 = vmatmul.mubr.bf16.vlgmr.msra.gmra.mrb[212].mxu0 %v14143_v10 }
 0xa09   : > { %v8580_v1 = vpop.permute.xlu1 %8579  ;;  %v8126_v3 = vpop.permute.xlu0 %8125  ;;  %13702 = vmatpush3.bf16.msra.mxu0 %v14148_v59 }
 0xa0a   : > { %8607 = vst.msk [vmem:[#allocation6 + $0x1c] sm:$0xf] %vm5992_vm10, %v8580_v1  ;;  %13703 = vmatprep.subr.bf16.mxu0 %v14350_v36 }
 0xa0b   : > { %8150 = vst.msk [vmem:[#allocation6 + $0x3c] sm:$0xf] %vm5828_vm8, %v8126_v3 }
 0xa0d   : > { %v8284_v17 = vpop.permute.xlu1 %8283  ;;  %v8206_v6 = vpop.permute.xlu0 %8205  ;;  %13704 = vmatpush3.bf16.msra.mxu0 %v14149_v9 }
 0xa0e   : > { %8309 = vst.msk [vmem:[#allocation6 + $0x30] sm:$0xf] %vm5992_vm10, %v8284_v17 }
 0xa0f   : > { %8230 = vst.msk [vmem:[#allocation6 + $0x3c] sm:$0xf] %vm5910_vm9, %v8206_v6 }
 0xa11   : > { %v8424_v28 = vpop.permute.xlu1 %8423  ;;  %v8502_v8 = vpop.permute.xlu0 %8501  ;;  %v8679_v58 = vld [vmem:[#allocation6 + $0x18] sm:$0xff] }
 0xa12   : > { %8449 = vst.msk [vmem:[#allocation6 + $0x34] sm:$0xf] %vm5828_vm8, %v8424_v28  ;;  %v16865_v28 = vld [vmem:[%s17409_s3 + $0x6] ss:$0 sm:$0xff] }
 0xa13   : > { %8528 = vst.msk [vmem:[#allocation6 + $0x28] sm:$0xf] %vm5910_vm9, %v8502_v8 }
 0xa15   : > { %v8128_v54 = vpop.permute.xlu1 %8127  ;;  %v8582_v0 = vpop.permute.xlu0 %8581 }
 0xa16   : > { %8151 = vst.msk [vmem:[#allocation6 + $0x48] sm:$0xf] %vm5828_vm8, %v8128_v54 }
 0xa17   : > { %8608 = vst.msk [vmem:[#allocation6 + $0x28] sm:$0xf] %vm5992_vm10, %v8582_v0  ;;  %v16870_v0 = vld [vmem:[%s17409_s3 + $0x7] ss:$0 sm:$0xff] }
 0xa19   : > { %v8208_v25 = vpop.permute.xlu1 %8207  ;;  %v8286_v19 = vpop.permute.xlu0 %8285 }
 0xa1a   : > { %8231 = vst.msk [vmem:[#allocation6 + $0x48] sm:$0xf] %vm5910_vm9, %v8208_v25 }
 0xa1b   : > { %8310 = vst.msk [vmem:[#allocation6 + $0x3c] sm:$0xf] %vm5992_vm10, %v8286_v19 }
 0xa1d   : > { %v8504_v38 = vpop.permute.xlu1 %8503  ;;  %v8426_v26 = vpop.permute.xlu0 %8425 }
 0xa1e   : > { %v8681_v29 = vld [vmem:[#allocation6 + $0x24] sm:$0xff]  ;;  %8529 = vst.msk [vmem:[#allocation6 + $0x34] sm:$0xf] %vm5910_vm9, %v8504_v38 }
 0xa1f   : > { %v14146_v32 = vld [vmem:[#allocation6 + $0x1c] ss:$12 sps:$4 sm:$0xff]   ;;  %8450 = vst.msk [vmem:[#allocation6 + $0x40] sm:$0xf] %vm5828_vm8, %v8426_v26  ;;  %v11989_v20 = vcombine.low %v8679_v58, %v8681_v29 }
 0xa20   : > { %8969 = vmatprep.mubr.bf16.mxu0 %v14146_v32 }
 0xa21   : > { %8970 = vmatmul.mubr.bf16.gmra.mrb[216].mxu0 %v11989_v20  ;;  %v8584_v23 = vpop.permute.xlu1 %8583  ;;  %v8130_v33 = vpop.permute.xlu0 %8129 }
 0xa22   : > { %13705 = vmatprep.mubr.msk.bf16.mxu0 %vm14359_vm4, %v14350_v36  ;;  %8609 = vst.msk [vmem:[#allocation6 + $0x34] sm:$0xf] %vm5992_vm10, %v8584_v23  ;;  %v14152_v14 = vld [vmem:[#allocation6 + $0x30] ss:$12 sps:$4 sm:$0xff]  }
 0xa23   : > { %8152 = vst.msk [vmem:[#allocation6 + $0x54] sm:$0xf] %vm5828_vm8, %v8130_v33 }
 0xa25   : > { %v8288_v47 = vpop.permute.xlu1 %8287  ;;  %v8210_v31 = vpop.permute.xlu0 %8209 }
 0xa26   : > { %8311 = vst.msk [vmem:[#allocation6 + $0x48] sm:$0xf] %vm5992_vm10, %v8288_v47 }
 0xa27   : > { %8232 = vst.msk [vmem:[#allocation6 + $0x54] sm:$0xf] %vm5910_vm9, %v8210_v31 }
 0xa29   : > { %13706 = vmatmul.mubr.msk.bf16.vlgmr.msra.gmra.mrb[220].mxu0 %vm257_vm0, %v14150_v62  ;;  %v8428_v35 = vpop.permute.xlu1 %8427  ;;  %v8506_v63 = vpop.permute.xlu0 %8505 }
 0xa2a   : > { %13709 = vmatprep.mubr.msk.bf16.mxu0 %vm14359_vm4, %v14350_v36  ;;  %8451 = vst.msk [vmem:[#allocation6 + $0x4c] sm:$0xf] %vm5828_vm8, %v8428_v35 }
 0xa2b   : > { %8530 = vst.msk [vmem:[#allocation6 + $0x40] sm:$0xf] %vm5910_vm9, %v8506_v63 }
 0xa2d   : > { %v8132_v24 = vpop.permute.xlu1 %8131  ;;  %v8586_v60 = vpop.permute.xlu0 %8585 }
 0xa2e   : > { %8153 = vst.msk [vmem:[#allocation6 + $0x60] sm:$0xf] %vm5828_vm8, %v8132_v24 }
 0xa2f   : > { %8610 = vst.msk [vmem:[#allocation6 + $0x40] sm:$0xf] %vm5992_vm10, %v8586_v60 }
 0xa31   : > { %13710 = vmatmul.mubr.msk.bf16.gmra.mrb[224].mxu0 %vm257_vm0, %v14151_v34  ;;  %v8212_v42 = vpop.permute.xlu1 %8211  ;;  %v8290_v44 = vpop.permute.xlu0 %8289 }
 0xa32   : > { %13713 = vmatprep.mubr.msk.bf16.mxu0 %vm14359_vm4, %v14350_v36  ;;  %8233 = vst.msk [vmem:[#allocation6 + $0x60] sm:$0xf] %vm5910_vm9, %v8212_v42 }
 0xa33   : > { %8312 = vst.msk [vmem:[#allocation6 + $0x54] sm:$0xf] %vm5992_vm10, %v8290_v44 }
 0xa35   : > { %v8508_v22 = vpop.permute.xlu1 %8507  ;;  %v8430_v16 = vpop.permute.xlu0 %8429 }
 0xa36   : > { %v14154_v18 = vld [vmem:[#allocation6 + $0x34] ss:$12 sps:$4 sm:$0xff]   ;;  %8531 = vst.msk [vmem:[#allocation6 + $0x4c] sm:$0xf] %vm5910_vm9, %v8508_v22 }
 0xa37   : > { %8452 = vst.msk [vmem:[#allocation6 + $0x58] sm:$0xf] %vm5828_vm8, %v8430_v16  ;;  %8977 = vmatprep.mubr.bf16.mxu1 %v14154_v18 }
 0xa38   : > { %8978 = vmatmul.mubr.bf16.vlgmr.msra.gmra.mrb[188].mxu1 %v14152_v14 }
 0xa39   : > { %13714 = vmatmul.mubr.msk.bf16.gmra.mrb[228].mxu0 %vm257_vm0, %v14155_v45  ;;  %v8588_v2 = vpop.permute.xlu1 %8587  ;;  %v8134_v51 = vpop.permute.xlu0 %8133 }
 0xa3a   : > { %13717 = vmatprep.mubr.msk.bf16.mxu0 %vm14359_vm4, %v14350_v36  ;;  %8611 = vst.msk [vmem:[#allocation6 + $0x4c] sm:$0xf] %vm5992_vm10, %v8588_v2 }
 0xa3b   : > { %8154 = vst.msk [vmem:[#allocation6 + $0x6c] sm:$0x7] %vm5838_vm11, %v8134_v51 }
 0xa3d   : > { %v8292_v12 = vpop.permute.xlu1 %8291  ;;  %v8214_v43 = vpop.permute.xlu0 %8213 }
 0xa3e   : > { %8313 = vst.msk [vmem:[#allocation6 + $0x60] sm:$0xf] %vm5992_vm10, %v8292_v12 }
 0xa3f   : > { %8234 = vst.msk [vmem:[#allocation6 + $0x6c] sm:$0x7] %vm5920_vm12, %v8214_v43 }
 0xa41   : > { %13718 = vmatmul.mubr.msk.bf16.gmra.mrb[232].mxu0 %vm257_vm0, %v14156_v41  ;;  %v8432_v53 = vpop.permute.xlu1 %8431  ;;  %v8510_v57 = vpop.permute.xlu0 %8509  ;;  %v8687_v55 = vld [vmem:[#allocation6 + $0x48] sm:$0xff] }
 0xa42   : > { %13721 = vmatprep.mubr.msk.bf16.mxu0 %vm14359_vm4, %v14350_v36  ;;  %8453 = vst.msk [vmem:[#allocation6 + $0x64] sm:$0xf] %vm5828_vm8, %v8432_v53  ;;  %vm10648_vm8 = vcmask 179200  }
 0xa43   : > { %8532 = vst.msk [vmem:[#allocation6 + $0x58] sm:$0xf] %vm5910_vm9, %v8510_v57 }
 0xa45   : > { %v8512_v27 = vpop.permute.xlu1 %8511  ;;  %v8590_v61 = vpop.permute.xlu0 %8589 }
 0xa46   : > { %8533 = vst.msk [vmem:[#allocation6 + $0x64] sm:$0xf] %vm5910_vm9, %v8512_v27 }
 0xa47   : > { %8612 = vst.msk [vmem:[#allocation6 + $0x58] sm:$0xf] %vm5992_vm10, %v8590_v61 }
 0xa49   : > { %13722 = vmatmul.mubr.msk.bf16.gmra.mrb[236].mxu0 %vm257_vm0, %v14157_v11  ;;  %v8592_v7 = vpop.permute.xlu1 %8591  ;;  %v8434_v48 = vpop.permute.xlu0 %8433  ;;  %vm9131_vm0 = vcmask 637952  }
 0xa4a   : > { %8613 = vst.msk [vmem:[#allocation6 + $0x64] sm:$0xf] %vm5992_vm10, %v8592_v7 }
 0xa4b   : > { %8454 = vst.msk [vmem:[#allocation6 + $0x70] sm:$0x7] %vm5838_vm11, %v8434_v48 }
 0xa4c   : > { %8534 = vst.msk [vmem:[#allocation6 + $0x70] sm:$0x7] %vm5920_vm12, %v16765_v40  ;;  %v14163_v40 = vld [vmem:[%s17408_s2 + $0xe4] ss:$12 sps:$4 sm:$0xff]  }
 0xa4d   : > { %v8294_v49 = vpop.permute.xlu0 %8293 }
 0xa4e   : > { %v8689_v46 = vld [vmem:[#allocation6 + $0x54] sm:$0xff]  ;;  %8314 = vst.msk [vmem:[#allocation6 + $0x6c] sm:$0x7] %vm6002_vm13, %v8294_v49 }
 0xa4f   : > { %v14158_v52 = vld [vmem:[#allocation6 + $0x4c] ss:$12 sps:$4 sm:$0xff]   ;;  %v11995_v21 = vcombine.low %v8687_v55, %v8689_v46 }
 0xa50   : > { %8985 = vmatprep.mubr.bf16.mxu1 %v14158_v52 }
 0xa51   : > { %8986 = vmatmul.mubr.bf16.gmra.mrb[192].mxu1 %v11995_v21  ;;  %v8594_v13 = vpop.permute.xlu0 %8593 }
 0xa52   : > { %8614 = vst.msk [vmem:[#allocation6 + $0x70] sm:$0x7] %vm6002_vm13, %v8594_v13 }
 0xa55   : > { %v14162_v5 = vld [vmem:[#allocation6 + $0x60] ss:$12 sps:$4 sm:$0x7f]  }
 0xa59   : > { %v14160_v39 = vld [vmem:[#allocation6 + $0x64] ss:$12 sps:$4 sm:$0x7f]  }
 0xa5a   : > { %8993 = vmatprep.mubr.bf16.mxu1 %v14160_v39 }
 0xa5b   : > { %8994 = vmatmul.mubr.bf16.gmra.mrb[196].mxu1 %v14162_v5 }
 0xa5c   : > { %13735 = vmatprep.mubr.msk.bf16.mxu1 %vm9131_vm0, %v14163_v40 }
 0xadb   : > { %v13306_v15 = vpop.f32.mrb[212].mxu0 }
 0xadc   : > { %v13307_v30 = vpop.f32.mrb[213].mxu0 }
 0xadd   : > { %v13308_v4 = vadd.f32 %v13307_v30, %v13306_v15  ;;  %v13309_v59 = vpop.f32.mrb[214].mxu0 }
 0xade   : > { %v13310_v56 = vpop.f32.mrb[215].mxu0 }
 0xadf   : > { %v13311_v50 = vadd.f32 %v13310_v56, %v13309_v59 }
 0xaf4   : > { %v13312_v10 = vpop.f32.mrb[216].mxu0 }
 0xaf5   : > { %v13313_v37 = vpop.f32.mrb[217].mxu0 }
 0xaf6   : > { %v13314_v1 = vadd.f32 %v13313_v37, %v13312_v10  ;;  %v13315_v3 = vpop.f32.mrb[218].mxu0 }
 0xaf7   : > { %v13316_v9 = vpop.f32.mrb[219].mxu0 }
 0xaf8   : > { %v13317_v17 = vadd.f32 %v13316_v9, %v13315_v3 }
 0xafc   : > { %v9036_v6 = vpop.f32.mrb[220].mxu0 }
 0xafd   : > { %v9037_v8 = vadd.f32 %v13308_v4, %v9036_v6  ;;  %v13707_v54 = vpop.f32.mrb[221].mxu0 }
 0xafe   : > { %v9039_v25 = vpop.f32.mrb[222].mxu0 }
 0xaff   : > { %v9081_v19 = vmul.f32 %v16865_v28, %v9037_v8  ;;  %v9040_v38 = vadd.f32 %v13311_v50, %v9039_v25  ;;  %v13708_v26 = vpop.f32.mrb[223].mxu0 }
 0xb01   : > { %v9095_v58 = vadd.f32 %v16870_v0, %v9081_v19  ;;  %v9082_v29 = vmul.f32 %v16865_v28, %v9040_v38 }
 0xb03   : > { %v9096_v32 = vadd.f32 %v16870_v0, %v9082_v29  ;;  %v9105_v23 = vmax.f32 %v9095_v58, 0.0 }
 0xb04   : > { %v9044_v20 = vpop.f32.mrb[224].mxu0 }
 0xb05   : > { %v9106_v33 = vmax.f32 %v9096_v32, 0.0  ;;  %v9045_v47 = vadd.f32 %v13314_v1, %v9044_v20  ;;  %v13711_v31 = vpop.f32.mrb[225].mxu0 }
 0xb06   : > { %v9047_v62 = vpop.f32.mrb[226].mxu0 }
 0xb07   : > { %v9083_v35 = vmul.f32 %v16865_v28, %v9045_v47  ;;  %v9048_v63 = vadd.f32 %v13317_v17, %v9047_v62  ;;  %v13712_v24 = vpop.f32.mrb[227].mxu0  ;;  %v9118_v60 = vpack.c.bf16 %v9106_v33, %v9105_v23 }
 0xb09   : > { %v9097_v34 = vadd.f32 %v16870_v0, %v9083_v35  ;;  %v9084_v42 = vmul.f32 %v16865_v28, %v9048_v63  ;;  %13725 = vmatprep.subr.bf16.mxu1 %v9118_v60 }
 0xb0a   : > { %13726 = vmatpush3.bf16.msra.mxu1 %v9118_v60 }
 0xb0b   : > { %v9098_v44 = vadd.f32 %v16870_v0, %v9084_v42  ;;  %v13318_v22 = vpop.f32.mrb[188].mxu1  ;;  %v9107_v14 = vmax.f32 %v9097_v34, 0.0 }
 0xb0c   : > { %v9052_v16 = vpop.f32.mrb[228].mxu0  ;;  %v13319_v45 = vpop.f32.mrb[189].mxu1 }
 0xb0d   : > { %v9108_v18 = vmax.f32 %v9098_v44, 0.0  ;;  %v13715_v2 = vpop.f32.mrb[229].mxu0  ;;  %v13320_v51 = vadd.f32 %v13319_v45, %v13318_v22  ;;  %v13321_v12 = vpop.f32.mrb[190].mxu1  ;;  %v14164_v22 = vld [vmem:[%s17408_s2 + $0xfc] ss:$0 sps:$4 sm:$0xff]  }
 0xb0e   : > { %v9055_v43 = vpop.f32.mrb[230].mxu0  ;;  %v13322_v41 = vpop.f32.mrb[191].mxu1  ;;  %v14174_v45 = vld [vmem:[%s17407_s1 + $0x1f8] sm:$0xff]   ;;  %v14176_v2 = vld [vmem:[%s17407_s1 + $0x240] sm:$0xff]  }
 0xb0f   : > { %v13716_v53 = vpop.f32.mrb[231].mxu0  ;;  %v9119_v57 = vpack.c.bf16 %v9108_v18, %v9107_v14  ;;  %v9053_v27 = vadd.f32 %v13320_v51, %v9052_v16  ;;  %v13323_v61 = vadd.f32 %v13322_v41, %v13321_v12  ;;  %v14167_v16 = vld [vmem:[%s17407_s1 + $0x1c0] sm:$0xff]   ;;  %v14172_v14 = vld [vmem:[%s17407_s1 + $0x238] sm:$0xff]   ;;  %v14169_v51 = vld [vmem:[%s17407_s1 + $0x1c8] sm:$0xff]  }
 0xb10   : > { %v14168_v18 = vld [vmem:[%s17407_s1 + $0x180] sm:$0xff]   ;;  %v14170_v12 = vld [vmem:[%s17407_s1 + $0x188] sm:$0xff]   ;;  %v14173_v41 = vld [vmem:[%s17407_s1 + $0x190] sm:$0xff]  }
 0xb11   : > { %13727 = vmatprep.subr.bf16.mxu1 %v9119_v57  ;;  %v9085_v11 = vmul.f32 %v16865_v28, %v9053_v27  ;;  %v9056_v7 = vadd.f32 %v13323_v61, %v9055_v43  ;;  %v14171_v43 = vld [vmem:[%s17407_s1 + $0x1d0] sm:$0xff]   ;;  %v14175_v53 = vld [vmem:[%s17407_s1 + $0x1d8] sm:$0xff]  }
 0xb12   : > { %13728 = vmatpush3.bf16.msra.mxu1 %v9119_v57 }
 0xb13   : > { %v9086_v48 = vmul.f32 %v16865_v28, %v9056_v7  ;;  %v9099_v55 = vadd.f32 %v16870_v0, %v9085_v11  ;;  %v14177_v11 = vld [vmem:[%s17407_s1 + $0x198] sm:$0xff]   ;;  %v14178_v7 = vld [vmem:[%s17407_s1 + $0x200] sm:$0xff]  }
 0xb14   : > { %v9060_v49 = vpop.f32.mrb[232].mxu0 }
 0xb15   : > { %v13719_v46 = vpop.f32.mrb[233].mxu0  ;;  %v9100_v21 = vadd.f32 %v16870_v0, %v9086_v48  ;;  %v9109_v39 = vmax.f32 %v9099_v55, 0.0  ;;  %v14179_v48 = vld [vmem:[%s17407_s1 + $0x1e0] sm:$0xff]   ;;  %v14180_v55 = vld [vmem:[%s17407_s1 + $0x248] sm:$0xff]  }
 0xb16   : > { %v9063_v52 = vpop.f32.mrb[234].mxu0  ;;  %v14181_v46 = vld [vmem:[%s17407_s1 + $0x1a0] sm:$0xff]  }
 0xb17   : > { %v13720_v13 = vpop.f32.mrb[235].mxu0  ;;  %v9110_v5 = vmax.f32 %v9100_v21, 0.0  ;;  %v14183_v21 = vld [vmem:[%s17407_s1 + $0x1e8] sm:$0xff]  }
 0xb18   : > { %v14184_v13 = vld [vmem:[%s17407_s1 + $0x250] sm:$0xff]  }
 0xb19   : > { %v9120_v40 = vpack.c.bf16 %v9110_v5, %v9109_v39 }
 0xb1b   : > { %13729 = vmatprep.subr.bf16.mxu1 %v9120_v40 }
 0xb1c   : > { %v9068_v15 = vpop.f32.mrb[236].mxu0  ;;  %13730 = vmatpush3.bf16.msra.mxu1 %v9120_v40 }
 0xb1d   : > { %v13723_v30 = vpop.f32.mrb[237].mxu0 }
 0xb1e   : > { %v9071_v4 = vpop.f32.mrb[238].mxu0 }
 0xb1f   : > { %v13724_v59 = vpop.f32.mrb[239].mxu0 }
 0xb24   : > { %v13324_v56 = vpop.f32.mrb[192].mxu1 }
 0xb25   : > { %v13325_v50 = vpop.f32.mrb[193].mxu1 }
 0xb26   : > { %v13326_v10 = vadd.f32 %v13325_v50, %v13324_v56  ;;  %v13327_v37 = vpop.f32.mrb[194].mxu1 }
 0xb27   : > { %v13328_v1 = vpop.f32.mrb[195].mxu1 }
 0xb28   : > { %v9061_v3 = vadd.f32 %v13326_v10, %v9060_v49  ;;  %v13329_v9 = vadd.f32 %v13328_v1, %v13327_v37 }
 0xb2a   : > { %v9087_v17 = vmul.f32 %v16865_v28, %v9061_v3  ;;  %v9064_v6 = vadd.f32 %v13329_v9, %v9063_v52  ;;  %v14182_v52 = vld [vmem:[%s17407_s1 + $0x208] sm:$0xff]  }
 0xb2c   : > { %v9088_v8 = vmul.f32 %v16865_v28, %v9064_v6  ;;  %v9101_v54 = vadd.f32 %v16870_v0, %v9087_v17 }
 0xb2e   : > { %v9102_v25 = vadd.f32 %v16870_v0, %v9088_v8  ;;  %v13330_v19 = vpop.f32.mrb[196].mxu1  ;;  %v9111_v38 = vmax.f32 %v9101_v54, 0.0 }
 0xb2f   : > { %v13331_v58 = vpop.f32.mrb[197].mxu1 }
 0xb30   : > { %v9112_v26 = vmax.f32 %v9102_v25, 0.0  ;;  %v13332_v29 = vadd.f32 %v13331_v58, %v13330_v19  ;;  %v13333_v32 = vpop.f32.mrb[198].mxu1 }
 0xb31   : > { %v13334_v23 = vpop.f32.mrb[199].mxu1 }
 0xb32   : > { %v9121_v20 = vpack.c.bf16 %v9112_v26, %v9111_v38  ;;  %v9069_v33 = vadd.f32 %v13332_v29, %v9068_v15  ;;  %v13335_v47 = vadd.f32 %v13334_v23, %v13333_v32 }
 0xb34   : > { %13731 = vmatprep.subr.bf16.mxu1 %v9121_v20  ;;  %v9089_v31 = vmul.f32 %v16865_v28, %v9069_v33  ;;  %v9072_v62 = vadd.f32 %v13335_v47, %v9071_v4  ;;  %v14185_v33 = vld [vmem:[%s17407_s1 + $0x1a8] sm:$0xff]   ;;  %v14186_v47 = vld [vmem:[%s17407_s1 + $0x210] sm:$0xff]  }
 0xb35   : > { %13732 = vmatpush3.bf16.msra.mxu1 %v9121_v20 }
 0xb36   : > { %v9103_v35 = vadd.f32 %v16870_v0, %v9089_v31  ;;  %v9090_v63 = vmul.f32 %v16865_v28, %v9072_v62  ;;  %v14165_v28 = vld [vmem:[%s17407_s1 + $0x1b8] sm:$0xff]   ;;  %v14187_v31 = vld [vmem:[%s17407_s1 + $0x1f0] sm:$0xff]  }
 0xb37   : > { %13350 = vmatprep.subr.bf16.mxu0 %v14165_v28 }
 0xb38   : > { %v9104_v24 = vadd.f32 %v16870_v0, %v9090_v63  ;;  %v9113_v60 = vmax.f32 %v9103_v35, 0.0  ;;  %v14166_v0 = vld [vmem:[%s17407_s1 + $0x178] sm:$0xff]   ;;  %v14189_v63 = vld [vmem:[%s17407_s1 + $0x1b0] sm:$0xff]  }
 0xb39   : > { %13351 = vmatpush3.bf16.msra.mxu0 %v14166_v0  ;;  %v14188_v35 = vld [vmem:[%s17407_s1 + $0x258] sm:$0xff]  }
 0xb3a   : > { %v9114_v34 = vmax.f32 %v9104_v24, 0.0  ;;  %13352 = vmatprep.subr.bf16.mxu0 %v14167_v16  ;;  %v14190_v24 = vld [vmem:[%s17407_s1 + $0x218] sm:$0xff]  }
 0xb3c   : > { %v9122_v42 = vpack.c.bf16 %v9114_v34, %v9113_v60 }
 0xb3d   : > { %13353 = vmatpush3.bf16.msra.mxu0 %v14168_v18 }
 0xb3e   : > { %13864 = vmatprep.subr.msk.bf16.mxu1 %vm5516_vm1, %v9122_v42  ;;  %v9139_v44 = vsel %vm5516_vm1, %v9122_v42, 0  ;;  %13354 = vmatprep.subr.bf16.mxu0 %v14169_v51  ;;  %v14193_v42 = vld [vmem:[%s17407_s1 + $0x260] sm:$0xff]   ;;  %vm9241_vm1 = vcmask 1043968  }
 0xb3f   : > { %13734 = vmatpush3.bf16.msra.mxu1 %v9139_v44  ;;  %v17006_v44 = vld [vmem:[%s17407_s1 + $0x278] sm:$0xff]  }
 0xb40   : > { %13378 = vmatprep.subr.bf16.mxu1 %v14172_v14 }
 0xb41   : > { %13355 = vmatpush3.bf16.msra.mxu0 %v14170_v12 }
 0xb42   : > { %13736 = vmatmul.mubr.msk.bf16.vlgmr.msra.gmra.mrb[200].mxu1 %vm9131_vm0, %v14164_v22  ;;  %13356 = vmatprep.subr.bf16.mxu0 %v14171_v43  ;;  %v14196_v43 = vld [vmem:[%s17407_s1 + $0x268] sm:$0xff]  }
 0xb43   : > { %13379 = vmatpush3.bf16.msra.mxu1 %v14174_v45 }
 0xb44   : > { %13380 = vmatprep.subr.bf16.mxu1 %v14176_v2  ;;  %v14195_v2 = vld [vmem:[%s17407_s1 + $0x220] sm:$0xff]  }
 0xb45   : > { %13357 = vmatpush3.bf16.msra.mxu0 %v14173_v41 }
 0xb46   : > { %13358 = vmatprep.subr.bf16.mxu0 %v14175_v53 }
 0xb47   : > { %13381 = vmatpush3.bf16.msra.mxu1 %v14178_v7 }
 0xb48   : > { %13382 = vmatprep.subr.bf16.mxu1 %v14180_v55  ;;  %v9380_v55 = vld [vmem:[#allocation4 + $0x20] sm:$0x3f] }
 0xb49   : > { %13359 = vmatpush3.bf16.msra.mxu0 %v14177_v11  ;;  %v14200_v11 = vld [vmem:[%s17407_s1 + $0x270] sm:$0xff]  }
 0xb4a   : > { %13360 = vmatprep.subr.bf16.mxu0 %v14179_v48 }
 0xb4b   : > { %13383 = vmatpush3.bf16.msra.mxu1 %v14182_v52 }
 0xb4c   : > { %13384 = vmatprep.subr.bf16.mxu1 %v14184_v13 }
 0xb4d   : > { %13361 = vmatpush3.bf16.msra.mxu0 %v14181_v46 }
 0xb4e   : > { %13362 = vmatprep.subr.bf16.mxu0 %v14183_v21  ;;  %v12853_v21 = vpack.c.bf16 %v9380_v55, %v9380_v55 }
 0xb4f   : > { %13385 = vmatpush3.bf16.msra.mxu1 %v14186_v47 }
 0xb50   : > { %13386 = vmatprep.subr.bf16.mxu1 %v14188_v35  ;;  %9396 = vst.msk [vmem:[#allocation7 + $0x38] sm:$0x7] %vm9217_vm3, %v12853_v21 }
 0xb51   : > { %13363 = vmatpush3.bf16.msra.mxu0 %v14185_v33  ;;  %v14201_v33 = vld [vmem:[%s17407_s1 + $0x288] sm:$0xff]  }
 0xb52   : > { %13364 = vmatprep.subr.bf16.mxu0 %v14187_v31 }
 0xb53   : > { %13387 = vmatpush3.bf16.msra.mxu1 %v14190_v24 }
 0xb54   : > { %13388 = vmatprep.subr.bf16.mxu1 %v14193_v42 }
 0xb55   : > { %13365 = vmatpush3.bf16.msra.mxu0 %v14189_v63 }
 0xb56   : > { %13739 = vmatprep.subr.bf16.mxu0 %v17006_v44 }
 0xb57   : > { %13389 = vmatpush3.bf16.msra.mxu1 %v14195_v2  ;;  %v14217_v2 = vld [vmem:[%s17407_s1 + $0x1d0] sm:$0xff]  }
 0xb58   : > { %13390 = vmatprep.subr.bf16.mxu1 %v14196_v43 }
 0xc15   : > { %v13737_v57 = vpop.f32.mrb[200].mxu1 }
 0xc16   : > { %9191 = vst.msk [vmem:[#allocation4 + $0x18] sm:$0xff] %vm262_vm15, %v13737_v57  ;;  %v9175_v27 = vpop.f32.mrb[201].mxu1  ;;  %v14198_v57 = vld [vmem:[%s17407_s1 + $0x228] sm:$0xff]  }
 0xc17   : > { %9189 = vst.msk [vmem:[#allocation4 + $0x8] sm:$0xff] %vm262_vm15, %v9175_v27  ;;  %v13738_v61 = vpop.f32.mrb[202].mxu1  ;;  %13391 = vmatpush3.bf16.msra.mxu1 %v14198_v57 }
 0xc18   : > { %v9178_v49 = vpop.f32.mrb[203].mxu1  ;;  %13392 = vmatprep.subr.bf16.mxu1 %v14200_v11 }
 0xc19   : > { %9190 = vst.msk [vmem:[#allocation4 + $0x10] sm:$0xff] %vm262_vm15, %v9178_v49  ;;  %v14202_v49 = vld [vmem:[%s17407_s1 + $0x230] sm:$0xff]  }
 0xc1b   : > { %13393 = vmatpush3.bf16.msra.mxu1 %v14202_v49 }
 0xc1d   : > { %v9379_v39 = vld [vmem:[#allocation4 + $0x18] sm:$0xff] }
 0xc1e   : > { %v12852_v5 = vpack.c.bf16 %v9379_v39, %v9379_v39  ;;  %v9219_v40 = vld [vmem:[#allocation4 + $0x3] sm:$0xff]  ;;  %v9267_v62 = vld [vmem:[#allocation4 + $0x18] sm:$0x3f] }
 0xc1f   : > { %v12830_v15 = vpack.c.bf16 %v9219_v40, %v9219_v40  ;;  %v9265_v30 = vld [vmem:[#allocation4 + $0x8] sm:$0xff]  ;;  %v9292_v16 = vld [vmem:[#allocation4 + $0x19] sm:$0x3f]  ;;  %v12838_v45 = vpack.c.bf16 %v9267_v62, %v9267_v62  ;;  %v9355_v52 = vld [vmem:[#allocation4 + $0x1f] sm:$0x3f] }
 0xc20   : > { %v9198_v4 = vld [vmem:[#allocation4 + $0x2] sm:$0xff]  ;;  %v16963_v50 = vld [vmem:[#allocation4 + $0x11] sm:$0xff]  ;;  %9395 = vst.msk [vmem:[#allocation7 + $0x24] sm:$0xf] %vm9214_vm2, %v12852_v5  ;;  %v12836_v38 = vpack.c.bf16 %v9265_v30, %v9265_v30  ;;  %v12841_v14 = vpack.c.bf16 %v9292_v16, %v9292_v16  ;;  %v9311_v7 = vld [vmem:[#allocation4 + $0x1a] sm:$0x3f]  ;;  %v12850_v13 = vpack.c.bf16 %v9355_v52, %v9355_v52 }
 0xc21   : > { %v9246_v59 = vld [vmem:[#allocation4 + $0x4] sm:$0xff]  ;;  %v9378_v10 = vld [vmem:[#allocation4 + $0x10] sm:$0xff]  ;;  %v12827_v37 = vpack.c.bf16 %v9198_v4, %v9198_v4  ;;  %9232 = vrot.lane.b32.xlu1 %v12830_v15, %s14355_s13  ;;  %v12840_v8 = vpack.c.bf16 %v16963_v50, %v16963_v50  ;;  %v9336_v18 = vld [vmem:[#allocation4 + $0x1e] sm:$0x3f]  ;;  %v12844_v46 = vpack.c.bf16 %v9311_v7, %v9311_v7  ;;  %v14360_v30 = vmov 1  }
 0xc22   : > { %v16961_v56 = vld [vmem:[#allocation4 + $0x9] sm:$0xff]  ;;  %v12833_v1 = vpack.c.bf16 %v9246_v59, %v9246_v59  ;;  %v12851_v3 = vpack.c.bf16 %v9378_v10, %v9378_v10  ;;  %v9221_v25 = vld [vmem:[#allocation4 + $0x13] sm:$0x3f]  ;;  %v12847_v51 = vpack.c.bf16 %v9336_v18, %v9336_v18  ;;  %9308 = vst.msk [vmem:[#allocation7 + $0x30] sm:$0x7] %vm9217_vm3, %v12841_v14  ;;  %v9192_v40 = vld [vmem:[%s17411_s5] sm:$0xff]  ;;  %13917 = vset.pattern.permute.xlu1 %v14360_v30 }
 0xc23   : > { %v9220_v9 = vld [vmem:[#allocation4 + $0xb] sm:$0xff]  ;;  %v12839_v6 = vpack.c.bf16 %v16961_v56, %v16961_v56  ;;  %9215 = vst.msk [vmem:[#allocation7] sm:$0xf] %vm9214_vm2, %v12827_v37  ;;  %v9248_v29 = vld [vmem:[#allocation4 + $0x14] sm:$0x3f]  ;;  %v12832_v34 = vpack.c.bf16 %v9221_v25, %v9221_v25  ;;  %13918 = vset.pattern.permute.xlu0 %v14360_v30  ;;  %v14214_v16 = vld [vmem:[%s17407_s1 + $0x180] sm:$0xff]  }
 0xc24   : > { %v9309_v17 = vld [vmem:[#allocation4 + $0xa] sm:$0xff]  ;;  %v12831_v54 = vpack.c.bf16 %v9220_v9, %v9220_v9  ;;  %9262 = vst.msk [vmem:[#allocation7 + $0x4] sm:$0xf] %vm9214_vm2, %v12833_v1  ;;  %9394 = vst.msk [vmem:[#allocation7 + $0x10] sm:$0xf] %vm9214_vm2, %v12851_v3  ;;  %v12835_v23 = vpack.c.bf16 %v9248_v29, %v9248_v29  ;;  %v9335_v28 = vld [vmem:[#allocation4 + $0x16] sm:$0xff] }
 0xc25   : > { %v12842_v19 = vpack.c.bf16 %v9309_v17, %v9309_v17  ;;  %v9247_v26 = vld [vmem:[#allocation4 + $0xc] sm:$0xff]  ;;  %9306 = vst.msk [vmem:[#allocation7 + $0x8] sm:$0xf] %vm9214_vm2, %v12839_v6  ;;  %9307 = vst.msk [vmem:[#allocation7 + $0x1c] sm:$0xf] %vm9214_vm2, %v12840_v8  ;;  %9278 = vrot.lane.b32.xlu1 %v12836_v38, %s14355_s13  ;;  %v12846_v0 = vpack.c.bf16 %v9335_v28, %v9335_v28  ;;  %v9354_v61 = vld [vmem:[#allocation4 + $0x17] sm:$0xff] }
 0xc26   : > { %v9200_v58 = vld [vmem:[#allocation4 + $0x12] sm:$0x3f]  ;;  %9234 = vrot.lane.b32.xlu0 %v12831_v54, %s14355_s13  ;;  %v12834_v32 = vpack.c.bf16 %v9247_v26, %v9247_v26  ;;  %9264 = vst.msk [vmem:[#allocation7 + $0x2c] sm:$0x7] %vm9217_vm3, %v12835_v23  ;;  %9352 = vst.msk [vmem:[#allocation7 + $0x34] sm:$0x7] %vm9217_vm3, %v12847_v51  ;;  %v12849_v48 = vpack.c.bf16 %v9354_v61, %v9354_v61 }
 0xc27   : > { %9216 = vst.msk [vmem:[#allocation7 + $0x14] sm:$0xf] %vm9214_vm2, %v12842_v19  ;;  %v12829_v20 = vpack.c.bf16 %v9200_v58, %v9200_v58  ;;  %v9334_v60 = vld [vmem:[#allocation4 + $0xe] sm:$0xff]  ;;  %9351 = vst.msk [vmem:[#allocation7 + $0x20] sm:$0xf] %vm9214_vm2, %v12846_v0  ;;  %v14197_v58 = vld [vmem:[%s17407_s1 + $0x280] sm:$0xff]  }
 0xc28   : > { %9263 = vst.msk [vmem:[#allocation7 + $0x18] sm:$0xf] %vm9214_vm2, %v12834_v32  ;;  %v12845_v22 = vpack.c.bf16 %v9334_v60, %v9334_v60  ;;  %v9310_v12 = vld [vmem:[#allocation4 + $0x12] sm:$0xff]  ;;  %v10105_v39 = vld [vmem:[#allocation4 + $0x20] sm:$0x3f]  ;;  %v9193_v15 = vld [vmem:[%s17411_s5 + $0x8] sm:$0xff] }
 0xc29   : > { %9218 = vst.msk [vmem:[#allocation7 + $0x28] sm:$0x7] %vm9217_vm3, %v12829_v20  ;;  %9236 = vrot.lane.b32.xlu1 %v12832_v34, %s14355_s13  ;;  %v9353_v41 = vld [vmem:[#allocation4 + $0xf] sm:$0xff]  ;;  %v12843_v53 = vpack.c.bf16 %v9310_v12, %v9310_v12  ;;  %v12880_v5 = vpack.c.bf16 %v10105_v39, %v10105_v39  ;;  %v14208_v59 = vld [vmem:[#allocation7 + $0x38] ss:$0 sps:$4 sm:$0x77]  }
 0xc2a   : > { %9280 = vrot.lane.b32.xlu0 %v12851_v3, %s14355_s13  ;;  %9350 = vst.msk [vmem:[#allocation7 + $0xc] sm:$0xf] %vm9214_vm2, %v12845_v22  ;;  %v12848_v27 = vpack.c.bf16 %v9353_v41, %v9353_v41  ;;  %v9194_v4 = vld [vmem:[%s17411_s5 + $0x10] sm:$0x3f]  ;;  %v14212_v22 = vld [vmem:[%s17407_s1 + $0x178] sm:$0xff]   ;;  %v14213_v28 = vld [vmem:[%s17407_s1 + $0x1c0] sm:$0xff]  }
 0xc2b   : > { %10121 = vst.msk [vmem:[#allocation7 + $0x38] sm:$0x7] %vm9217_vm3, %v12880_v5  ;;  %v14207_v62 = vld [vmem:[%s17407_s1 + $0x290] sm:$0xff]   ;;  %v14218_v0 = vld [vmem:[%s17407_s1 + $0x238] sm:$0xff]   ;;  %v14215_v18 = vld [vmem:[%s17407_s1 + $0x1c8] sm:$0xff]  }
 0xc2c   : > { %v14203_v35 = vld [vmem:[#allocation7 + $0x10] ss:$20 sps:$4 sm:$0xff]   ;;  %v14220_v14 = vld [vmem:[%s17407_s1 + $0x1f8] sm:$0xff]   ;;  %13440 = vmatprep.subr.bf16.mxu1 %v14218_v0  ;;  %v17105_v30 = vld [vmem:[%s17409_s3 + $0x8] ss:$0 sm:$0xff] }
 0xc2d   : > { %9322 = vrot.lane.b32.xlu1 %v12842_v19, %s14355_s13  ;;  %v14219_v51 = vld [vmem:[%s17407_s1 + $0x190] sm:$0xff]  }
 0xc2e   : > { %9282 = vrot.lane.b32.xlu0 %v12838_v45, %s14355_s13  ;;  %v14216_v45 = vld [vmem:[%s17407_s1 + $0x188] sm:$0xff]  }
 0xc31   : > { %9366 = vrot.lane.b32.xlu1 %v12848_v27, %s14355_s13 }
 0xc32   : > { %9324 = vrot.lane.b32.xlu0 %v12843_v53, %s14355_s13 }
 0xc35   : > { %9326 = vrot.lane.b32.xlu1 %v12844_v46, %s14355_s13 }
 0xc36   : > { %9368 = vrot.lane.b32.xlu0 %v12849_v48, %s14355_s13 }
 0xc39   : > { %9907 = vperm.xlu1 %13917, %v9192_v40  }
 0xc3a   : > { %9370 = vrot.lane.b32.xlu0 %v12850_v13, %s14355_s13 }
 0xc3d   : > { %9917 = vperm.xlu1 %13917, %v9194_v4  }
 0xc3e   : > { %9912 = vperm.xlu0 %13918, %v9193_v15  }
 0xc93   : > { %v9233_v10 = vpop.permute.xlu1 %9232 }
 0xc94   : > { %9242 = vst.msk [vmem:[#allocation7] sm:$0xf] %vm9241_vm1, %v9233_v10 }
 0xc97   : > { %v9279_v1 = vpop.permute.xlu1 %9278 }
 0xc98   : > { %v9235_v37 = vpop.permute.xlu0 %9234  ;;  %9287 = vst.msk [vmem:[#allocation7 + $0x4] sm:$0xf] %vm9241_vm1, %v9279_v1  ;;  %v17110_v1 = vld [vmem:[%s17409_s3 + $0x9] ss:$0 sm:$0xff] }
 0xc99   : > { %9243 = vst.msk [vmem:[#allocation7 + $0x14] sm:$0xf] %vm9241_vm1, %v9235_v37 }
 0xc9b   : > { %v9237_v9 = vpop.permute.xlu1 %9236 }
 0xc9c   : > { %v9281_v3 = vpop.permute.xlu0 %9280  ;;  %9245 = vst.msk [vmem:[#allocation7 + $0x28] sm:$0x7] %vm9244_vm5, %v9237_v9 }
 0xc9d   : > { %9288 = vst.msk [vmem:[#allocation7 + $0x18] sm:$0xf] %vm9241_vm1, %v9281_v3 }
 0xc9f   : > { %v9323_v6 = vpop.permute.xlu1 %9322  ;;  %v9397_v54 = vld [vmem:[#allocation7] sm:$0xff] }
 0xca0   : > { %v9283_v17 = vpop.permute.xlu0 %9282  ;;  %9331 = vst.msk [vmem:[#allocation7 + $0x8] sm:$0xf] %vm9241_vm1, %v9323_v6 }
 0xca1   : > { %9289 = vst.msk [vmem:[#allocation7 + $0x2c] sm:$0x7] %vm9244_vm5, %v9283_v17 }
 0xca3   : > { %v9367_v38 = vpop.permute.xlu1 %9366 }
 0xca4   : > { %v9325_v8 = vpop.permute.xlu0 %9324  ;;  %v9400_v25 = vld [vmem:[#allocation7 + $0x14] sm:$0xff]  ;;  %9375 = vst.msk [vmem:[#allocation7 + $0xc] sm:$0xf] %vm9241_vm1, %v9367_v38 }
 0xca5   : > { %v14191_v19 = vld [vmem:[#allocation7 + $0x4] ss:$20 sps:$4 sm:$0xff]   ;;  %9332 = vst.msk [vmem:[#allocation7 + $0x1c] sm:$0xf] %vm9241_vm1, %v9325_v8  ;;  %v12057_v26 = vcombine.low %v9397_v54, %v9400_v25 }
 0xca6   : > { %9774 = vmatprep.mubr.bf16.mxu0 %v14191_v19 }
 0xca7   : > { %9775 = vmatmul.mubr.bf16.vlgmr.msra.gmra.mrb[240].mxu0 %v12057_v26  ;;  %v9327_v23 = vpop.permute.xlu1 %9326 }
 0xca8   : > { %v9369_v29 = vpop.permute.xlu0 %9368  ;;  %13740 = vmatpush3.bf16.msra.mxu0 %v17006_v44  ;;  %v9403_v32 = vld [vmem:[#allocation7 + $0x28] sm:$0x77]  ;;  %9333 = vst.msk [vmem:[#allocation7 + $0x30] sm:$0x7] %vm9244_vm5, %v9327_v23  ;;  %v14211_v44 = vld [vmem:[%s17407_s1 + $0x1b8] sm:$0xff]  }
 0xca9   : > { %9376 = vst.msk [vmem:[#allocation7 + $0x20] sm:$0xf] %vm9241_vm1, %v9369_v29  ;;  %13741 = vmatprep.subr.bf16.mxu0 %v14197_v58  ;;  %v12063_v20 = vcombine.high %v9403_v32, %v9403_v32  ;;  %v12062_v31 = vcombine.low %v9403_v32, %v9403_v32  ;;  %v14221_v23 = vld [vmem:[%s17407_s1 + $0x1d8] sm:$0xff]  }
 0xcab   : > { %9782 = vmatprep.mubr.bf16.mxu0 %v12063_v20 }
 0xcac   : > { %13742 = vmatpush3.bf16.msra.mxu0 %v14197_v58  ;;  %v9371_v47 = vpop.permute.xlu0 %9370  ;;  %v14206_v24 = vld [vmem:[#allocation7 + $0x8] ss:$20 sps:$4 sm:$0xff]  }
 0xcad   : > { %9377 = vst.msk [vmem:[#allocation7 + $0x34] sm:$0x7] %vm9244_vm5, %v9371_v47  ;;  %13743 = vmatprep.subr.bf16.mxu0 %v14201_v33 }
 0xcaf   : > { %9783 = vmatmul.mubr.bf16.gmra.mrb[244].mxu0 %v12062_v31 }
 0xcb0   : > { %13744 = vmatpush3.bf16.msra.mxu0 %v14201_v33  ;;  %13747 = vmatprep.mubr.msk.bf16.mxu0 %vm262_vm15, %v14203_v35  ;;  %v14204_v63 = vld [vmem:[#allocation7 + $0xc] ss:$20 sps:$4 sm:$0xff]   ;;  %v14223_v35 = vld [vmem:[%s17407_s1 + $0x198] sm:$0xff]  }
 0xcb1   : > { %13745 = vmatprep.subr.bf16.mxu0 %v14207_v62  ;;  %9822 = vmatprep.mubr.bf16.mxu1 %v14204_v63  ;;  %v14222_v33 = vld [vmem:[%s17407_s1 + $0x240] sm:$0xff]  }
 0xcb2   : > { %9823 = vmatmul.mubr.bf16.vlgmr.msra.gmra.mrb[204].mxu1 %v14206_v24  ;;  %v14224_v63 = vld [vmem:[%s17407_s1 + $0x200] sm:$0xff]  }
 0xcb3   : > { %13441 = vmatpush3.bf16.msra.mxu1 %v14220_v14  ;;  %v14229_v14 = vld [vmem:[%s17407_s1 + $0x1e8] sm:$0xff]  }
 0xcb4   : > { %13746 = vmatpush3.bf16.msra.mxu0 %v14207_v62  ;;  %v9404_v60 = vld [vmem:[#allocation7 + $0x30] sm:$0x77]  ;;  %13442 = vmatprep.subr.bf16.mxu1 %v14222_v33 }
 0xcb5   : > { %v12065_v34 = vcombine.high %v9404_v60, %v9404_v60  ;;  %v12064_v42 = vcombine.low %v9404_v60, %v9404_v60  ;;  %13412 = vmatprep.subr.bf16.mxu0 %v14211_v44 }
 0xcb7   : > { %13748 = vmatmul.mubr.msk.bf16.vlgmr.msra.gmra.mrb[248].mxu0 %vm262_vm15, %v14208_v59  ;;  %9830 = vmatprep.mubr.bf16.mxu1 %v12065_v34  ;;  %v14225_v34 = vld [vmem:[%s17407_s1 + $0x1e0] sm:$0xff]  }
 0xcb8   : > { %13413 = vmatpush3.bf16.msra.mxu0 %v14212_v22  ;;  %v17116_v32 = vpop.permute.xlu1 %9907  ;;  %13443 = vmatpush3.bf16.msra.mxu1 %v14224_v63  ;;  %v14227_v22 = vld [vmem:[%s17407_s1 + $0x1a0] sm:$0xff]  }
 0xcb9   : > { %13414 = vmatprep.subr.bf16.mxu0 %v14213_v28  ;;  %v14228_v28 = vld [vmem:[%s17407_s1 + $0x208] sm:$0xff]  }
 0xcba   : > { %9831 = vmatmul.mubr.bf16.gmra.mrb[208].mxu1 %v12064_v42  ;;  %v14226_v42 = vld [vmem:[%s17407_s1 + $0x248] sm:$0xff]  }
 0xcbb   : > { %13444 = vmatprep.subr.bf16.mxu1 %v14226_v42 }
 0xcbc   : > { %13415 = vmatpush3.bf16.msra.mxu0 %v14214_v16  ;;  %v17150_v16 = vpop.permute.xlu1 %9917  ;;  %13445 = vmatpush3.bf16.msra.mxu1 %v14228_v28 }
 0xcbd   : > { %13416 = vmatprep.subr.bf16.mxu0 %v14215_v18  ;;  %v17118_v20 = vpop.permute.xlu0 %9912  ;;  %v14230_v18 = vld [vmem:[%s17407_s1 + $0x250] sm:$0xff]  }
 0xcbe   : > { %13446 = vmatprep.subr.bf16.mxu1 %v14230_v18 }
 0xcc0   : > { %13417 = vmatpush3.bf16.msra.mxu0 %v14216_v45 }
 0xcc1   : > { %13418 = vmatprep.subr.bf16.mxu0 %v14217_v2  ;;  %v17159_v2 = vld [vmem:[#allocation4 + $0x19] sm:$0x3f] }
 0xcc4   : > { %13419 = vmatpush3.bf16.msra.mxu0 %v14219_v51 }
 0xcc5   : > { %13420 = vmatprep.subr.bf16.mxu0 %v14221_v23 }
 0xcc8   : > { %13421 = vmatpush3.bf16.msra.mxu0 %v14223_v35 }
 0xcc9   : > { %13422 = vmatprep.subr.bf16.mxu0 %v14225_v34 }
 0xccc   : > { %13423 = vmatpush3.bf16.msra.mxu0 %v14227_v22 }
 0xccd   : > { %13424 = vmatprep.subr.bf16.mxu0 %v14229_v14 }
 0xd7a   : > { %v13366_v12 = vpop.f32.mrb[240].mxu0 }
 0xd7b   : > { %v13367_v43 = vpop.f32.mrb[241].mxu0 }
 0xd7c   : > { %v13368_v41 = vadd.f32 %v13367_v43, %v13366_v12  ;;  %v13369_v53 = vpop.f32.mrb[242].mxu0 }
 0xd7d   : > { %v13370_v57 = vpop.f32.mrb[243].mxu0 }
 0xd7e   : > { %v13371_v27 = vadd.f32 %v13370_v57, %v13369_v53  ;;  %v14231_v57 = vld [vmem:[%s17407_s1 + $0x1a8] sm:$0xff]  }
 0xd7f   : > { %13425 = vmatpush3.bf16.msra.mxu0 %v14231_v57 }
 0xd82   : > { %v13372_v61 = vpop.f32.mrb[244].mxu0 }
 0xd83   : > { %v13373_v11 = vpop.f32.mrb[245].mxu0 }
 0xd84   : > { %v13374_v7 = vadd.f32 %v13373_v11, %v13372_v61  ;;  %v13375_v48 = vpop.f32.mrb[246].mxu0 }
 0xd85   : > { %v13376_v49 = vpop.f32.mrb[247].mxu0  ;;  %v13394_v55 = vpop.f32.mrb[204].mxu1 }
 0xd86   : > { %v13395_v46 = vpop.f32.mrb[205].mxu1 }
 0xd87   : > { %v13396_v52 = vadd.f32 %v13395_v46, %v13394_v55  ;;  %v13397_v21 = vpop.f32.mrb[206].mxu1 }
 0xd88   : > { %v13398_v13 = vpop.f32.mrb[207].mxu1 }
 0xd89   : > { %v13399_v39 = vadd.f32 %v13398_v13, %v13397_v21  ;;  %v9825_v40 = vadd.f32 %v13396_v52, %v13368_v41 }
 0xd8a   : > { %v13749_v5 = vpop.f32.mrb[248].mxu0 }
 0xd8b   : > { %v9872_v15 = vpop.f32.mrb[249].mxu0  ;;  %v9828_v10 = vadd.f32 %v13399_v39, %v13371_v27  ;;  %v14232_v27 = vld [vmem:[%s17407_s1 + $0x210] sm:$0xff]  }
 0xd8c   : > { %v9873_v4 = vadd.f32 %v9872_v15, %v9825_v40  ;;  %v13750_v59 = vpop.f32.mrb[250].mxu0  ;;  %13447 = vmatpush3.bf16.msra.mxu1 %v14232_v27  ;;  %v14233_v15 = vld [vmem:[%s17407_s1 + $0x1f0] sm:$0xff]  }
 0xd8d   : > { %v9875_v37 = vpop.f32.mrb[251].mxu0  ;;  %v13400_v17 = vpop.f32.mrb[208].mxu1  ;;  %13426 = vmatprep.subr.bf16.mxu0 %v14233_v15 }
 0xd8e   : > { %v9892_v3 = vmul.f32 %v17105_v30, %v9873_v4  ;;  %v9876_v9 = vadd.f32 %v9875_v37, %v9828_v10  ;;  %v13401_v6 = vpop.f32.mrb[209].mxu1  ;;  %v14234_v37 = vld [vmem:[%s17407_s1 + $0x258] sm:$0xff]  }
 0xd8f   : > { %v13402_v54 = vadd.f32 %v13401_v6, %v13400_v17  ;;  %v13403_v19 = vpop.f32.mrb[210].mxu1  ;;  %v14236_v6 = vld [vmem:[%s17407_s1 + $0x218] sm:$0xff]   ;;  %13448 = vmatprep.subr.bf16.mxu1 %v14234_v37 }
 0xd90   : > { %v9893_v8 = vmul.f32 %v17105_v30, %v9876_v9  ;;  %v9899_v25 = vadd.f32 %v17110_v1, %v9892_v3  ;;  %v13404_v38 = vpop.f32.mrb[211].mxu1  ;;  %v14235_v9 = vld [vmem:[%s17407_s1 + $0x1b0] sm:$0xff]   ;;  %v17199_v19 = vld [vmem:[%s17407_s1 + $0x278] sm:$0xff]   ;;  %13449 = vmatpush3.bf16.msra.mxu1 %v14236_v6 }
 0xd91   : > { %v9833_v26 = vadd.f32 %v13402_v54, %v13374_v7  ;;  %v14240_v54 = vld [vmem:[%s17407_s1 + $0x260] sm:$0xff]   ;;  %13427 = vmatpush3.bf16.msra.mxu0 %v14235_v9 }
 0xd92   : > { %v9902_v58 = vmax.f32 %v9899_v25, 0.0  ;;  %v9900_v29 = vadd.f32 %v17110_v1, %v9893_v8  ;;  %13450 = vmatprep.subr.bf16.mxu1 %v14240_v54  ;;  %13751 = vmatprep.subr.bf16.mxu0 %v17199_v19 }
 0xd93   : > { %v9881_v47 = vadd.f32 %v13749_v5, %v9833_v26 }
 0xd94   : > { %v9920_v31 = vmul.f32 %v17116_v32, %v9902_v58  ;;  %v9903_v62 = vmax.f32 %v9900_v29, 0.0 }
 0xd95   : > { %v9894_v60 = vmul.f32 %v17105_v30, %v9881_v47  ;;  %v14242_v47 = vld [vmem:[%s17407_s1 + $0x220] sm:$0xff]  }
 0xd96   : > { %9923 = vst.msk [vmem:[#allocation4 + $0x9] sm:$0xff] %vm262_vm15, %v9920_v31  ;;  %v9921_v24 = vmul.f32 %v17118_v20, %v9903_v62  ;;  %v14243_v62 = vld [vmem:[%s17407_s1 + $0x268] sm:$0xff]   ;;  %13451 = vmatpush3.bf16.msra.mxu1 %v14242_v47 }
 0xd97   : > { %v9901_v44 = vadd.f32 %v17110_v1, %v9894_v60  ;;  %13452 = vmatprep.subr.bf16.mxu1 %v14243_v62 }
 0xd98   : > { %9924 = vst.msk [vmem:[#allocation4 + $0x11] sm:$0xff] %vm262_vm15, %v9921_v24 }
 0xd99   : > { %v9904_v0 = vmax.f32 %v9901_v44, 0.0  ;;  %v14245_v44 = vld [vmem:[%s17407_s1 + $0x228] sm:$0xff]  }
 0xd9a   : > { %13453 = vmatpush3.bf16.msra.mxu1 %v14245_v44 }
 0xd9b   : > { %v9922_v45 = vmul.f32 %v17150_v16, %v9904_v0  ;;  %v14248_v0 = vld [vmem:[%s17407_s1 + $0x270] sm:$0xff]  }
 0xd9c   : > { %13454 = vmatprep.subr.bf16.mxu1 %v14248_v0 }
 0xd9d   : > { %v9946_v51 = vld [vmem:[#allocation4 + $0x3] sm:$0xff]  ;;  %9926 = vst.msk [vmem:[#allocation4 + $0x19] sm:$0x3f] %vm9925_vm6, %v9922_v45  ;;  %v14250_v45 = vld [vmem:[%s17407_s1 + $0x230] sm:$0xff]  }
 0xd9e   : > { %v9927_v12 = vld [vmem:[#allocation4 + $0x2] sm:$0xff]  ;;  %v12857_v43 = vpack.c.bf16 %v9946_v51, %v9946_v51  ;;  %13455 = vmatpush3.bf16.msra.mxu1 %v14250_v45 }
 0xd9f   : > { %v12854_v41 = vpack.c.bf16 %v9927_v12, %v9927_v12  ;;  %v9971_v53 = vld [vmem:[#allocation4 + $0x4] sm:$0xff]  ;;  %v9991_v7 = vld [vmem:[#allocation4 + $0x10] sm:$0xff]  ;;  %13771 = vmatprep.subr.bf16.mxu1 %v14350_v36 }
 0xda0   : > { %v9947_v61 = vld [vmem:[#allocation4 + $0xb] sm:$0xff]  ;;  %v12860_v48 = vpack.c.bf16 %v9971_v53, %v9971_v53  ;;  %9959 = vrot.lane.b32.xlu1 %v12857_v43, %s14355_s13  ;;  %v12864_v55 = vpack.c.bf16 %v9991_v7, %v9991_v7  ;;  %v9948_v21 = vld [vmem:[#allocation4 + $0x13] sm:$0x3f] }
 0xda1   : > { %v9990_v11 = vld [vmem:[#allocation4 + $0x8] sm:$0xff]  ;;  %v12858_v49 = vpack.c.bf16 %v9947_v61, %v9947_v61  ;;  %9943 = vst.msk [vmem:[#allocation7] sm:$0xf] %vm9214_vm2, %v12854_v41  ;;  %v9929_v5 = vld [vmem:[#allocation4 + $0x12] sm:$0x3f]  ;;  %v12859_v26 = vpack.c.bf16 %v9948_v21, %v9948_v21 }
 0xda2   : > { %v10034_v46 = vld [vmem:[#allocation4 + $0xa] sm:$0xff]  ;;  %9987 = vst.msk [vmem:[#allocation7 + $0x4] sm:$0xf] %vm9214_vm2, %v12860_v48  ;;  %v12863_v4 = vpack.c.bf16 %v9990_v11, %v9990_v11  ;;  %v12856_v59 = vpack.c.bf16 %v9929_v5, %v9929_v5  ;;  %10119 = vst.msk [vmem:[#allocation7 + $0x10] sm:$0xf] %vm9214_vm2, %v12864_v55 }
 0xda3   : > { %v9972_v52 = vld [vmem:[#allocation4 + $0xc] sm:$0xff]  ;;  %v17170_v13 = vpack.c.bf16 %v10034_v46, %v10034_v46  ;;  %9961 = vrot.lane.b32.xlu0 %v12858_v49, %s14355_s13  ;;  %v10080_v41 = vld [vmem:[#allocation4 + $0x1f] sm:$0x3f] }
 0xda4   : > { %v12861_v39 = vpack.c.bf16 %v9972_v52, %v9972_v52  ;;  %v10015_v40 = vld [vmem:[#allocation4 + $0x9] sm:$0xff]  ;;  %v10016_v3 = vld [vmem:[#allocation4 + $0x11] sm:$0xff]  ;;  %10003 = vrot.lane.b32.xlu1 %v12863_v4, %s14355_s13  ;;  %9945 = vst.msk [vmem:[#allocation7 + $0x28] sm:$0x7] %vm9217_vm3, %v12856_v59  ;;  %v10017_v31 = vld [vmem:[#allocation4 + $0x19] sm:$0x3f]  ;;  %v12877_v57 = vpack.c.bf16 %v10080_v41, %v10080_v41 }
 0xda5   : > { %v12866_v10 = vpack.c.bf16 %v10015_v40, %v10015_v40  ;;  %9944 = vst.msk [vmem:[#allocation7 + $0x14] sm:$0xf] %vm9214_vm2, %v17170_v13  ;;  %v12867_v17 = vpack.c.bf16 %v10016_v3, %v10016_v3  ;;  %v10059_v8 = vld [vmem:[#allocation4 + $0xe] sm:$0xff]  ;;  %v9992_v38 = vld [vmem:[#allocation4 + $0x18] sm:$0x3f]  ;;  %v12868_v63 = vpack.c.bf16 %v10017_v31, %v10017_v31 }
 0xda6   : > { %9988 = vst.msk [vmem:[#allocation7 + $0x18] sm:$0xf] %vm9214_vm2, %v12861_v39  ;;  %v12872_v25 = vpack.c.bf16 %v10059_v8, %v10059_v8  ;;  %v9973_v58 = vld [vmem:[#allocation4 + $0x14] sm:$0x3f]  ;;  %v12865_v35 = vpack.c.bf16 %v9992_v38, %v9992_v38  ;;  %v10061_v24 = vld [vmem:[#allocation4 + $0x1e] sm:$0x3f] }
 0xda7   : > { %10031 = vst.msk [vmem:[#allocation7 + $0x8] sm:$0xf] %vm9214_vm2, %v12866_v10  ;;  %10032 = vst.msk [vmem:[#allocation7 + $0x1c] sm:$0xf] %vm9214_vm2, %v12867_v17  ;;  %10005 = vrot.lane.b32.xlu0 %v12864_v55, %s14355_s13  ;;  %v10060_v29 = vld [vmem:[#allocation4 + $0x16] sm:$0xff]  ;;  %v12862_v23 = vpack.c.bf16 %v9973_v58, %v9973_v58  ;;  %v12874_v42 = vpack.c.bf16 %v10061_v24, %v10061_v24  ;;  %v14249_v4 = vld [vmem:[%s17407_s1 + $0x288] sm:$0xff]  }
 0xda8   : > { %10075 = vst.msk [vmem:[#allocation7 + $0xc] sm:$0xf] %vm9214_vm2, %v12872_v25  ;;  %v12873_v33 = vpack.c.bf16 %v10060_v29, %v10060_v29  ;;  %9963 = vrot.lane.b32.xlu1 %v12859_v26, %s14355_s13  ;;  %v10104_v60 = vld [vmem:[#allocation4 + $0x18] sm:$0xff]  ;;  %v10078_v28 = vld [vmem:[#allocation4 + $0xf] sm:$0xff]  ;;  %v14259_v38 = vld [vmem:[%s17410_s4] sm:$0xff]  }
 0xda9   : > { %v10035_v34 = vld [vmem:[#allocation4 + $0x12] sm:$0xff]  ;;  %9989 = vst.msk [vmem:[#allocation7 + $0x2c] sm:$0x7] %vm9217_vm3, %v12862_v23  ;;  %v12879_v22 = vpack.c.bf16 %v10104_v60, %v10104_v60  ;;  %10033 = vst.msk [vmem:[#allocation7 + $0x30] sm:$0x7] %vm9217_vm3, %v12868_v63  ;;  %v12875_v51 = vpack.c.bf16 %v10078_v28, %v10078_v28  ;;  %v14260_v26 = vld [vmem:[%s17410_s4 + $0x8] sm:$0xff]  }
 0xdaa   : > { %10076 = vst.msk [vmem:[#allocation7 + $0x20] sm:$0xf] %vm9214_vm2, %v12873_v33  ;;  %v12870_v14 = vpack.c.bf16 %v10035_v34, %v10035_v34  ;;  %v10079_v18 = vld [vmem:[#allocation4 + $0x17] sm:$0xff] }
 0xdab   : > { %10007 = vrot.lane.b32.xlu0 %v12865_v35, %s14355_s13  ;;  %10077 = vst.msk [vmem:[#allocation7 + $0x34] sm:$0x7] %vm9217_vm3, %v12874_v42  ;;  %v10036_v12 = vld [vmem:[#allocation4 + $0x1a] sm:$0x3f]  ;;  %v12876_v43 = vpack.c.bf16 %v10079_v18, %v10079_v18  ;;  %v14255_v3 = vld [vmem:[%s17407_s1 + $0x290] sm:$0xff]  }
 0xdac   : > { %10120 = vst.msk [vmem:[#allocation7 + $0x24] sm:$0xf] %vm9214_vm2, %v12879_v22  ;;  %10047 = vrot.lane.b32.xlu1 %v17170_v13, %s14355_s13  ;;  %v12871_v53 = vpack.c.bf16 %v10036_v12, %v10036_v12  ;;  %v14244_v13 = vld [vmem:[%s17407_s1 + $0x280] sm:$0xff]   ;;  %v14257_v8 = vld [vmem:[#allocation7 + $0x38] ss:$0 sps:$4 sm:$0x77]  }
 0xdad   : > { %v14261_v58 = vld [vmem:[%s17410_s4 + $0x10] sm:$0xff]   ;;  %v14262_v29 = vld [vmem:[%s17410_s4 + $0x18] sm:$0xff]  }
 0xdaf   : > { %10049 = vrot.lane.b32.xlu0 %v12870_v14, %s14355_s13 }
 0xdb0   : > { %10091 = vrot.lane.b32.xlu1 %v12875_v51, %s14355_s13 }
 0xdb3   : > { %10093 = vrot.lane.b32.xlu0 %v12876_v43, %s14355_s13  ;;  %v14251_v9 = vld [vmem:[#allocation7 + $0x10] ss:$20 sps:$4 sm:$0xff]  }
 0xdb4   : > { %10051 = vrot.lane.b32.xlu1 %v12871_v53, %s14355_s13 }
 0xdb7   : > { %10095 = vrot.lane.b32.xlu0 %v12877_v57, %s14355_s13  ;;  %s11024_s13 = sshll.u32 %s243_s15, 4  ;;  %s17366_s13 = int_to_ptr.vmem [resolvable:$true] %s11024_s13 }
 0xdb8   : > { %s14286_s25 = scalar_lea.vmem %s17366_s13, 16  ;;  %p14293_p0 = scmp.lt.s32.totalorder %s17366_s13, %s14291_s17 }
 0xdb9   : > { %p14287_p11 = scmp.ne.s32.totalorder %s17366_s13, %s14286_s25  ;;  %p14294_p1 = scmp.lt.s32.totalorder %s14292_s18, %s14286_s25 }
 0xdbb   : > { %p14288_p12 = pnand %p14287_p11, %p14435_p5  ;;  %p14295_p2 = por %p14294_p1, %p14293_p0 }
 0xdbd   : > { %p14289_p13 = pneg %p14288_p12 }
 0xdbf   : > { %p14296_p3 = pnand %p14295_p2, %p14289_p13 }
 0xe12   : > { %v9960_v27 = vpop.permute.xlu1 %9959 }
 0xe13   : > { %9968 = vst.msk [vmem:[#allocation7] sm:$0xf] %vm9241_vm1, %v9960_v27 }
 0xe15   : > { %v9962_v61 = vpop.permute.xlu0 %9961 }
 0xe16   : > { %9969 = vst.msk [vmem:[#allocation7 + $0x14] sm:$0xf] %vm9241_vm1, %v9962_v61  ;;  %v10004_v11 = vpop.permute.xlu1 %10003 }
 0xe17   : > { %10012 = vst.msk [vmem:[#allocation7 + $0x4] sm:$0xf] %vm9241_vm1, %v10004_v11 }
 0xe19   : > { %v10006_v7 = vpop.permute.xlu0 %10005 }
 0xe1a   : > { %10013 = vst.msk [vmem:[#allocation7 + $0x18] sm:$0xf] %vm9241_vm1, %v10006_v7  ;;  %v9964_v48 = vpop.permute.xlu1 %9963 }
 0xe1b   : > { %9970 = vst.msk [vmem:[#allocation7 + $0x28] sm:$0x7] %vm9244_vm5, %v9964_v48 }
 0xe1d   : > { %v10008_v49 = vpop.permute.xlu0 %10007  ;;  %v14237_v52 = vld [vmem:[#allocation7] ss:$20 sps:$4 sm:$0xff]  }
 0xe1e   : > { %10014 = vst.msk [vmem:[#allocation7 + $0x2c] sm:$0x7] %vm9244_vm5, %v10008_v49  ;;  %v10048_v55 = vpop.permute.xlu1 %10047 }
 0xe1f   : > { %10056 = vst.msk [vmem:[#allocation7 + $0x8] sm:$0xf] %vm9241_vm1, %v10048_v55 }
 0xe21   : > { %v10050_v46 = vpop.permute.xlu0 %10049  ;;  %v14239_v21 = vld [vmem:[#allocation7 + $0x4] ss:$20 sps:$4 sm:$0xff]  }
 0xe22   : > { %10057 = vst.msk [vmem:[#allocation7 + $0x1c] sm:$0xf] %vm9241_vm1, %v10050_v46  ;;  %v10092_v39 = vpop.permute.xlu1 %10091  ;;  %10499 = vmatprep.mubr.bf16.mxu0 %v14239_v21 }
 0xe23   : > { %10100 = vst.msk [vmem:[#allocation7 + $0xc] sm:$0xf] %vm9241_vm1, %v10092_v39  ;;  %10500 = vmatmul.mubr.bf16.vlgmr.msra.gmra.mrb[252].mxu0 %v14237_v52 }
 0xe24   : > { %13752 = vmatpush3.bf16.msra.mxu0 %v17199_v19 }
 0xe25   : > { %v10094_v5 = vpop.permute.xlu0 %10093  ;;  %v10128_v40 = vld [vmem:[#allocation7 + $0x28] sm:$0x77]  ;;  %13753 = vmatprep.subr.bf16.mxu0 %v14244_v13 }
 0xe26   : > { %10101 = vst.msk [vmem:[#allocation7 + $0x20] sm:$0xf] %vm9241_vm1, %v10094_v5  ;;  %v12140_v15 = vcombine.high %v10128_v40, %v10128_v40  ;;  %v10052_v59 = vpop.permute.xlu1 %10051  ;;  %v12139_v37 = vcombine.low %v10128_v40, %v10128_v40 }
 0xe27   : > { %10058 = vst.msk [vmem:[#allocation7 + $0x30] sm:$0x7] %vm9244_vm5, %v10052_v59 }
 0xe28   : > { %10507 = vmatprep.mubr.bf16.mxu0 %v12140_v15  ;;  %13754 = vmatpush3.bf16.msra.mxu0 %v14244_v13 }
 0xe29   : > { %v10096_v10 = vpop.permute.xlu0 %10095  ;;  %13755 = vmatprep.subr.bf16.mxu0 %v14249_v4  ;;  %v14252_v17 = vld [vmem:[#allocation7 + $0x8] ss:$20 sps:$4 sm:$0xff]  }
 0xe2a   : > { %10102 = vst.msk [vmem:[#allocation7 + $0x34] sm:$0x7] %vm9244_vm5, %v10096_v10 }
 0xe2b   : > { %10508 = vmatmul.mubr.bf16.gmra.mrb[0].mxu0 %v12139_v37 }
 0xe2c   : > { %13756 = vmatpush3.bf16.msra.mxu0 %v14249_v4  ;;  %13759 = vmatprep.mubr.msk.bf16.mxu0 %vm262_vm15, %v14251_v9 }
 0xe2d   : > { %v14254_v6 = vld [vmem:[#allocation7 + $0xc] ss:$20 sps:$4 sm:$0xff]   ;;  %13757 = vmatprep.subr.bf16.mxu0 %v14255_v3 }
 0xe2e   : > { %10547 = vmatprep.mubr.bf16.mxu1 %v14254_v6 }
 0xe2f   : > { %10548 = vmatmul.mubr.bf16.vlgmr.msra.gmra.mrb[212].mxu1 %v14252_v17 }
 0xe30   : > { %13758 = vmatpush3.bf16.msra.mxu0 %v14255_v3  ;;  %13772 = vmatpush3.bf16.msra.mxu1 %v14259_v38 }
 0xe31   : > { %v10129_v54 = vld [vmem:[#allocation7 + $0x30] sm:$0x77]  ;;  %13763 = vmatprep.subr.bf16.mxu0 %v14350_v36  ;;  %13773 = vmatprep.subr.bf16.mxu1 %v14350_v36 }
 0xe32   : > { %v12142_v25 = vcombine.high %v10129_v54, %v10129_v54  ;;  %v12141_v19 = vcombine.low %v10129_v54, %v10129_v54 }
 0xe33   : > { %13760 = vmatmul.mubr.msk.bf16.vlgmr.msra.gmra.mrb[4].mxu0 %vm262_vm15, %v14257_v8 }
 0xe34   : > { %10555 = vmatprep.mubr.bf16.mxu1 %v12142_v25  ;;  %13767 = vmatprep.mubr.msk.bf16.mxu0 %vm14359_vm4, %v14350_v36 }
 0xe35   : > { %13774 = vmatpush3.bf16.msra.mxu1 %v14260_v26 }
 0xe36   : > { %13775 = vmatprep.subr.bf16.mxu1 %v14350_v36 }
 0xe37   : > { %10556 = vmatmul.mubr.bf16.gmra.mrb[216].mxu1 %v12141_v19  ;;  %v14263_v19 = vld [vmem:[%s17410_s4 + $0x20] sm:$0xff]  }
 0xe38   : > { %13779 = vmatprep.mubr.msk.bf16.mxu1 %vm14359_vm4, %v14350_v36 }
 0xe39   : > { %13776 = vmatpush3.bf16.msra.mxu1 %v14261_v58 }
 0xe3a   : > { %13777 = vmatprep.subr.bf16.mxu1 %v14350_v36 }
 0xe3d   : > { %13778 = vmatpush3.bf16.msra.mxu1 %v14262_v29 }
 0xe3e   : > { %13783 = vmatprep.subr.bf16.mxu1 %v14350_v36 }
 0xef6   : > { %v13428_v23 = vpop.f32.mrb[252].mxu0 }
 0xef7   : > { %v13429_v33 = vpop.f32.mrb[253].mxu0 }
 0xef8   : > { %v13430_v47 = vadd.f32 %v13429_v33, %v13428_v23  ;;  %v13431_v31 = vpop.f32.mrb[254].mxu0  ;;  %v14264_v23 = vld [vmem:[%s17410_s4 + $0x28] sm:$0xff]   ;;  %v14265_v33 = vld [vmem:[%s17410_s4 + $0x30] sm:$0xff]  }
 0xef9   : > { %v13432_v62 = vpop.f32.mrb[255].mxu0 }
 0xefa   : > { %v13433_v35 = vadd.f32 %v13432_v62, %v13431_v31  ;;  %v14267_v31 = vld [vmem:[%s17410_s4 + $0x40] sm:$0xff]  }
 0xefe   : > { %v13434_v63 = vpop.f32.mrb[0].mxu0 }
 0xeff   : > { %v13435_v24 = vpop.f32.mrb[1].mxu0 }
 0xf00   : > { %v13436_v60 = vadd.f32 %v13435_v24, %v13434_v63  ;;  %v13437_v34 = vpop.f32.mrb[2].mxu0  ;;  %v14269_v63 = vld [vmem:[%s17410_s4 + $0x50] sm:$0xff]   ;;  %v14270_v24 = vld [vmem:[%s17410_s4 + $0x58] sm:$0xff]  }
 0xf01   : > { %v13438_v42 = vpop.f32.mrb[3].mxu0 }
 0xf02   : > { %v13456_v44 = vpop.f32.mrb[212].mxu1  ;;  %v14272_v42 = vld [vmem:[%s17410_s4 + $0x68] sm:$0xff]  }
 0xf03   : > { %v13457_v22 = vpop.f32.mrb[213].mxu1 }
 0xf04   : > { %v13458_v28 = vadd.f32 %v13457_v22, %v13456_v44  ;;  %v13459_v0 = vpop.f32.mrb[214].mxu1  ;;  %v14273_v44 = vld [vmem:[%s17410_s4 + $0x70] sm:$0xff]   ;;  %v14274_v22 = vld [vmem:[%s17410_s4 + $0x78] sm:$0xff]  }
 0xf05   : > { %v13460_v14 = vpop.f32.mrb[215].mxu1 }
 0xf06   : > { %v13461_v18 = vadd.f32 %v13460_v14, %v13459_v0  ;;  %v13761_v45 = vpop.f32.mrb[4].mxu0  ;;  %v10550_v51 = vadd.f32 %v13458_v28, %v13430_v47  ;;  %v14266_v47 = vld [vmem:[%s17410_s4 + $0x38] sm:$0xff]   ;;  %v10696_v0 = vld [vmem:[%s17409_s3 + $0xa] sm:$0x1] }
 0xf07   : > { %v10597_v12 = vpop.f32.mrb[5].mxu0 }
 0xf08   : > { %v10598_v43 = vadd.f32 %v10597_v12, %v10550_v51  ;;  %v13762_v41 = vpop.f32.mrb[6].mxu0  ;;  %v10553_v53 = vadd.f32 %v13461_v18, %v13433_v35  ;;  %v14268_v35 = vld [vmem:[%s17410_s4 + $0x48] sm:$0xff]  }
 0xf09   : > { %v10600_v57 = vpop.f32.mrb[7].mxu0 }
 0xf0a   : > { %v10617_v27 = vmul.f32 %v17105_v30, %v10598_v43  ;;  %v10601_v61 = vadd.f32 %v10600_v57, %v10553_v53  ;;  %v13462_v11 = vpop.f32.mrb[216].mxu1 }
 0xf0b   : > { %v13463_v7 = vpop.f32.mrb[217].mxu1 }
 0xf0c   : > { %v10624_v48 = vadd.f32 %v17110_v1, %v10617_v27  ;;  %v10618_v49 = vmul.f32 %v17105_v30, %v10601_v61  ;;  %v13464_v55 = vadd.f32 %v13463_v7, %v13462_v11  ;;  %v13465_v46 = vpop.f32.mrb[218].mxu1 }
 0xf0d   : > { %v13466_v52 = vpop.f32.mrb[219].mxu1 }
 0xf0e   : > { %v10627_v21 = vmax.f32 %v10624_v48, 0.0  ;;  %v10625_v13 = vadd.f32 %v17110_v1, %v10618_v49  ;;  %v10558_v39 = vadd.f32 %v13464_v55, %v13436_v60  ;;  %v14271_v60 = vld [vmem:[%s17410_s4 + $0x60] sm:$0xff]  }
 0xf10   : > { %v10630_v5 = vadd.f32 %v10627_v21, %v16961_v56  ;;  %v10628_v40 = vmax.f32 %v10625_v13, 0.0  ;;  %v10606_v15 = vadd.f32 %v13761_v45, %v10558_v39 }
 0xf12   : > { %v10633_v4 = vmax.f32 %v10630_v5, 0.0  ;;  %v10631_v59 = vadd.f32 %v10628_v40, %v16963_v50  ;;  %v10619_v10 = vmul.f32 %v17105_v30, %v10606_v15 }
 0xf14   : > { %v10636_v37 = vmul.f32 %v10633_v4, %v17116_v32  ;;  %v10634_v3 = vmax.f32 %v10631_v59, 0.0  ;;  %v10626_v9 = vadd.f32 %v17110_v1, %v10619_v10 }
 0xf16   : > { %10639 = vst.msk [vmem:[#allocation4 + $0x9] sm:$0xff] %vm262_vm15, %v10636_v37  ;;  %v10637_v17 = vmul.f32 %v10634_v3, %v17118_v20  ;;  %v10629_v6 = vmax.f32 %v10626_v9, 0.0 }
 0xf18   : > { %10640 = vst.msk [vmem:[#allocation4 + $0x11] sm:$0xff] %vm262_vm15, %v10637_v17  ;;  %v10632_v56 = vadd.f32 %v10629_v6, %v17159_v2  ;;  %v10642_v2 = vld [vmem:[%s17408_s2 + $0x108] sm:$0x3] }
 0xf1a   : > { %v10635_v8 = vmax.f32 %v10632_v56, 0.0 }
 0xf1c   : > { %v10638_v54 = vmul.f32 %v10635_v8, %v17150_v16 }
 0xf1d   : > { %v10643_v50 = vld [vmem:[#allocation4 + $0x9] sm:$0xff] }
 0xf1e   : > { %10641 = vst.msk [vmem:[#allocation4 + $0x19] sm:$0x3f] %vm9925_vm6, %v10638_v54 }
 0xf1f   : > { %v10644_v30 = vld [vmem:[#allocation4 + $0x11] sm:$0xff] }
 0xf20   : > { %v10646_v32 = vpack.c.bf16 %v10644_v30, %v10643_v50 }
 0xf22   : > { %13764 = vmatpush3.bf16.msra.mxu0 %v10646_v32 }
 0xf23   : > { %13765 = vmatprep.subr.bf16.mxu0 %v14350_v36 }
 0xf25   : > { %v10645_v1 = vld [vmem:[#allocation4 + $0x19] sm:$0x3f] }
 0xf26   : > { %v10647_v25 = vpack.c.bf16 %v10645_v1, %v10645_v1 }
 0xf28   : > { %v10654_v20 = vsel %vm10652_vm7, %v10647_v25, 0 }
 0xf29   : > { %13766 = vmatpush3.bf16.msra.mxu0 %v10654_v20 }
 0xf2c   : > { %13768 = vmatmul.mubr.msk.bf16.vlgmr.msra.gmra.mrb[8].mxu0 %vm10648_vm8, %v10642_v2 }
 0xfff   : > { %v10690_v16 = vpop.f32.mrb[8].mxu0 }
0x1000   : > { %v10697_v38 = vpack.c.bf16 %v10690_v16, %v10690_v16  ;;  %v13769_v26 = vpop.f32.mrb[9].mxu0 }
0x1001   : > { %v10693_v58 = vpop.f32.mrb[10].mxu0 }
0x1002   : > { %13780 = vmatmul.mubr.msk.bf16.vlgmr.msra.gmra.mrb[220].mxu1 %vm262_vm15, %v10697_v38  ;;  %v13770_v29 = vpop.f32.mrb[11].mxu0  ;;  %v10783_v62 = vshrl.u32 %v10697_v38, 16  ;;  %v10863_v34 = vrot.slane %v10697_v38, 1 }
0x1003   : > { %13784 = vmatpush3.bf16.msra.mxu1 %v14263_v19  ;;  %13791 = vmatprep.mubr.msk.bf16.mxu1 %vm14359_vm4, %v14350_v36 }
0x1004   : > { %13785 = vmatprep.subr.bf16.mxu1 %v14350_v36  ;;  %v10941_v28 = vrot.slane %v10783_v62, 1 }
0x1007   : > { %13786 = vmatpush3.bf16.msra.mxu1 %v14264_v23 }
0x1008   : > { %13787 = vmatprep.subr.bf16.mxu1 %v14350_v36 }
0x100b   : > { %13788 = vmatpush3.bf16.msra.mxu1 %v14265_v33 }
0x100c   : > { %13789 = vmatprep.subr.bf16.mxu1 %v14350_v36 }
0x100f   : > { %13790 = vmatpush3.bf16.msra.mxu1 %v14266_v47 }
0x1010   : > { %13795 = vmatprep.subr.bf16.mxu1 %v14350_v36 }
0x1012   : > { %13792 = vmatmul.mubr.msk.bf16.vlgmr.msra.gmra.mrb[220].mxu1 %vm262_vm15, %v10783_v62 }
0x1013   : > { %13796 = vmatpush3.bf16.msra.mxu1 %v14267_v31  ;;  %13803 = vmatprep.mubr.msk.bf16.mxu1 %vm14359_vm4, %v14350_v36 }
0x1014   : > { %13797 = vmatprep.subr.bf16.mxu1 %v14350_v36 }
0x1017   : > { %13798 = vmatpush3.bf16.msra.mxu1 %v14268_v35 }
0x1018   : > { %13799 = vmatprep.subr.bf16.mxu1 %v14350_v36 }
0x101b   : > { %13800 = vmatpush3.bf16.msra.mxu1 %v14269_v63 }
0x101c   : > { %13801 = vmatprep.subr.bf16.mxu1 %v14350_v36 }
0x101f   : > { %13802 = vmatpush3.bf16.msra.mxu1 %v14270_v24 }
0x1020   : > { %13807 = vmatprep.subr.bf16.mxu1 %v14350_v36 }
0x1022   : > { %13804 = vmatmul.mubr.msk.bf16.vlgmr.msra.gmra.mrb[220].mxu1 %vm262_vm15, %v10863_v34 }
0x1023   : > { %13808 = vmatpush3.bf16.msra.mxu1 %v14271_v60  ;;  %13815 = vmatprep.mubr.msk.bf16.mxu1 %vm14359_vm4, %v14350_v36 }
0x1024   : > { %13809 = vmatprep.subr.bf16.mxu1 %v14350_v36 }
0x1027   : > { %13810 = vmatpush3.bf16.msra.mxu1 %v14272_v42 }
0x1028   : > { %13811 = vmatprep.subr.bf16.mxu1 %v14350_v36 }
0x102b   : > { %13812 = vmatpush3.bf16.msra.mxu1 %v14273_v44 }
0x102c   : > { %13813 = vmatprep.subr.bf16.mxu1 %v14350_v36 }
0x102f   : > { %13814 = vmatpush3.bf16.msra.mxu1 %v14274_v22 }
0x1032   : > { %13816 = vmatmul.mubr.msk.bf16.vlgmr.msra.gmra.mrb[220].mxu1 %vm262_vm15, %v10941_v28 }
0x1105   : > { %v11003_v14 = vpop.f32.mrb[220].mxu1 }
0x1106   : > { %v13851_v18 = vadd.f32 %v11003_v14, %v10696_v0  ;;  %v13817_v45 = vpop.f32.mrb[221].mxu1 }
0x1107   : > { %v11006_v36 = vpop.f32.mrb[222].mxu1 }
0x1108   : > { %11010 = vst [vmem:[%s243_s15] sm:$0x1] %v13851_v18  ;;  %v13818_v51 = vpop.f32.mrb[223].mxu1 }
0x1109   : > { %14299 = shalt.err (!%p14296_p3)
}
0x110a   : > { %s14300_s19 = scalar_lea.hbm %s17364_s29, 16  ;;  %s14304_s20 = scalar_lea.hbm %s17412_s6, 32 }
0x110b   : > { %p14301_p4 = scmp.ne.s32.totalorder %s17364_s29, %s14300_s19  ;;  %p14305_p9 = scmp.lt.u32.totalorder %s17364_s29, %s17412_s6 }
0x110c   : > { %p14306_p10 = scmp.lt.u32.totalorder %s14304_s20, %s14300_s19  ;;  %p14308_p12 = scmp.lt.u32.totalorder %s14300_s19, %s17364_s29 }
0x110d   : > { %p14302_p7 = pnand %p14301_p4, %p14435_p5 }
0x110e   : > { %p14307_p11 = por %p14306_p10, %p14305_p9 }
0x110f   : > { %p14303_p8 = pneg %p14302_p7 }
0x1110   : > { %p14309_p13 = por %p14308_p12, %p14307_p11 }
0x1112   : > { %p14310_p0 = pnand %p14309_p13, %p14303_p8 }
0x1114   : > { %14313 = shalt.err (!%p14310_p0)
}
0x1115   : > { %13865 = dma.vmem_to_hbm [thread:$0]  (%p14435_p5), %s17366_s13, 16, %s17364_s29, %s11012_s9  }
0x1116 PF: > { %p13871_p1 = scmp.ge.s32.totalorder %s14348_s24, 2  ;;  %s11036_s15 = sand.u32 1, %s14336_s21  }
0x1117   : > { %s11037_s14 = scalar_lea.sflag [#allocation9], %s11036_s15 }
0x1118   : > { %p13868_p2 = pnand %p13871_p1, %p14439_p6 }
0x111a   : > { %14331 = dma.done.wait (!%p13868_p2), %s11037_s14, 16  }
0x111b   : > { %14333 = vsyncadd (!%p13868_p2), %s11037_s14, 4294967280  ;;  %p16_p3 = scmp.ge.s32.totalorder %s14422_s27, 4   ;;  %s17415_s21 = smov %s14340_s22 }
0x111c   : > { %s17416_s22 = smov %s14344_s23  ;;  %s17417_s23 = smov %s14433_s30 }
0x111d   : > { %s17418_s24 = smov %s14422_s27  ;;  %18 = sbr.rel (!%p16_p3) target bundleno = 3 (0x3), region = 82 }
0x1124   :  { %11041 = vsyncpa [#allocation9], 1 }
0x1125   :  { %11043 = vsyncpa [#allocation9 + $0x1], 1 }

</bundles_post_ra>
